<compile_context>
chip_gen: v5e
topology: v5e:2x2
jax: 0.10.0
libtpu: 0.0.40
codegen_flags: <defaults>
</compile_context>

<pallas_src>
import functools

import jax
import jax.numpy as jnp
from jax.experimental import pallas as pl
from jax.experimental.pallas import tpu as pltpu


# --------------------------- Model configuration --------------------------- #
INPUT_SIZE = 314
NUM_CLASSES = 67
HIDDEN_SIZES = [512, 1024, 256, 128]


def _round_up(v: int, m: int) -> int:
    return (v + m - 1) // m * m


def _cdiv(a: int, b: int) -> int:
    return (a + b - 1) // b


# ------------------------------ Pallas kernel ------------------------------ #
def _fused_mlp_kernel(x_ref, *refs):
    """Fused MLP: (Linear + ReLU) x (L-1), then Linear.

    refs = (w1, b1, w2, b2, ..., wL, bL, out_ref).  Weights are bf16
    (MXU-native operands), biases are f32; matmul accumulation, bias add and
    ReLU all happen in f32.  Intermediates never leave VMEM/vregs.
    """
    out_ref = refs[-1]
    param_refs = refs[:-1]
    n_layers = len(param_refs) // 2

    h = x_ref[...]                                   # f32 activations
    for l in range(n_layers):
        w = param_refs[2 * l][...]                   # bf16 (Kp, Np)
        b = param_refs[2 * l + 1][...]               # f32  (1, Np) -> row broadcast
        h = jnp.dot(h.astype(jnp.bfloat16), w,
                    preferred_element_type=jnp.float32) + b
        if l < n_layers - 1:
            h = jnp.maximum(h, 0.0)
    out_ref[...] = h.astype(out_ref.dtype)


# --------------------------- Parameter handling ----------------------------- #
def init_params(key):
    """Deterministic init mimicking nn.Linear defaults:
    U(-1/sqrt(fan_in), 1/sqrt(fan_in)) for weight and bias.
    Weights stored as (in_features, out_features) so x @ W == x @ torch_W.T."""
    dims = [INPUT_SIZE] + HIDDEN_SIZES + [NUM_CLASSES]
    params = []
    for fan_in, fan_out in zip(dims[:-1], dims[1:]):
        kw, kb, key = jax.random.split(key, 3)
        bound = 1.0 / (fan_in ** 0.5)
        w = jax.random.uniform(kw, (fan_in, fan_out), jnp.float32,
                               minval=-bound, maxval=bound)
        b = jax.random.uniform(kb, (fan_out,), jnp.float32,
                               minval=-bound, maxval=bound)
        params.append((w, b))
    return params


def prepare_params(params):
    """One-time pad to lane-aligned shapes + cast weights to bf16 (MXU-native).
    Done at init, NOT on the forward path.  Zero-padding keeps the math exact;
    biases stay f32 so the bias add / ReLU path is full precision."""
    padded = []
    for w, b in params:
        K, N = w.shape
        Kp, Np = _round_up(K, 128), _round_up(N, 128)
        wp = jnp.pad(w, ((0, Kp - K), (0, Np - N))).astype(jnp.bfloat16)
        bp = jnp.pad(b, ((0, Np - N),)).reshape(1, Np).astype(jnp.float32)
        padded.append((wp, bp))
    return padded


# -------------------------------- Forward ----------------------------------- #
def fcnn_forward(padded_params, x, *, single_buffer_weights=True):
    """Fused forward pass. x: (M, INPUT_SIZE) float32 -> (M, NUM_CLASSES)."""
    M, K = x.shape
    Kp0 = padded_params[0][0].shape[0]
    Np_last = padded_params[-1][0].shape[1]

    # Batch (M) tiling:
    #   * M < 128: single sublane-aligned tile (latency path, unchanged).
    #   * M >= 128: target 256-512 row tiles (amortizes ~0.35 us/step overhead,
    #     fully feeds the 256x256 MXU on v6e/v7x), capped at ceil(M/2) rounded
    #     to 128 so the "parallel" grid keeps >= 2 steps -> both v7x TCs busy.
    if M >= 128:
        TM = min(512, _round_up(_cdiv(M, 2), 128))
        Mp = _round_up(M, TM)
    else:
        TM = _round_up(M, 8)
        Mp = TM

    xp = jnp.pad(x, ((0, Mp - M), (0, Kp0 - K)))

    # Weights/biases: constant index_map -> DMA'd to VMEM once, reused every
    # grid step.  Buffered(1): no point double-buffering constant operands.
    w_spec_kwargs = (
        dict(pipeline_mode=pl.Buffered(1)) if single_buffer_weights else {})

    in_specs = [pl.BlockSpec((TM, Kp0), lambda i: (i, 0))]
    flat_params = []
    for wp, bp in padded_params:
        in_specs.append(pl.BlockSpec(wp.shape, lambda i: (0, 0), **w_spec_kwargs))
        in_specs.append(pl.BlockSpec(bp.shape, lambda i: (0, 0), **w_spec_kwargs))
        flat_params.append(wp)
        flat_params.append(bp)

    out_spec = pl.BlockSpec((TM, Np_last), lambda i: (i, 0))

    # Explicit VMEM budget, clamped to [32, 48] MiB (48 MiB keeps v7x's
    # 64 MiB-per-TC physical ceiling safe even as TM grows).
    weight_bufs = 1 if single_buffer_weights else 2
    weight_bytes = sum(int(w.size) * w.dtype.itemsize + int(b.size) * b.dtype.itemsize
                       for w, b in padded_params)
    max_width = max(w.shape[1] for w, _ in padded_params)       # widest layer (1024)
    budget = (weight_bufs * weight_bytes                        # resident params
              + 2 * TM * (Kp0 + Np_last) * 4                    # double-buffered x/out tiles
              + 4 * TM * max_width * 4)                         # staged f32 intermediates
    vmem_limit = int(min(48 * 1024 * 1024, max(32 * 1024 * 1024, 2 * budget)))

    flops = 2 * Mp * sum(w.shape[0] * w.shape[1] for w, _ in padded_params)
    bytes_accessed = 4 * (Mp * Kp0 + Mp * Np_last) + weight_bytes

    out = pl.pallas_call(
        _fused_mlp_kernel,
        out_shape=jax.ShapeDtypeStruct((Mp, Np_last), x.dtype),
        grid=(Mp // TM,),
        in_specs=in_specs,
        out_specs=out_spec,
        compiler_params=pltpu.CompilerParams(
            dimension_semantics=("parallel",),
            vmem_limit_bytes=vmem_limit,
        ),
        cost_estimate=pl.CostEstimate(
            flops=int(flops), transcendentals=0, bytes_accessed=int(bytes_accessed)),
    )(xp, *flat_params)

    # Single slice at the very end (padded rows/columns are exact zeros).
    return out[:M, :NUM_CLASSES]


# ------------------------------ References ---------------------------------- #
def fcnn_forward_ref_f32(params, x):
    """Pure-f32 JAX reference (uses the unpadded f32 params)."""
    n_layers = len(params)
    for idx, (w, b) in enumerate(params):
        x = x @ w + b
        if idx < n_layers - 1:
            x = jnp.maximum(x, 0.0)
    return x


def fcnn_forward_ref_bf16(params, x):
    """Pure-JAX reference matching the kernel's mixed precision exactly:
    bf16 operands, f32 MXU accumulation, f32 bias add / ReLU."""
    n_layers = len(params)
    h = x
    for idx, (w, b) in enumerate(params):
        h = jnp.dot(h.astype(jnp.bfloat16), w.astype(jnp.bfloat16),
                    preferred_element_type=jnp.float32) + b
        if idx < n_layers - 1:
            h = jnp.maximum(h, 0.0)
    return h


# ---------------------------------- Main ------------------------------------ #
if __name__ == "__main__":
    key = jax.random.PRNGKey(0)
    k_params, k_x1, k_x2 = jax.random.split(key, 3)

    params = init_params(k_params)
    padded_params = prepare_params(params)   # one-time pad + bf16 cast

    def make_fwd(single_buffer_weights):
        return jax.jit(functools.partial(
            fcnn_forward, single_buffer_weights=single_buffer_weights))

    fwd = make_fwd(True)

    # 1) Small batch (latency path, single grid step).
    x_small = jax.random.normal(k_x1, (8, INPUT_SIZE), dtype=jnp.float32)
    try:
        out_small = jax.block_until_ready(fwd(padded_params, x_small))
    except Exception:
        # TODO(synk): this jax version rejects pl.Buffered(1) for constant
        # inputs; fall back to default double-buffered weight specs
        # (semantics identical, slightly more VMEM).
        fwd = make_fwd(False)
        out_small = jax.block_until_ready(fwd(padded_params, x_small))

    ref_small_mx = jax.block_until_ready(fcnn_forward_ref_bf16(params, x_small))
    ref_small_f32 = jax.block_until_ready(fcnn_forward_ref_f32(params, x_small))
    assert out_small.shape == (8, NUM_CLASSES), out_small.shape
    assert jnp.allclose(out_small, ref_small_mx, atol=2e-3, rtol=2e-3), (
        float(jnp.max(jnp.abs(out_small - ref_small_mx))))
    assert jnp.allclose(out_small, ref_small_f32, atol=3e-2, rtol=3e-2), (
        float(jnp.max(jnp.abs(out_small - ref_small_f32))))

    # 2) Larger batch: TM=256, Mp=512 -> 2 "parallel" grid steps
    #    (amortized step overhead, both v7x TensorCores engaged).
    x_big = jax.random.normal(k_x2, (300, INPUT_SIZE), dtype=jnp.float32)
    out_big = jax.block_until_ready(fwd(padded_params, x_big))
    ref_big_mx = jax.block_until_ready(fcnn_forward_ref_bf16(params, x_big))
    ref_big_f32 = jax.block_until_ready(fcnn_forward_ref_f32(params, x_big))
    assert out_big.shape == (300, NUM_CLASSES), out_big.shape
    assert jnp.allclose(out_big, ref_big_mx, atol=2e-3, rtol=2e-3), (
        float(jnp.max(jnp.abs(out_big - ref_big_mx))))
    assert jnp.allclose(out_big, ref_big_f32, atol=3e-2, rtol=3e-2), (
        float(jnp.max(jnp.abs(out_big - ref_big_f32))))

    print("KERNEL_OK")
</pallas_src>

<mosaic_0001>
module attributes {stable_mosaic.version = 11 : i64} {
  func.func @_fused_mlp_kernel(%arg0: i32, %arg1: memref<8x384xf32, #tpu.memory_space<vmem>>, %arg2: memref<384x512xbf16, #tpu.memory_space<vmem>>, %arg3: memref<1x512xf32, #tpu.memory_space<vmem>>, %arg4: memref<512x1024xbf16, #tpu.memory_space<vmem>>, %arg5: memref<1x1024xf32, #tpu.memory_space<vmem>>, %arg6: memref<1024x256xbf16, #tpu.memory_space<vmem>>, %arg7: memref<1x256xf32, #tpu.memory_space<vmem>>, %arg8: memref<256x128xbf16, #tpu.memory_space<vmem>>, %arg9: memref<1x128xf32, #tpu.memory_space<vmem>>, %arg10: memref<128x128xbf16, #tpu.memory_space<vmem>>, %arg11: memref<1x128xf32, #tpu.memory_space<vmem>>, %arg12: memref<8x128xf32, #tpu.memory_space<vmem>>) attributes {dimension_semantics = [#tpu.dimension_semantics<parallel>], iteration_bounds = array<i64: 1>, scalar_prefetch = 0 : i64, scratch_operands = 0 : i64, tpu.core_type = #tpu.core_type<tc>, window_params = [{transform_indices = @transform_0, window_bounds = array<i64: 8, 384>}, {pipeline_mode = #tpu.pipeline_mode<synchronous>, transform_indices = @transform_1, window_bounds = array<i64: 384, 512>}, {pipeline_mode = #tpu.pipeline_mode<synchronous>, transform_indices = @transform_2, window_bounds = array<i64: 1, 512>}, {pipeline_mode = #tpu.pipeline_mode<synchronous>, transform_indices = @transform_3, window_bounds = array<i64: 512, 1024>}, {pipeline_mode = #tpu.pipeline_mode<synchronous>, transform_indices = @transform_4, window_bounds = array<i64: 1, 1024>}, {pipeline_mode = #tpu.pipeline_mode<synchronous>, transform_indices = @transform_5, window_bounds = array<i64: 1024, 256>}, {pipeline_mode = #tpu.pipeline_mode<synchronous>, transform_indices = @transform_6, window_bounds = array<i64: 1, 256>}, {pipeline_mode = #tpu.pipeline_mode<synchronous>, transform_indices = @transform_7, window_bounds = array<i64: 256, 128>}, {pipeline_mode = #tpu.pipeline_mode<synchronous>, transform_indices = @transform_8, window_bounds = array<i64: 1, 128>}, {pipeline_mode = #tpu.pipeline_mode<synchronous>, transform_indices = @transform_9, window_bounds = array<i64: 128, 128>}, {pipeline_mode = #tpu.pipeline_mode<synchronous>, transform_indices = @transform_10, window_bounds = array<i64: 1, 128>}, {transform_indices = @transform_11, window_bounds = array<i64: 8, 128>}]} {
    %c0 = arith.constant 0 : index
    %c0_0 = arith.constant 0 : index
    %0 = vector.load %arg1[%c0, %c0_0] : memref<8x384xf32, #tpu.memory_space<vmem>>, vector<8x384xf32>
    %c0_1 = arith.constant 0 : index
    %c0_2 = arith.constant 0 : index
    %1 = vector.load %arg2[%c0_1, %c0_2] : memref<384x512xbf16, #tpu.memory_space<vmem>>, vector<384x512xbf16>
    %c0_3 = arith.constant 0 : index
    %c0_4 = arith.constant 0 : index
    %2 = vector.load %arg3[%c0_3, %c0_4] : memref<1x512xf32, #tpu.memory_space<vmem>>, vector<1x512xf32>
    %3 = arith.truncf %0 : vector<8x384xf32> to vector<8x384xbf16>
    %cst = arith.constant dense<0.000000e+00> : vector<8x512xf32>
    %4 = tpu.matmul %3, %1, %cst {dimension_numbers = #tpu.dot_dimension_numbers<[1], [0], [0], [1], [0, 0, 1, 1], [], []>} : vector<8x384xbf16>, vector<384x512xbf16>, vector<8x512xf32> -> vector<8x512xf32>
    %5 = vector.broadcast %2 : vector<1x512xf32> to vector<8x512xf32>
    %6 = arith.addf %4, %5 : vector<8x512xf32>
    %cst_5 = arith.constant 0.000000e+00 : f32
    %7 = vector.broadcast %cst_5 : f32 to vector<8x512xf32>
    %8 = arith.maximumf %6, %7 : vector<8x512xf32>
    %c0_6 = arith.constant 0 : index
    %c0_7 = arith.constant 0 : index
    %9 = vector.load %arg4[%c0_6, %c0_7] : memref<512x1024xbf16, #tpu.memory_space<vmem>>, vector<512x1024xbf16>
    %c0_8 = arith.constant 0 : index
    %c0_9 = arith.constant 0 : index
    %10 = vector.load %arg5[%c0_8, %c0_9] : memref<1x1024xf32, #tpu.memory_space<vmem>>, vector<1x1024xf32>
    %11 = arith.truncf %8 : vector<8x512xf32> to vector<8x512xbf16>
    %cst_10 = arith.constant dense<0.000000e+00> : vector<8x1024xf32>
    %12 = tpu.matmul %11, %9, %cst_10 {dimension_numbers = #tpu.dot_dimension_numbers<[1], [0], [0], [1], [0, 0, 1, 1], [], []>} : vector<8x512xbf16>, vector<512x1024xbf16>, vector<8x1024xf32> -> vector<8x1024xf32>
    %13 = vector.broadcast %10 : vector<1x1024xf32> to vector<8x1024xf32>
    %14 = arith.addf %12, %13 : vector<8x1024xf32>
    %cst_11 = arith.constant 0.000000e+00 : f32
    %15 = vector.broadcast %cst_11 : f32 to vector<8x1024xf32>
    %16 = arith.maximumf %14, %15 : vector<8x1024xf32>
    %c0_12 = arith.constant 0 : index
    %c0_13 = arith.constant 0 : index
    %17 = vector.load %arg6[%c0_12, %c0_13] : memref<1024x256xbf16, #tpu.memory_space<vmem>>, vector<1024x256xbf16>
    %c0_14 = arith.constant 0 : index
    %c0_15 = arith.constant 0 : index
    %18 = vector.load %arg7[%c0_14, %c0_15] : memref<1x256xf32, #tpu.memory_space<vmem>>, vector<1x256xf32>
    %19 = arith.truncf %16 : vector<8x1024xf32> to vector<8x1024xbf16>
    %cst_16 = arith.constant dense<0.000000e+00> : vector<8x256xf32>
    %20 = tpu.matmul %19, %17, %cst_16 {dimension_numbers = #tpu.dot_dimension_numbers<[1], [0], [0], [1], [0, 0, 1, 1], [], []>} : vector<8x1024xbf16>, vector<1024x256xbf16>, vector<8x256xf32> -> vector<8x256xf32>
    %21 = vector.broadcast %18 : vector<1x256xf32> to vector<8x256xf32>
    %22 = arith.addf %20, %21 : vector<8x256xf32>
    %cst_17 = arith.constant 0.000000e+00 : f32
    %23 = vector.broadcast %cst_17 : f32 to vector<8x256xf32>
    %24 = arith.maximumf %22, %23 : vector<8x256xf32>
    %c0_18 = arith.constant 0 : index
    %c0_19 = arith.constant 0 : index
    %25 = vector.load %arg8[%c0_18, %c0_19] : memref<256x128xbf16, #tpu.memory_space<vmem>>, vector<256x128xbf16>
    %c0_20 = arith.constant 0 : index
    %c0_21 = arith.constant 0 : index
    %26 = vector.load %arg9[%c0_20, %c0_21] : memref<1x128xf32, #tpu.memory_space<vmem>>, vector<1x128xf32>
    %27 = arith.truncf %24 : vector<8x256xf32> to vector<8x256xbf16>
    %cst_22 = arith.constant dense<0.000000e+00> : vector<8x128xf32>
    %28 = tpu.matmul %27, %25, %cst_22 {dimension_numbers = #tpu.dot_dimension_numbers<[1], [0], [0], [1], [0, 0, 1, 1], [], []>} : vector<8x256xbf16>, vector<256x128xbf16>, vector<8x128xf32> -> vector<8x128xf32>
    %29 = vector.broadcast %26 : vector<1x128xf32> to vector<8x128xf32>
    %30 = arith.addf %28, %29 : vector<8x128xf32>
    %cst_23 = arith.constant 0.000000e+00 : f32
    %31 = vector.broadcast %cst_23 : f32 to vector<8x128xf32>
    %32 = arith.maximumf %30, %31 : vector<8x128xf32>
    %c0_24 = arith.constant 0 : index
    %c0_25 = arith.constant 0 : index
    %33 = vector.load %arg10[%c0_24, %c0_25] : memref<128x128xbf16, #tpu.memory_space<vmem>>, vector<128x128xbf16>
    %c0_26 = arith.constant 0 : index
    %c0_27 = arith.constant 0 : index
    %34 = vector.load %arg11[%c0_26, %c0_27] : memref<1x128xf32, #tpu.memory_space<vmem>>, vector<1x128xf32>
    %35 = arith.truncf %32 : vector<8x128xf32> to vector<8x128xbf16>
    %cst_28 = arith.constant dense<0.000000e+00> : vector<8x128xf32>
    %36 = tpu.matmul %35, %33, %cst_28 {dimension_numbers = #tpu.dot_dimension_numbers<[1], [0], [0], [1], [0, 0, 1, 1], [], []>} : vector<8x128xbf16>, vector<128x128xbf16>, vector<8x128xf32> -> vector<8x128xf32>
    %37 = vector.broadcast %34 : vector<1x128xf32> to vector<8x128xf32>
    %38 = arith.addf %36, %37 : vector<8x128xf32>
    %c0_29 = arith.constant 0 : index
    %c0_30 = arith.constant 0 : index
    %39 = vector.load %arg12[%c0_29, %c0_30] : memref<8x128xf32, #tpu.memory_space<vmem>>, vector<8x128xf32>
    tpu.vector_store %arg12[%c0_29, %c0_30], %38 {strides = array<i32>} : memref<8x128xf32, #tpu.memory_space<vmem>>, vector<8x128xf32>,
    return
  }
  func.func @transform_0(%arg0: i32) -> (i32, i32) {
    %c0_i32 = arith.constant 0 : i32
    %c0_i32_0 = arith.constant 0 : i32
    return %arg0, %c0_i32 : i32, i32
  }
  func.func @transform_1(%arg0: i32) -> (i32, i32) {
    %c0_i32 = arith.constant 0 : i32
    %c0_i32_0 = arith.constant 0 : i32
    %c0_i32_1 = arith.constant 0 : i32
    return %c0_i32, %c0_i32_0 : i32, i32
  }
  func.func @transform_2(%arg0: i32) -> (i32, i32) {
    %c0_i32 = arith.constant 0 : i32
    %c0_i32_0 = arith.constant 0 : i32
    %c0_i32_1 = arith.constant 0 : i32
    return %c0_i32, %c0_i32_0 : i32, i32
  }
  func.func @transform_3(%arg0: i32) -> (i32, i32) {
    %c0_i32 = arith.constant 0 : i32
    %c0_i32_0 = arith.constant 0 : i32
    %c0_i32_1 = arith.constant 0 : i32
    return %c0_i32, %c0_i32_0 : i32, i32
  }
  func.func @transform_4(%arg0: i32) -> (i32, i32) {
    %c0_i32 = arith.constant 0 : i32
    %c0_i32_0 = arith.constant 0 : i32
    %c0_i32_1 = arith.constant 0 : i32
    return %c0_i32, %c0_i32_0 : i32, i32
  }
  func.func @transform_5(%arg0: i32) -> (i32, i32) {
    %c0_i32 = arith.constant 0 : i32
    %c0_i32_0 = arith.constant 0 : i32
    %c0_i32_1 = arith.constant 0 : i32
    return %c0_i32, %c0_i32_0 : i32, i32
  }
  func.func @transform_6(%arg0: i32) -> (i32, i32) {
    %c0_i32 = arith.constant 0 : i32
    %c0_i32_0 = arith.constant 0 : i32
    %c0_i32_1 = arith.constant 0 : i32
    return %c0_i32, %c0_i32_0 : i32, i32
  }
  func.func @transform_7(%arg0: i32) -> (i32, i32) {
    %c0_i32 = arith.constant 0 : i32
    %c0_i32_0 = arith.constant 0 : i32
    %c0_i32_1 = arith.constant 0 : i32
    return %c0_i32, %c0_i32_0 : i32, i32
  }
  func.func @transform_8(%arg0: i32) -> (i32, i32) {
    %c0_i32 = arith.constant 0 : i32
    %c0_i32_0 = arith.constant 0 : i32
    %c0_i32_1 = arith.constant 0 : i32
    return %c0_i32, %c0_i32_0 : i32, i32
  }
  func.func @transform_9(%arg0: i32) -> (i32, i32) {
    %c0_i32 = arith.constant 0 : i32
    %c0_i32_0 = arith.constant 0 : i32
    %c0_i32_1 = arith.constant 0 : i32
    return %c0_i32, %c0_i32_0 : i32, i32
  }
  func.func @transform_10(%arg0: i32) -> (i32, i32) {
    %c0_i32 = arith.constant 0 : i32
    %c0_i32_0 = arith.constant 0 : i32
    %c0_i32_1 = arith.constant 0 : i32
    return %c0_i32, %c0_i32_0 : i32, i32
  }
  func.func @transform_11(%arg0: i32) -> (i32, i32) {
    %c0_i32 = arith.constant 0 : i32
    %c0_i32_0 = arith.constant 0 : i32
    return %arg0, %c0_i32 : i32, i32
  }
}

module attributes {stable_mosaic.version = 11 : i64} {
  func.func @_fused_mlp_kernel(%arg0: i32, %arg1: memref<8x384xf32, #tpu.memory_space<vmem>>, %arg2: memref<384x512xbf16, #tpu.memory_space<vmem>>, %arg3: memref<1x512xf32, #tpu.memory_space<vmem>>, %arg4: memref<512x1024xbf16, #tpu.memory_space<vmem>>, %arg5: memref<1x1024xf32, #tpu.memory_space<vmem>>, %arg6: memref<1024x256xbf16, #tpu.memory_space<vmem>>, %arg7: memref<1x256xf32, #tpu.memory_space<vmem>>, %arg8: memref<256x128xbf16, #tpu.memory_space<vmem>>, %arg9: memref<1x128xf32, #tpu.memory_space<vmem>>, %arg10: memref<128x128xbf16, #tpu.memory_space<vmem>>, %arg11: memref<1x128xf32, #tpu.memory_space<vmem>>, %arg12: memref<8x128xf32, #tpu.memory_space<vmem>>) attributes {dimension_semantics = [#tpu.dimension_semantics<parallel>], iteration_bounds = array<i64: 1>, scalar_prefetch = 0 : i64, scratch_operands = 0 : i64, tpu.core_type = #tpu.core_type<tc>, window_params = [{transform_indices = @transform_0, window_bounds = array<i64: 8, 384>}, {pipeline_mode = #tpu.pipeline_mode<synchronous>, transform_indices = @transform_1, window_bounds = array<i64: 384, 512>}, {pipeline_mode = #tpu.pipeline_mode<synchronous>, transform_indices = @transform_2, window_bounds = array<i64: 1, 512>}, {pipeline_mode = #tpu.pipeline_mode<synchronous>, transform_indices = @transform_3, window_bounds = array<i64: 512, 1024>}, {pipeline_mode = #tpu.pipeline_mode<synchronous>, transform_indices = @transform_4, window_bounds = array<i64: 1, 1024>}, {pipeline_mode = #tpu.pipeline_mode<synchronous>, transform_indices = @transform_5, window_bounds = array<i64: 1024, 256>}, {pipeline_mode = #tpu.pipeline_mode<synchronous>, transform_indices = @transform_6, window_bounds = array<i64: 1, 256>}, {pipeline_mode = #tpu.pipeline_mode<synchronous>, transform_indices = @transform_7, window_bounds = array<i64: 256, 128>}, {pipeline_mode = #tpu.pipeline_mode<synchronous>, transform_indices = @transform_8, window_bounds = array<i64: 1, 128>}, {pipeline_mode = #tpu.pipeline_mode<synchronous>, transform_indices = @transform_9, window_bounds = array<i64: 128, 128>}, {pipeline_mode = #tpu.pipeline_mode<synchronous>, transform_indices = @transform_10, window_bounds = array<i64: 1, 128>}, {transform_indices = @transform_11, window_bounds = array<i64: 8, 128>}]} {
    %c0 = arith.constant 0 : index
    %c0_0 = arith.constant 0 : index
    %0 = vector.load %arg1[%c0, %c0_0] : memref<8x384xf32, #tpu.memory_space<vmem>>, vector<8x384xf32>
    %c0_1 = arith.constant 0 : index
    %c0_2 = arith.constant 0 : index
    %1 = vector.load %arg2[%c0_1, %c0_2] : memref<384x512xbf16, #tpu.memory_space<vmem>>, vector<384x512xbf16>
    %c0_3 = arith.constant 0 : index
    %c0_4 = arith.constant 0 : index
    %2 = vector.load %arg3[%c0_3, %c0_4] : memref<1x512xf32, #tpu.memory_space<vmem>>, vector<1x512xf32>
    %3 = arith.truncf %0 : vector<8x384xf32> to vector<8x384xbf16>
    %cst = arith.constant dense<0.000000e+00> : vector<8x512xf32>
    %4 = tpu.matmul %3, %1, %cst {dimension_numbers = #tpu.dot_dimension_numbers<[1], [0], [0], [1], [0, 0, 1, 1], [], []>} : vector<8x384xbf16>, vector<384x512xbf16>, vector<8x512xf32> -> vector<8x512xf32>
    %5 = vector.broadcast %2 : vector<1x512xf32> to vector<8x512xf32>
    %6 = arith.addf %4, %5 : vector<8x512xf32>
    %cst_5 = arith.constant 0.000000e+00 : f32
    %7 = vector.broadcast %cst_5 : f32 to vector<8x512xf32>
    %8 = arith.maximumf %6, %7 : vector<8x512xf32>
    %c0_6 = arith.constant 0 : index
    %c0_7 = arith.constant 0 : index
    %9 = vector.load %arg4[%c0_6, %c0_7] : memref<512x1024xbf16, #tpu.memory_space<vmem>>, vector<512x1024xbf16>
    %c0_8 = arith.constant 0 : index
    %c0_9 = arith.constant 0 : index
    %10 = vector.load %arg5[%c0_8, %c0_9] : memref<1x1024xf32, #tpu.memory_space<vmem>>, vector<1x1024xf32>
    %11 = arith.truncf %8 : vector<8x512xf32> to vector<8x512xbf16>
    %cst_10 = arith.constant dense<0.000000e+00> : vector<8x1024xf32>
    %12 = tpu.matmul %11, %9, %cst_10 {dimension_numbers = #tpu.dot_dimension_numbers<[1], [0], [0], [1], [0, 0, 1, 1], [], []>} : vector<8x512xbf16>, vector<512x1024xbf16>, vector<8x1024xf32> -> vector<8x1024xf32>
    %13 = vector.broadcast %10 : vector<1x1024xf32> to vector<8x1024xf32>
    %14 = arith.addf %12, %13 : vector<8x1024xf32>
    %cst_11 = arith.constant 0.000000e+00 : f32
    %15 = vector.broadcast %cst_11 : f32 to vector<8x1024xf32>
    %16 = arith.maximumf %14, %15 : vector<8x1024xf32>
    %c0_12 = arith.constant 0 : index
    %c0_13 = arith.constant 0 : index
    %17 = vector.load %arg6[%c0_12, %c0_13] : memref<1024x256xbf16, #tpu.memory_space<vmem>>, vector<1024x256xbf16>
    %c0_14 = arith.constant 0 : index
    %c0_15 = arith.constant 0 : index
    %18 = vector.load %arg7[%c0_14, %c0_15] : memref<1x256xf32, #tpu.memory_space<vmem>>, vector<1x256xf32>
    %19 = arith.truncf %16 : vector<8x1024xf32> to vector<8x1024xbf16>
    %cst_16 = arith.constant dense<0.000000e+00> : vector<8x256xf32>
    %20 = tpu.matmul %19, %17, %cst_16 {dimension_numbers = #tpu.dot_dimension_numbers<[1], [0], [0], [1], [0, 0, 1, 1], [], []>} : vector<8x1024xbf16>, vector<1024x256xbf16>, vector<8x256xf32> -> vector<8x256xf32>
    %21 = vector.broadcast %18 : vector<1x256xf32> to vector<8x256xf32>
    %22 = arith.addf %20, %21 : vector<8x256xf32>
    %cst_17 = arith.constant 0.000000e+00 : f32
    %23 = vector.broadcast %cst_17 : f32 to vector<8x256xf32>
    %24 = arith.maximumf %22, %23 : vector<8x256xf32>
    %c0_18 = arith.constant 0 : index
    %c0_19 = arith.constant 0 : index
    %25 = vector.load %arg8[%c0_18, %c0_19] : memref<256x128xbf16, #tpu.memory_space<vmem>>, vector<256x128xbf16>
    %c0_20 = arith.constant 0 : index
    %c0_21 = arith.constant 0 : index
    %26 = vector.load %arg9[%c0_20, %c0_21] : memref<1x128xf32, #tpu.memory_space<vmem>>, vector<1x128xf32>
    %27 = arith.truncf %24 : vector<8x256xf32> to vector<8x256xbf16>
    %cst_22 = arith.constant dense<0.000000e+00> : vector<8x128xf32>
    %28 = tpu.matmul %27, %25, %cst_22 {dimension_numbers = #tpu.dot_dimension_numbers<[1], [0], [0], [1], [0, 0, 1, 1], [], []>} : vector<8x256xbf16>, vector<256x128xbf16>, vector<8x128xf32> -> vector<8x128xf32>
    %29 = vector.broadcast %26 : vector<1x128xf32> to vector<8x128xf32>
    %30 = arith.addf %28, %29 : vector<8x128xf32>
    %cst_23 = arith.constant 0.000000e+00 : f32
    %31 = vector.broadcast %cst_23 : f32 to vector<8x128xf32>
    %32 = arith.maximumf %30, %31 : vector<8x128xf32>
    %c0_24 = arith.constant 0 : index
    %c0_25 = arith.constant 0 : index
    %33 = vector.load %arg10[%c0_24, %c0_25] : memref<128x128xbf16, #tpu.memory_space<vmem>>, vector<128x128xbf16>
    %c0_26 = arith.constant 0 : index
    %c0_27 = arith.constant 0 : index
    %34 = vector.load %arg11[%c0_26, %c0_27] : memref<1x128xf32, #tpu.memory_space<vmem>>, vector<1x128xf32>
    %35 = arith.truncf %32 : vector<8x128xf32> to vector<8x128xbf16>
    %cst_28 = arith.constant dense<0.000000e+00> : vector<8x128xf32>
    %36 = tpu.matmul %35, %33, %cst_28 {dimension_numbers = #tpu.dot_dimension_numbers<[1], [0], [0], [1], [0, 0, 1, 1], [], []>} : vector<8x128xbf16>, vector<128x128xbf16>, vector<8x128xf32> -> vector<8x128xf32>
    %37 = vector.broadcast %34 : vector<1x128xf32> to vector<8x128xf32>
    %38 = arith.addf %36, %37 : vector<8x128xf32>
    %c0_29 = arith.constant 0 : index
    %c0_30 = arith.constant 0 : index
    %39 = vector.load %arg12[%c0_29, %c0_30] : memref<8x128xf32, #tpu.memory_space<vmem>>, vector<8x128xf32>
    tpu.vector_store %arg12[%c0_29, %c0_30], %38 {strides = array<i32>} : memref<8x128xf32, #tpu.memory_space<vmem>>, vector<8x128xf32>,
    return
  }
  func.func @transform_0(%arg0: i32) -> (i32, i32) {
    %c0_i32 = arith.constant 0 : i32
    %c0_i32_0 = arith.constant 0 : i32
    return %arg0, %c0_i32 : i32, i32
  }
  func.func @transform_1(%arg0: i32) -> (i32, i32) {
    %c0_i32 = arith.constant 0 : i32
    %c0_i32_0 = arith.constant 0 : i32
    %c0_i32_1 = arith.constant 0 : i32
    return %c0_i32, %c0_i32_0 : i32, i32
  }
  func.func @transform_2(%arg0: i32) -> (i32, i32) {
    %c0_i32 = arith.constant 0 : i32
    %c0_i32_0 = arith.constant 0 : i32
    %c0_i32_1 = arith.constant 0 : i32
    return %c0_i32, %c0_i32_0 : i32, i32
  }
  func.func @transform_3(%arg0: i32) -> (i32, i32) {
    %c0_i32 = arith.constant 0 : i32
    %c0_i32_0 = arith.constant 0 : i32
    %c0_i32_1 = arith.constant 0 : i32
    return %c0_i32, %c0_i32_0 : i32, i32
  }
  func.func @transform_4(%arg0: i32) -> (i32, i32) {
    %c0_i32 = arith.constant 0 : i32
    %c0_i32_0 = arith.constant 0 : i32
    %c0_i32_1 = arith.constant 0 : i32
    return %c0_i32, %c0_i32_0 : i32, i32
  }
  func.func @transform_5(%arg0: i32) -> (i32, i32) {
    %c0_i32 = arith.constant 0 : i32
    %c0_i32_0 = arith.constant 0 : i32
    %c0_i32_1 = arith.constant 0 : i32
    return %c0_i32, %c0_i32_0 : i32, i32
  }
  func.func @transform_6(%arg0: i32) -> (i32, i32) {
    %c0_i32 = arith.constant 0 : i32
    %c0_i32_0 = arith.constant 0 : i32
    %c0_i32_1 = arith.constant 0 : i32
    return %c0_i32, %c0_i32_0 : i32, i32
  }
  func.func @transform_7(%arg0: i32) -> (i32, i32) {
    %c0_i32 = arith.constant 0 : i32
    %c0_i32_0 = arith.constant 0 : i32
    %c0_i32_1 = arith.constant 0 : i32
    return %c0_i32, %c0_i32_0 : i32, i32
  }
  func.func @transform_8(%arg0: i32) -> (i32, i32) {
    %c0_i32 = arith.constant 0 : i32
    %c0_i32_0 = arith.constant 0 : i32
    %c0_i32_1 = arith.constant 0 : i32
    return %c0_i32, %c0_i32_0 : i32, i32
  }
  func.func @transform_9(%arg0: i32) -> (i32, i32) {
    %c0_i32 = arith.constant 0 : i32
    %c0_i32_0 = arith.constant 0 : i32
    %c0_i32_1 = arith.constant 0 : i32
    return %c0_i32, %c0_i32_0 : i32, i32
  }
  func.func @transform_10(%arg0: i32) -> (i32, i32) {
    %c0_i32 = arith.constant 0 : i32
    %c0_i32_0 = arith.constant 0 : i32
    %c0_i32_1 = arith.constant 0 : i32
    return %c0_i32, %c0_i32_0 : i32, i32
  }
  func.func @transform_11(%arg0: i32) -> (i32, i32) {
    %c0_i32 = arith.constant 0 : i32
    %c0_i32_0 = arith.constant 0 : i32
    return %arg0, %c0_i32 : i32, i32
  }
}

</mosaic_0001>

<bundles_post_ra>
// kernel: fcnn_forward.1
= control target key start
LH: loop header
LB: loop body
LE: loop exit
PB: predicated region body
PF: predicated region fallthrough
CT: control target
= control target key end

     0   :  { %16 = vsyncpa [#allocation3], 0  ;;  %s7084_s0 = inlined_call_operand.vmem [shape: f32[8,384], index: 0, kind: input, shape index: {}]   ;;  %s7085_s1 = inlined_call_operand.hbm [shape: bf16[384,512], index: 1, kind: input, shape index: {}]   ;;  %s7086_s2 = inlined_call_operand.vmem [shape: f32[1,512], index: 2, kind: input, shape index: {}]   ;;  %s7087_s3 = inlined_call_operand.hbm [shape: bf16[512,1024], index: 3, kind: input, shape index: {}]   ;;  %s7088_s4 = inlined_call_operand.vmem [shape: f32[1,1024], index: 4, kind: input, shape index: {}]   ;;  %s7089_s5 = inlined_call_operand.hbm [shape: bf16[1024,256], index: 5, kind: input, shape index: {}]   ;;  %s7090_s6 = inlined_call_operand.vmem [shape: f32[1,256], index: 6, kind: input, shape index: {}]   ;;  %s7091_s7 = inlined_call_operand.hbm [shape: bf16[256,128], index: 7, kind: input, shape index: {}]   ;;  %s7092_s8 = inlined_call_operand.vmem [shape: f32[1,128], index: 8, kind: input, shape index: {}]   ;;  %s7093_s9 = inlined_call_operand.hbm [shape: bf16[128,128], index: 9, kind: input, shape index: {}]   ;;  %s7094_s10 = inlined_call_operand.vmem [shape: f32[1,128], index: 10, kind: input, shape index: {}]   ;;  %s7095_s11 = inlined_call_operand.hbm [shape: f32[8,128], index: 11, kind: output, shape index: {}]  }
   0x1   :  { %17 = vsyncpa [#allocation6], 0 }
   0x2   :  { %18 = vsyncpa [#allocation9], 0  ;;  %s41_s19 = sshll.u32 %s7087_s3, 4  ;;  %s42_s19 = int_to_ptr.hbm [resolvable:$true] %s41_s19 }
   0x3   :  { %19 = vsyncpa [#allocation4], 0  ;;  %s6795_s20 = smov [#allocation5]   ;;  %s71_s24 = sshll.u32 %s7091_s7, 4  ;;  %s72_s24 = int_to_ptr.hbm [resolvable:$true] %s71_s24 }
   0x4   :  { %s43_s21 = sshll.u32 %s6795_s20, 4  ;;  %s6796_s25 = smov 512   ;;  %s44_s21 = int_to_ptr.vmem [resolvable:$true] %s43_s21 }
   0x5   :  { %s6797_s26 = smov 32   ;;  %s6798_s27 = smov [#allocation8]  }
   0x6   :  { %49 = dma.hbm_to_vmem [thread:$0]  %s42_s19, 32768, %s44_s21, [#allocation6], %s6796_s25, %s6796_s25, %s6797_s26  }
   0x7   :  { %s73_s28 = sshll.u32 %s6798_s27, 4  ;;  %s6799_s29 = smov 64   ;;  %s74_s28 = int_to_ptr.vmem [resolvable:$true] %s73_s28 }
   0x8   :  { %s6800_s30 = smov 4   ;;  %s26_s13 = sshll.u32 %s7085_s1, 4  ;;  %s27_s13 = int_to_ptr.hbm [resolvable:$true] %s26_s13 }
   0x9   :  { %79 = dma.hbm_to_vmem [thread:$0]  %s72_s24, 2048, %s74_s28, [#allocation9], %s6799_s29, %s6799_s29, %s6800_s30  }
   0xa   :  { %s6801_s14 = smov [#allocation2]   ;;  %s56_s17 = sshll.u32 %s7089_s5, 4  ;;  %s57_s17 = int_to_ptr.hbm [resolvable:$true] %s56_s17 }
   0xb   :  { %s28_s15 = sshll.u32 %s6801_s14, 4  ;;  %s6802_s18 = smov 256   ;;  %s29_s15 = int_to_ptr.vmem [resolvable:$true] %s28_s15 }
   0xc   :  { %s6803_s19 = smov 16   ;;  %s6804_s20 = smov [#allocation7]  }
   0xd   :  { %34 = dma.hbm_to_vmem [thread:$0]  %s27_s13, 12288, %s29_s15, [#allocation3], %s6802_s18, %s6802_s18, %s6803_s19  }
   0xe   :  { %s58_s21 = sshll.u32 %s6804_s20, 4  ;;  %s6805_s22 = smov 128   ;;  %s59_s21 = int_to_ptr.vmem [resolvable:$true] %s58_s21 }
   0xf   :  { %s6806_s23 = smov 8   ;;  %s86_s25 = sshll.u32 %s7093_s9, 4  ;;  %s87_s25 = int_to_ptr.hbm [resolvable:$true] %s86_s25 }
  0x10   :  { %64 = dma.hbm_to_vmem [thread:$0]  %s57_s17, 16384, %s59_s21, [#allocation6], %s6805_s22, %s6805_s22, %s6806_s23  }
  0x11   :  { %s6807_s26 = smov [#allocation10]  }
  0x12   :  { %s88_s27 = sshll.u32 %s6807_s26, 4  ;;  %s89_s27 = int_to_ptr.vmem [resolvable:$true] %s88_s27 }
  0x13   :  { %94 = dma.hbm_to_vmem [thread:$0]  %s87_s25, 1024, %s89_s27, [#allocation9], %s6799_s29, %s6799_s29, %s6800_s30  }
  0x14   :  { %6787 = dma.done.wait [#allocation3], 12288  }
  0x15   :  { %6788 = vsyncadd [#allocation3], 4294955008 }
  0x16   :  { %6789 = dma.done.wait [#allocation6], 49152  }
  0x17   :  { %6790 = vsyncadd [#allocation6], 4294918144 }
  0x18   :  { %6791 = dma.done.wait [#allocation9], 3072  }
  0x19   :  { %6792 = vsyncadd [#allocation9], 4294964224  ;;  %v4220_v0 = vld [vmem:[#allocation2 + $0xe0] sm:$0xf]  ;;  %v6152_v1 = vld [vmem:[#allocation2 + $0xec] sm:$0xf0] }
  0x1a   :  { %v4348_v2 = vld [vmem:[#allocation2 + $0x1e0] sm:$0xf]  ;;  %v4221_v3 = vor.u32 %v6152_v1, %v4220_v0  ;;  %v6184_v4 = vld [vmem:[#allocation2 + $0x1ec] sm:$0xf0]  ;;  %v6150_v9 = vld [vmem:[#allocation2 + $0xe4] sm:$0xf] }
  0x1b   :  { %v4476_v5 = vld [vmem:[#allocation2 + $0x2e0] sm:$0xf]  ;;  %v6216_v6 = vld [vmem:[#allocation2 + $0x2ec] sm:$0xf0]  ;;  %v4349_v7 = vor.u32 %v6184_v4, %v4348_v2  ;;  %v4222_v10 = vld [vmem:[#allocation2 + $0xf0] sm:$0xf0] }
  0x1c   :  { %v4477_v8 = vor.u32 %v6216_v6, %v4476_v5  ;;  %v4204_v11 = vld [vmem:[#allocation2 + $0xc0] sm:$0xf]  ;;  %709 = vmatpush.bf16.msra.mxu0 %v4221_v3  ;;  %v4225_v12 = vor.u32 %v6150_v9, %v4222_v10  ;;  %v6148_v13 = vld [vmem:[#allocation2 + $0xcc] sm:$0xf0]  ;;  %v6146_v20 = vld [vmem:[#allocation2 + $0xc4] sm:$0xf] }
  0x1d   :  { %v4332_v14 = vld [vmem:[#allocation2 + $0x1c0] sm:$0xf]  ;;  %v6180_v15 = vld [vmem:[#allocation2 + $0x1cc] sm:$0xf0]  ;;  %722 = vmatpush.bf16.msra.mxu1 %v4349_v7  ;;  %v4205_v16 = vor.u32 %v6148_v13, %v4204_v11  ;;  %v4206_v22 = vld [vmem:[#allocation2 + $0xd0] sm:$0xf0] }
  0x1e   :  { %735 = vmatpush.bf16.msra.mxu2 %v4477_v8  ;;  %v4333_v17 = vor.u32 %v6180_v15, %v4332_v14  ;;  %v4460_v18 = vld [vmem:[#allocation2 + $0x2c0] sm:$0xf]  ;;  %v6212_v19 = vld [vmem:[#allocation2 + $0x2cc] sm:$0xf0]  ;;  %748 = vmatpush.bf16.msra.mxu3 %v4225_v12  ;;  %v4209_v25 = vor.u32 %v6146_v20, %v4206_v22  ;;  %v6142_v31 = vld [vmem:[#allocation2 + $0xa4] sm:$0xf] }
  0x1f   :  { %v4461_v21 = vor.u32 %v6212_v19, %v4460_v18  ;;  %v4188_v23 = vld [vmem:[#allocation2 + $0xa0] sm:$0xf]  ;;  %v6144_v24 = vld [vmem:[#allocation2 + $0xac] sm:$0xf0]  ;;  %v4190_v32 = vld [vmem:[#allocation2 + $0xb0] sm:$0xf0] }
  0x20   :  { %v4316_v26 = vld [vmem:[#allocation2 + $0x1a0] sm:$0xf]  ;;  %v6176_v27 = vld [vmem:[#allocation2 + $0x1ac] sm:$0xf0]  ;;  %710 = vmatpush.bf16.msra.mxu0 %v4205_v16  ;;  %v4189_v29 = vor.u32 %v6144_v24, %v4188_v23  ;;  %v4193_v38 = vor.u32 %v6142_v31, %v4190_v32  ;;  %v6138_v42 = vld [vmem:[#allocation2 + $0x84] sm:$0xf] }
  0x21   :  { %v4444_v28 = vld [vmem:[#allocation2 + $0x2a0] sm:$0xf]  ;;  %v6208_v30 = vld [vmem:[#allocation2 + $0x2ac] sm:$0xf0]  ;;  %723 = vmatpush.bf16.msra.mxu1 %v4333_v17  ;;  %v4317_v33 = vor.u32 %v6176_v27, %v4316_v26  ;;  %v4174_v43 = vld [vmem:[#allocation2 + $0x90] sm:$0xf0] }
  0x22   :  { %736 = vmatpush.bf16.msra.mxu2 %v4461_v21  ;;  %v4445_v34 = vor.u32 %v6208_v30, %v4444_v28  ;;  %v4172_v35 = vld [vmem:[#allocation2 + $0x80] sm:$0xf]  ;;  %v6140_v36 = vld [vmem:[#allocation2 + $0x8c] sm:$0xf0]  ;;  %749 = vmatpush.bf16.msra.mxu3 %v4209_v25  ;;  %v4177_v50 = vor.u32 %v6138_v42, %v4174_v43  ;;  %v6134_v54 = vld [vmem:[#allocation2 + $0x64] sm:$0xf] }
  0x23   :  { %v4300_v37 = vld [vmem:[#allocation2 + $0x180] sm:$0xf]  ;;  %v6172_v39 = vld [vmem:[#allocation2 + $0x18c] sm:$0xf0]  ;;  %v4173_v44 = vor.u32 %v6140_v36, %v4172_v35  ;;  %v4158_v55 = vld [vmem:[#allocation2 + $0x70] sm:$0xf0] }
  0x24   :  { %v4428_v40 = vld [vmem:[#allocation2 + $0x280] sm:$0xf]  ;;  %v6204_v41 = vld [vmem:[#allocation2 + $0x28c] sm:$0xf0]  ;;  %711 = vmatpush.bf16.msra.mxu0 %v4189_v29  ;;  %v4301_v45 = vor.u32 %v6172_v39, %v4300_v37  ;;  %v4161_v62 = vor.u32 %v6134_v54, %v4158_v55  ;;  %v6130_v2 = vld [vmem:[#allocation2 + $0x44] sm:$0xf] }
  0x25   :  { %724 = vmatpush.bf16.msra.mxu1 %v4317_v33  ;;  %v4429_v46 = vor.u32 %v6204_v41, %v4428_v40  ;;  %v4156_v47 = vld [vmem:[#allocation2 + $0x60] sm:$0xf]  ;;  %v6136_v48 = vld [vmem:[#allocation2 + $0x6c] sm:$0xf0]  ;;  %v4142_v3 = vld [vmem:[#allocation2 + $0x50] sm:$0xf0] }
  0x26   :  { %737 = vmatpush.bf16.msra.mxu2 %v4445_v34  ;;  %v4284_v49 = vld [vmem:[#allocation2 + $0x160] sm:$0xf]  ;;  %750 = vmatpush.bf16.msra.mxu3 %v4193_v38  ;;  %v6168_v51 = vld [vmem:[#allocation2 + $0x16c] sm:$0xf0]  ;;  %v4157_v56 = vor.u32 %v6136_v48, %v4156_v47  ;;  %v4145_v10 = vor.u32 %v6130_v2, %v4142_v3  ;;  %v6126_v14 = vld [vmem:[#allocation2 + $0x24] sm:$0xf] }
  0x27   :  { %v4412_v52 = vld [vmem:[#allocation2 + $0x260] sm:$0xf]  ;;  %v6200_v53 = vld [vmem:[#allocation2 + $0x26c] sm:$0xf0]  ;;  %v4285_v57 = vor.u32 %v6168_v51, %v4284_v49  ;;  %v4126_v15 = vld [vmem:[#allocation2 + $0x30] sm:$0xf0] }
  0x28   :  { %712 = vmatpush.bf16.msra.mxu0 %v4173_v44  ;;  %v4413_v58 = vor.u32 %v6200_v53, %v4412_v52  ;;  %v4140_v59 = vld [vmem:[#allocation2 + $0x40] sm:$0xf]  ;;  %v6132_v60 = vld [vmem:[#allocation2 + $0x4c] sm:$0xf0]  ;;  %v4129_v24 = vor.u32 %v6126_v14, %v4126_v15  ;;  %v6122_v26 = vld [vmem:[#allocation2 + $0x4] sm:$0xf] }
  0x29   :  { %725 = vmatpush.bf16.msra.mxu1 %v4301_v45  ;;  %v4268_v61 = vld [vmem:[#allocation2 + $0x140] sm:$0xf]  ;;  %v6164_v63 = vld [vmem:[#allocation2 + $0x14c] sm:$0xf0]  ;;  %v4141_v4 = vor.u32 %v6132_v60, %v4140_v59  ;;  %v4110_v27 = vld [vmem:[#allocation2 + $0x10] sm:$0xf0] }
  0x2a   :  { %738 = vmatpush.bf16.msra.mxu2 %v4429_v46  ;;  %751 = vmatpush.bf16.msra.mxu3 %v4177_v50  ;;  %v4396_v0 = vld [vmem:[#allocation2 + $0x240] sm:$0xf]  ;;  %v6196_v1 = vld [vmem:[#allocation2 + $0x24c] sm:$0xf0]  ;;  %v4269_v5 = vor.u32 %v6164_v63, %v4268_v61  ;;  %v6182_v28 = vld [vmem:[#allocation2 + $0x1e4] sm:$0xf]  ;;  %v4113_v40 = vor.u32 %v6122_v26, %v4110_v27 }
  0x2b   :  { %v4397_v6 = vor.u32 %v6196_v1, %v4396_v0  ;;  %v4124_v7 = vld [vmem:[#allocation2 + $0x20] sm:$0xf]  ;;  %v6128_v8 = vld [vmem:[#allocation2 + $0x2c] sm:$0xf0]  ;;  %v4350_v29 = vld [vmem:[#allocation2 + $0x1f0] sm:$0xf0] }
  0x2c   :  { %713 = vmatpush.bf16.msra.mxu0 %v4157_v56  ;;  %v4252_v9 = vld [vmem:[#allocation2 + $0x120] sm:$0xf]  ;;  %v6160_v11 = vld [vmem:[#allocation2 + $0x12c] sm:$0xf0]  ;;  %v4125_v16 = vor.u32 %v6128_v8, %v4124_v7  ;;  %v6214_v30 = vld [vmem:[#allocation2 + $0x2e4] sm:$0xf]  ;;  %v4353_v41 = vor.u32 %v6182_v28, %v4350_v29 }
  0x2d   :  { %726 = vmatpush.bf16.msra.mxu1 %v4285_v57  ;;  %v4380_v12 = vld [vmem:[#allocation2 + $0x220] sm:$0xf]  ;;  %v6192_v13 = vld [vmem:[#allocation2 + $0x22c] sm:$0xf0]  ;;  %v4253_v19 = vor.u32 %v6160_v11, %v4252_v9  ;;  %v4478_v32 = vld [vmem:[#allocation2 + $0x2f0] sm:$0xf0] }
  0x2e   :  { %739 = vmatpush.bf16.msra.mxu2 %v4413_v58  ;;  %752 = vmatpush.bf16.msra.mxu3 %v4161_v62  ;;  %v4108_v17 = vld [vmem:[#allocation2] sm:$0xf]  ;;  %v6124_v18 = vld [vmem:[#allocation2 + $0xc] sm:$0xf0]  ;;  %v4381_v20 = vor.u32 %v6192_v13, %v4380_v12  ;;  %v4228_v33 = vld [vmem:[#allocation2 + $0xe8] sm:$0xf]  ;;  %v4481_v44 = vor.u32 %v6214_v30, %v4478_v32 }
  0x2f   :  { %v4236_v21 = vld [vmem:[#allocation2 + $0x100] sm:$0xf]  ;;  %v6156_v22 = vld [vmem:[#allocation2 + $0x10c] sm:$0xf0]  ;;  %v4109_v31 = vor.u32 %v6124_v18, %v4108_v17  ;;  %v6153_v34 = vld [vmem:[#allocation2 + $0xf4] sm:$0xf0] }
  0x30   :  { %714 = vmatpush.bf16.msra.mxu0 %v4141_v4  ;;  %v4364_v23 = vld [vmem:[#allocation2 + $0x200] sm:$0xf]  ;;  %v6188_v25 = vld [vmem:[#allocation2 + $0x20c] sm:$0xf0]  ;;  %v4237_v35 = vor.u32 %v6156_v22, %v4236_v21  ;;  %v4356_v37 = vld [vmem:[#allocation2 + $0x1e8] sm:$0xf]  ;;  %v4229_v45 = vor.u32 %v6153_v34, %v4228_v33 }
  0x31   :  { %727 = vmatpush.bf16.msra.mxu1 %v4269_v5  ;;  %v4365_v36 = vor.u32 %v6188_v25, %v4364_v23  ;;  %v6185_v38 = vld [vmem:[#allocation2 + $0x1f4] sm:$0xf0]  ;;  %v119_v39 = vld [vmem:[%s7084_s0 + $0x10] sm:$0xff]  ;;  %v117_v42 = vld [vmem:[%s7084_s0] sm:$0xff]  ;;  %s6808_s19 = smov [#allocation11]   ;;  %s4094_s23 = sshll.u32 %s7095_s11, 4  ;;  %s4095_s23 = int_to_ptr.hbm [resolvable:$true] %s4094_s23 }
  0x32   :  { %740 = vmatpush.bf16.msra.mxu2 %v4397_v6  ;;  %753 = vmatpush.bf16.msra.mxu3 %v4145_v10  ;;  %v118_v43 = vld [vmem:[%s7084_s0 + $0x8] sm:$0xff]  ;;  %v6178_v46 = vld [vmem:[#allocation2 + $0x1c4] sm:$0xf]  ;;  %v4334_v47 = vld [vmem:[#allocation2 + $0x1d0] sm:$0xf0]  ;;  %v4357_v49 = vor.u32 %v6185_v38, %v4356_v37  ;;  %v6893_v50 = vpack.c.bf16 %v119_v39, %v119_v39  ;;  %v6895_v54 = vpack.c.bf16 %v117_v42, %v117_v42  ;;  %s4092_s20 = sshll.u32 %s6808_s19, 4  ;;  %s4093_s20 = int_to_ptr.vmem [resolvable:$true] %s4092_s20 }
  0x33   :  { %v6210_v48 = vld [vmem:[#allocation2 + $0x2c4] sm:$0xf]  ;;  %v4462_v51 = vld [vmem:[#allocation2 + $0x2d0] sm:$0xf0]  ;;  %v4212_v52 = vld [vmem:[#allocation2 + $0xc8] sm:$0xf]  ;;  %v6897_v57 = vpack.c.bf16 %v118_v43, %v118_v43  ;;  %v4337_v58 = vor.u32 %v6178_v46, %v4334_v47 }
  0x34   :  { %715 = vmatpush.bf16.msra.mxu0 %v4125_v16  ;;  %v6149_v53 = vld [vmem:[#allocation2 + $0xd4] sm:$0xf0]  ;;  %v4340_v55 = vld [vmem:[#allocation2 + $0x1c8] sm:$0xf]  ;;  %v4465_v59 = vor.u32 %v6210_v48, %v4462_v51  ;;  %v6174_v61 = vld [vmem:[#allocation2 + $0x1a4] sm:$0xf] }
  0x35   :  { %728 = vmatpush.bf16.msra.mxu1 %v4253_v19  ;;  %v6181_v56 = vld [vmem:[#allocation2 + $0x1d4] sm:$0xf0]  ;;  %v4213_v60 = vor.u32 %v6149_v53, %v4212_v52  ;;  %v4318_v62 = vld [vmem:[#allocation2 + $0x1b0] sm:$0xf0]  ;;  %v6206_v63 = vld [vmem:[#allocation2 + $0x2a4] sm:$0xf] }
  0x36   :  { %741 = vmatpush.bf16.msra.mxu2 %v4381_v20  ;;  %754 = vmatpush.bf16.msra.mxu3 %v4129_v24  ;;  %v4341_v0 = vor.u32 %v6181_v56, %v4340_v55  ;;  %v4446_v1 = vld [vmem:[#allocation2 + $0x2b0] sm:$0xf0]  ;;  %v4196_v2 = vld [vmem:[#allocation2 + $0xa8] sm:$0xf]  ;;  %v6145_v3 = vld [vmem:[#allocation2 + $0xb4] sm:$0xf0]  ;;  %v4321_v6 = vor.u32 %v6174_v61, %v4318_v62 }
  0x37   :  { %v4324_v4 = vld [vmem:[#allocation2 + $0x1a8] sm:$0xf]  ;;  %v6177_v5 = vld [vmem:[#allocation2 + $0x1b4] sm:$0xf0]  ;;  %v4449_v7 = vor.u32 %v6206_v63, %v4446_v1  ;;  %v4197_v8 = vor.u32 %v6145_v3, %v4196_v2  ;;  %v6170_v9 = vld [vmem:[#allocation2 + $0x184] sm:$0xf] }
  0x38   :  { %716 = vmatpush.bf16.msra.mxu0 %v4109_v31  ;;  %v4302_v10 = vld [vmem:[#allocation2 + $0x190] sm:$0xf0]  ;;  %v6202_v11 = vld [vmem:[#allocation2 + $0x284] sm:$0xf]  ;;  %v4325_v12 = vor.u32 %v6177_v5, %v4324_v4  ;;  %v4180_v14 = vld [vmem:[#allocation2 + $0x88] sm:$0xf] }
  0x39   :  { %729 = vmatpush.bf16.msra.mxu1 %v4237_v35  ;;  %v4430_v13 = vld [vmem:[#allocation2 + $0x290] sm:$0xf0]  ;;  %v6141_v15 = vld [vmem:[#allocation2 + $0x94] sm:$0xf0]  ;;  %v4308_v16 = vld [vmem:[#allocation2 + $0x188] sm:$0xf]  ;;  %v4305_v18 = vor.u32 %v6170_v9, %v4302_v10 }
  0x3a   :  { %742 = vmatpush.bf16.msra.mxu2 %v4365_v36  ;;  %755 = vmatpush.bf16.msra.mxu3 %v4113_v40  ;;  %v6173_v17 = vld [vmem:[#allocation2 + $0x194] sm:$0xf0]  ;;  %v4433_v19 = vor.u32 %v6202_v11, %v4430_v13  ;;  %v4181_v20 = vor.u32 %v6141_v15, %v4180_v14  ;;  %v6166_v21 = vld [vmem:[#allocation2 + $0x164] sm:$0xf]  ;;  %v4286_v22 = vld [vmem:[#allocation2 + $0x170] sm:$0xf0] }
  0x3b   :  { %717 = vmatmul.bf16.vlgmr.msra.gmra.mxu0 %v6895_v54  ;;  %v6198_v23 = vld [vmem:[#allocation2 + $0x264] sm:$0xf]  ;;  %v4309_v24 = vor.u32 %v6173_v17, %v4308_v16  ;;  %v4414_v25 = vld [vmem:[#allocation2 + $0x270] sm:$0xf0]  ;;  %v4164_v26 = vld [vmem:[#allocation2 + $0x68] sm:$0xf]  ;;  %v4289_v30 = vor.u32 %v6166_v21, %v4286_v22 }
  0x3c   :  { %761 = vmatpush.bf16.msrb.mxu0 %v4353_v41  ;;  %730 = vmatmul.bf16.vlgmr.msra.gmra.mxu1 %v6897_v57  ;;  %v6137_v27 = vld [vmem:[#allocation2 + $0x74] sm:$0xf0]  ;;  %v4292_v28 = vld [vmem:[#allocation2 + $0x168] sm:$0xf]  ;;  %v4417_v31 = vor.u32 %v6198_v23, %v4414_v25  ;;  %v6162_v33 = vld [vmem:[#allocation2 + $0x144] sm:$0xf] }
  0x3d   :  { %774 = vmatpush.bf16.msrb.mxu1 %v4481_v44  ;;  %743 = vmatmul.bf16.vlgmr.msra.gmra.mxu2 %v6893_v50  ;;  %v6169_v29 = vld [vmem:[#allocation2 + $0x174] sm:$0xf0]  ;;  %v4165_v32 = vor.u32 %v6137_v27, %v4164_v26  ;;  %v4270_v34 = vld [vmem:[#allocation2 + $0x150] sm:$0xf0]  ;;  %v6194_v35 = vld [vmem:[#allocation2 + $0x244] sm:$0xf] }
  0x3e   :  { %787 = vmatpush.bf16.msrb.mxu2 %v4229_v45  ;;  %800 = vmatpush.bf16.msrb.mxu3 %v4357_v49  ;;  %v4293_v36 = vor.u32 %v6169_v29, %v4292_v28  ;;  %v4398_v37 = vld [vmem:[#allocation2 + $0x250] sm:$0xf0]  ;;  %v4148_v38 = vld [vmem:[#allocation2 + $0x48] sm:$0xf]  ;;  %v6133_v39 = vld [vmem:[#allocation2 + $0x54] sm:$0xf0]  ;;  %v4273_v42 = vor.u32 %v6162_v33, %v4270_v34 }
  0x3f   :  { %756 = vmatmul.bf16.vlgmr.msra.gmra.mxu3 %v6895_v54  ;;  %v4276_v40 = vld [vmem:[#allocation2 + $0x148] sm:$0xf]  ;;  %v6165_v41 = vld [vmem:[#allocation2 + $0x154] sm:$0xf0]  ;;  %v4401_v43 = vor.u32 %v6194_v35, %v4398_v37  ;;  %v4149_v44 = vor.u32 %v6133_v39, %v4148_v38  ;;  %v6158_v45 = vld [vmem:[#allocation2 + $0x124] sm:$0xf] }
  0x40   :  { %762 = vmatpush.bf16.msrb.mxu0 %v4337_v58  ;;  %v4254_v46 = vld [vmem:[#allocation2 + $0x130] sm:$0xf0]  ;;  %v6190_v47 = vld [vmem:[#allocation2 + $0x224] sm:$0xf]  ;;  %v4277_v48 = vor.u32 %v6165_v41, %v4276_v40  ;;  %v4132_v51 = vld [vmem:[#allocation2 + $0x28] sm:$0xf] }
  0x41   :  { %775 = vmatpush.bf16.msrb.mxu1 %v4465_v59  ;;  %v4382_v49 = vld [vmem:[#allocation2 + $0x230] sm:$0xf0]  ;;  %v6129_v52 = vld [vmem:[#allocation2 + $0x34] sm:$0xf0]  ;;  %v4260_v53 = vld [vmem:[#allocation2 + $0x128] sm:$0xf]  ;;  %v4257_v56 = vor.u32 %v6158_v45, %v4254_v46 }
  0x42   :  { %788 = vmatpush.bf16.msrb.mxu2 %v4213_v60  ;;  %801 = vmatpush.bf16.msrb.mxu3 %v4341_v0  ;;  %v6161_v55 = vld [vmem:[#allocation2 + $0x134] sm:$0xf0]  ;;  %v6154_v58 = vld [vmem:[#allocation2 + $0x104] sm:$0xf]  ;;  %v4238_v59 = vld [vmem:[#allocation2 + $0x110] sm:$0xf0]  ;;  %v4385_v60 = vor.u32 %v6190_v47, %v4382_v49  ;;  %v4133_v61 = vor.u32 %v6129_v52, %v4132_v51 }
  0x43   :  { %v6186_v62 = vld [vmem:[#allocation2 + $0x204] sm:$0xf]  ;;  %v4366_v63 = vld [vmem:[#allocation2 + $0x210] sm:$0xf0]  ;;  %v4116_v0 = vld [vmem:[#allocation2 + $0x8] sm:$0xf]  ;;  %v4261_v1 = vor.u32 %v6161_v55, %v4260_v53 }
  0x44   :  { %763 = vmatpush.bf16.msrb.mxu0 %v4321_v6  ;;  %v6125_v2 = vld [vmem:[#allocation2 + $0x14] sm:$0xf0]  ;;  %v4244_v3 = vld [vmem:[#allocation2 + $0x108] sm:$0xf]  ;;  %v4230_v9 = vld [vmem:[#allocation2 + $0xf8] sm:$0xf0] }
  0x45   :  { %776 = vmatpush.bf16.msrb.mxu1 %v4449_v7  ;;  %v6157_v4 = vld [vmem:[#allocation2 + $0x114] sm:$0xf0]  ;;  %v4484_v5 = vld [vmem:[#allocation2 + $0x2e8] sm:$0xf]  ;;  %v6151_v7 = vld [vmem:[#allocation2 + $0xec] sm:$0xf]  ;;  %v4117_v13 = vor.u32 %v6125_v2, %v4116_v0 }
  0x46   :  { %789 = vmatpush.bf16.msrb.mxu2 %v4197_v8  ;;  %802 = vmatpush.bf16.msrb.mxu3 %v4325_v12  ;;  %v6217_v6 = vld [vmem:[#allocation2 + $0x2f4] sm:$0xf0]  ;;  %v4241_v8 = vor.u32 %v6154_v58, %v4238_v59  ;;  %v6183_v10 = vld [vmem:[#allocation2 + $0x1ec] sm:$0xf]  ;;  %v4358_v11 = vld [vmem:[#allocation2 + $0x1f8] sm:$0xf0]  ;;  %v4369_v12 = vor.u32 %v6186_v62, %v4366_v63  ;;  %v4245_v16 = vor.u32 %v6157_v4, %v4244_v3 }
  0x47   :  { %v6215_v14 = vld [vmem:[#allocation2 + $0x2ec] sm:$0xf]  ;;  %v4486_v15 = vld [vmem:[#allocation2 + $0x2f8] sm:$0xf0]  ;;  %v4485_v17 = vor.u32 %v6217_v6, %v4484_v5  ;;  %v6213_v21 = vld [vmem:[#allocation2 + $0x2d4] sm:$0xf0] }
  0x48   :  { %764 = vmatpush.bf16.msrb.mxu0 %v4305_v18  ;;  %v4233_v18 = vor.u32 %v6151_v7, %v4230_v9  ;;  %v6147_v22 = vld [vmem:[#allocation2 + $0xcc] sm:$0xf]  ;;  %v4489_v23 = vor.u32 %v6215_v14, %v4486_v15  ;;  %v4342_v26 = vld [vmem:[#allocation2 + $0x1d8] sm:$0xf0]  ;;  %v6209_v33 = vld [vmem:[#allocation2 + $0x2b4] sm:$0xf0] }
  0x49   :  { %777 = vmatpush.bf16.msrb.mxu1 %v4433_v19  ;;  %v4361_v19 = vor.u32 %v6183_v10, %v4358_v11  ;;  %v6179_v25 = vld [vmem:[#allocation2 + $0x1cc] sm:$0xf]  ;;  %v4470_v28 = vld [vmem:[#allocation2 + $0x2d8] sm:$0xf0]  ;;  %v6205_v45 = vld [vmem:[#allocation2 + $0x294] sm:$0xf0] }
  0x4a   :  { %790 = vmatpush.bf16.msrb.mxu2 %v4181_v20  ;;  %803 = vmatpush.bf16.msrb.mxu3 %v4309_v24  ;;  %v4468_v20 = vld [vmem:[#allocation2 + $0x2c8] sm:$0xf]  ;;  %v4214_v24 = vld [vmem:[#allocation2 + $0xd8] sm:$0xf0]  ;;  %v6211_v27 = vld [vmem:[#allocation2 + $0x2cc] sm:$0xf] }
  0x4b   :  { %v4469_v29 = vor.u32 %v6213_v21, %v4468_v20  ;;  %v6143_v34 = vld [vmem:[#allocation2 + $0xac] sm:$0xf]  ;;  %v4473_v35 = vor.u32 %v6211_v27, %v4470_v28  ;;  %v4326_v38 = vld [vmem:[#allocation2 + $0x1b8] sm:$0xf0]  ;;  %v4420_v59 = vld [vmem:[#allocation2 + $0x268] sm:$0xf] }
  0x4c   :  { %765 = vmatpush.bf16.msrb.mxu0 %v4289_v30  ;;  %v4217_v30 = vor.u32 %v6147_v22, %v4214_v24  ;;  %v6175_v37 = vld [vmem:[#allocation2 + $0x1ac] sm:$0xf]  ;;  %v4454_v40 = vld [vmem:[#allocation2 + $0x2b8] sm:$0xf0]  ;;  %v4404_v7 = vld [vmem:[#allocation2 + $0x248] sm:$0xf] }
  0x4d   :  { %778 = vmatpush.bf16.msrb.mxu1 %v4417_v31  ;;  %v4345_v31 = vor.u32 %v6179_v25, %v4342_v26  ;;  %v6207_v39 = vld [vmem:[#allocation2 + $0x2ac] sm:$0xf]  ;;  %v4310_v51 = vld [vmem:[#allocation2 + $0x198] sm:$0xf0]  ;;  %v6193_v20 = vld [vmem:[#allocation2 + $0x234] sm:$0xf0] }
  0x4e   :  { %791 = vmatpush.bf16.msrb.mxu2 %v4165_v32  ;;  %804 = vmatpush.bf16.msrb.mxu3 %v4293_v36  ;;  %v4452_v32 = vld [vmem:[#allocation2 + $0x2a8] sm:$0xf]  ;;  %v4198_v36 = vld [vmem:[#allocation2 + $0xb8] sm:$0xf0]  ;;  %v6139_v46 = vld [vmem:[#allocation2 + $0x8c] sm:$0xf]  ;;  %v4457_v47 = vor.u32 %v6207_v39, %v4454_v40 }
  0x4f   :  { %v4453_v41 = vor.u32 %v6209_v33, %v4452_v32  ;;  %v6171_v49 = vld [vmem:[#allocation2 + $0x18c] sm:$0xf]  ;;  %v4438_v53 = vld [vmem:[#allocation2 + $0x298] sm:$0xf0]  ;;  %v6189_v32 = vld [vmem:[#allocation2 + $0x214] sm:$0xf0] }
  0x50   :  { %766 = vmatpush.bf16.msrb.mxu0 %v4273_v42  ;;  %v4201_v42 = vor.u32 %v6143_v34, %v4198_v36  ;;  %v6203_v52 = vld [vmem:[#allocation2 + $0x28c] sm:$0xf]  ;;  %v4313_v58 = vor.u32 %v6171_v49, %v4310_v51  ;;  %v4166_v63 = vld [vmem:[#allocation2 + $0x78] sm:$0xf0]  ;;  %v4716_v40 = vld [vmem:[#allocation5 + $0x1c0] sm:$0xf] }
  0x51   :  { %779 = vmatpush.bf16.msrb.mxu1 %v4401_v43  ;;  %v4329_v43 = vor.u32 %v6175_v37, %v4326_v38  ;;  %v4441_v62 = vor.u32 %v6203_v52, %v4438_v53  ;;  %v6167_v0 = vld [vmem:[#allocation2 + $0x16c] sm:$0xf]  ;;  %v4422_v3 = vld [vmem:[#allocation2 + $0x278] sm:$0xf0]  ;;  %v4684_v49 = vld [vmem:[#allocation5 + $0x180] sm:$0xf] }
  0x52   :  { %792 = vmatpush.bf16.msrb.mxu2 %v4149_v44  ;;  %805 = vmatpush.bf16.msrb.mxu3 %v4277_v48  ;;  %v4436_v44 = vld [vmem:[#allocation2 + $0x288] sm:$0xf]  ;;  %v4182_v48 = vld [vmem:[#allocation2 + $0x98] sm:$0xf0]  ;;  %v6199_v2 = vld [vmem:[#allocation2 + $0x26c] sm:$0xf] }
  0x53   :  { %v4437_v55 = vor.u32 %v6205_v45, %v4436_v44  ;;  %v6131_v9 = vld [vmem:[#allocation2 + $0x4c] sm:$0xf]  ;;  %v4425_v10 = vor.u32 %v6199_v2, %v4422_v3  ;;  %v4150_v11 = vld [vmem:[#allocation2 + $0x58] sm:$0xf0]  ;;  %v6342_v44 = vld [vmem:[#allocation5 + $0x3dc] sm:$0xf0] }
  0x54   :  { %767 = vmatpush.bf16.msrb.mxu0 %v4257_v56  ;;  %v4185_v56 = vor.u32 %v6139_v46, %v4182_v48  ;;  %v6195_v14 = vld [vmem:[#allocation2 + $0x24c] sm:$0xf]  ;;  %v4406_v15 = vld [vmem:[#allocation2 + $0x258] sm:$0xf0]  ;;  %v6270_v51 = vld [vmem:[#allocation5 + $0x19c] sm:$0xf0] }
  0x55   :  { %780 = vmatpush.bf16.msrb.mxu1 %v4385_v60  ;;  %v6201_v60 = vld [vmem:[#allocation2 + $0x274] sm:$0xf0]  ;;  %v6127_v21 = vld [vmem:[#allocation2 + $0x2c] sm:$0xf]  ;;  %v4409_v22 = vor.u32 %v6195_v14, %v4406_v15  ;;  %v4262_v25 = vld [vmem:[#allocation2 + $0x138] sm:$0xf0] }
  0x56   :  { %793 = vmatpush.bf16.msrb.mxu2 %v4133_v61  ;;  %806 = vmatpush.bf16.msrb.mxu3 %v4261_v1  ;;  %v6135_v61 = vld [vmem:[#allocation2 + $0x6c] sm:$0xf]  ;;  %v4294_v1 = vld [vmem:[#allocation2 + $0x178] sm:$0xf0]  ;;  %v4421_v4 = vor.u32 %v6201_v60, %v4420_v59  ;;  %v4940_v53 = vld [vmem:[#allocation5 + $0x380] sm:$0xf] }
  0x57   :  { %v4169_v5 = vor.u32 %v6135_v61, %v4166_v63  ;;  %v4297_v6 = vor.u32 %v6167_v0, %v4294_v1  ;;  %v6159_v24 = vld [vmem:[#allocation2 + $0x12c] sm:$0xf]  ;;  %v4390_v27 = vld [vmem:[#allocation2 + $0x238] sm:$0xf0]  ;;  %v6262_v59 = vld [vmem:[#allocation5 + $0x15c] sm:$0xf0] }
  0x58   :  { %768 = vmatpush.bf16.msrb.mxu0 %v4241_v8  ;;  %v6197_v8 = vld [vmem:[#allocation2 + $0x254] sm:$0xf0]  ;;  %v6191_v26 = vld [vmem:[#allocation2 + $0x22c] sm:$0xf]  ;;  %v4118_v34 = vld [vmem:[#allocation2 + $0x18] sm:$0xf0] }
  0x59   :  { %781 = vmatpush.bf16.msrb.mxu1 %v4369_v12  ;;  %v6163_v12 = vld [vmem:[#allocation2 + $0x14c] sm:$0xf]  ;;  %v4246_v37 = vld [vmem:[#allocation2 + $0x118] sm:$0xf0]  ;;  %v4908_v61 = vld [vmem:[#allocation5 + $0x340] sm:$0xf] }
  0x5a   :  { %794 = vmatpush.bf16.msrb.mxu2 %v4117_v13  ;;  %807 = vmatpush.bf16.msrb.mxu3 %v4245_v16  ;;  %v4278_v13 = vld [vmem:[#allocation2 + $0x158] sm:$0xf0]  ;;  %v4405_v16 = vor.u32 %v6197_v8, %v4404_v7  ;;  %v6123_v33 = vld [vmem:[#allocation2 + $0xc] sm:$0xf]  ;;  %v4620_v0 = vld [vmem:[#allocation5 + $0x100] sm:$0xf] }
  0x5b   :  { %769 = vmatmul.bf16.vlgmr.msrb.gmra.mxu0 %v6897_v57  ;;  %v6155_v36 = vld [vmem:[#allocation2 + $0x10c] sm:$0xf]  ;;  %v4374_v39 = vld [vmem:[#allocation2 + $0x218] sm:$0xf0]  ;;  %v4121_v45 = vor.u32 %v6123_v33, %v4118_v34  ;;  %v6254_v1 = vld [vmem:[#allocation5 + $0x11c] sm:$0xf0] }
  0x5c   :  { %813 = vmatpush.bf16.msra.mxu0 %v4485_v17  ;;  %782 = vmatmul.bf16.vlgmr.msrb.gmra.mxu1 %v6893_v50  ;;  %v4153_v17 = vor.u32 %v6131_v9, %v4150_v11  ;;  %v6187_v38 = vld [vmem:[#allocation2 + $0x20c] sm:$0xf]  ;;  %v4249_v46 = vor.u32 %v6155_v36, %v4246_v37  ;;  %v4876_v3 = vld [vmem:[#allocation5 + $0x300] sm:$0xf]  ;;  %v6242_v34 = vld [vmem:[#allocation5 + $0xc4] sm:$0xf] }
  0x5d   :  { %826 = vmatpush.bf16.msra.mxu1 %v4233_v18  ;;  %795 = vmatmul.bf16.vlgmr.msrb.gmra.mxu2 %v6895_v54  ;;  %v4281_v18 = vor.u32 %v6163_v12, %v4278_v13  ;;  %v6246_v7 = vld [vmem:[#allocation5 + $0xdc] sm:$0xf0] }
  0x5e   :  { %839 = vmatpush.bf16.msra.mxu2 %v4361_v19  ;;  %852 = vmatpush.bf16.msra.mxu3 %v4489_v23  ;;  %v4388_v19 = vld [vmem:[#allocation2 + $0x228] sm:$0xf]  ;;  %v4134_v23 = vld [vmem:[#allocation2 + $0x38] sm:$0xf0]  ;;  %v4844_v8 = vld [vmem:[#allocation5 + $0x2c0] sm:$0xf] }
  0x5f   :  { %808 = vmatmul.bf16.vlgmr.msrb.gmra.mxu3 %v6897_v57  ;;  %v4389_v28 = vor.u32 %v6193_v20, %v4388_v19  ;;  %v4812_v12 = vld [vmem:[#allocation5 + $0x280] sm:$0xf] }
  0x60   :  { %814 = vmatpush.bf16.msra.mxu0 %v4469_v29  ;;  %v4372_v29 = vld [vmem:[#allocation2 + $0x208] sm:$0xf]  ;;  %v6302_v13 = vld [vmem:[#allocation5 + $0x29c] sm:$0xf0] }
  0x61   :  { %827 = vmatpush.bf16.msra.mxu1 %v4217_v30  ;;  %v4137_v30 = vor.u32 %v6127_v21, %v4134_v23  ;;  %v4524_v15 = vld [vmem:[#allocation5 + $0x40] sm:$0xf]  ;;  %v6274_v21 = vld [vmem:[#allocation5 + $0x1c4] sm:$0xf] }
  0x62   :  { %840 = vmatpush.bf16.msra.mxu2 %v4345_v31  ;;  %853 = vmatpush.bf16.msra.mxu3 %v4473_v35  ;;  %v4265_v31 = vor.u32 %v6159_v24, %v4262_v25  ;;  %v4393_v35 = vor.u32 %v6191_v26, %v4390_v27  ;;  %v4492_v19 = vld [vmem:[#allocation5] sm:$0xf]  ;;  %v6266_v25 = vld [vmem:[#allocation5 + $0x184] sm:$0xf] }
  0x63   :  { %v6222_v20 = vld [vmem:[#allocation5 + $0x1c] sm:$0xf0]  ;;  %v4686_v26 = vld [vmem:[#allocation5 + $0x1a0] sm:$0xf0] }
  0x64   :  { %815 = vmatpush.bf16.msra.mxu0 %v4453_v41  ;;  %v6278_v41 = vld [vmem:[#allocation5 + $0x1dc] sm:$0xf0]  ;;  %v4493_v23 = vor.u32 %v6222_v20, %v4492_v19  ;;  %v4689_v27 = vor.u32 %v6266_v25, %v4686_v26 }
  0x65   :  { %828 = vmatpush.bf16.msra.mxu1 %v4201_v42  ;;  %v4373_v42 = vor.u32 %v6189_v32, %v4372_v29  ;;  %v4717_v48 = vor.u32 %v6278_v41, %v4716_v40  ;;  %v4654_v29 = vld [vmem:[#allocation5 + $0x160] sm:$0xf0]  ;;  %v4780_v36 = vld [vmem:[#allocation5 + $0x240] sm:$0xf] }
  0x66   :  { %841 = vmatpush.bf16.msra.mxu2 %v4329_v43  ;;  %854 = vmatpush.bf16.msra.mxu3 %v4457_v47  ;;  %v4972_v43 = vld [vmem:[#allocation5 + $0x3c0] sm:$0xf]  ;;  %v4377_v47 = vor.u32 %v6187_v38, %v4374_v39  ;;  %v4622_v32 = vld [vmem:[#allocation5 + $0x120] sm:$0xf0] }
  0x67   :  { %v4973_v52 = vor.u32 %v6342_v44, %v4972_v43  ;;  %v6294_v37 = vld [vmem:[#allocation5 + $0x25c] sm:$0xf0]  ;;  %v6234_v40 = vld [vmem:[#allocation5 + $0x84] sm:$0xf] }
  0x68   :  { %816 = vmatpush.bf16.msra.mxu0 %v4437_v55  ;;  %v6334_v55 = vld [vmem:[#allocation5 + $0x39c] sm:$0xf0]  ;;  %v4781_v38 = vor.u32 %v6294_v37, %v4780_v36  ;;  %v4558_v41 = vld [vmem:[#allocation5 + $0xa0] sm:$0xf0] }
  0x69   :  { %829 = vmatpush.bf16.msra.mxu1 %v4185_v56  ;;  %v4685_v56 = vor.u32 %v6270_v51, %v4684_v49  ;;  %v4941_v60 = vor.u32 %v6334_v55, %v4940_v53  ;;  %v6406_v43 = vld [vmem:[#allocation5 + $0x5dc] sm:$0xf0]  ;;  %v4974_v49 = vld [vmem:[#allocation5 + $0x3e0] sm:$0xf0]  ;;  %v4561_v51 = vor.u32 %v6234_v40, %v4558_v41 }
  0x6a   :  { %842 = vmatpush.bf16.msra.mxu2 %v4313_v58  ;;  %855 = vmatpush.bf16.msra.mxu3 %v4441_v62  ;;  %v4652_v58 = vld [vmem:[#allocation5 + $0x140] sm:$0xf]  ;;  %v4526_v55 = vld [vmem:[#allocation5 + $0x60] sm:$0xf0] }
  0x6b   :  { %v6326_v62 = vld [vmem:[#allocation5 + $0x35c] sm:$0xf0]  ;;  %v4653_v63 = vor.u32 %v6262_v59, %v4652_v58 }
  0x6c   :  { %817 = vmatpush.bf16.msra.mxu0 %v4421_v4  ;;  %v4909_v2 = vor.u32 %v6326_v62, %v4908_v61  ;;  %v6318_v4 = vld [vmem:[#allocation5 + $0x31c] sm:$0xf0]  ;;  %v6330_v61 = vld [vmem:[#allocation5 + $0x384] sm:$0xf] }
  0x6d   :  { %830 = vmatpush.bf16.msra.mxu1 %v4169_v5  ;;  %v4621_v5 = vor.u32 %v6254_v1, %v4620_v0  ;;  %v6398_v58 = vld [vmem:[#allocation5 + $0x59c] sm:$0xf0]  ;;  %v4942_v62 = vld [vmem:[#allocation5 + $0x3a0] sm:$0xf0] }
  0x6e   :  { %843 = vmatpush.bf16.msra.mxu2 %v4297_v6  ;;  %856 = vmatpush.bf16.msra.mxu3 %v4425_v10  ;;  %v4588_v6 = vld [vmem:[#allocation5 + $0xc0] sm:$0xf]  ;;  %v4494_v0 = vld [vmem:[#allocation5 + $0x20] sm:$0xf0]  ;;  %v4945_v1 = vor.u32 %v6330_v61, %v4942_v62 }
  0x6f   :  { %v4589_v9 = vor.u32 %v6246_v7, %v4588_v6  ;;  %v4556_v10 = vld [vmem:[#allocation5 + $0x80] sm:$0xf]  ;;  %v6322_v7 = vld [vmem:[#allocation5 + $0x344] sm:$0xf] }
  0x70   :  { %818 = vmatpush.bf16.msra.mxu0 %v4405_v16  ;;  %v6230_v16 = vld [vmem:[#allocation5 + $0x5c] sm:$0xf0] }
  0x71   :  { %831 = vmatpush.bf16.msra.mxu1 %v4153_v17  ;;  %v4813_v17 = vor.u32 %v6302_v13, %v4812_v12  ;;  %v6470_v6 = vld [vmem:[#allocation5 + $0x7dc] sm:$0xf0] }
  0x72   :  { %844 = vmatpush.bf16.msra.mxu2 %v4281_v18  ;;  %857 = vmatpush.bf16.msra.mxu3 %v4409_v22  ;;  %v4525_v18 = vor.u32 %v6230_v16, %v4524_v15  ;;  %v4718_v22 = vld [vmem:[#allocation5 + $0x1e0] sm:$0xf0]  ;;  %v6462_v13 = vld [vmem:[#allocation5 + $0x79c] sm:$0xf0] }
  0x73   :  { %v4721_v24 = vor.u32 %v6274_v21, %v4718_v22  ;;  %v4878_v15 = vld [vmem:[#allocation5 + $0x320] sm:$0xf0]  ;;  %v6374_v19 = vld [vmem:[#allocation5 + $0x4dc] sm:$0xf0] }
  0x74   :  { %819 = vmatpush.bf16.msra.mxu0 %v4389_v28  ;;  %v6258_v28 = vld [vmem:[#allocation5 + $0x144] sm:$0xf]  ;;  %v5420_v20 = vld [vmem:[#allocation5 + $0x740] sm:$0xf] }
  0x75   :  { %832 = vmatpush.bf16.msra.mxu1 %v4137_v30  ;;  %v4657_v30 = vor.u32 %v6258_v28, %v4654_v29  ;;  %v6454_v22 = vld [vmem:[#allocation5 + $0x75c] sm:$0xf0] }
  0x76   :  { %845 = vmatpush.bf16.msra.mxu2 %v4265_v31  ;;  %858 = vmatpush.bf16.msra.mxu3 %v4393_v35  ;;  %v6250_v31 = vld [vmem:[#allocation5 + $0x104] sm:$0xf]  ;;  %v5421_v25 = vor.u32 %v6454_v22, %v5420_v20  ;;  %v6366_v28 = vld [vmem:[#allocation5 + $0x49c] sm:$0xf0] }
  0x77   :  { %v4625_v33 = vor.u32 %v6250_v31, %v4622_v32  ;;  %v4590_v35 = vld [vmem:[#allocation5 + $0xe0] sm:$0xf0]  ;;  %v6914_v29 = vld [vmem:[%s7086_s2] sm:$0xf] }
  0x78   :  { %820 = vmatpush.bf16.msra.mxu0 %v4373_v42  ;;  %v4593_v39 = vor.u32 %v6242_v34, %v4590_v35  ;;  %v5228_v42 = vld [vmem:[#allocation5 + $0x5c0] sm:$0xf]  ;;  %v6298_v34 = vld [vmem:[#allocation5 + $0x284] sm:$0xf]  ;;  %v221_v36 = vperm.slane %v6914_v29, 0 }
  0x79   :  { %833 = vmatpush.bf16.msra.mxu1 %v4121_v45  ;;  %v5229_v44 = vor.u32 %v6406_v43, %v5228_v42  ;;  %v4748_v45 = vld [vmem:[#allocation5 + $0x200] sm:$0xf]  ;;  %v4814_v35 = vld [vmem:[#allocation5 + $0x2a0] sm:$0xf0] }
  0x7a   :  { %846 = vmatpush.bf16.msra.mxu2 %v4249_v46  ;;  %859 = vmatpush.bf16.msra.mxu3 %v4377_v47  ;;  %v6286_v46 = vld [vmem:[#allocation5 + $0x21c] sm:$0xf0]  ;;  %v4817_v37 = vor.u32 %v6298_v34, %v4814_v35  ;;  %v6386_v20 = vld [vmem:[#allocation5 + $0x544] sm:$0xf] }
  0x7b   :  { %821 = vmatmul.bf16.vlgmr.msra.gmra.mxu0 %v6893_v50  ;;  %v4749_v47 = vor.u32 %v6286_v46, %v4748_v45  ;;  %v5388_v31 = vld [vmem:[#allocation5 + $0x700] sm:$0xf]  ;;  %v6290_v46 = vld [vmem:[#allocation5 + $0x244] sm:$0xf] }
  0x7c   :  { %2427 = vmatpush.bf16.msrb.mxu0 %v4717_v48  ;;  %834 = vmatmul.bf16.vlgmr.msra.gmra.mxu1 %v6895_v54  ;;  %v4877_v54 = vor.u32 %v6318_v4, %v4876_v3  ;;  %v6338_v48 = vld [vmem:[#allocation5 + $0x3c4] sm:$0xf]  ;;  %v6390_v3 = vld [vmem:[#allocation5 + $0x55c] sm:$0xf0] }
  0x7d   :  { %2440 = vmatpush.bf16.msrb.mxu1 %v4973_v52  ;;  %847 = vmatmul.bf16.vlgmr.msra.gmra.mxu2 %v6897_v57  ;;  %v6310_v57 = vld [vmem:[#allocation5 + $0x2dc] sm:$0xf0]  ;;  %v6226_v52 = vld [vmem:[#allocation5 + $0x44] sm:$0xf]  ;;  %v4977_v53 = vor.u32 %v6338_v48, %v4974_v49 }
  0x7e   :  { %860 = vmatmul.bf16.vlgmr.msra.gmra.mxu3 %v6893_v50  ;;  %v6238_v50 = vld [vmem:[#allocation5 + $0x9c] sm:$0xf0]  ;;  %v4845_v11 = vor.u32 %v6310_v57, %v4844_v8  ;;  %2453 = vmatpush.bf16.msrb.mxu2 %v5229_v44  ;;  %v4910_v8 = vld [vmem:[#allocation5 + $0x360] sm:$0xf0] }
  0x7f   :  { %v4557_v14 = vor.u32 %v6238_v50, %v4556_v10  ;;  %v4913_v57 = vor.u32 %v6322_v7, %v4910_v8  ;;  %v5132_v10 = vld [vmem:[#allocation5 + $0x500] sm:$0xf]  ;;  %v6466_v22 = vld [vmem:[#allocation5 + $0x7c4] sm:$0xf] }
  0x80   :  { %2428 = vmatpush.bf16.msrb.mxu0 %v4685_v56  ;;  %v5196_v56 = vld [vmem:[#allocation5 + $0x580] sm:$0xf]  ;;  %v6458_v34 = vld [vmem:[#allocation5 + $0x784] sm:$0xf] }
  0x81   :  { %2441 = vmatpush.bf16.msrb.mxu1 %v4941_v60  ;;  %v5197_v59 = vor.u32 %v6398_v58, %v5196_v56  ;;  %v6218_v60 = vld [vmem:[#allocation5 + $0x4] sm:$0xf]  ;;  %v6382_v50 = vld [vmem:[#allocation5 + $0x51c] sm:$0xf0] }
  0x82   :  { %v5133_v12 = vor.u32 %v6382_v50, %v5132_v10  ;;  %v6446_v32 = vld [vmem:[#allocation5 + $0x71c] sm:$0xf0] }
  0x83   :  { %2454 = vmatpush.bf16.msrb.mxu2 %v5197_v59  ;;  %v5356_v40 = vld [vmem:[#allocation5 + $0x6c0] sm:$0xf]  ;;  %v6402_v59 = vld [vmem:[#allocation5 + $0x5c4] sm:$0xf] }
  0x84   :  { %2429 = vmatpush.bf16.msrb.mxu0 %v4653_v63  ;;  %v4529_v63 = vor.u32 %v6226_v52, %v4526_v55  ;;  %v6438_v42 = vld [vmem:[#allocation5 + $0x6dc] sm:$0xf0] }
  0x85   :  { %2442 = vmatpush.bf16.msrb.mxu1 %v4909_v2  ;;  %v5164_v2 = vld [vmem:[#allocation5 + $0x540] sm:$0xf]  ;;  %v5357_v45 = vor.u32 %v6438_v42, %v5356_v40  ;;  %v6255_v40 = vld [vmem:[#allocation5 + $0x124] sm:$0xf0]  ;;  %v5102_v42 = vld [vmem:[#allocation5 + $0x4e0] sm:$0xf0] }
  0x86   :  { %v5165_v4 = vor.u32 %v6390_v3, %v5164_v2  ;;  %v6350_v52 = vld [vmem:[#allocation5 + $0x41c] sm:$0xf0]  ;;  %v4724_v2 = vld [vmem:[#allocation5 + $0x1c8] sm:$0xf] }
  0x87   :  { %v6430_v58 = vld [vmem:[#allocation5 + $0x69c] sm:$0xf0] }
  0x88   :  { %2430 = vmatpush.bf16.msrb.mxu0 %v4621_v5  ;;  %v5484_v5 = vld [vmem:[#allocation5 + $0x7c0] sm:$0xf]  ;;  %2455 = vmatpush.bf16.msrb.mxu2 %v5165_v4 }
  0x89   :  { %2443 = vmatpush.bf16.msrb.mxu1 %v4877_v54  ;;  %v5485_v54 = vor.u32 %v6470_v6, %v5484_v5  ;;  %v6279_v5 = vld [vmem:[#allocation5 + $0x1e4] sm:$0xf0]  ;;  %v5292_v6 = vld [vmem:[#allocation5 + $0x640] sm:$0xf] }
  0x8a   :  { %v6422_v7 = vld [vmem:[#allocation5 + $0x65c] sm:$0xf0] }
  0x8b   :  { %2466 = vmatpush.bf16.msrb.mxu3 %v5485_v54  ;;  %v5293_v8 = vor.u32 %v6422_v7, %v5292_v6 }
  0x8c   :  { %2431 = vmatpush.bf16.msrb.mxu0 %v4589_v9  ;;  %v4497_v9 = vor.u32 %v6218_v60, %v4494_v0  ;;  %2456 = vmatpush.bf16.msrb.mxu2 %v5133_v12  ;;  %v5230_v60 = vld [vmem:[#allocation5 + $0x5e0] sm:$0xf0] }
  0x8d   :  { %2444 = vmatpush.bf16.msrb.mxu1 %v4845_v11  ;;  %v5452_v11 = vld [vmem:[#allocation5 + $0x780] sm:$0xf]  ;;  %v5233_v62 = vor.u32 %v6402_v59, %v5230_v60  ;;  %v4750_v0 = vld [vmem:[#allocation5 + $0x220] sm:$0xf0] }
  0x8e   :  { %v5453_v16 = vor.u32 %v6462_v13, %v5452_v11  ;;  %v4725_v13 = vor.u32 %v6279_v5, %v4724_v2  ;;  %v6434_v2 = vld [vmem:[#allocation5 + $0x6c4] sm:$0xf] }
  0x90   :  { %2432 = vmatpush.bf16.msrb.mxu0 %v4557_v14  ;;  %v6314_v14 = vld [vmem:[#allocation5 + $0x304] sm:$0xf]  ;;  %2467 = vmatpush.bf16.msrb.mxu3 %v5453_v16  ;;  %v6271_v16 = vld [vmem:[#allocation5 + $0x1a4] sm:$0xf0] }
  0x91   :  { %2445 = vmatpush.bf16.msrb.mxu1 %v4813_v17  ;;  %v4881_v17 = vor.u32 %v6314_v14, %v4878_v15  ;;  %v4692_v14 = vld [vmem:[#allocation5 + $0x188] sm:$0xf] }
  0x94   :  { %2433 = vmatpush.bf16.msrb.mxu0 %v4525_v18  ;;  %v5100_v18 = vld [vmem:[#allocation5 + $0x4c0] sm:$0xf]  ;;  %2468 = vmatpush.bf16.msrb.mxu3 %v5421_v25  ;;  %v4693_v25 = vor.u32 %v6271_v16, %v4692_v14  ;;  %v6426_v16 = vld [vmem:[#allocation5 + $0x684] sm:$0xf] }
  0x95   :  { %2446 = vmatpush.bf16.msrb.mxu1 %v4781_v38  ;;  %v5101_v21 = vor.u32 %v6374_v19, %v5100_v18  ;;  %v5036_v38 = vld [vmem:[#allocation5 + $0x440] sm:$0xf] }
  0x96   :  { %v6414_v18 = vld [vmem:[#allocation5 + $0x61c] sm:$0xf0] }
  0x97   :  { %2457 = vmatpush.bf16.msrb.mxu2 %v5101_v21  ;;  %v5166_v21 = vld [vmem:[#allocation5 + $0x560] sm:$0xf0] }
  0x98   :  { %2434 = vmatpush.bf16.msrb.mxu0 %v4493_v23  ;;  %v6306_v23 = vld [vmem:[#allocation5 + $0x2c4] sm:$0xf] }
  0x99   :  { %2447 = vmatpush.bf16.msrb.mxu1 %v4749_v47  ;;  %v4782_v47 = vld [vmem:[#allocation5 + $0x260] sm:$0xf0] }
  0x9a   :  { %v4785_v49 = vor.u32 %v6290_v46, %v4782_v47 }
  0x9c   :  { %2479 = vmatpush.bf16.msra.mxu0 %v4721_v24  ;;  %v4846_v24 = vld [vmem:[#allocation5 + $0x2e0] sm:$0xf0] }
  0x9d   :  { %2492 = vmatpush.bf16.msra.mxu1 %v4977_v53  ;;  %v4849_v26 = vor.u32 %v6306_v23, %v4846_v24  ;;  %v5324_v53 = vld [vmem:[#allocation5 + $0x680] sm:$0xf]  ;;  %v5169_v23 = vor.u32 %v6386_v20, %v5166_v21  ;;  %v5486_v24 = vld [vmem:[#allocation5 + $0x7e0] sm:$0xf0]  ;;  %v4500_v21 = vld [vmem:[#allocation5 + $0x8] sm:$0xf] }
  0x9e   :  { %v5325_v61 = vor.u32 %v6430_v58, %v5324_v53  ;;  %v5070_v53 = vld [vmem:[#allocation5 + $0x4a0] sm:$0xf0] }
  0x9f   :  { %v5390_v58 = vld [vmem:[#allocation5 + $0x720] sm:$0xf0] }
  0xa0   :  { %2480 = vmatpush.bf16.msra.mxu0 %v4689_v27  ;;  %v5068_v27 = vld [vmem:[#allocation5 + $0x480] sm:$0xf] }
  0xa1   :  { %2493 = vmatpush.bf16.msra.mxu1 %v4945_v1 }
  0xa4   :  { %2481 = vmatpush.bf16.msra.mxu0 %v4657_v30  ;;  %v5069_v30 = vor.u32 %v6366_v28, %v5068_v27  ;;  %v5489_v27 = vor.u32 %v6466_v22, %v5486_v24  ;;  %v4660_v28 = vld [vmem:[#allocation5 + $0x148] sm:$0xf]  ;;  %v6275_v24 = vld [vmem:[#allocation5 + $0x1cc] sm:$0xf] }
  0xa5   :  { %2494 = vmatpush.bf16.msra.mxu1 %v4913_v57  ;;  %v6394_v57 = vld [vmem:[#allocation5 + $0x584] sm:$0xf]  ;;  %v6223_v22 = vld [vmem:[#allocation5 + $0x24] sm:$0xf0] }
  0xa6   :  { %2458 = vmatpush.bf16.msrb.mxu2 %v5069_v30  ;;  %v6263_v30 = vld [vmem:[#allocation5 + $0x164] sm:$0xf0] }
  0xa8   :  { %2482 = vmatpush.bf16.msra.mxu0 %v4625_v33  ;;  %v5389_v33 = vor.u32 %v6446_v32, %v5388_v31  ;;  %v6378_v32 = vld [vmem:[#allocation5 + $0x504] sm:$0xf] }
  0xa9   :  { %2495 = vmatpush.bf16.msra.mxu1 %v4881_v17  ;;  %v5260_v17 = vld [vmem:[#allocation5 + $0x600] sm:$0xf] }
  0xaa   :  { %2469 = vmatpush.bf16.msrb.mxu3 %v5389_v33  ;;  %v5261_v19 = vor.u32 %v6414_v18, %v5260_v17  ;;  %v5134_v33 = vld [vmem:[#allocation5 + $0x520] sm:$0xf0] }
  0xab   :  { %v5137_v35 = vor.u32 %v6378_v32, %v5134_v33  ;;  %v5326_v17 = vld [vmem:[#allocation5 + $0x6a0] sm:$0xf0]  ;;  %v4501_v33 = vor.u32 %v6223_v22, %v4500_v21  ;;  %v6227_v21 = vld [vmem:[#allocation5 + $0x4c] sm:$0xf] }
  0xac   :  { %2483 = vmatpush.bf16.msra.mxu0 %v4593_v39  ;;  %v6358_v39 = vld [vmem:[#allocation5 + $0x45c] sm:$0xf0]  ;;  %v5294_v32 = vld [vmem:[#allocation5 + $0x660] sm:$0xf0]  ;;  %v4534_v22 = vld [vmem:[#allocation5 + $0x68] sm:$0xf0] }
  0xad   :  { %2496 = vmatpush.bf16.msra.mxu1 %v4849_v26  ;;  %v5037_v41 = vor.u32 %v6358_v39, %v5036_v38  ;;  %v4628_v39 = vld [vmem:[#allocation5 + $0x108] sm:$0xf] }
  0xae   :  { %2470 = vmatpush.bf16.msrb.mxu3 %v5357_v45  ;;  %v5422_v45 = vld [vmem:[#allocation5 + $0x760] sm:$0xf0]  ;;  %v4629_v46 = vor.u32 %v6255_v40, %v4628_v39  ;;  %v6267_v39 = vld [vmem:[#allocation5 + $0x18c] sm:$0xf] }
  0xaf   :  { %2459 = vmatpush.bf16.msrb.mxu2 %v5037_v41  ;;  %v6370_v41 = vld [vmem:[#allocation5 + $0x4c4] sm:$0xf] }
  0xb0   :  { %2484 = vmatpush.bf16.msra.mxu0 %v4561_v51  ;;  %v5004_v51 = vld [vmem:[#allocation5 + $0x400] sm:$0xf] }
  0xb1   :  { %2497 = vmatpush.bf16.msra.mxu1 %v4817_v37  ;;  %v5005_v56 = vor.u32 %v6350_v52, %v5004_v51  ;;  %v4661_v37 = vor.u32 %v6263_v30, %v4660_v28  ;;  %v6247_v51 = vld [vmem:[#allocation5 + $0xe4] sm:$0xf0]  ;;  %v6362_v52 = vld [vmem:[#allocation5 + $0x484] sm:$0xf] }
  0xb2   :  { %2471 = vmatpush.bf16.msrb.mxu3 %v5325_v61  ;;  %v4948_v30 = vld [vmem:[#allocation5 + $0x388] sm:$0xf] }
  0xb3   :  { %2460 = vmatpush.bf16.msrb.mxu2 %v5005_v56  ;;  %v5073_v56 = vor.u32 %v6362_v52, %v5070_v53  ;;  %v4884_v53 = vld [vmem:[#allocation5 + $0x308] sm:$0xf] }
  0xb4   :  { %2485 = vmatpush.bf16.msra.mxu0 %v4529_v63  ;;  %v6282_v63 = vld [vmem:[#allocation5 + $0x204] sm:$0xf] }
  0xb5   :  { %2498 = vmatpush.bf16.msra.mxu1 %v4785_v49  ;;  %v4753_v3 = vor.u32 %v6282_v63, %v4750_v0  ;;  %v4596_v49 = vld [vmem:[#allocation5 + $0xc8] sm:$0xf]  ;;  %v6354_v0 = vld [vmem:[#allocation5 + $0x444] sm:$0xf] }
  0xb6   :  { %2472 = vmatpush.bf16.msrb.mxu3 %v5293_v8  ;;  %v4597_v59 = vor.u32 %v6247_v51, %v4596_v49  ;;  %v6239_v63 = vld [vmem:[#allocation5 + $0xa4] sm:$0xf0]  ;;  %v6259_v49 = vld [vmem:[#allocation5 + $0x14c] sm:$0xf] }
  0xb7   :  { %2505 = vmatpush.bf16.msra.mxu2 %v5233_v62  ;;  %v4564_v62 = vld [vmem:[#allocation5 + $0x88] sm:$0xf]  ;;  %v4662_v51 = vld [vmem:[#allocation5 + $0x168] sm:$0xf0] }
  0xb8   :  { %2486 = vmatpush.bf16.msra.mxu0 %v4497_v9  ;;  %v718_v43 = vpop.f32.mrf.mxu0  ;;  %v5198_v9 = vld [vmem:[#allocation5 + $0x5a0] sm:$0xf0]  ;;  %v4565_v6 = vor.u32 %v6239_v63, %v4564_v62  ;;  %v4852_v62 = vld [vmem:[#allocation5 + $0x2c8] sm:$0xf] }
  0xb9   :  { %v731_v44 = vpop.f32.mrf.mxu1  ;;  %v719_v48 = vadd.f32 %v718_v43, %v221_v36  ;;  %2499 = vmatpush.bf16.msra.mxu1 %v4753_v3  ;;  %v5201_v12 = vor.u32 %v6394_v57, %v5198_v9  ;;  %v5454_v36 = vld [vmem:[#allocation5 + $0x7a0] sm:$0xf0]  ;;  %v4532_v9 = vld [vmem:[#allocation5 + $0x48] sm:$0xf] }
  0xba   :  { %2473 = vmatpush.bf16.msrb.mxu3 %v5261_v19  ;;  %v5457_v38 = vor.u32 %v6458_v34, %v5454_v36  ;;  %v6450_v43 = vld [vmem:[#allocation5 + $0x744] sm:$0xf]  ;;  %v5329_v19 = vor.u32 %v6426_v16, %v5326_v17  ;;  %v6311_v63 = vld [vmem:[#allocation5 + $0x2e4] sm:$0xf0] }
  0xbb   :  { %v732_v55 = vadd.f32 %v731_v44, %v719_v48  ;;  %2506 = vmatpush.bf16.msra.mxu2 %v5201_v12  ;;  %v5105_v44 = vor.u32 %v6370_v41, %v5102_v42  ;;  %v5425_v47 = vor.u32 %v6450_v43, %v5422_v45  ;;  %v222_v48 = vperm.slane %v6914_v29, 1  ;;  %v4694_v41 = vld [vmem:[#allocation5 + $0x1a8] sm:$0xf0]  ;;  %v6410_v42 = vld [vmem:[#allocation5 + $0x604] sm:$0xf] }
  0xbc   :  { %v5262_v43 = vld [vmem:[#allocation5 + $0x620] sm:$0xf0]  ;;  %v6327_v45 = vld [vmem:[#allocation5 + $0x364] sm:$0xf0] }
  0xbd   :  { %v5236_v16 = vld [vmem:[#allocation5 + $0x5c8] sm:$0xf] }
  0xbe   :  { %2518 = vmatpush.bf16.msra.mxu3 %v5489_v27 }
  0xbf   :  { %2507 = vmatpush.bf16.msra.mxu2 %v5169_v23 }
  0xc0   :  { %v744_v1 = vpop.f32.mrf.mxu2  ;;  %v720_v50 = vpop.f32.mrf.mxu0 }
  0xc1   :  { %v745_v4 = vadd.f32 %v744_v1, %v732_v55  ;;  %v733_v11 = vpop.f32.mrf.mxu1  ;;  %v6442_v55 = vld [vmem:[#allocation5 + $0x704] sm:$0xf] }
  0xc2   :  { %v6917_v54 = vpop.f32.mrf.mxu3  ;;  %2519 = vmatpush.bf16.msra.mxu3 %v5457_v38  ;;  %v5393_v60 = vor.u32 %v6442_v55, %v5390_v58  ;;  %v5038_v1 = vld [vmem:[#allocation5 + $0x460] sm:$0xf0]  ;;  %v6319_v55 = vld [vmem:[#allocation5 + $0x324] sm:$0xf0]  ;;  %v4665_v58 = vor.u32 %v6259_v49, %v4662_v51 }
  0xc3   :  { %v865_v10 = vmax.f32 %v745_v4, 0.0  ;;  %2508 = vmatpush.bf16.msra.mxu2 %v5137_v35  ;;  %v758_v61 = vadd.f32 %v6917_v54, %v222_v48  ;;  %v5041_v3 = vor.u32 %v6354_v0, %v5038_v1  ;;  %v5358_v4 = vld [vmem:[#allocation5 + $0x6e0] sm:$0xf0]  ;;  %v4980_v54 = vld [vmem:[#allocation5 + $0x3c8] sm:$0xf]  ;;  %v223_v0 = vperm.slane %v6914_v29, 2 }
  0xc4   :  { %v5361_v7 = vor.u32 %v6434_v2, %v5358_v4  ;;  %v6346_v50 = vld [vmem:[#allocation5 + $0x404] sm:$0xf]  ;;  %v4853_v2 = vor.u32 %v6311_v63, %v4852_v62  ;;  %v4598_v4 = vld [vmem:[#allocation5 + $0xe8] sm:$0xf0]  ;;  %v5172_v51 = vld [vmem:[#allocation5 + $0x548] sm:$0xf] }
  0xc5   :  { %v6919_v15 = vpack.c.bf16 %v865_v10, %v865_v10  ;;  %v6231_v10 = vld [vmem:[#allocation5 + $0x64] sm:$0xf0]  ;;  %v5006_v11 = vld [vmem:[#allocation5 + $0x420] sm:$0xf0]  ;;  %v4700_v62 = vld [vmem:[#allocation5 + $0x190] sm:$0xf] }
  0xc6   :  { %2520 = vmatpush.bf16.msra.mxu3 %v5425_v47  ;;  %v5009_v14 = vor.u32 %v6346_v50, %v5006_v11  ;;  %v4533_v18 = vor.u32 %v6231_v10, %v4532_v9  ;;  %v4697_v47 = vor.u32 %v6267_v39, %v4694_v41  ;;  %v6235_v9 = vld [vmem:[#allocation5 + $0x8c] sm:$0xf]  ;;  %v6295_v50 = vld [vmem:[#allocation5 + $0x264] sm:$0xf0]  ;;  %v6272_v63 = vld [vmem:[#allocation5 + $0x1ac] sm:$0xf0] }
  0xc7   :  { %2435 = vmatmul.bf16.vlgmr.msrb.gmra.mxu0 %v6919_v15  ;;  %2509 = vmatpush.bf16.msra.mxu2 %v5105_v44  ;;  %v4916_v44 = vld [vmem:[#allocation5 + $0x348] sm:$0xf]  ;;  %v4566_v10 = vld [vmem:[#allocation5 + $0xa8] sm:$0xf0] }
  0xc8   :  { %2531 = vmatpush.bf16.msrb.mxu0 %v4725_v13  ;;  %v746_v26 = vpop.f32.mrf.mxu2  ;;  %v6343_v13 = vld [vmem:[#allocation5 + $0x3e4] sm:$0xf0]  ;;  %v4917_v48 = vor.u32 %v6327_v45, %v4916_v44  ;;  %v6331_v39 = vld [vmem:[#allocation5 + $0x38c] sm:$0xf] }
  0xc9   :  { %v4981_v23 = vor.u32 %v6343_v13, %v4980_v54  ;;  %v6418_v26 = vld [vmem:[#allocation5 + $0x644] sm:$0xf]  ;;  %v4788_v54 = vld [vmem:[#allocation5 + $0x248] sm:$0xf]  ;;  %v224_v13 = vperm.slane %v6914_v29, 3 }
  0xca   :  { %v759_v31 = vpop.f32.mrf.mxu3  ;;  %2521 = vmatpush.bf16.msra.mxu3 %v5393_v60  ;;  %v5297_v36 = vor.u32 %v6418_v26, %v5294_v32  ;;  %v6251_v60 = vld [vmem:[#allocation5 + $0x10c] sm:$0xf]  ;;  %v4537_v32 = vor.u32 %v6227_v21, %v4534_v22  ;;  %v6455_v21 = vld [vmem:[#allocation5 + $0x764] sm:$0xf0] }
  0xcb   :  { %2510 = vmatpush.bf16.msra.mxu2 %v5073_v56  ;;  %v6335_v31 = vld [vmem:[#allocation5 + $0x3a4] sm:$0xf0]  ;;  %v6339_v26 = vld [vmem:[#allocation5 + $0x3cc] sm:$0xf] }
  0xcc   :  { %2532 = vmatpush.bf16.msrb.mxu0 %v4693_v25  ;;  %v4726_v25 = vld [vmem:[#allocation5 + $0x1e8] sm:$0xf0]  ;;  %v4949_v40 = vor.u32 %v6335_v31, %v4948_v30 }
  0xcd   :  { %v4950_v41 = vld [vmem:[#allocation5 + $0x3a8] sm:$0xf0] }
  0xce   :  { %2522 = vmatpush.bf16.msra.mxu3 %v5361_v7  ;;  %v6307_v22 = vld [vmem:[#allocation5 + $0x2cc] sm:$0xf] }
  0xcf   :  { %2511 = vmatpush.bf16.msra.mxu2 %v5041_v3  ;;  %v6243_v3 = vld [vmem:[#allocation5 + $0xcc] sm:$0xf] }
  0xd0   :  { %2533 = vmatpush.bf16.msrb.mxu0 %v4661_v37  ;;  %v4729_v37 = vor.u32 %v6275_v24, %v4726_v25  ;;  %v6287_v24 = vld [vmem:[#allocation5 + $0x224] sm:$0xf0] }
  0xd2   :  { %2523 = vmatpush.bf16.msra.mxu3 %v5329_v19  ;;  %v4789_v19 = vor.u32 %v6295_v50, %v4788_v54  ;;  %v4886_v54 = vld [vmem:[#allocation5 + $0x328] sm:$0xf0]  ;;  %v4668_v50 = vld [vmem:[#allocation5 + $0x150] sm:$0xf] }
  0xd3   :  { %2512 = vmatpush.bf16.msra.mxu2 %v5009_v14  ;;  %v4569_v14 = vor.u32 %v6235_v9, %v4566_v10  ;;  %v6315_v9 = vld [vmem:[#allocation5 + $0x30c] sm:$0xf] }
  0xd4   :  { %2534 = vmatpush.bf16.msrb.mxu0 %v4629_v46  ;;  %v5265_v46 = vor.u32 %v6410_v42, %v5262_v43  ;;  %v4732_v42 = vld [vmem:[#allocation5 + $0x1d0] sm:$0xf] }
  0xd5   :  { %v6280_v43 = vld [vmem:[#allocation5 + $0x1ec] sm:$0xf0] }
  0xd6   :  { %2524 = vmatpush.bf16.msra.mxu3 %v5297_v36 }
  0xd7   :  { %2487 = vmatmul.bf16.vlgmr.msra.gmra.mxu0 %v6919_v15 }
  0xd8   :  { %v770_v5 = vpop.f32.mrf.mxu0  ;;  %2535 = vmatpush.bf16.msrb.mxu0 %v4597_v59  ;;  %v4885_v59 = vor.u32 %v6319_v55, %v4884_v53  ;;  %v4953_v55 = vor.u32 %v6331_v39, %v4950_v41  ;;  %v6248_v39 = vld [vmem:[#allocation5 + $0xec] sm:$0xf0] }
  0xd9   :  { %v771_v8 = vadd.f32 %v770_v5, %v758_v61  ;;  %v783_v57 = vpop.f32.mrf.mxu1  ;;  %v4630_v61 = vld [vmem:[#allocation5 + $0x128] sm:$0xf0]  ;;  %v4820_v5 = vld [vmem:[#allocation5 + $0x288] sm:$0xf] }
  0xda   :  { %2525 = vmatpush.bf16.msra.mxu3 %v5265_v46  ;;  %v4633_v1 = vor.u32 %v6251_v60, %v4630_v61  ;;  %v6323_v60 = vld [vmem:[#allocation5 + $0x34c] sm:$0xf] }
  0xdb   :  { %v784_v12 = vadd.f32 %v783_v57, %v771_v8  ;;  %v4601_v8 = vor.u32 %v6243_v3, %v4598_v4  ;;  %v4918_v61 = vld [vmem:[#allocation5 + $0x368] sm:$0xf0]  ;;  %v5140_v3 = vld [vmem:[#allocation5 + $0x508] sm:$0xf] }
  0xdc   :  { %2536 = vmatpush.bf16.msrb.mxu0 %v4565_v6  ;;  %v6303_v6 = vld [vmem:[#allocation5 + $0x2a4] sm:$0xf0] }
  0xdd   :  { %v866_v20 = vmax.f32 %v784_v12, 0.0  ;;  %v4821_v57 = vor.u32 %v6303_v6, %v4820_v5  ;;  %v6383_v4 = vld [vmem:[#allocation5 + $0x524] sm:$0xf0]  ;;  %v4921_v6 = vor.u32 %v6323_v60, %v4918_v61 }
  0xde   :  { %v6431_v60 = vld [vmem:[#allocation5 + $0x6a4] sm:$0xf0] }
  0xdf   :  { %v6925_v27 = vpack.c.bf16 %v866_v20, %v866_v20  ;;  %v6407_v20 = vld [vmem:[#allocation5 + $0x5e4] sm:$0xf0] }
  0xe0   :  { %v796_v28 = vpop.f32.mrf.mxu2  ;;  %2537 = vmatpush.bf16.msrb.mxu0 %v4533_v18  ;;  %v772_v35 = vpop.f32.mrf.mxu0  ;;  %v5237_v31 = vor.u32 %v6407_v20, %v5236_v16  ;;  %v5108_v16 = vld [vmem:[#allocation5 + $0x4c8] sm:$0xf] }
  0xe1   :  { %2448 = vmatmul.bf16.vlgmr.msrb.gmra.mxu1 %v6925_v27  ;;  %v785_v38 = vpop.f32.mrf.mxu1  ;;  %v797_v7 = vadd.f32 %v796_v28, %v223_v0  ;;  %v4982_v28 = vld [vmem:[#allocation5 + $0x3e8] sm:$0xf0]  ;;  %v6399_v35 = vld [vmem:[#allocation5 + $0x5a4] sm:$0xf0] }
  0xe2   :  { %v809_v34 = vpop.f32.mrf.mxu3  ;;  %2544 = vmatpush.bf16.msrb.mxu1 %v4981_v23  ;;  %v4756_v23 = vld [vmem:[#allocation5 + $0x208] sm:$0xf]  ;;  %v4985_v36 = vor.u32 %v6339_v26, %v4982_v28  ;;  %v4502_v38 = vld [vmem:[#allocation5 + $0x28] sm:$0xf0] }
  0xe3   :  { %v810_v11 = vadd.f32 %v809_v34, %v797_v7  ;;  %v5204_v34 = vld [vmem:[#allocation5 + $0x588] sm:$0xf]  ;;  %v4701_v7 = vor.u32 %v6272_v63, %v4700_v62  ;;  %v6403_v63 = vld [vmem:[#allocation5 + $0x5cc] sm:$0xf] }
  0xe4   :  { %2538 = vmatpush.bf16.msrb.mxu0 %v4501_v33  ;;  %v4757_v33 = vor.u32 %v6287_v24, %v4756_v23  ;;  %v5428_v20 = vld [vmem:[#allocation5 + $0x748] sm:$0xf]  ;;  %v4854_v23 = vld [vmem:[#allocation5 + $0x2e8] sm:$0xf0]  ;;  %v4636_v24 = vld [vmem:[#allocation5 + $0x110] sm:$0xf] }
  0xe5   :  { %v5429_v28 = vor.u32 %v6455_v21, %v5428_v20  ;;  %v6276_v20 = vld [vmem:[#allocation5 + $0x1d4] sm:$0xf] }
  0xe6   :  { %2545 = vmatpush.bf16.msrb.mxu1 %v4949_v40  ;;  %v4734_v21 = vld [vmem:[#allocation5 + $0x1f0] sm:$0xf0] }
  0xe7   :  { %2539 = vmatmul.bf16.vlgmr.msrb.gmra.mxu0 %v6919_v15 }
  0xe8   :  { %2583 = vmatpush.bf16.msra.mxu0 %v4729_v37  ;;  %v798_v52 = vpop.f32.mrf.mxu2  ;;  %v6219_v37 = vld [vmem:[#allocation5 + $0xc] sm:$0xf] }
  0xe9   :  { %v4505_v49 = vor.u32 %v6219_v37, %v4502_v38  ;;  %v6391_v52 = vld [vmem:[#allocation5 + $0x564] sm:$0xf0]  ;;  %v4822_v37 = vld [vmem:[#allocation5 + $0x2a8] sm:$0xf0]  ;;  %v4604_v38 = vld [vmem:[#allocation5 + $0xd0] sm:$0xf] }
  0xea   :  { %v811_v56 = vpop.f32.mrf.mxu3  ;;  %2546 = vmatpush.bf16.msrb.mxu1 %v4917_v48 }
  0xeb   :  { %v4733_v56 = vor.u32 %v6280_v43, %v4732_v42  ;;  %v5044_v42 = vld [vmem:[#allocation5 + $0x448] sm:$0xf] }
  0xec   :  { %2584 = vmatpush.bf16.msra.mxu0 %v4697_v47  ;;  %v5205_v47 = vor.u32 %v6399_v35, %v5204_v34  ;;  %v5396_v34 = vld [vmem:[#allocation5 + $0x708] sm:$0xf] }
  0xed   :  { %v6447_v35 = vld [vmem:[#allocation5 + $0x724] sm:$0xf0] }
  0xee   :  { %2547 = vmatpush.bf16.msrb.mxu1 %v4885_v59  ;;  %v6471_v59 = vld [vmem:[#allocation5 + $0x7e4] sm:$0xf0]  ;;  %v5397_v41 = vor.u32 %v6447_v35, %v5396_v34  ;;  %v5494_v34 = vld [vmem:[#allocation5 + $0x7e8] sm:$0xf0]  ;;  %v4924_v35 = vld [vmem:[#allocation5 + $0x350] sm:$0xf] }
  0xef   :  { %v6359_v43 = vld [vmem:[#allocation5 + $0x464] sm:$0xf0] }
  0xf0   :  { %2585 = vmatpush.bf16.msra.mxu0 %v4665_v58  ;;  %v5492_v58 = vld [vmem:[#allocation5 + $0x7c8] sm:$0xf] }
  0xf1   :  { %2500 = vmatmul.bf16.vlgmr.msra.gmra.mxu1 %v6925_v27 }
  0xf2   :  { %2548 = vmatpush.bf16.msrb.mxu1 %v4853_v2  ;;  %v5493_v2 = vor.u32 %v6471_v59, %v5492_v58  ;;  %v6351_v58 = vld [vmem:[#allocation5 + $0x424] sm:$0xf0] }
  0xf3   :  { %v5332_v59 = vld [vmem:[#allocation5 + $0x688] sm:$0xf] }
  0xf4   :  { %2586 = vmatpush.bf16.msra.mxu0 %v4633_v1  ;;  %v5173_v1 = vor.u32 %v6391_v52, %v5172_v51  ;;  %v4572_v51 = vld [vmem:[#allocation5 + $0x90] sm:$0xf] }
  0xf5   :  { %v6240_v52 = vld [vmem:[#allocation5 + $0xac] sm:$0xf0] }
  0xf6   :  { %2549 = vmatpush.bf16.msrb.mxu1 %v4821_v57  ;;  %v6463_v57 = vld [vmem:[#allocation5 + $0x7a4] sm:$0xf0]  ;;  %v4573_v62 = vor.u32 %v6240_v52, %v4572_v51  ;;  %v6260_v51 = vld [vmem:[#allocation5 + $0x154] sm:$0xf] }
  0xf7   :  { %v4670_v52 = vld [vmem:[#allocation5 + $0x170] sm:$0xf0] }
  0xf8   :  { %v822_v12 = vpop.f32.mrf.mxu0  ;;  %2587 = vmatpush.bf16.msra.mxu0 %v4601_v8  ;;  %v5460_v8 = vld [vmem:[#allocation5 + $0x788] sm:$0xf] }
  0xf9   :  { %v823_v17 = vadd.f32 %v822_v12, %v810_v11  ;;  %v835_v18 = vpop.f32.mrf.mxu1  ;;  %v6264_v11 = vld [vmem:[#allocation5 + $0x16c] sm:$0xf0] }
  0xfa   :  { %v836_v30 = vadd.f32 %v835_v18, %v224_v13  ;;  %2550 = vmatpush.bf16.msrb.mxu1 %v4789_v19  ;;  %v5141_v13 = vor.u32 %v6383_v4, %v5140_v3  ;;  %v4889_v18 = vor.u32 %v6315_v9, %v4886_v54  ;;  %v4669_v19 = vor.u32 %v6264_v11, %v4668_v50  ;;  %v4540_v3 = vld [vmem:[#allocation5 + $0x50] sm:$0xf]  ;;  %v6423_v11 = vld [vmem:[#allocation5 + $0x664] sm:$0xf0] }
  0xfb   :  { %v867_v25 = vmax.f32 %v823_v17, 0.0  ;;  %v6375_v17 = vld [vmem:[#allocation5 + $0x4e4] sm:$0xf0]  ;;  %v6232_v4 = vld [vmem:[#allocation5 + $0x6c] sm:$0xf0] }
  0xfc   :  { %2588 = vmatpush.bf16.msra.mxu0 %v4569_v14  ;;  %v5461_v14 = vor.u32 %v6463_v57, %v5460_v8  ;;  %v5109_v26 = vor.u32 %v6375_v17, %v5108_v16  ;;  %v6344_v8 = vld [vmem:[#allocation5 + $0x3ec] sm:$0xf0]  ;;  %v5333_v57 = vor.u32 %v6431_v60, %v5332_v59  ;;  %v4541_v50 = vor.u32 %v6232_v4, %v4540_v3 }
  0xfd   :  { %v6932_v29 = vpack.c.bf16 %v867_v25, %v867_v25  ;;  %v6256_v25 = vld [vmem:[#allocation5 + $0x12c] sm:$0xf0]  ;;  %v4673_v60 = vor.u32 %v6260_v51, %v4670_v52 }
  0xfe   :  { %2551 = vmatpush.bf16.msrb.mxu1 %v4757_v33  ;;  %v4637_v33 = vor.u32 %v6256_v25, %v4636_v24  ;;  %v4508_v16 = vld [vmem:[#allocation5 + $0x10] sm:$0xf] }
  0xff   :  { %2461 = vmatmul.bf16.vlgmr.msrb.gmra.mxu2 %v6932_v29  ;;  %v6224_v17 = vld [vmem:[#allocation5 + $0x2c] sm:$0xf0] }
 0x100   :  { %v848_v40 = vpop.f32.mrf.mxu2  ;;  %2557 = vmatpush.bf16.msrb.mxu2 %v5237_v31  ;;  %v824_v46 = vpop.f32.mrf.mxu0  ;;  %2589 = vmatpush.bf16.msra.mxu0 %v4537_v32  ;;  %v6367_v31 = vld [vmem:[#allocation5 + $0x4a4] sm:$0xf0]  ;;  %v4857_v32 = vor.u32 %v6307_v22, %v4854_v23  ;;  %v4509_v25 = vor.u32 %v6224_v17, %v4508_v16  ;;  %v6355_v16 = vld [vmem:[#allocation5 + $0x44c] sm:$0xf] }
 0x101   :  { %v849_v44 = vadd.f32 %v848_v40, %v836_v30  ;;  %v861_v45 = vpop.f32.mrf.mxu3  ;;  %v837_v48 = vpop.f32.mrf.mxu1  ;;  %2552 = vmatmul.bf16.vlgmr.msrb.gmra.mxu1 %v6925_v27  ;;  %v5076_v30 = vld [vmem:[#allocation5 + $0x488] sm:$0xf]  ;;  %v5046_v17 = vld [vmem:[#allocation5 + $0x468] sm:$0xf0] }
 0x102   :  { %2596 = vmatpush.bf16.msra.mxu1 %v4985_v36  ;;  %v6299_v36 = vld [vmem:[#allocation5 + $0x28c] sm:$0xf]  ;;  %v5077_v40 = vor.u32 %v6367_v31, %v5076_v30  ;;  %v5364_v46 = vld [vmem:[#allocation5 + $0x6c8] sm:$0xf] }
 0x103   :  { %v862_v53 = vadd.f32 %v861_v45, %v849_v44  ;;  %v4825_v44 = vor.u32 %v6299_v36, %v4822_v37  ;;  %v4605_v45 = vor.u32 %v6248_v39, %v4604_v38  ;;  %v6291_v48 = vld [vmem:[#allocation5 + $0x24c] sm:$0xf]  ;;  %v5268_v23 = vld [vmem:[#allocation5 + $0x608] sm:$0xf]  ;;  %v6328_v36 = vld [vmem:[#allocation5 + $0x36c] sm:$0xf0] }
 0x104   :  { %2558 = vmatpush.bf16.msrb.mxu2 %v5205_v47  ;;  %2590 = vmatpush.bf16.msra.mxu0 %v4505_v49  ;;  %v6439_v47 = vld [vmem:[#allocation5 + $0x6e4] sm:$0xf0]  ;;  %v4790_v49 = vld [vmem:[#allocation5 + $0x268] sm:$0xf0]  ;;  %v6268_v37 = vld [vmem:[#allocation5 + $0x194] sm:$0xf] }
 0x105   :  { %v868_v0 = vmax.f32 %v862_v53, 0.0  ;;  %v5045_v53 = vor.u32 %v6359_v43, %v5044_v42  ;;  %v4793_v61 = vor.u32 %v6291_v48, %v4790_v49  ;;  %v5174_v30 = vld [vmem:[#allocation5 + $0x568] sm:$0xf0]  ;;  %v4702_v38 = vld [vmem:[#allocation5 + $0x1b0] sm:$0xf0] }
 0x106   :  { %2597 = vmatpush.bf16.msra.mxu1 %v4953_v55  ;;  %v5012_v55 = vld [vmem:[#allocation5 + $0x408] sm:$0xf]  ;;  %v6379_v42 = vld [vmem:[#allocation5 + $0x50c] sm:$0xf]  ;;  %v4892_v48 = vld [vmem:[#allocation5 + $0x310] sm:$0xf] }
 0x107   :  { %v6936_v5 = vpack.c.bf16 %v868_v0, %v868_v0  ;;  %2591 = vmatmul.bf16.vlgmr.msra.gmra.mxu0 %v6919_v15  ;;  %v5238_v0 = vld [vmem:[#allocation5 + $0x5e8] sm:$0xf0]  ;;  %v6320_v49 = vld [vmem:[#allocation5 + $0x32c] sm:$0xf0] }
 0x108   :  { %2635 = vmatpush.bf16.msrb.mxu0 %v4733_v56  ;;  %v850_v10 = vpop.f32.mrf.mxu2  ;;  %2559 = vmatpush.bf16.msrb.mxu2 %v5173_v1  ;;  %v5365_v56 = vor.u32 %v6439_v47, %v5364_v46  ;;  %v6283_v1 = vld [vmem:[#allocation5 + $0x20c] sm:$0xf]  ;;  %v5241_v9 = vor.u32 %v6403_v63, %v5238_v0  ;;  %v4893_v59 = vor.u32 %v6320_v49, %v4892_v48  ;;  %v4860_v63 = vld [vmem:[#allocation5 + $0x2d0] sm:$0xf] }
 0x109   :  { %v863_v12 = vpop.f32.mrf.mxu3  ;;  %2474 = vmatmul.bf16.vlgmr.msrb.gmra.mxu3 %v6936_v5  ;;  %v5300_v10 = vld [vmem:[#allocation5 + $0x648] sm:$0xf]  ;;  %v5142_v43 = vld [vmem:[#allocation5 + $0x528] sm:$0xf0]  ;;  %v6312_v0 = vld [vmem:[#allocation5 + $0x2ec] sm:$0xf0] }
 0x10a   :  { %2570 = vmatpush.bf16.msrb.mxu3 %v5493_v2  ;;  %2598 = vmatpush.bf16.msra.mxu1 %v4921_v6  ;;  %v4758_v2 = vld [vmem:[#allocation5 + $0x228] sm:$0xf0]  ;;  %v5013_v6 = vor.u32 %v6351_v58, %v5012_v55  ;;  %v5301_v22 = vor.u32 %v6423_v11, %v5300_v10  ;;  %v6244_v11 = vld [vmem:[#allocation5 + $0xd4] sm:$0xf] }
 0x10b   :  { %v4761_v54 = vor.u32 %v6283_v1, %v4758_v2  ;;  %v6395_v12 = vld [vmem:[#allocation5 + $0x58c] sm:$0xf]  ;;  %v6252_v1 = vld [vmem:[#allocation5 + $0x114] sm:$0xf] }
 0x10c   :  { %2636 = vmatpush.bf16.msrb.mxu0 %v4701_v7  ;;  %2560 = vmatpush.bf16.msrb.mxu2 %v5141_v13  ;;  %v4988_v7 = vld [vmem:[#allocation5 + $0x3d0] sm:$0xf]  ;;  %v5206_v13 = vld [vmem:[#allocation5 + $0x5a8] sm:$0xf0]  ;;  %v4638_v2 = vld [vmem:[#allocation5 + $0x130] sm:$0xf0] }
 0x10d   :  { %v5209_v24 = vor.u32 %v6395_v12, %v5206_v13  ;;  %v6459_v46 = vld [vmem:[#allocation5 + $0x78c] sm:$0xf]  ;;  %v4606_v12 = vld [vmem:[#allocation5 + $0xf0] sm:$0xf0] }
 0x10e   :  { %2571 = vmatpush.bf16.msrb.mxu3 %v5461_v14  ;;  %2599 = vmatpush.bf16.msra.mxu1 %v4889_v18  ;;  %v4989_v14 = vor.u32 %v6344_v8, %v4988_v7  ;;  %v4956_v18 = vld [vmem:[#allocation5 + $0x390] sm:$0xf]  ;;  %v5462_v47 = vld [vmem:[#allocation5 + $0x7a8] sm:$0xf0]  ;;  %v4861_v8 = vor.u32 %v6312_v0, %v4860_v63  ;;  %v6281_v63 = vld [vmem:[#allocation5 + $0x1f4] sm:$0xf0] }
 0x10f   :  { %2513 = vmatmul.bf16.vlgmr.msra.gmra.mxu2 %v6932_v29  ;;  %v5465_v55 = vor.u32 %v6459_v46, %v5462_v47  ;;  %v5110_v58 = vld [vmem:[#allocation5 + $0x4e8] sm:$0xf0] }
 0x110   :  { %2637 = vmatpush.bf16.msrb.mxu0 %v4669_v19  ;;  %2561 = vmatpush.bf16.msrb.mxu2 %v5109_v26  ;;  %v6336_v19 = vld [vmem:[#allocation5 + $0x3ac] sm:$0xf0]  ;;  %v6415_v26 = vld [vmem:[#allocation5 + $0x624] sm:$0xf0]  ;;  %v5078_v7 = vld [vmem:[#allocation5 + $0x4a8] sm:$0xf0] }
 0x111   :  { %v4957_v31 = vor.u32 %v6336_v19, %v4956_v18  ;;  %v5269_v39 = vor.u32 %v6415_v26, %v5268_v23  ;;  %v5398_v10 = vld [vmem:[#allocation5 + $0x728] sm:$0xf0]  ;;  %v4609_v19 = vor.u32 %v6244_v11, %v4606_v12  ;;  %v6296_v23 = vld [vmem:[#allocation5 + $0x26c] sm:$0xf0]  ;;  %v5049_v26 = vor.u32 %v6355_v16, %v5046_v17  ;;  %v4708_v11 = vld [vmem:[#allocation5 + $0x198] sm:$0xf] }
 0x112   :  { %2572 = vmatpush.bf16.msrb.mxu3 %v5429_v28  ;;  %2600 = vmatpush.bf16.msra.mxu1 %v4857_v32  ;;  %v6387_v28 = vld [vmem:[#allocation5 + $0x54c] sm:$0xf]  ;;  %v4737_v32 = vor.u32 %v6276_v20, %v4734_v21  ;;  %v6273_v12 = vld [vmem:[#allocation5 + $0x1b4] sm:$0xf0]  ;;  %v5148_v16 = vld [vmem:[#allocation5 + $0x510] sm:$0xf] }
 0x113   :  { %v6435_v20 = vld [vmem:[#allocation5 + $0x6cc] sm:$0xf] }
 0x114   :  { %2638 = vmatpush.bf16.msrb.mxu0 %v4637_v33  ;;  %2562 = vmatpush.bf16.msrb.mxu2 %v5077_v40  ;;  %v6467_v33 = vld [vmem:[#allocation5 + $0x7cc] sm:$0xf]  ;;  %v5177_v40 = vor.u32 %v6387_v28, %v5174_v30 }
 0x115   :  { %v5366_v21 = vld [vmem:[#allocation5 + $0x6e8] sm:$0xf0] }
 0x116   :  { %2573 = vmatpush.bf16.msrb.mxu3 %v5397_v41  ;;  %2601 = vmatpush.bf16.msra.mxu1 %v4825_v44  ;;  %v5497_v41 = vor.u32 %v6467_v33, %v5494_v34  ;;  %v4925_v44 = vor.u32 %v6328_v36, %v4924_v35  ;;  %v5369_v28 = vor.u32 %v6435_v20, %v5366_v21  ;;  %v6347_v30 = vld [vmem:[#allocation5 + $0x40c] sm:$0xf]  ;;  %v5244_v36 = vld [vmem:[#allocation5 + $0x5d0] sm:$0xf] }
 0x117   :  { %v5334_v35 = vld [vmem:[#allocation5 + $0x6a8] sm:$0xf0]  ;;  %v6464_v20 = vld [vmem:[#allocation5 + $0x7ac] sm:$0xf0]  ;;  %v4709_v21 = vor.u32 %v6273_v12, %v4708_v11  ;;  %v5246_v11 = vld [vmem:[#allocation5 + $0x5f0] sm:$0xf0] }
 0x118   :  { %2639 = vmatpush.bf16.msrb.mxu0 %v4605_v45  ;;  %2563 = vmatpush.bf16.msrb.mxu2 %v5045_v53  ;;  %v4705_v45 = vor.u32 %v6268_v37, %v4702_v38  ;;  %v5145_v53 = vor.u32 %v6379_v42, %v5142_v43  ;;  %v6408_v37 = vld [vmem:[#allocation5 + $0x5ec] sm:$0xf0]  ;;  %v6340_v42 = vld [vmem:[#allocation5 + $0x3d4] sm:$0xf]  ;;  %v6419_v48 = vld [vmem:[#allocation5 + $0x64c] sm:$0xf] }
 0x119   :  { %2526 = vmatmul.bf16.vlgmr.msra.gmra.mxu3 %v6936_v5  ;;  %v4764_v38 = vld [vmem:[#allocation5 + $0x210] sm:$0xf]  ;;  %v4990_v43 = vld [vmem:[#allocation5 + $0x3f0] sm:$0xf0]  ;;  %v5245_v46 = vor.u32 %v6408_v37, %v5244_v36  ;;  %v5302_v49 = vld [vmem:[#allocation5 + $0x668] sm:$0xf0] }
 0x11a   :  { %2574 = vmatpush.bf16.msrb.mxu3 %v5365_v56  ;;  %2602 = vmatpush.bf16.msra.mxu1 %v4793_v61  ;;  %v6371_v56 = vld [vmem:[#allocation5 + $0x4cc] sm:$0xf]  ;;  %v4993_v52 = vor.u32 %v6340_v42, %v4990_v43  ;;  %v6308_v36 = vld [vmem:[#allocation5 + $0x2d4] sm:$0xf]  ;;  %v5084_v43 = vld [vmem:[#allocation5 + $0x490] sm:$0xf] }
 0x11b   :  { %v6451_v61 = vld [vmem:[#allocation5 + $0x74c] sm:$0xf]  ;;  %v5113_v3 = vor.u32 %v6371_v56, %v5110_v58  ;;  %v6220_v56 = vld [vmem:[#allocation5 + $0x14] sm:$0xf] }
 0x11c   :  { %2640 = vmatpush.bf16.msrb.mxu0 %v4573_v62  ;;  %2564 = vmatpush.bf16.msrb.mxu2 %v5013_v6  ;;  %v5430_v62 = vld [vmem:[#allocation5 + $0x768] sm:$0xf0]  ;;  %v4510_v58 = vld [vmem:[#allocation5 + $0x30] sm:$0xf0] }
 0x11d   :  { %v5433_v4 = vor.u32 %v6451_v61, %v5430_v62  ;;  %v6363_v6 = vld [vmem:[#allocation5 + $0x48c] sm:$0xf]  ;;  %v5305_v61 = vor.u32 %v6419_v48, %v5302_v49  ;;  %v4740_v62 = vld [vmem:[#allocation5 + $0x1d8] sm:$0xf]  ;;  %v4862_v37 = vld [vmem:[#allocation5 + $0x2f0] sm:$0xf0] }
 0x11e   :  { %2575 = vmatpush.bf16.msrb.mxu3 %v5333_v57  ;;  %2603 = vmatpush.bf16.msra.mxu1 %v4761_v54  ;;  %v4641_v57 = vor.u32 %v6252_v1, %v4638_v2  ;;  %v4828_v54 = vld [vmem:[#allocation5 + $0x290] sm:$0xf]  ;;  %v5081_v13 = vor.u32 %v6363_v6, %v5078_v7  ;;  %v6411_v1 = vld [vmem:[#allocation5 + $0x60c] sm:$0xf]  ;;  %v6300_v49 = vld [vmem:[#allocation5 + $0x294] sm:$0xf] }
 0x11f   :  { %2565 = vmatmul.bf16.vlgmr.msrb.gmra.mxu2 %v6932_v29  ;;  %v5270_v2 = vld [vmem:[#allocation5 + $0x628] sm:$0xf0]  ;;  %v6392_v7 = vld [vmem:[#allocation5 + $0x56c] sm:$0xf0] }
 0x120   :  { %2609 = vmatpush.bf16.msra.mxu2 %v5241_v9  ;;  %2641 = vmatpush.bf16.msrb.mxu0 %v4541_v50  ;;  %v6443_v9 = vld [vmem:[#allocation5 + $0x70c] sm:$0xf]  ;;  %v6304_v50 = vld [vmem:[#allocation5 + $0x2ac] sm:$0xf0] }
 0x121   :  { %2604 = vmatmul.bf16.vlgmr.msra.gmra.mxu1 %v6925_v27  ;;  %v4829_v18 = vor.u32 %v6304_v50, %v4828_v54  ;;  %v4926_v54 = vld [vmem:[#allocation5 + $0x370] sm:$0xf0]  ;;  %v5273_v50 = vor.u32 %v6411_v1, %v5270_v2  ;;  %v4580_v2 = vld [vmem:[#allocation5 + $0x98] sm:$0xf] }
 0x122   :  { %2648 = vmatpush.bf16.msrb.mxu1 %v4989_v14  ;;  %2576 = vmatpush.bf16.msrb.mxu3 %v5301_v22  ;;  %v5401_v14 = vor.u32 %v6443_v9, %v5398_v10  ;;  %v4796_v22 = vld [vmem:[#allocation5 + $0x250] sm:$0xf]  ;;  %v4741_v9 = vor.u32 %v6281_v63, %v4740_v62  ;;  %v6324_v10 = vld [vmem:[#allocation5 + $0x354] sm:$0xf] }
 0x123   :  { %v4797_v33 = vor.u32 %v6296_v23, %v4796_v22  ;;  %v4929_v17 = vor.u32 %v6324_v10, %v4926_v54  ;;  %v6316_v22 = vld [vmem:[#allocation5 + $0x314] sm:$0xf]  ;;  %v6440_v62 = vld [vmem:[#allocation5 + $0x6ec] sm:$0xf0] }
 0x124   :  { %2610 = vmatpush.bf16.msra.mxu2 %v5209_v24  ;;  %2642 = vmatpush.bf16.msrb.mxu0 %v4509_v25  ;;  %v6236_v24 = vld [vmem:[#allocation5 + $0x94] sm:$0xf]  ;;  %v6432_v54 = vld [vmem:[#allocation5 + $0x6ac] sm:$0xf0] }
 0x125   :  { %v4574_v25 = vld [vmem:[#allocation5 + $0xb0] sm:$0xf0] }
 0x126   :  { %2649 = vmatpush.bf16.msrb.mxu1 %v4957_v31  ;;  %2577 = vmatpush.bf16.msrb.mxu3 %v5269_v39  ;;  %v5014_v31 = vld [vmem:[#allocation5 + $0x428] sm:$0xf0]  ;;  %v4577_v34 = vor.u32 %v6236_v24, %v4574_v25  ;;  %v6288_v39 = vld [vmem:[#allocation5 + $0x22c] sm:$0xf0]  ;;  %v4894_v23 = vld [vmem:[#allocation5 + $0x330] sm:$0xf0] }
 0x127   :  { %2643 = vmatmul.bf16.vlgmr.msrb.gmra.mxu0 %v6919_v15  ;;  %v4765_v47 = vor.u32 %v6288_v39, %v4764_v38  ;;  %v4676_v24 = vld [vmem:[#allocation5 + $0x158] sm:$0xf]  ;;  %v4798_v1 = vld [vmem:[#allocation5 + $0x270] sm:$0xf0] }
 0x128   :  { %2687 = vmatpush.bf16.msra.mxu0 %v4737_v32  ;;  %2611 = vmatpush.bf16.msra.mxu2 %v5177_v40  ;;  %v6427_v32 = vld [vmem:[#allocation5 + $0x68c] sm:$0xf]  ;;  %v6228_v40 = vld [vmem:[#allocation5 + $0x54] sm:$0xf]  ;;  %v6265_v25 = vld [vmem:[#allocation5 + $0x174] sm:$0xf0] }
 0x129   :  { %2578 = vmatmul.bf16.vlgmr.msrb.gmra.mxu3 %v6936_v5  ;;  %v4644_v38 = vld [vmem:[#allocation5 + $0x118] sm:$0xf] }
 0x12a   :  { %2622 = vmatpush.bf16.msra.mxu3 %v5497_v41  ;;  %2650 = vmatpush.bf16.msrb.mxu1 %v4925_v44  ;;  %v4542_v41 = vld [vmem:[#allocation5 + $0x70] sm:$0xf0]  ;;  %v5017_v44 = vor.u32 %v6347_v30, %v5014_v31  ;;  %v5116_v30 = vld [vmem:[#allocation5 + $0x4d0] sm:$0xf]  ;;  %v4897_v31 = vor.u32 %v6316_v22, %v4894_v23  ;;  %v6257_v39 = vld [vmem:[#allocation5 + $0x134] sm:$0xf0] }
 0x12b   :  { %v4545_v51 = vor.u32 %v6228_v40, %v4542_v41  ;;  %v4645_v48 = vor.u32 %v6257_v39, %v4644_v38  ;;  %v6277_v38 = vld [vmem:[#allocation5 + $0x1dc] sm:$0xf] }
 0x12c   :  { %2688 = vmatpush.bf16.msra.mxu0 %v4705_v45  ;;  %2612 = vmatpush.bf16.msra.mxu2 %v5145_v53  ;;  %v5337_v45 = vor.u32 %v6427_v32, %v5334_v35  ;;  %v5212_v53 = vld [vmem:[#allocation5 + $0x590] sm:$0xf]  ;;  %v4677_v35 = vor.u32 %v6265_v25, %v4676_v24  ;;  %v4742_v39 = vld [vmem:[#allocation5 + $0x1f8] sm:$0xf0] }
 0x12d   :  { %v6376_v32 = vld [vmem:[#allocation5 + $0x4ec] sm:$0xf0] }
 0x12e   :  { %2623 = vmatpush.bf16.msra.mxu3 %v5465_v55  ;;  %2651 = vmatpush.bf16.msrb.mxu1 %v4893_v59  ;;  %v6400_v55 = vld [vmem:[#allocation5 + $0x5ac] sm:$0xf0]  ;;  %v6332_v59 = vld [vmem:[#allocation5 + $0x394] sm:$0xf]  ;;  %v5117_v41 = vor.u32 %v6376_v32, %v5116_v30  ;;  %v4516_v32 = vld [vmem:[#allocation5 + $0x18] sm:$0xf] }
 0x12f   :  { %v5213_v0 = vor.u32 %v6400_v55, %v5212_v53  ;;  %v6249_v53 = vld [vmem:[#allocation5 + $0xf4] sm:$0xf0]  ;;  %v5308_v24 = vld [vmem:[#allocation5 + $0x650] sm:$0xf]  ;;  %v6396_v30 = vld [vmem:[#allocation5 + $0x594] sm:$0xf] }
 0x130   :  { %2689 = vmatpush.bf16.msra.mxu0 %v4673_v60  ;;  %2613 = vmatpush.bf16.msra.mxu2 %v5113_v3  ;;  %v4958_v60 = vld [vmem:[#allocation5 + $0x3b0] sm:$0xf0]  ;;  %v5180_v3 = vld [vmem:[#allocation5 + $0x550] sm:$0xf] }
 0x131   :  { %v4961_v6 = vor.u32 %v6332_v59, %v4958_v60  ;;  %v6360_v60 = vld [vmem:[#allocation5 + $0x46c] sm:$0xf0] }
 0x132   :  { %2624 = vmatpush.bf16.msra.mxu3 %v5433_v4  ;;  %2652 = vmatpush.bf16.msrb.mxu1 %v4861_v8  ;;  %v4513_v4 = vor.u32 %v6220_v56, %v4510_v58  ;;  %v5500_v8 = vld [vmem:[#allocation5 + $0x7d0] sm:$0xf] }
 0x133   :  { %v5052_v58 = vld [vmem:[#allocation5 + $0x450] sm:$0xf] }
 0x134   :  { %2690 = vmatpush.bf16.msra.mxu0 %v4641_v57  ;;  %2614 = vmatpush.bf16.msra.mxu2 %v5081_v13  ;;  %v6472_v57 = vld [vmem:[#allocation5 + $0x7ec] sm:$0xf0]  ;;  %v5181_v13 = vor.u32 %v6392_v7, %v5180_v3  ;;  %v6241_v3 = vld [vmem:[#allocation5 + $0xb4] sm:$0xf0] }
 0x135   :  { %v4581_v12 = vor.u32 %v6241_v3, %v4580_v2  ;;  %v6424_v25 = vld [vmem:[#allocation5 + $0x66c] sm:$0xf0]  ;;  %v4900_v3 = vld [vmem:[#allocation5 + $0x318] sm:$0xf] }
 0x136   :  { %2625 = vmatpush.bf16.msra.mxu3 %v5401_v14  ;;  %2653 = vmatpush.bf16.msrb.mxu1 %v4829_v18  ;;  %v5501_v14 = vor.u32 %v6472_v57, %v5500_v8  ;;  %v6384_v18 = vld [vmem:[#allocation5 + $0x52c] sm:$0xf0] }
 0x137   :  { %v5020_v8 = vld [vmem:[#allocation5 + $0x410] sm:$0xf] }
 0x138   :  { %2691 = vmatpush.bf16.msra.mxu0 %v4609_v19  ;;  %2615 = vmatpush.bf16.msra.mxu2 %v5049_v26  ;;  %v5468_v19 = vld [vmem:[#allocation5 + $0x790] sm:$0xf]  ;;  %v5149_v26 = vor.u32 %v6384_v18, %v5148_v16  ;;  %v4548_v16 = vld [vmem:[#allocation5 + $0x58] sm:$0xf] }
 0x139   :  { %v6352_v57 = vld [vmem:[#allocation5 + $0x42c] sm:$0xf0]  ;;  %v4996_v18 = vld [vmem:[#allocation5 + $0x3d8] sm:$0xf] }
 0x13a   :  { %2626 = vmatpush.bf16.msra.mxu3 %v5369_v28  ;;  %2654 = vmatpush.bf16.msrb.mxu1 %v4797_v33  ;;  %v5469_v28 = vor.u32 %v6464_v20, %v5468_v19  ;;  %v5436_v33 = vld [vmem:[#allocation5 + $0x750] sm:$0xf]  ;;  %v6345_v19 = vld [vmem:[#allocation5 + $0x3f4] sm:$0xf0]  ;;  %v5021_v20 = vor.u32 %v6352_v57, %v5020_v8  ;;  %v4678_v8 = vld [vmem:[#allocation5 + $0x178] sm:$0xf0] }
 0x13c   :  { %2692 = vmatpush.bf16.msra.mxu0 %v4577_v34  ;;  %2616 = vmatpush.bf16.msra.mxu2 %v5017_v44  ;;  %v6456_v34 = vld [vmem:[#allocation5 + $0x76c] sm:$0xf0]  ;;  %v4865_v44 = vor.u32 %v6308_v36, %v4862_v37  ;;  %v5309_v37 = vor.u32 %v6424_v25, %v5308_v24  ;;  %v5086_v24 = vld [vmem:[#allocation5 + $0x4b0] sm:$0xf0] }
 0x13d   :  { %v5437_v42 = vor.u32 %v6456_v34, %v5436_v33  ;;  %v6225_v33 = vld [vmem:[#allocation5 + $0x34] sm:$0xf0]  ;;  %v6444_v25 = vld [vmem:[#allocation5 + $0x714] sm:$0xf] }
 0x13e   :  { %2627 = vmatpush.bf16.msra.mxu3 %v5337_v45  ;;  %2655 = vmatpush.bf16.msrb.mxu1 %v4765_v47  ;;  %v6368_v45 = vld [vmem:[#allocation5 + $0x4ac] sm:$0xf0]  ;;  %v4964_v34 = vld [vmem:[#allocation5 + $0x398] sm:$0xf] }
 0x13f   :  { %2617 = vmatmul.bf16.vlgmr.msra.gmra.mxu2 %v6932_v29  ;;  %v6448_v47 = vld [vmem:[#allocation5 + $0x72c] sm:$0xf0]  ;;  %v5085_v55 = vor.u32 %v6368_v45, %v5084_v43  ;;  %v4517_v45 = vor.u32 %v6225_v33, %v4516_v32  ;;  %v6245_v33 = vld [vmem:[#allocation5 + $0xdc] sm:$0xf] }
 0x140   :  { %2661 = vmatpush.bf16.msrb.mxu2 %v5245_v46  ;;  %2693 = vmatpush.bf16.msra.mxu0 %v4545_v51  ;;  %v5404_v46 = vld [vmem:[#allocation5 + $0x710] sm:$0xf]  ;;  %v4830_v51 = vld [vmem:[#allocation5 + $0x2b0] sm:$0xf0] }
 0x141   :  { %2656 = vmatmul.bf16.vlgmr.msrb.gmra.mxu1 %v6925_v27  ;;  %v5405_v56 = vor.u32 %v6448_v47, %v5404_v46  ;;  %v4833_v59 = vor.u32 %v6300_v49, %v4830_v51  ;;  %v6416_v43 = vld [vmem:[#allocation5 + $0x62c] sm:$0xf0]  ;;  %v5182_v47 = vld [vmem:[#allocation5 + $0x570] sm:$0xf0]  ;;  %v4745_v51 = vor.u32 %v6277_v38, %v4742_v39 }
 0x142   :  { %2700 = vmatpush.bf16.msra.mxu1 %v4993_v52  ;;  %2628 = vmatpush.bf16.msra.mxu3 %v5305_v61  ;;  %v4612_v52 = vld [vmem:[#allocation5 + $0xd8] sm:$0xf]  ;;  %v5372_v61 = vld [vmem:[#allocation5 + $0x6d0] sm:$0xf]  ;;  %v5502_v49 = vld [vmem:[#allocation5 + $0x7f0] sm:$0xf0] }
 0x143   :  { %v4613_v63 = vor.u32 %v6249_v53, %v4612_v52  ;;  %v5373_v7 = vor.u32 %v6440_v62, %v5372_v61  ;;  %v4932_v52 = vld [vmem:[#allocation5 + $0x358] sm:$0xf]  ;;  %v6380_v61 = vld [vmem:[#allocation5 + $0x514] sm:$0xf] }
 0x144   :  { %2662 = vmatpush.bf16.msrb.mxu2 %v5213_v0  ;;  %2694 = vmatpush.bf16.msra.mxu0 %v4513_v4  ;;  %v6950_v40 = vpop.f32.mrf.mxu0  ;;  %v6292_v0 = vld [vmem:[#allocation5 + $0x254] sm:$0xf]  ;;  %v6329_v53 = vld [vmem:[#allocation5 + $0x374] sm:$0xf0] }
 0x145   :  { %v4801_v10 = vor.u32 %v6292_v0, %v4798_v1  ;;  %v4933_v62 = vor.u32 %v6329_v53, %v4932_v52  ;;  %v6460_v0 = vld [vmem:[#allocation5 + $0x794] sm:$0xf] }
 0x146   :  { %2701 = vmatpush.bf16.msra.mxu1 %v4961_v6  ;;  %2629 = vmatpush.bf16.msra.mxu3 %v5273_v50  ;;  %v5053_v6 = vor.u32 %v6360_v60, %v5052_v58  ;;  %v6404_v50 = vld [vmem:[#allocation5 + $0x5d4] sm:$0xf]  ;;  %v4710_v58 = vld [vmem:[#allocation5 + $0x1b8] sm:$0xf0] }
 0x147   :  { %2695 = vmatmul.bf16.vlgmr.msra.gmra.mxu0 %v6919_v15  ;;  %v5249_v22 = vor.u32 %v6404_v50, %v5246_v11  ;;  %v5470_v1 = vld [vmem:[#allocation5 + $0x7b0] sm:$0xf0] }
 0x148   :  { %2739 = vmatpush.bf16.msrb.mxu0 %v4741_v9  ;;  %2663 = vmatpush.bf16.msrb.mxu2 %v5181_v13  ;;  %v5340_v9 = vld [vmem:[#allocation5 + $0x690] sm:$0xf]  ;;  %v6284_v13 = vld [vmem:[#allocation5 + $0x214] sm:$0xf] }
 0x149   :  { %2630 = vmatmul.bf16.vlgmr.msra.gmra.mxu3 %v6936_v5  ;;  %v5118_v11 = vld [vmem:[#allocation5 + $0x4f0] sm:$0xf0] }
 0x14a   :  { %2674 = vmatpush.bf16.msrb.mxu3 %v5501_v14  ;;  %2702 = vmatpush.bf16.msra.mxu1 %v4929_v17  ;;  %v4766_v14 = vld [vmem:[#allocation5 + $0x230] sm:$0xf0]  ;;  %v6233_v17 = vld [vmem:[#allocation5 + $0x74] sm:$0xf0] }
 0x14b   :  { %v4769_v23 = vor.u32 %v6284_v13, %v4766_v14  ;;  %v5438_v13 = vld [vmem:[#allocation5 + $0x770] sm:$0xf0] }
 0x14c   :  { %2740 = vmatpush.bf16.msrb.mxu0 %v4709_v21  ;;  %2664 = vmatpush.bf16.msrb.mxu2 %v5149_v26  ;;  %v2438_v4 = vpop.f32.mrf.mxu0  ;;  %v5341_v21 = vor.u32 %v6432_v54, %v5340_v9  ;;  %v4549_v26 = vor.u32 %v6233_v17, %v4548_v16  ;;  %v5473_v9 = vor.u32 %v6460_v0, %v5470_v1  ;;  %v4868_v16 = vld [vmem:[#allocation5 + $0x2d8] sm:$0xf]  ;;  %v6356_v38 = vld [vmem:[#allocation5 + $0x454] sm:$0xf]  ;;  %v6229_v1 = vld [vmem:[#allocation5 + $0x5c] sm:$0xf] }
 0x14d   :  { %v6321_v4 = vld [vmem:[#allocation5 + $0x334] sm:$0xf0]  ;;  %v6348_v53 = vld [vmem:[#allocation5 + $0x414] sm:$0xf] }
 0x14e   :  { %2675 = vmatpush.bf16.msrb.mxu3 %v5469_v28  ;;  %2703 = vmatpush.bf16.msra.mxu1 %v4897_v31  ;;  %v4997_v28 = vor.u32 %v6345_v19, %v4996_v18  ;;  %v5214_v31 = vld [vmem:[#allocation5 + $0x5b0] sm:$0xf0]  ;;  %v4901_v50 = vor.u32 %v6321_v4, %v4900_v3  ;;  %v6313_v17 = vld [vmem:[#allocation5 + $0x2f4] sm:$0xf0]  ;;  %v6253_v18 = vld [vmem:[#allocation5 + $0x11c] sm:$0xf] }
 0x14f   :  { %v4646_v19 = vld [vmem:[#allocation5 + $0x138] sm:$0xf0]  ;;  %v6289_v0 = vld [vmem:[#allocation5 + $0x234] sm:$0xf0] }
 0x150   :  { %2741 = vmatpush.bf16.msrb.mxu0 %v4677_v35  ;;  %2665 = vmatpush.bf16.msrb.mxu2 %v5117_v41  ;;  %v6337_v35 = vld [vmem:[#allocation5 + $0x3b4] sm:$0xf0]  ;;  %v5217_v41 = vor.u32 %v6396_v30, %v5214_v31  ;;  %v4550_v3 = vld [vmem:[#allocation5 + $0x78] sm:$0xf0] }
 0x151   :  { %v4965_v46 = vor.u32 %v6337_v35, %v4964_v34  ;;  %v4836_v30 = vld [vmem:[#allocation5 + $0x298] sm:$0xf]  ;;  %v4614_v34 = vld [vmem:[#allocation5 + $0xf8] sm:$0xf0] }
 0x152   :  { %2676 = vmatpush.bf16.msrb.mxu3 %v5437_v42  ;;  %2704 = vmatpush.bf16.msra.mxu1 %v4865_v44  ;;  %v5276_v42 = vld [vmem:[#allocation5 + $0x610] sm:$0xf]  ;;  %v6388_v44 = vld [vmem:[#allocation5 + $0x554] sm:$0xf]  ;;  %v6305_v31 = vld [vmem:[#allocation5 + $0x2b4] sm:$0xf0] }
 0x153   :  { %v6341_v4 = vld [vmem:[#allocation5 + $0x3dc] sm:$0xf] }
 0x154   :  { %2742 = vmatpush.bf16.msrb.mxu0 %v4645_v48  ;;  %2666 = vmatpush.bf16.msrb.mxu2 %v5085_v55  ;;  %v6952_v36 = vpop.f32.mrf.mxu0  ;;  %v6468_v48 = vld [vmem:[#allocation5 + $0x7d4] sm:$0xf]  ;;  %v5277_v55 = vor.u32 %v6416_v43, %v5276_v42 }
 0x155   :  { %v5505_v60 = vor.u32 %v6468_v48, %v5502_v49  ;;  %v5054_v42 = vld [vmem:[#allocation5 + $0x470] sm:$0xf0]  ;;  %v6237_v48 = vld [vmem:[#allocation5 + $0x9c] sm:$0xf] }
 0x156   :  { %2677 = vmatpush.bf16.msrb.mxu3 %v5405_v56  ;;  %2705 = vmatpush.bf16.msra.mxu1 %v4833_v59  ;;  %v6269_v56 = vld [vmem:[#allocation5 + $0x19c] sm:$0xf]  ;;  %v5185_v59 = vor.u32 %v6388_v44, %v5182_v47  ;;  %v6436_v43 = vld [vmem:[#allocation5 + $0x6d4] sm:$0xf]  ;;  %v6297_v47 = vld [vmem:[#allocation5 + $0x274] sm:$0xf0] }
 0x157   :  { %v4713_v2 = vor.u32 %v6269_v56, %v4710_v58  ;;  %v5374_v44 = vld [vmem:[#allocation5 + $0x6f0] sm:$0xf0]  ;;  %v4582_v49 = vld [vmem:[#allocation5 + $0xb8] sm:$0xf0] }
 0x158   :  { %2743 = vmatpush.bf16.msrb.mxu0 %v4613_v63  ;;  %2667 = vmatpush.bf16.msrb.mxu2 %v5053_v6  ;;  %v5150_v63 = vld [vmem:[#allocation5 + $0x530] sm:$0xf0]  ;;  %v5377_v52 = vor.u32 %v6436_v43, %v5374_v44  ;;  %v6487_v43 = vld [vmem:[#allocation7 + $0x64] sm:$0xf0] }
 0x159   :  { %v5153_v57 = vor.u32 %v6380_v61, %v5150_v63  ;;  %v6428_v56 = vld [vmem:[#allocation5 + $0x694] sm:$0xf]  ;;  %v6409_v61 = vld [vmem:[#allocation5 + $0x5f4] sm:$0xf0] }
 0x15a   :  { %2678 = vmatpush.bf16.msrb.mxu3 %v5373_v7  ;;  %2706 = vmatpush.bf16.msra.mxu1 %v4801_v10  ;;  %v6261_v7 = vld [vmem:[#allocation5 + $0x15c] sm:$0xf]  ;;  %v6372_v10 = vld [vmem:[#allocation5 + $0x4d4] sm:$0xf]  ;;  %v4772_v63 = vld [vmem:[#allocation5 + $0x218] sm:$0xf] }
 0x15b   :  { %v4681_v14 = vor.u32 %v6261_v7, %v4678_v8 }
 0x15c   :  { %2744 = vmatpush.bf16.msrb.mxu0 %v4581_v12  ;;  %2668 = vmatpush.bf16.msrb.mxu2 %v5021_v20  ;;  %v2490_v6 = vpop.f32.mrf.mxu0  ;;  %v6452_v12 = vld [vmem:[#allocation5 + $0x754] sm:$0xf]  ;;  %v5121_v20 = vor.u32 %v6372_v10, %v5118_v11  ;;  %v4773_v10 = vor.u32 %v6289_v0, %v4772_v63  ;;  %v5124_v0 = vld [vmem:[#allocation5 + $0x4d8] sm:$0xf] }
 0x15d   :  { %v4998_v6 = vld [vmem:[#allocation5 + $0x3f8] sm:$0xf0]  ;;  %v5310_v11 = vld [vmem:[#allocation5 + $0x670] sm:$0xf0] }
 0x15e   :  { %2679 = vmatpush.bf16.msrb.mxu3 %v5341_v21  ;;  %2707 = vmatpush.bf16.msra.mxu1 %v4769_v23  ;;  %v6957_v54 = vpop.f32.mrf.mxu1  ;;  %v5441_v21 = vor.u32 %v6452_v12, %v5438_v13  ;;  %v4869_v23 = vor.u32 %v6313_v17, %v4868_v16  ;;  %v4553_v12 = vor.u32 %v6229_v1, %v4550_v3  ;;  %v6401_v16 = vld [vmem:[#allocation5 + $0x5b4] sm:$0xf0]  ;;  %v6221_v17 = vld [vmem:[#allocation5 + $0x1c] sm:$0xf] }
 0x15f   :  { %2669 = vmatmul.bf16.vlgmr.msrb.gmra.mxu2 %v6932_v29  ;;  %v5001_v13 = vor.u32 %v6341_v4, %v4998_v6  ;;  %v5444_v3 = vld [vmem:[#allocation5 + $0x758] sm:$0xf] }
 0x160   :  { %2713 = vmatpush.bf16.msra.mxu2 %v5249_v22  ;;  %2745 = vmatpush.bf16.msrb.mxu0 %v4549_v26  ;;  %v6364_v22 = vld [vmem:[#allocation5 + $0x494] sm:$0xf]  ;;  %v6457_v4 = vld [vmem:[#allocation5 + $0x774] sm:$0xf0] }
 0x161   :  { %2708 = vmatmul.bf16.vlgmr.msra.gmra.mxu1 %v6925_v27  ;;  %v5406_v26 = vld [vmem:[#allocation5 + $0x730] sm:$0xf0]  ;;  %v5089_v35 = vor.u32 %v6364_v22, %v5086_v24  ;;  %v5572_v22 = vld [vmem:[#allocation7 + $0x70] sm:$0xf] }
 0x162   :  { %2752 = vmatpush.bf16.msrb.mxu1 %v4997_v28  ;;  %2680 = vmatpush.bf16.msrb.mxu3 %v5309_v37  ;;  %v4649_v28 = vor.u32 %v6253_v18, %v4646_v19  ;;  %v5409_v37 = vor.u32 %v6444_v25, %v5406_v26  ;;  %v4518_v18 = vld [vmem:[#allocation5 + $0x38] sm:$0xf0]  ;;  %v6412_v25 = vld [vmem:[#allocation5 + $0x614] sm:$0xf] }
 0x163   :  { %v6333_v19 = vld [vmem:[#allocation5 + $0x39c] sm:$0xf]  ;;  %v5278_v26 = vld [vmem:[#allocation5 + $0x630] sm:$0xf0] }
 0x164   :  { %2714 = vmatpush.bf16.msra.mxu2 %v5217_v41  ;;  %2746 = vmatpush.bf16.msrb.mxu0 %v4517_v45  ;;  %v6960_v32 = vpop.f32.mrf.mxu0  ;;  %v4837_v41 = vor.u32 %v6305_v31, %v4836_v30  ;;  %v4617_v45 = vor.u32 %v6245_v33, %v4614_v34  ;;  %v4521_v30 = vor.u32 %v6221_v17, %v4518_v18  ;;  %v6393_v33 = vld [vmem:[#allocation5 + $0x574] sm:$0xf0] }
 0x165   :  { %v5508_v34 = vld [vmem:[#allocation5 + $0x7d8] sm:$0xf] }
 0x166   :  { %2753 = vmatpush.bf16.msrb.mxu1 %v4965_v46  ;;  %2681 = vmatpush.bf16.msrb.mxu3 %v5277_v55  ;;  %v2451_v39 = vpop.f32.mrf.mxu1  ;;  %v4804_v46 = vld [vmem:[#allocation5 + $0x258] sm:$0xf]  ;;  %v5022_v55 = vld [vmem:[#allocation5 + $0x430] sm:$0xf0] }
 0x167   :  { %2747 = vmatmul.bf16.vlgmr.msrb.gmra.mxu0 %v6919_v15  ;;  %v4805_v58 = vor.u32 %v6297_v47, %v4804_v46  ;;  %v5025_v7 = vor.u32 %v6348_v53, %v5022_v55  ;;  %v4934_v39 = vld [vmem:[#allocation5 + $0x378] sm:$0xf0]  ;;  %v5156_v47 = vld [vmem:[#allocation5 + $0x518] sm:$0xf]  ;;  %v6969_v53 = vld [vmem:[%s7088_s4] sm:$0xff] }
 0x168   :  { %2791 = vmatpush.bf16.msra.mxu0 %v4745_v51  ;;  %2715 = vmatpush.bf16.msra.mxu2 %v5185_v59  ;;  %v5057_v51 = vor.u32 %v6356_v38, %v5054_v42  ;;  %v5342_v59 = vld [vmem:[#allocation5 + $0x6b0] sm:$0xf0]  ;;  %v6325_v38 = vld [vmem:[#allocation5 + $0x35c] sm:$0xf]  ;;  %v5564_v42 = vld [vmem:[#allocation7 + $0x60] sm:$0xf] }
 0x169   :  { %2682 = vmatmul.bf16.vlgmr.msrb.gmra.mxu3 %v6936_v5  ;;  %v5345_v8 = vor.u32 %v6428_v56, %v5342_v59  ;;  %v5565_v55 = vor.u32 %v6487_v43, %v5564_v42  ;;  %v6317_v56 = vld [vmem:[#allocation5 + $0x31c] sm:$0xf]  ;;  %v1133_v59 = vperm.slane %v6969_v53, 2  ;;  %v6369_v18 = vld [vmem:[#allocation5 + $0x4b4] sm:$0xf0] }
 0x16a   :  { %2726 = vmatpush.bf16.msra.mxu3 %v5505_v60  ;;  %2754 = vmatpush.bf16.msrb.mxu1 %v4933_v62  ;;  %v5252_v60 = vld [vmem:[#allocation5 + $0x5d8] sm:$0xf]  ;;  %v4585_v62 = vor.u32 %v6237_v48, %v4582_v49  ;;  %v4937_v48 = vor.u32 %v6325_v38, %v4934_v39  ;;  %v6293_v39 = vld [vmem:[#allocation5 + $0x25c] sm:$0xf]  ;;  %v5532_v42 = vld [vmem:[#allocation7 + $0x20] sm:$0xf] }
 0x16b   :  { %v6385_v49 = vld [vmem:[#allocation5 + $0x534] sm:$0xf0]  ;;  %v6479_v43 = vld [vmem:[#allocation7 + $0x24] sm:$0xf0] }
 0x16c   :  { %2792 = vmatpush.bf16.msra.mxu0 %v4713_v2  ;;  %2716 = vmatpush.bf16.msra.mxu2 %v5153_v57  ;;  %v2542_v2 = vpop.f32.mrf.mxu0 }
 0x16d   :  { %v6377_v2 = vld [vmem:[#allocation5 + $0x4f4] sm:$0xf0] }
 0x16e   :  { %2727 = vmatpush.bf16.msra.mxu3 %v5473_v9  ;;  %2755 = vmatpush.bf16.msrb.mxu1 %v4901_v50  ;;  %v6962_v57 = vpop.f32.mrf.mxu1  ;;  %v5253_v9 = vor.u32 %v6409_v61, %v5252_v60  ;;  %v6420_v50 = vld [vmem:[#allocation5 + $0x654] sm:$0xf]  ;;  %v5556_v60 = vld [vmem:[#allocation7 + $0x50] sm:$0xf]  ;;  %v6485_v61 = vld [vmem:[#allocation7 + $0x54] sm:$0xf0] }
 0x16f   :  { %v5557_v6 = vor.u32 %v6485_v61, %v5556_v60  ;;  %v5533_v61 = vor.u32 %v6479_v43, %v5532_v42 }
 0x170   :  { %2793 = vmatpush.bf16.msra.mxu0 %v4681_v14  ;;  %2717 = vmatpush.bf16.msra.mxu2 %v5121_v20  ;;  %v5220_v14 = vld [vmem:[#allocation5 + $0x598] sm:$0xf]  ;;  %v4966_v20 = vld [vmem:[#allocation5 + $0x3b8] sm:$0xf0] }
 0x171   :  { %v5221_v24 = vor.u32 %v6401_v16, %v5220_v14  ;;  %v4969_v31 = vor.u32 %v6333_v19, %v4966_v20  ;;  %v5412_v19 = vld [vmem:[#allocation5 + $0x718] sm:$0xf] }
 0x172   :  { %2728 = vmatpush.bf16.msra.mxu3 %v5441_v21  ;;  %2756 = vmatpush.bf16.msrb.mxu1 %v4869_v23  ;;  %v5313_v21 = vor.u32 %v6420_v50, %v5310_v11  ;;  %v6489_v23 = vld [vmem:[#allocation7 + $0x74] sm:$0xf0]  ;;  %v6483_v50 = vld [vmem:[#allocation7 + $0x44] sm:$0xf0] }
 0x173   :  { %v6449_v20 = vld [vmem:[#allocation5 + $0x734] sm:$0xf0] }
 0x174   :  { %2794 = vmatpush.bf16.msra.mxu0 %v4649_v28  ;;  %2718 = vmatpush.bf16.msra.mxu2 %v5089_v35  ;;  %v5188_v28 = vld [vmem:[#allocation5 + $0x558] sm:$0xf] }
 0x175   :  { %v6473_v35 = vld [vmem:[#allocation5 + $0x7f4] sm:$0xf0] }
 0x176   :  { %2729 = vmatpush.bf16.msra.mxu3 %v5409_v37  ;;  %2757 = vmatpush.bf16.msrb.mxu1 %v4837_v41  ;;  %v5573_v37 = vor.u32 %v6489_v23, %v5572_v22  ;;  %v5281_v41 = vor.u32 %v6412_v25, %v5278_v26  ;;  %v2503_v44 = vpop.f32.mrf.mxu1  ;;  %v5509_v46 = vor.u32 %v6473_v35, %v5508_v34  ;;  %v4838_v22 = vld [vmem:[#allocation5 + $0x2b8] sm:$0xf0]  ;;  %v5540_v23 = vld [vmem:[#allocation7 + $0x30] sm:$0xf]  ;;  %v1131_v25 = vperm.slane %v6969_v53, 0 }
 0x177   :  { %v6361_v34 = vld [vmem:[#allocation5 + $0x474] sm:$0xf0] }
 0x178   :  { %2795 = vmatpush.bf16.msra.mxu0 %v4617_v45  ;;  %2719 = vmatpush.bf16.msra.mxu2 %v5057_v51  ;;  %v5189_v45 = vor.u32 %v6393_v33, %v5188_v28  ;;  %v5476_v51 = vld [vmem:[#allocation5 + $0x798] sm:$0xf]  ;;  %v5413_v28 = vor.u32 %v6449_v20, %v5412_v19  ;;  %v2437_v44 = vadd.f32 %v6950_v40, %v1131_v25  ;;  %v5524_v40 = vld [vmem:[#allocation7 + $0x10] sm:$0xf]  ;;  %v6475_v19 = vld [vmem:[#allocation7 + $0x4] sm:$0xf0] }
 0x179   :  { %v5380_v35 = vld [vmem:[#allocation5 + $0x6d8] sm:$0xf]  ;;  %v6503_v20 = vld [vmem:[#allocation7 + $0xe4] sm:$0xf0] }
 0x17a   :  { %2730 = vmatpush.bf16.msra.mxu3 %v5377_v52  ;;  %2758 = vmatpush.bf16.msrb.mxu1 %v4805_v58  ;;  %v6465_v52 = vld [vmem:[#allocation5 + $0x7b4] sm:$0xf0]  ;;  %v4902_v58 = vld [vmem:[#allocation5 + $0x338] sm:$0xf0] }
 0x17b   :  { %v5477_v63 = vor.u32 %v6465_v52, %v5476_v51  ;;  %v4905_v1 = vor.u32 %v6317_v56, %v4902_v58  ;;  %v5348_v51 = vld [vmem:[#allocation5 + $0x698] sm:$0xf]  ;;  %v6405_v58 = vld [vmem:[#allocation5 + $0x5dc] sm:$0xf] }
 0x17c   :  { %2796 = vmatpush.bf16.msra.mxu0 %v4585_v62  ;;  %2720 = vmatpush.bf16.msra.mxu2 %v5025_v7  ;;  %v5157_v62 = vor.u32 %v6385_v49, %v5156_v47  ;;  %v6309_v7 = vld [vmem:[#allocation5 + $0x2dc] sm:$0xf]  ;;  %v6353_v49 = vld [vmem:[#allocation5 + $0x434] sm:$0xf0] }
 0x17d   :  { %v6433_v56 = vld [vmem:[#allocation5 + $0x6b4] sm:$0xf0] }
 0x17e   :  { %2731 = vmatpush.bf16.msra.mxu3 %v5345_v8  ;;  %2759 = vmatpush.bf16.msrb.mxu1 %v4773_v10  ;;  %v4870_v8 = vld [vmem:[#allocation5 + $0x2f8] sm:$0xf0]  ;;  %v5548_v10 = vld [vmem:[#allocation7 + $0x40] sm:$0xf]  ;;  %v2553_v11 = vpop.f32.mrf.mxu1  ;;  %v6417_v25 = vld [vmem:[#allocation5 + $0x634] sm:$0xf0] }
 0x17f   :  { %2721 = vmatmul.bf16.vlgmr.msra.gmra.mxu2 %v6932_v29  ;;  %v4873_v17 = vor.u32 %v6309_v7, %v4870_v8 }
 0x180   :  { %2765 = vmatpush.bf16.msrb.mxu2 %v5253_v9  ;;  %2797 = vmatpush.bf16.msra.mxu0 %v4553_v12  ;;  %v2541_v9 = vadd.f32 %v6960_v32, %v1133_v59  ;;  %v5125_v12 = vor.u32 %v6377_v2, %v5124_v0  ;;  %v6301_v32 = vld [vmem:[#allocation5 + $0x29c] sm:$0xf]  ;;  %v6477_v0 = vld [vmem:[#allocation7 + $0x14] sm:$0xf0] }
 0x181   :  { %2760 = vmatmul.bf16.vlgmr.msrb.gmra.mxu1 %v6925_v27  ;;  %v4841_v33 = vor.u32 %v6301_v32, %v4838_v22  ;;  %v5254_v59 = vld [vmem:[#allocation5 + $0x5f8] sm:$0xf0]  ;;  %v6505_v2 = vld [vmem:[#allocation7 + $0xf4] sm:$0xf0] }
 0x182   :  { %2804 = vmatpush.bf16.msra.mxu1 %v5001_v13  ;;  %2732 = vmatpush.bf16.msra.mxu3 %v5313_v21  ;;  %v5092_v13 = vld [vmem:[#allocation5 + $0x498] sm:$0xf]  ;;  %v6975_v14 = vadd.f32 %v2553_v11, %v2541_v9  ;;  %v6977_v16 = vpop.f32.mrf.mxu2  ;;  %v5549_v21 = vor.u32 %v6483_v50, %v5548_v10  ;;  %v5257_v8 = vor.u32 %v6405_v58, %v5254_v59  ;;  %v5612_v58 = vld [vmem:[#allocation7 + $0xc0] sm:$0xf]  ;;  %v6499_v59 = vld [vmem:[#allocation7 + $0xc4] sm:$0xf0] }
 0x183   :  { %v5093_v26 = vor.u32 %v6369_v18, %v5092_v13  ;;  %v5316_v10 = vld [vmem:[#allocation5 + $0x658] sm:$0xf]  ;;  %v6397_v13 = vld [vmem:[#allocation5 + $0x59c] sm:$0xf]  ;;  %v5516_v18 = vld [vmem:[#allocation7] sm:$0xf] }
 0x184   :  { %2766 = vmatpush.bf16.msrb.mxu2 %v5221_v24  ;;  %2798 = vmatpush.bf16.msra.mxu0 %v4521_v30  ;;  %v6481_v24 = vld [vmem:[#allocation7 + $0x34] sm:$0xf0] }
 0x185   :  { %v5060_v30 = vld [vmem:[#allocation5 + $0x458] sm:$0xf]  ;;  %v5541_v38 = vor.u32 %v6481_v24, %v5540_v23  ;;  %v5828_v23 = vld [vmem:[#allocation7 + $0x270] sm:$0xf] }
 0x186   :  { %2805 = vmatpush.bf16.msra.mxu1 %v4969_v31  ;;  %2733 = vmatpush.bf16.msra.mxu3 %v5281_v41  ;;  %v6980_v31 = vpop.f32.mrf.mxu0  ;;  %v4806_v41 = vld [vmem:[#allocation5 + $0x278] sm:$0xf0]  ;;  %v6425_v50 = vld [vmem:[#allocation5 + $0x674] sm:$0xf0] }
 0x187   :  { %2799 = vmatmul.bf16.vlgmr.msra.gmra.mxu0 %v6919_v15  ;;  %v5445_v15 = vor.u32 %v6457_v4, %v5444_v3  ;;  %v2450_v3 = vadd.f32 %v6957_v54, %v2437_v44  ;;  %v5628_v54 = vld [vmem:[#allocation7 + $0xe0] sm:$0xf]  ;;  %v5317_v32 = vor.u32 %v6425_v50, %v5316_v10  ;;  %v5284_v22 = vld [vmem:[#allocation5 + $0x618] sm:$0xf] }
 0x188   :  { %3633 = vmatpush.bf16.msrb.mxu0 %v5573_v37  ;;  %2767 = vmatpush.bf16.msrb.mxu2 %v5189_v45  ;;  %v6441_v37 = vld [vmem:[#allocation5 + $0x6f4] sm:$0xf0]  ;;  %v2555_v45 = vpop.f32.mrf.mxu1  ;;  %v5285_v44 = vor.u32 %v6417_v25, %v5284_v22  ;;  %v5804_v50 = vld [vmem:[#allocation7 + $0x240] sm:$0xf]  ;;  %v6495_v22 = vld [vmem:[#allocation7 + $0xa4] sm:$0xf0] }
 0x189   :  { %2734 = vmatmul.bf16.vlgmr.msra.gmra.mxu3 %v6936_v5  ;;  %v5381_v47 = vor.u32 %v6441_v37, %v5380_v35  ;;  %v2463_v11 = vadd.f32 %v6977_v16, %v2450_v3  ;;  %v5190_v35 = vld [vmem:[#allocation5 + $0x578] sm:$0xf0]  ;;  %v5613_v3 = vor.u32 %v6499_v59, %v5612_v58 }
 0x18a   :  { %2778 = vmatpush.bf16.msrb.mxu3 %v5509_v46  ;;  %2806 = vmatpush.bf16.msra.mxu1 %v4937_v48  ;;  %v5061_v46 = vor.u32 %v6361_v34, %v5060_v30  ;;  %v5028_v48 = vld [vmem:[#allocation5 + $0x418] sm:$0xf]  ;;  %v2464_v52 = vpop.f32.mrf.mxu2  ;;  %v5629_v34 = vor.u32 %v6503_v20, %v5628_v54  ;;  %v6469_v37 = vld [vmem:[#allocation5 + $0x7dc] sm:$0xf] }
 0x18b   :  { %v5029_v4 = vor.u32 %v6353_v49, %v5028_v48  ;;  %v5820_v48 = vld [vmem:[#allocation7 + $0x260] sm:$0xf]  ;;  %v6551_v49 = vld [vmem:[#allocation7 + $0x264] sm:$0xf0]  ;;  %v5158_v52 = vld [vmem:[#allocation5 + $0x538] sm:$0xf0] }
 0x18c   :  { %3634 = vmatpush.bf16.msrb.mxu0 %v5565_v55  ;;  %2768 = vmatpush.bf16.msrb.mxu2 %v5157_v62  ;;  %v4809_v55 = vor.u32 %v6293_v39, %v4806_v41  ;;  %v2475_v60 = vpop.f32.mrf.mxu3  ;;  %v6285_v62 = vld [vmem:[#allocation5 + $0x21c] sm:$0xf]  ;;  %v5620_v39 = vld [vmem:[#allocation7 + $0xd0] sm:$0xf]  ;;  %v6501_v41 = vld [vmem:[#allocation7 + $0xd4] sm:$0xf0] }
 0x18d   :  { %v5094_v54 = vld [vmem:[#allocation5 + $0x4b8] sm:$0xf0] }
 0x18e   :  { %2779 = vmatpush.bf16.msrb.mxu3 %v5477_v63  ;;  %2807 = vmatpush.bf16.msra.mxu1 %v4905_v1  ;;  %v4774_v63 = vld [vmem:[#allocation5 + $0x238] sm:$0xf0]  ;;  %v5636_v1 = vld [vmem:[#allocation7 + $0xf0] sm:$0xf]  ;;  %v2594_v7 = vpop.f32.mrf.mxu0 }
 0x18f   :  { %v4777_v9 = vor.u32 %v6285_v62, %v4774_v63  ;;  %v5446_v7 = vld [vmem:[#allocation5 + $0x778] sm:$0xf0] }
 0x190   :  { %3635 = vmatpush.bf16.msrb.mxu0 %v5557_v6  ;;  %2769 = vmatpush.bf16.msrb.mxu2 %v5125_v12  ;;  %v5349_v6 = vor.u32 %v6433_v56, %v5348_v51  ;;  %v5525_v12 = vor.u32 %v6477_v0, %v5524_v40  ;;  %v5621_v51 = vor.u32 %v6501_v41, %v5620_v39  ;;  %v5478_v56 = vld [vmem:[#allocation5 + $0x7b8] sm:$0xf0]  ;;  %v5812_v0 = vld [vmem:[#allocation7 + $0x250] sm:$0xf] }
 0x191   :  { %v6373_v40 = vld [vmem:[#allocation5 + $0x4dc] sm:$0xf] }
 0x192   :  { %2780 = vmatpush.bf16.msrb.mxu3 %v5445_v15  ;;  %2808 = vmatpush.bf16.msra.mxu1 %v4873_v17  ;;  %v5637_v15 = vor.u32 %v6505_v2, %v5636_v1  ;;  %v5222_v17 = vld [vmem:[#allocation5 + $0x5b8] sm:$0xf0]  ;;  %v6985_v24 = vpop.f32.mrf.mxu2  ;;  %v6549_v1 = vld [vmem:[#allocation7 + $0x254] sm:$0xf0] }
 0x193   :  { %v5225_v16 = vor.u32 %v6397_v13, %v5222_v17  ;;  %v5813_v10 = vor.u32 %v6549_v1, %v5812_v0  ;;  %v6365_v17 = vld [vmem:[#allocation5 + $0x49c] sm:$0xf] }
 0x194   :  { %3636 = vmatpush.bf16.msrb.mxu0 %v5549_v21  ;;  %2770 = vmatpush.bf16.msrb.mxu2 %v5093_v26  ;;  %v2476_v21 = vadd.f32 %v2475_v60, %v2463_v11  ;;  %v6389_v26 = vld [vmem:[#allocation5 + $0x55c] sm:$0xf]  ;;  %v2477_v30 = vpop.f32.mrf.mxu3  ;;  %v5821_v60 = vor.u32 %v6551_v49, %v5820_v48  ;;  %v1132_v11 = vperm.slane %v6969_v53, 1 }
 0x195   :  { %v5193_v45 = vor.u32 %v6389_v26, %v5190_v35  ;;  %v6445_v20 = vld [vmem:[#allocation5 + $0x71c] sm:$0xf]  ;;  %v6545_v35 = vld [vmem:[#allocation7 + $0x234] sm:$0xf0] }
 0x196   :  { %2781 = vmatpush.bf16.msrb.mxu3 %v5413_v28  ;;  %2809 = vmatpush.bf16.msra.mxu1 %v4841_v33  ;;  %v6553_v28 = vld [vmem:[#allocation7 + $0x274] sm:$0xf0]  ;;  %v5517_v33 = vor.u32 %v6475_v19, %v5516_v18  ;;  %v2843_v43 = vmax.f32 %v2476_v21, 0.0  ;;  %v6547_v18 = vld [vmem:[#allocation7 + $0x244] sm:$0xf0] }
 0x197   :  { %v5829_v42 = vor.u32 %v6553_v28, %v5828_v23  ;;  %v5414_v21 = vld [vmem:[#allocation5 + $0x738] sm:$0xf0]  ;;  %v5805_v23 = vor.u32 %v6547_v18, %v5804_v50  ;;  %v5097_v28 = vor.u32 %v6365_v17, %v5094_v54  ;;  %v5772_v54 = vld [vmem:[#allocation7 + $0x200] sm:$0xf] }
 0x198   :  { %3637 = vmatpush.bf16.msrb.mxu0 %v5541_v38  ;;  %2771 = vmatpush.bf16.msrb.mxu2 %v5061_v46  ;;  %v5510_v38 = vld [vmem:[#allocation5 + $0x7f8] sm:$0xf0]  ;;  %v5417_v30 = vor.u32 %v6445_v20, %v5414_v21  ;;  %v5684_v21 = vld [vmem:[#allocation7 + $0x150] sm:$0xf] }
 0x199   :  { %v5513_v46 = vor.u32 %v6469_v37, %v5510_v38  ;;  %v5062_v39 = vld [vmem:[#allocation5 + $0x478] sm:$0xf0] }
 0x19a   :  { %2782 = vmatpush.bf16.msrb.mxu3 %v5381_v47  ;;  %2810 = vmatpush.bf16.msra.mxu1 %v4809_v55  ;;  %v6381_v47 = vld [vmem:[#allocation5 + $0x51c] sm:$0xf] }
 0x19b   :  { %v6461_v55 = vld [vmem:[#allocation5 + $0x79c] sm:$0xf]  ;;  %v5161_v62 = vor.u32 %v6381_v47, %v5158_v52 }
 0x19c   :  { %3638 = vmatpush.bf16.msrb.mxu0 %v5533_v61  ;;  %2772 = vmatpush.bf16.msrb.mxu2 %v5029_v4  ;;  %v6989_v61 = vpack.c.bf16 %v2843_v43, %v2843_v43  ;;  %v5481_v63 = vor.u32 %v6461_v55, %v5478_v56  ;;  %v6992_v2 = vpop.f32.mrf.mxu3  ;;  %v5126_v4 = vld [vmem:[#allocation5 + $0x4f8] sm:$0xf0]  ;;  %v6543_v56 = vld [vmem:[#allocation7 + $0x224] sm:$0xf0] }
 0x19d   :  { %v6437_v41 = vld [vmem:[#allocation5 + $0x6dc] sm:$0xf] }
 0x19e   :  { %2783 = vmatpush.bf16.msrb.mxu3 %v5349_v6  ;;  %2811 = vmatpush.bf16.msra.mxu1 %v4777_v9  ;;  %v6453_v6 = vld [vmem:[#allocation5 + $0x75c] sm:$0xf]  ;;  %v6497_v9 = vld [vmem:[#allocation7 + $0xb4] sm:$0xf0] }
 0x19f   :  { %2773 = vmatmul.bf16.vlgmr.msrb.gmra.mxu2 %v6932_v29  ;;  %v5449_v13 = vor.u32 %v6453_v6, %v5446_v7  ;;  %v6349_v52 = vld [vmem:[#allocation5 + $0x41c] sm:$0xf]  ;;  %v5780_v6 = vld [vmem:[#allocation7 + $0x210] sm:$0xf]  ;;  %v6541_v7 = vld [vmem:[#allocation7 + $0x214] sm:$0xf0] }
 0x1a0   :  { %2817 = vmatpush.bf16.msra.mxu2 %v5257_v8  ;;  %3639 = vmatpush.bf16.msrb.mxu0 %v5525_v12  ;;  %v5604_v8 = vld [vmem:[#allocation7 + $0xb0] sm:$0xf]  ;;  %v6996_v12 = vpop.f32.mrf.mxu1  ;;  %v5030_v55 = vld [vmem:[#allocation5 + $0x438] sm:$0xf0]  ;;  %v5781_v17 = vor.u32 %v6541_v7, %v5780_v6  ;;  %v6563_v6 = vld [vmem:[#allocation7 + $0x2c4] sm:$0xf0] }
 0x1a1   :  { %2812 = vmatmul.bf16.vlgmr.msra.gmra.mxu1 %v6925_v27  ;;  %v2516_v27 = vpop.f32.mrf.mxu2  ;;  %v5605_v19 = vor.u32 %v6497_v9, %v5604_v8  ;;  %v6429_v59 = vld [vmem:[#allocation5 + $0x69c] sm:$0xf]  ;;  %v6482_v7 = vld [vmem:[#allocation7 + $0x44] sm:$0xf] }
 0x1a2   :  { %3646 = vmatpush.bf16.msrb.mxu1 %v5637_v15  ;;  %2784 = vmatpush.bf16.msrb.mxu3 %v5317_v32  ;;  %v5129_v15 = vor.u32 %v6373_v40, %v5126_v4  ;;  %v5596_v32 = vld [vmem:[#allocation7 + $0xa0] sm:$0xf]  ;;  %v6491_v40 = vld [vmem:[#allocation7 + $0x84] sm:$0xf0]  ;;  %v6421_v50 = vld [vmem:[#allocation5 + $0x65c] sm:$0xf] }
 0x1a3   :  { %v5597_v38 = vor.u32 %v6495_v22, %v5596_v32  ;;  %v6413_v18 = vld [vmem:[#allocation5 + $0x61c] sm:$0xf]  ;;  %v6539_v32 = vld [vmem:[#allocation7 + $0x204] sm:$0xf0]  ;;  %v5892_v22 = vld [vmem:[#allocation7 + $0x2f0] sm:$0xf] }
 0x1a4   :  { %2818 = vmatpush.bf16.msra.mxu2 %v5225_v16  ;;  %3640 = vmatpush.bf16.msrb.mxu0 %v5517_v33  ;;  %v2489_v16 = vadd.f32 %v6952_v36, %v1132_v11  ;;  %v6999_v25 = vpop.f32.mrf.mxu0  ;;  %v6357_v33 = vld [vmem:[#allocation5 + $0x45c] sm:$0xf]  ;;  %v2529_v37 = vpop.f32.mrf.mxu3  ;;  %v5588_v36 = vld [vmem:[#allocation7 + $0x90] sm:$0xf] }
 0x1a5   :  { %v5065_v49 = vor.u32 %v6357_v33, %v5062_v39  ;;  %v6537_v37 = vld [vmem:[#allocation7 + $0x1f4] sm:$0xf0] }
 0x1a6   :  { %3647 = vmatpush.bf16.msrb.mxu1 %v5629_v34  ;;  %2785 = vmatpush.bf16.msrb.mxu3 %v5285_v44  ;;  %v5796_v34 = vld [vmem:[#allocation7 + $0x230] sm:$0xf]  ;;  %v2502_v43 = vadd.f32 %v6962_v57, %v2489_v16  ;;  %v6493_v44 = vld [vmem:[#allocation7 + $0x94] sm:$0xf0] }
 0x1a7   :  { %3641 = vmatmul.bf16.vlgmr.msrb.gmra.mxu0 %v6989_v61  ;;  %v5589_v58 = vor.u32 %v6493_v44, %v5588_v36  ;;  %v5700_v57 = vld [vmem:[#allocation7 + $0x170] sm:$0xf]  ;;  %v6569_v16 = vld [vmem:[#allocation7 + $0x2f4] sm:$0xf0]  ;;  %v6567_v36 = vld [vmem:[#allocation7 + $0x2e4] sm:$0xf0] }
 0x1a8   :  { %3685 = vmatpush.bf16.msra.mxu0 %v5829_v42  ;;  %2819 = vmatpush.bf16.msra.mxu2 %v5193_v45  ;;  %v5382_v42 = vld [vmem:[#allocation5 + $0x6f8] sm:$0xf0]  ;;  %v5797_v45 = vor.u32 %v6545_v35, %v5796_v34  ;;  %v2515_v47 = vadd.f32 %v6985_v24, %v2502_v43  ;;  %v2607_v48 = vpop.f32.mrf.mxu1  ;;  %v6517_v34 = vld [vmem:[#allocation7 + $0x154] sm:$0xf0]  ;;  %v5764_v35 = vld [vmem:[#allocation7 + $0x1f0] sm:$0xf]  ;;  %v5893_v39 = vor.u32 %v6569_v16, %v5892_v22 }
 0x1a9   :  { %2786 = vmatmul.bf16.vlgmr.msrb.gmra.mxu3 %v6936_v5  ;;  %v7001_v26 = vpop.f32.mrf.mxu2  ;;  %v5884_v43 = vld [vmem:[#allocation7 + $0x2e0] sm:$0xf]  ;;  %v6486_v44 = vld [vmem:[#allocation7 + $0x64] sm:$0xf]  ;;  %v5652_v22 = vld [vmem:[#allocation7 + $0x110] sm:$0xf] }
 0x1aa   :  { %2830 = vmatpush.bf16.msra.mxu3 %v5513_v46  ;;  %3648 = vmatpush.bf16.msrb.mxu1 %v5621_v51  ;;  %v5788_v46 = vld [vmem:[#allocation7 + $0x220] sm:$0xf]  ;;  %v5385_v51 = vor.u32 %v6437_v41, %v5382_v42  ;;  %v2528_v27 = vadd.f32 %v6992_v2, %v2515_v47  ;;  %v5318_v2 = vld [vmem:[#allocation5 + $0x678] sm:$0xf0]  ;;  %v5765_v47 = vor.u32 %v6537_v37, %v5764_v35 }
 0x1ab   :  { %v5789_v24 = vor.u32 %v6543_v56, %v5788_v46  ;;  %v5321_v20 = vor.u32 %v6421_v50, %v5318_v2  ;;  %v5685_v46 = vor.u32 %v6517_v34, %v5684_v21  ;;  %v5676_v48 = vld [vmem:[#allocation7 + $0x140] sm:$0xf]  ;;  %v6529_v34 = vld [vmem:[#allocation7 + $0x1b4] sm:$0xf0] }
 0x1ac   :  { %3686 = vmatpush.bf16.msra.mxu0 %v5821_v60  ;;  %2820 = vmatpush.bf16.msra.mxu2 %v5161_v62  ;;  %v5350_v60 = vld [vmem:[#allocation5 + $0x6b8] sm:$0xf0]  ;;  %v6521_v62 = vld [vmem:[#allocation7 + $0x174] sm:$0xf0]  ;;  %v2646_v0 = vpop.f32.mrf.mxu0  ;;  %v7006_v8 = vpop.f32.mrf.mxu3  ;;  %v2844_v11 = vmax.f32 %v2528_v27, 0.0 }
 0x1ad   :  { %v5353_v4 = vor.u32 %v6429_v59, %v5350_v60  ;;  %v5701_v9 = vor.u32 %v6521_v62, %v5700_v57  ;;  %v6565_v59 = vld [vmem:[#allocation7 + $0x2d4] sm:$0xf0]  ;;  %v6484_v60 = vld [vmem:[#allocation7 + $0x54] sm:$0xf]  ;;  %v5668_v62 = vld [vmem:[#allocation7 + $0x130] sm:$0xf] }
 0x1ae   :  { %2831 = vmatpush.bf16.msra.mxu3 %v5481_v63  ;;  %3649 = vmatpush.bf16.msrb.mxu1 %v5613_v3  ;;  %v5580_v63 = vld [vmem:[#allocation7 + $0x80] sm:$0xf]  ;;  %v5033_v3 = vor.u32 %v6349_v52, %v5030_v55  ;;  %v7008_v33 = vpack.c.bf16 %v2844_v11, %v2844_v11  ;;  %v6535_v55 = vld [vmem:[#allocation7 + $0x1e4] sm:$0xf0]  ;;  %v6533_v0 = vld [vmem:[#allocation7 + $0x1d4] sm:$0xf0] }
 0x1af   :  { %v5756_v52 = vld [vmem:[#allocation7 + $0x1e0] sm:$0xf] }
 0x1b0   :  { %3687 = vmatpush.bf16.msra.mxu0 %v5813_v10  ;;  %2821 = vmatpush.bf16.msra.mxu2 %v5129_v15  ;;  %v5581_v10 = vor.u32 %v6491_v40, %v5580_v63  ;;  %v5692_v15 = vld [vmem:[#allocation7 + $0x160] sm:$0xf]  ;;  %v5757_v27 = vor.u32 %v6535_v55, %v5756_v52  ;;  %v5558_v63 = vld [vmem:[#allocation7 + $0x58] sm:$0xf0]  ;;  %v6513_v40 = vld [vmem:[#allocation7 + $0x134] sm:$0xf0] }
 0x1b1   :  { %v2568_v1 = vpop.f32.mrf.mxu2  ;;  %v5669_v50 = vor.u32 %v6513_v40, %v5668_v62  ;;  %v5660_v11 = vld [vmem:[#allocation7 + $0x120] sm:$0xf]  ;;  %v6527_v55 = vld [vmem:[#allocation7 + $0x1a4] sm:$0xf0] }
 0x1b2   :  { %2832 = vmatpush.bf16.msra.mxu3 %v5449_v13  ;;  %3650 = vmatpush.bf16.msrb.mxu1 %v5605_v19  ;;  %v6519_v13 = vld [vmem:[#allocation7 + $0x164] sm:$0xf0]  ;;  %v5286_v19 = vld [vmem:[#allocation5 + $0x638] sm:$0xf0]  ;;  %v5724_v52 = vld [vmem:[#allocation7 + $0x1a0] sm:$0xf] }
 0x1b3   :  { %v5289_v42 = vor.u32 %v6413_v18, %v5286_v19  ;;  %v5860_v19 = vld [vmem:[#allocation7 + $0x2b0] sm:$0xf] }
 0x1b4   :  { %3688 = vmatpush.bf16.msra.mxu0 %v5805_v23  ;;  %2822 = vmatpush.bf16.msra.mxu2 %v5097_v28  ;;  %v5693_v23 = vor.u32 %v6519_v13, %v5692_v15  ;;  %v6488_v28 = vld [vmem:[#allocation7 + $0x74] sm:$0xf]  ;;  %v6511_v15 = vld [vmem:[#allocation7 + $0x124] sm:$0xf0]  ;;  %v5740_v13 = vld [vmem:[#allocation7 + $0x1c0] sm:$0xf] }
 0x1b5   :  { %v5661_v21 = vor.u32 %v6511_v15, %v5660_v11  ;;  %v6523_v11 = vld [vmem:[#allocation7 + $0x184] sm:$0xf0]  ;;  %v5956_v15 = vld [vmem:[#allocation7 + $0x370] sm:$0xf] }
 0x1b6   :  { %2833 = vmatpush.bf16.msra.mxu3 %v5417_v30  ;;  %3651 = vmatpush.bf16.msrb.mxu1 %v5597_v38  ;;  %v5574_v30 = vld [vmem:[#allocation7 + $0x78] sm:$0xf0]  ;;  %v5773_v38 = vor.u32 %v6539_v32, %v5772_v54  ;;  %v6561_v54 = vld [vmem:[#allocation7 + $0x2b4] sm:$0xf0] }
 0x1b7   :  { %v5577_v41 = vor.u32 %v6488_v28, %v5574_v30  ;;  %v6509_v28 = vld [vmem:[#allocation7 + $0x114] sm:$0xf0]  ;;  %v5732_v30 = vld [vmem:[#allocation7 + $0x1b0] sm:$0xf]  ;;  %v5861_v35 = vor.u32 %v6561_v54, %v5860_v19  ;;  %v6504_v19 = vld [vmem:[#allocation7 + $0xf4] sm:$0xf] }
 0x1b8   :  { %3689 = vmatpush.bf16.msra.mxu0 %v5797_v45  ;;  %2823 = vmatpush.bf16.msra.mxu2 %v5065_v49  ;;  %v2581_v45 = vpop.f32.mrf.mxu3  ;;  %v5566_v49 = vld [vmem:[#allocation7 + $0x68] sm:$0xf0]  ;;  %v5638_v54 = vld [vmem:[#allocation7 + $0xf8] sm:$0xf0] }
 0x1b9   :  { %v5569_v56 = vor.u32 %v6486_v44, %v5566_v49  ;;  %v5534_v44 = vld [vmem:[#allocation7 + $0x28] sm:$0xf0] }
 0x1ba   :  { %2834 = vmatpush.bf16.msra.mxu3 %v5385_v51  ;;  %3652 = vmatpush.bf16.msrb.mxu1 %v5589_v58  ;;  %v6515_v51 = vld [vmem:[#allocation7 + $0x144] sm:$0xf0]  ;;  %v5876_v58 = vld [vmem:[#allocation7 + $0x2d0] sm:$0xf] }
 0x1bb   :  { %v5677_v57 = vor.u32 %v6515_v51, %v5676_v48  ;;  %v5877_v1 = vor.u32 %v6565_v59, %v5876_v58  ;;  %v5644_v48 = vld [vmem:[#allocation7 + $0x100] sm:$0xf]  ;;  %v6507_v51 = vld [vmem:[#allocation7 + $0x104] sm:$0xf0]  ;;  %v6476_v59 = vld [vmem:[#allocation7 + $0x14] sm:$0xf] }
 0x1bc   :  { %3690 = vmatpush.bf16.msra.mxu0 %v5789_v24  ;;  %2824 = vmatpush.bf16.msra.mxu2 %v5033_v3  ;;  %v5748_v24 = vld [vmem:[#allocation7 + $0x1d0] sm:$0xf]  ;;  %v5561_v3 = vor.u32 %v6484_v60, %v5558_v63  ;;  %v5645_v60 = vor.u32 %v6507_v51, %v5644_v48  ;;  %v6579_v48 = vld [vmem:[#allocation7 + $0x344] sm:$0xf0] }
 0x1bd   :  { %v5749_v2 = vor.u32 %v6533_v0, %v5748_v24  ;;  %v5716_v24 = vld [vmem:[#allocation7 + $0x190] sm:$0xf]  ;;  %v6525_v0 = vld [vmem:[#allocation7 + $0x194] sm:$0xf0] }
 0x1be   :  { %2835 = vmatpush.bf16.msra.mxu3 %v5353_v4  ;;  %3653 = vmatpush.bf16.msrb.mxu1 %v5581_v10  ;;  %v5868_v4 = vld [vmem:[#allocation7 + $0x2c0] sm:$0xf]  ;;  %v7013_v10 = vpop.f32.mrf.mxu1 }
 0x1bf   :  { %2825 = vmatmul.bf16.vlgmr.msra.gmra.mxu2 %v6932_v29  ;;  %v5885_v29 = vor.u32 %v6567_v36, %v5884_v43  ;;  %v5869_v18 = vor.u32 %v6563_v6, %v5868_v4  ;;  %v2567_v43 = vadd.f32 %v7001_v26, %v6975_v14  ;;  %v6478_v36 = vld [vmem:[#allocation7 + $0x24] sm:$0xf]  ;;  %v5844_v14 = vld [vmem:[#allocation7 + $0x290] sm:$0xf]  ;;  %v6557_v26 = vld [vmem:[#allocation7 + $0x294] sm:$0xf0] }
 0x1c0   :  { %3659 = vmatpush.bf16.msrb.mxu2 %v5701_v9  ;;  %3691 = vmatpush.bf16.msra.mxu0 %v5781_v17  ;;  %v5550_v9 = vld [vmem:[#allocation7 + $0x48] sm:$0xf0]  ;;  %v6531_v17 = vld [vmem:[#allocation7 + $0x1c4] sm:$0xf0]  ;;  %v5708_v6 = vld [vmem:[#allocation7 + $0x180] sm:$0xf] }
 0x1c1   :  { %3654 = vmatmul.bf16.vlgmr.msrb.gmra.mxu1 %v7008_v33  ;;  %v5741_v32 = vor.u32 %v6531_v17, %v5740_v13  ;;  %v2580_v49 = vadd.f32 %v7006_v8, %v2567_v43  ;;  %v6500_v43 = vld [vmem:[#allocation7 + $0xd4] sm:$0xf] }
 0x1c2   :  { %2836 = vmatpush.bf16.msra.mxu3 %v5321_v20  ;;  %3698 = vmatpush.bf16.msra.mxu1 %v5893_v39  ;;  %v6480_v20 = vld [vmem:[#allocation7 + $0x34] sm:$0xf]  ;;  %v2618_v16 = vpop.f32.mrf.mxu2  ;;  %v5852_v39 = vld [vmem:[#allocation7 + $0x2a0] sm:$0xf] }
 0x1c3   :  { %v2845_v8 = vmax.f32 %v2580_v49, 0.0  ;;  %v6498_v49 = vld [vmem:[#allocation7 + $0xc4] sm:$0xf] }
 0x1c4   :  { %3660 = vmatpush.bf16.msrb.mxu2 %v5693_v23  ;;  %3692 = vmatpush.bf16.msra.mxu0 %v5773_v38  ;;  %v5542_v23 = vld [vmem:[#allocation7 + $0x38] sm:$0xf0]  ;;  %v7015_v37 = vpop.f32.mrf.mxu0 }
 0x1c5   :  { %v5545_v38 = vor.u32 %v6480_v20, %v5542_v23  ;;  %v7023_v13 = vpack.c.bf16 %v2845_v8, %v2845_v8  ;;  %v6583_v23 = vld [vmem:[#allocation7 + $0x364] sm:$0xf0] }
 0x1c6   :  { %2837 = vmatpush.bf16.msra.mxu3 %v5289_v42  ;;  %3699 = vmatpush.bf16.msra.mxu1 %v5885_v29  ;;  %v1134_v42 = vperm.slane %v6969_v53, 3  ;;  %v2659_v45 = vpop.f32.mrf.mxu1  ;;  %v6575_v8 = vld [vmem:[#allocation7 + $0x324] sm:$0xf0] }
 0x1c8   :  { %3737 = vmatpush.bf16.msrb.mxu0 %v5577_v41  ;;  %3661 = vmatpush.bf16.msrb.mxu2 %v5685_v46  ;;  %v6559_v41 = vld [vmem:[#allocation7 + $0x2a4] sm:$0xf0]  ;;  %v5653_v46 = vor.u32 %v6509_v28, %v5652_v22  ;;  %v2593_v58 = vadd.f32 %v6980_v31, %v1134_v42  ;;  %v5948_v22 = vld [vmem:[#allocation7 + $0x360] sm:$0xf]  ;;  %v5630_v28 = vld [vmem:[#allocation7 + $0xe8] sm:$0xf0] }
 0x1c9   :  { %2838 = vmatmul.bf16.vlgmr.msra.gmra.mxu3 %v6936_v5  ;;  %v5553_v5 = vor.u32 %v6482_v7, %v5550_v9  ;;  %v5853_v29 = vor.u32 %v6559_v41, %v5852_v39  ;;  %v5836_v7 = vld [vmem:[#allocation7 + $0x280] sm:$0xf]  ;;  %v6555_v9 = vld [vmem:[#allocation7 + $0x284] sm:$0xf0]  ;;  %v5940_v41 = vld [vmem:[#allocation7 + $0x350] sm:$0xf] }
 0x1ca   :  { %3672 = vmatpush.bf16.msrb.mxu3 %v5765_v47  ;;  %3700 = vmatpush.bf16.msra.mxu1 %v5877_v1  ;;  %v5733_v47 = vor.u32 %v6529_v34, %v5732_v30  ;;  %v2606_v62 = vadd.f32 %v6996_v12, %v2593_v58  ;;  %v2620_v63 = vpop.f32.mrf.mxu2  ;;  %v5845_v1 = vor.u32 %v6557_v26, %v5844_v14  ;;  %v5518_v12 = vld [vmem:[#allocation7 + $0x8] sm:$0xf0]  ;;  %v6581_v42 = vld [vmem:[#allocation7 + $0x354] sm:$0xf0]  ;;  %v6496_v14 = vld [vmem:[#allocation7 + $0xb4] sm:$0xf] }
 0x1cb   :  { %v5709_v30 = vor.u32 %v6523_v11, %v5708_v6  ;;  %v5949_v34 = vor.u32 %v6583_v23, %v5948_v22  ;;  %v6577_v58 = vld [vmem:[#allocation7 + $0x334] sm:$0xf0]  ;;  %v1135_v26 = vperm.slane %v6969_v53, 4  ;;  %v6550_v23 = vld [vmem:[#allocation7 + $0x264] sm:$0xf] }
 0x1cc   :  { %3738 = vmatpush.bf16.msrb.mxu0 %v5569_v56  ;;  %3662 = vmatpush.bf16.msrb.mxu2 %v5677_v57  ;;  %v5537_v56 = vor.u32 %v6478_v36, %v5534_v44  ;;  %v5725_v57 = vor.u32 %v6527_v55, %v5724_v52  ;;  %v2631_v40 = vpop.f32.mrf.mxu3  ;;  %v2619_v4 = vadd.f32 %v2618_v16, %v2606_v62  ;;  %v6502_v16 = vld [vmem:[#allocation7 + $0xe4] sm:$0xf]  ;;  %v5622_v36 = vld [vmem:[#allocation7 + $0xd8] sm:$0xf0]  ;;  %v5614_v52 = vld [vmem:[#allocation7 + $0xc8] sm:$0xf0] }
 0x1cd   :  { %v5633_v39 = vor.u32 %v6502_v16, %v5630_v28  ;;  %v5941_v44 = vor.u32 %v6581_v42, %v5940_v41  ;;  %v5916_v62 = vld [vmem:[#allocation7 + $0x320] sm:$0xf]  ;;  %v6573_v6 = vld [vmem:[#allocation7 + $0x314] sm:$0xf0]  ;;  %v6020_v28 = vld [vmem:[#allocation7 + $0x3f0] sm:$0xf] }
 0x1ce   :  { %3673 = vmatpush.bf16.msrb.mxu3 %v5757_v27  ;;  %3701 = vmatpush.bf16.msra.mxu1 %v5869_v18  ;;  %v5526_v27 = vld [vmem:[#allocation7 + $0x18] sm:$0xf0]  ;;  %v2632_v17 = vadd.f32 %v2631_v40, %v2619_v4  ;;  %v5837_v18 = vor.u32 %v6555_v9, %v5836_v7  ;;  %v6494_v40 = vld [vmem:[#allocation7 + $0xa4] sm:$0xf]  ;;  %v5908_v4 = vld [vmem:[#allocation7 + $0x310] sm:$0xf] }
 0x1cf   :  { %v5529_v31 = vor.u32 %v6476_v59, %v5526_v27  ;;  %v6492_v7 = vld [vmem:[#allocation7 + $0x94] sm:$0xf]  ;;  %v5702_v41 = vld [vmem:[#allocation7 + $0x178] sm:$0xf0] }
 0x1d0   :  { %3739 = vmatpush.bf16.msrb.mxu0 %v5561_v3  ;;  %3663 = vmatpush.bf16.msrb.mxu2 %v5669_v50  ;;  %v2698_v3 = vpop.f32.mrf.mxu0  ;;  %v6474_v50 = vld [vmem:[#allocation7 + $0x4] sm:$0xf] }
 0x1d1   :  { %v5521_v20 = vor.u32 %v6474_v50, %v5518_v12  ;;  %v5909_v50 = vor.u32 %v6573_v6, %v5908_v4  ;;  %v5798_v4 = vld [vmem:[#allocation7 + $0x238] sm:$0xf0] }
 0x1d2   :  { %3674 = vmatpush.bf16.msrb.mxu3 %v5749_v2  ;;  %3702 = vmatpush.bf16.msra.mxu1 %v5861_v35  ;;  %v5717_v2 = vor.u32 %v6525_v0, %v5716_v24  ;;  %v2846_v35 = vmax.f32 %v2632_v17, 0.0  ;;  %v5598_v24 = vld [vmem:[#allocation7 + $0xa8] sm:$0xf0]  ;;  %v5917_v0 = vor.u32 %v6575_v8, %v5916_v62  ;;  %v5996_v8 = vld [vmem:[#allocation7 + $0x3c0] sm:$0xf] }
 0x1d4   :  { %3740 = vmatpush.bf16.msrb.mxu0 %v5553_v5  ;;  %3664 = vmatpush.bf16.msrb.mxu2 %v5661_v21  ;;  %v6585_v5 = vld [vmem:[#allocation7 + $0x374] sm:$0xf0]  ;;  %v7026_v45 = vpack.c.bf16 %v2846_v35, %v2846_v35  ;;  %v5822_v35 = vld [vmem:[#allocation7 + $0x268] sm:$0xf0] }
 0x1d5   :  { %v5957_v21 = vor.u32 %v6585_v5, %v5956_v15  ;;  %v6552_v5 = vld [vmem:[#allocation7 + $0x274] sm:$0xf] }
 0x1d6   :  { %3675 = vmatpush.bf16.msrb.mxu3 %v5741_v32  ;;  %3703 = vmatpush.bf16.msra.mxu1 %v5853_v29  ;;  %v5641_v32 = vor.u32 %v6504_v19, %v5638_v54  ;;  %v5617_v29 = vor.u32 %v6498_v49, %v5614_v52  ;;  %v5900_v19 = vld [vmem:[#allocation7 + $0x300] sm:$0xf]  ;;  %v6571_v54 = vld [vmem:[#allocation7 + $0x304] sm:$0xf0]  ;;  %v5814_v52 = vld [vmem:[#allocation7 + $0x258] sm:$0xf0] }
 0x1d8   :  { %3741 = vmatpush.bf16.msrb.mxu0 %v5545_v38  ;;  %3665 = vmatpush.bf16.msrb.mxu2 %v5653_v46  ;;  %v2633_v38 = vpop.f32.mrf.mxu3  ;;  %v5625_v46 = vor.u32 %v6500_v43, %v5622_v36  ;;  %v6012_v43 = vld [vmem:[#allocation7 + $0x3e0] sm:$0xf]  ;;  %v6599_v36 = vld [vmem:[#allocation7 + $0x3e4] sm:$0xf0] }
 0x1d9   :  { %v6013_v49 = vor.u32 %v6599_v36, %v6012_v43  ;;  %v6508_v43 = vld [vmem:[#allocation7 + $0x114] sm:$0xf] }
 0x1da   :  { %3676 = vmatpush.bf16.msrb.mxu3 %v5733_v47  ;;  %3704 = vmatpush.bf16.msra.mxu1 %v5845_v1  ;;  %v5932_v47 = vld [vmem:[#allocation7 + $0x340] sm:$0xf]  ;;  %v2645_v1 = vadd.f32 %v6999_v25, %v1135_v26  ;;  %v5830_v25 = vld [vmem:[#allocation7 + $0x278] sm:$0xf0] }
 0x1db   :  { %v5933_v51 = vor.u32 %v6579_v48, %v5932_v47  ;;  %v5833_v22 = vor.u32 %v6552_v5, %v5830_v25  ;;  %v5825_v47 = vor.u32 %v6550_v23, %v5822_v35  ;;  %v6548_v48 = vld [vmem:[#allocation7 + $0x254] sm:$0xf]  ;;  %v5686_v26 = vld [vmem:[#allocation7 + $0x158] sm:$0xf0]  ;;  %v5790_v25 = vld [vmem:[#allocation7 + $0x228] sm:$0xf0] }
 0x1dc   :  { %3742 = vmatpush.bf16.msrb.mxu0 %v5537_v56  ;;  %3666 = vmatpush.bf16.msrb.mxu2 %v5645_v60  ;;  %v5924_v56 = vld [vmem:[#allocation7 + $0x330] sm:$0xf]  ;;  %v5606_v60 = vld [vmem:[#allocation7 + $0xb8] sm:$0xf0]  ;;  %v2658_v53 = vadd.f32 %v7013_v10, %v2645_v1  ;;  %v5678_v1 = vld [vmem:[#allocation7 + $0x148] sm:$0xf0] }
 0x1dd   :  { %v5925_v59 = vor.u32 %v6577_v58, %v5924_v56  ;;  %v5609_v27 = vor.u32 %v6496_v14, %v5606_v60  ;;  %v6004_v56 = vld [vmem:[#allocation7 + $0x3d0] sm:$0xf]  ;;  %v6597_v58 = vld [vmem:[#allocation7 + $0x3d4] sm:$0xf0]  ;;  %v6516_v14 = vld [vmem:[#allocation7 + $0x154] sm:$0xf]  ;;  %v5817_v60 = vor.u32 %v6548_v48, %v5814_v52 }
 0x1de   :  { %3677 = vmatpush.bf16.msrb.mxu3 %v5725_v57  ;;  %3705 = vmatpush.bf16.msra.mxu1 %v5837_v18  ;;  %v7029_v55 = vpop.f32.mrf.mxu1  ;;  %v5689_v62 = vor.u32 %v6516_v14, %v5686_v26  ;;  %v5782_v35 = vld [vmem:[#allocation7 + $0x218] sm:$0xf0]  ;;  %v6538_v48 = vld [vmem:[#allocation7 + $0x204] sm:$0xf]  ;;  %v6587_v14 = vld [vmem:[#allocation7 + $0x384] sm:$0xf0] }
 0x1df   :  { %3667 = vmatmul.bf16.vlgmr.msrb.gmra.mxu2 %v7023_v13  ;;  %v6506_v26 = vld [vmem:[#allocation7 + $0x104] sm:$0xf] }
 0x1e0   :  { %3743 = vmatpush.bf16.msrb.mxu0 %v5529_v31  ;;  %3711 = vmatpush.bf16.msra.mxu2 %v5957_v21  ;;  %v5601_v31 = vor.u32 %v6494_v40, %v5598_v24  ;;  %v5901_v21 = vor.u32 %v6571_v54, %v5900_v19  ;;  %v6595_v40 = vld [vmem:[#allocation7 + $0x3c4] sm:$0xf0]  ;;  %v6514_v24 = vld [vmem:[#allocation7 + $0x144] sm:$0xf]  ;;  %v5980_v54 = vld [vmem:[#allocation7 + $0x3a0] sm:$0xf] }
 0x1e1   :  { %v5681_v6 = vor.u32 %v6514_v24, %v5678_v1  ;;  %v5766_v24 = vld [vmem:[#allocation7 + $0x1f8] sm:$0xf0]  ;;  %v6566_v1 = vld [vmem:[#allocation7 + $0x2e4] sm:$0xf] }
 0x1e2   :  { %3678 = vmatpush.bf16.msrb.mxu3 %v5717_v2  ;;  %3750 = vmatpush.bf16.msrb.mxu1 %v5641_v32  ;;  %v2670_v57 = vpop.f32.mrf.mxu2  ;;  %v5590_v2 = vld [vmem:[#allocation7 + $0x98] sm:$0xf0]  ;;  %v5582_v32 = vld [vmem:[#allocation7 + $0x88] sm:$0xf0] }
 0x1e3   :  { %v2671_v9 = vadd.f32 %v2670_v57, %v2658_v53  ;;  %v5593_v15 = vor.u32 %v6492_v7, %v5590_v2  ;;  %v6546_v57 = vld [vmem:[#allocation7 + $0x244] sm:$0xf]  ;;  %v6544_v53 = vld [vmem:[#allocation7 + $0x234] sm:$0xf]  ;;  %v5988_v7 = vld [vmem:[#allocation7 + $0x3b0] sm:$0xf] }
 0x1e4   :  { %3744 = vmatpush.bf16.msrb.mxu0 %v5521_v20  ;;  %3712 = vmatpush.bf16.msra.mxu2 %v5949_v34  ;;  %v7032_v63 = vpop.f32.mrf.mxu0  ;;  %v6490_v20 = vld [vmem:[#allocation7 + $0x84] sm:$0xf] }
 0x1e5   :  { %v5585_v16 = vor.u32 %v6490_v20, %v5582_v32  ;;  %v7044_v2 = vld [vmem:[%s7088_s4] sm:$0xff]  ;;  %v6591_v20 = vld [vmem:[#allocation7 + $0x3a4] sm:$0xf0]  ;;  %v5662_v32 = vld [vmem:[#allocation7 + $0x128] sm:$0xf0] }
 0x1e6   :  { %3679 = vmatpush.bf16.msrb.mxu3 %v5709_v30  ;;  %3751 = vmatpush.bf16.msrb.mxu1 %v5633_v39  ;;  %v2711_v3 = vpop.f32.mrf.mxu1  ;;  %v6601_v30 = vld [vmem:[#allocation7 + $0x3f4] sm:$0xf0]  ;;  %v6520_v39 = vld [vmem:[#allocation7 + $0x174] sm:$0xf] }
 0x1e7   :  { %v6021_v38 = vor.u32 %v6601_v30, %v6020_v28  ;;  %v5705_v42 = vor.u32 %v6520_v39, %v5702_v41  ;;  %v6540_v30 = vld [vmem:[#allocation7 + $0x214] sm:$0xf]  ;;  %v5972_v41 = vld [vmem:[#allocation7 + $0x390] sm:$0xf] }
 0x1e8   :  { %3713 = vmatpush.bf16.msra.mxu2 %v5941_v44  ;;  %v6518_v44 = vld [vmem:[#allocation7 + $0x164] sm:$0xf] }
 0x1e9   :  { %3680 = vmatmul.bf16.vlgmr.msrb.gmra.mxu3 %v7026_v45 }
 0x1ea   :  { %3752 = vmatpush.bf16.msrb.mxu1 %v5625_v46  ;;  %v2672_v11 = vpop.f32.mrf.mxu2  ;;  %3724 = vmatpush.bf16.msra.mxu3 %v6021_v38 }
 0x1eb   :  { %v1136_v11 = vperm.slane %v7044_v2, 5 }
 0x1ec   :  { %3714 = vmatpush.bf16.msra.mxu2 %v5933_v51  ;;  %v2683_v12 = vpop.f32.mrf.mxu3  ;;  %v2750_v18 = vpop.f32.mrf.mxu0  ;;  %v5694_v51 = vld [vmem:[#allocation7 + $0x168] sm:$0xf0] }
 0x1ed   :  { %v2684_v17 = vadd.f32 %v2683_v12, %v2671_v9  ;;  %v6593_v9 = vld [vmem:[#allocation7 + $0x3b4] sm:$0xf0]  ;;  %v5801_v12 = vor.u32 %v6544_v53, %v5798_v4  ;;  %v5670_v18 = vld [vmem:[#allocation7 + $0x138] sm:$0xf0]  ;;  %v2697_v23 = vadd.f32 %v7015_v37, %v1136_v11  ;;  %v6534_v4 = vld [vmem:[#allocation7 + $0x1e4] sm:$0xf] }
 0x1ee   :  { %3753 = vmatpush.bf16.msrb.mxu1 %v5617_v29  ;;  %v5697_v29 = vor.u32 %v6518_v44, %v5694_v51  ;;  %3725 = vmatpush.bf16.msra.mxu3 %v6013_v49  ;;  %v5774_v49 = vld [vmem:[#allocation7 + $0x208] sm:$0xf0]  ;;  %v5878_v11 = vld [vmem:[#allocation7 + $0x2d8] sm:$0xf0] }
 0x1ef   :  { %v2847_v10 = vmax.f32 %v2684_v17, 0.0  ;;  %v5989_v17 = vor.u32 %v6593_v9, %v5988_v7  ;;  %v2710_v39 = vadd.f32 %v7029_v55, %v2697_v23  ;;  %v5964_v55 = vld [vmem:[#allocation7 + $0x380] sm:$0xf]  ;;  %v5862_v23 = vld [vmem:[#allocation7 + $0x2b8] sm:$0xf0] }
 0x1f0   :  { %3715 = vmatpush.bf16.msra.mxu2 %v5925_v59  ;;  %v6005_v59 = vor.u32 %v6597_v58, %v6004_v56  ;;  %v6568_v56 = vld [vmem:[#allocation7 + $0x2f4] sm:$0xf]  ;;  %v5894_v58 = vld [vmem:[#allocation7 + $0x2f8] sm:$0xf0] }
 0x1f1   :  { %v7036_v34 = vpack.c.bf16 %v2847_v10, %v2847_v10 }
 0x1f2   :  { %3754 = vmatpush.bf16.msrb.mxu1 %v5609_v27  ;;  %v5806_v27 = vld [vmem:[#allocation7 + $0x248] sm:$0xf0]  ;;  %3726 = vmatpush.bf16.msra.mxu3 %v6005_v59 }
 0x1f3   :  { %3693 = vmatmul.bf16.vlgmr.msra.gmra.mxu0 %v7036_v34 }
 0x1f4   :  { %3716 = vmatpush.bf16.msra.mxu2 %v5917_v0  ;;  %v2685_v46 = vpop.f32.mrf.mxu3  ;;  %3789 = vmatpush.bf16.msra.mxu0 %v5833_v22  ;;  %v5997_v0 = vor.u32 %v6595_v40, %v5996_v8  ;;  %v5981_v22 = vor.u32 %v6591_v20, %v5980_v54  ;;  %v6536_v40 = vld [vmem:[#allocation7 + $0x1f4] sm:$0xf]  ;;  %v6530_v54 = vld [vmem:[#allocation7 + $0x1c4] sm:$0xf]  ;;  %v5742_v20 = vld [vmem:[#allocation7 + $0x1c8] sm:$0xf0] }
 0x1f5   :  { %v5654_v46 = vld [vmem:[#allocation7 + $0x118] sm:$0xf0]  ;;  %v5769_v53 = vor.u32 %v6536_v40, %v5766_v24 }
 0x1f6   :  { %3755 = vmatpush.bf16.msrb.mxu1 %v5601_v31  ;;  %v5809_v31 = vor.u32 %v6546_v57, %v5806_v27  ;;  %3727 = vmatpush.bf16.msra.mxu3 %v5997_v0  ;;  %v5657_v51 = vor.u32 %v6508_v43, %v5654_v46  ;;  %v5965_v57 = vor.u32 %v6587_v14, %v5964_v55  ;;  %v5646_v27 = vld [vmem:[#allocation7 + $0x108] sm:$0xf0] }
 0x1f7   :  { %v5649_v8 = vor.u32 %v6506_v26, %v5646_v27  ;;  %v6554_v26 = vld [vmem:[#allocation7 + $0x284] sm:$0xf]  ;;  %v5958_v27 = vld [vmem:[#allocation7 + $0x378] sm:$0xf0] }
 0x1f8   :  { %3717 = vmatpush.bf16.msra.mxu2 %v5909_v50  ;;  %3790 = vmatpush.bf16.msra.mxu0 %v5825_v47  ;;  %v6512_v50 = vld [vmem:[#allocation7 + $0x134] sm:$0xf] }
 0x1f9   :  { %v5673_v19 = vor.u32 %v6512_v50, %v5670_v18  ;;  %v6564_v50 = vld [vmem:[#allocation7 + $0x2d4] sm:$0xf] }
 0x1fa   :  { %3756 = vmatpush.bf16.msrb.mxu1 %v5593_v15  ;;  %v6542_v15 = vld [vmem:[#allocation7 + $0x224] sm:$0xf]  ;;  %3728 = vmatpush.bf16.msra.mxu3 %v5989_v17  ;;  %v5750_v17 = vld [vmem:[#allocation7 + $0x1d8] sm:$0xf0]  ;;  %v5881_v18 = vor.u32 %v6564_v50, %v5878_v11  ;;  %v6580_v50 = vld [vmem:[#allocation7 + $0x354] sm:$0xf] }
 0x1fb   :  { %v5793_v28 = vor.u32 %v6542_v15, %v5790_v25  ;;  %v6532_v15 = vld [vmem:[#allocation7 + $0x1d4] sm:$0xf]  ;;  %v5870_v25 = vld [vmem:[#allocation7 + $0x2c8] sm:$0xf0]  ;;  %v5942_v11 = vld [vmem:[#allocation7 + $0x358] sm:$0xf0] }
 0x1fc   :  { %3718 = vmatpush.bf16.msra.mxu2 %v5901_v21  ;;  %3791 = vmatpush.bf16.msra.mxu0 %v5817_v60  ;;  %v6510_v21 = vld [vmem:[#allocation7 + $0x124] sm:$0xf]  ;;  %v5777_v60 = vor.u32 %v6538_v48, %v5774_v49  ;;  %v5846_v48 = vld [vmem:[#allocation7 + $0x298] sm:$0xf0] }
 0x1fd   :  { %v5665_v38 = vor.u32 %v6510_v21, %v5662_v32 }
 0x1fe   :  { %3757 = vmatpush.bf16.msrb.mxu1 %v5585_v16  ;;  %v7039_v3 = vpop.f32.mrf.mxu1  ;;  %3729 = vmatpush.bf16.msra.mxu3 %v5981_v22  ;;  %v6560_v22 = vld [vmem:[#allocation7 + $0x2b4] sm:$0xf] }
 0x200   :  { %3763 = vmatpush.bf16.msrb.mxu2 %v5705_v42  ;;  %3792 = vmatpush.bf16.msra.mxu0 %v5809_v31  ;;  %v6589_v42 = vld [vmem:[#allocation7 + $0x394] sm:$0xf0]  ;;  %v5886_v31 = vld [vmem:[#allocation7 + $0x2e8] sm:$0xf0] }
 0x201   :  { %v5973_v44 = vor.u32 %v6589_v42, %v5972_v41  ;;  %v5889_v9 = vor.u32 %v6566_v1, %v5886_v31  ;;  %v5854_v41 = vld [vmem:[#allocation7 + $0x2a8] sm:$0xf0] }
 0x202   :  { %v2722_v5 = vpop.f32.mrf.mxu2 }
 0x203   :  { %3745 = vmatmul.bf16.vlgmr.msrb.gmra.mxu0 %v6989_v61  ;;  %v2723_v36 = vadd.f32 %v2722_v5, %v2710_v39  ;;  %v5785_v61 = vor.u32 %v6540_v30, %v5782_v35  ;;  %3730 = vmatpush.bf16.msra.mxu3 %v5973_v44  ;;  %v6562_v5 = vld [vmem:[#allocation7 + $0x2c4] sm:$0xf]  ;;  %v1137_v30 = vperm.slane %v7044_v2, 6  ;;  %v5865_v35 = vor.u32 %v6560_v22, %v5862_v23 }
 0x204   :  { %3764 = vmatpush.bf16.msrb.mxu2 %v5697_v29  ;;  %v7047_v10 = vpop.f32.mrf.mxu0  ;;  %3793 = vmatpush.bf16.msra.mxu0 %v5801_v12  ;;  %v5873_v32 = vor.u32 %v6562_v5, %v5870_v25  ;;  %v6558_v39 = vld [vmem:[#allocation7 + $0x2a4] sm:$0xf]  ;;  %v1138_v22 = vperm.slane %v7044_v2, 7 }
 0x205   :  { %v2749_v44 = vadd.f32 %v7032_v63, %v1137_v30 }
 0x206   :  { %v2763_v16 = vpop.f32.mrf.mxu1 }
 0x207   :  { %3731 = vmatpush.bf16.msra.mxu3 %v5965_v57  ;;  %v5745_v16 = vor.u32 %v6530_v54, %v5742_v20  ;;  %v6584_v57 = vld [vmem:[#allocation7 + $0x374] sm:$0xf] }
 0x208   :  { %3765 = vmatpush.bf16.msrb.mxu2 %v5689_v62  ;;  %3794 = vmatpush.bf16.msra.mxu0 %v5793_v28  ;;  %v5897_v62 = vor.u32 %v6568_v56, %v5894_v58  ;;  %v6528_v28 = vld [vmem:[#allocation7 + $0x1b4] sm:$0xf]  ;;  %v5961_v24 = vor.u32 %v6584_v57, %v5958_v27  ;;  %v6590_v27 = vld [vmem:[#allocation7 + $0x3a4] sm:$0xf] }
 0x209   :  { %v6576_v20 = vld [vmem:[#allocation7 + $0x334] sm:$0xf] }
 0x20a   :  { %v2724_v47 = vpop.f32.mrf.mxu2 }
 0x20b   :  { %3776 = vmatpush.bf16.msrb.mxu3 %v5769_v53  ;;  %v5857_v47 = vor.u32 %v6558_v39, %v5854_v41  ;;  %v6582_v53 = vld [vmem:[#allocation7 + $0x364] sm:$0xf]  ;;  %v5910_v39 = vld [vmem:[#allocation7 + $0x318] sm:$0xf0] }
 0x20c   :  { %3766 = vmatpush.bf16.msrb.mxu2 %v5681_v6  ;;  %v2735_v37 = vpop.f32.mrf.mxu3  ;;  %v2802_v29 = vpop.f32.mrf.mxu0  ;;  %3795 = vmatpush.bf16.msra.mxu0 %v5785_v61  ;;  %v5758_v6 = vld [vmem:[#allocation7 + $0x1e8] sm:$0xf0] }
 0x20d   :  { %v2736_v52 = vadd.f32 %v2735_v37, %v2723_v36  ;;  %v5761_v12 = vor.u32 %v6534_v4, %v5758_v6  ;;  %v6526_v36 = vld [vmem:[#allocation7 + $0x1a4] sm:$0xf]  ;;  %v5726_v61 = vld [vmem:[#allocation7 + $0x1a8] sm:$0xf0]  ;;  %v6556_v37 = vld [vmem:[#allocation7 + $0x294] sm:$0xf] }
 0x20e   :  { %v5729_v49 = vor.u32 %v6526_v36, %v5726_v61  ;;  %v5718_v29 = vld [vmem:[#allocation7 + $0x198] sm:$0xf0]  ;;  %v5849_v58 = vor.u32 %v6556_v37, %v5846_v48  ;;  %v5950_v4 = vld [vmem:[#allocation7 + $0x368] sm:$0xf0]  ;;  %v7065_v6 = vld [vmem:[%s7090_s6] sm:$0x3] }
 0x20f   :  { %v2848_v59 = vmax.f32 %v2736_v52, 0.0  ;;  %3777 = vmatpush.bf16.msrb.mxu3 %v5761_v12  ;;  %v6524_v52 = vld [vmem:[#allocation7 + $0x194] sm:$0xf]  ;;  %v2989_v12 = vperm.slane %v7065_v6, 0  ;;  %v6570_v61 = vld [vmem:[#allocation7 + $0x304] sm:$0xf] }
 0x210   :  { %3767 = vmatpush.bf16.msrb.mxu2 %v5673_v19  ;;  %3796 = vmatpush.bf16.msra.mxu0 %v5777_v60  ;;  %v5753_v19 = vor.u32 %v6532_v15, %v5750_v17  ;;  %v5721_v63 = vor.u32 %v6524_v52, %v5718_v29  ;;  %v5945_v15 = vor.u32 %v6580_v50, %v5942_v11  ;;  %v6578_v17 = vld [vmem:[#allocation7 + $0x344] sm:$0xf]  ;;  %v6022_v37 = vld [vmem:[#allocation7 + $0x3f8] sm:$0xf0]  ;;  %v6014_v52 = vld [vmem:[#allocation7 + $0x3e8] sm:$0xf0] }
 0x211   :  { %v7052_v0 = vpack.c.bf16 %v2848_v59, %v2848_v59 }
 0x213   :  { %3706 = vmatmul.bf16.vlgmr.msra.gmra.mxu1 %v7052_v0  ;;  %3797 = vmatmul.bf16.vlgmr.msra.gmra.mxu0 %v7036_v34  ;;  %v5734_v34 = vld [vmem:[#allocation7 + $0x1b8] sm:$0xf0] }
 0x214   :  { %3768 = vmatpush.bf16.msrb.mxu2 %v5665_v38  ;;  %v2737_v7 = vpop.f32.mrf.mxu3  ;;  %3802 = vmatpush.bf16.msra.mxu1 %v5897_v62  ;;  %v5737_v42 = vor.u32 %v6528_v28, %v5734_v34  ;;  %v6522_v62 = vld [vmem:[#allocation7 + $0x184] sm:$0xf]  ;;  %v2801_v34 = vadd.f32 %v7047_v10, %v1138_v22  ;;  %v6608_v22 = vld [vmem:[#allocation8 + $0x30] sm:$0xff] }
 0x215   :  { %3778 = vmatpush.bf16.msrb.mxu3 %v5753_v19  ;;  %v6574_v28 = vld [vmem:[#allocation7 + $0x324] sm:$0xf] }
 0x218   :  { %3769 = vmatpush.bf16.msrb.mxu2 %v5657_v51  ;;  %3803 = vmatpush.bf16.msra.mxu1 %v5889_v9  ;;  %v2762_v51 = vadd.f32 %v7039_v3, %v2749_v44  ;;  %v5953_v9 = vor.u32 %v6582_v53, %v5950_v4  ;;  %v5902_v44 = vld [vmem:[#allocation7 + $0x308] sm:$0xf0]  ;;  %v6586_v4 = vld [vmem:[#allocation7 + $0x384] sm:$0xf] }
 0x219   :  { %3779 = vmatpush.bf16.msrb.mxu3 %v5745_v16  ;;  %v5905_v10 = vor.u32 %v6570_v61, %v5902_v44  ;;  %v6616_v61 = vld [vmem:[#allocation8 + $0x70] sm:$0xff]  ;;  %v6615_v44 = vld [vmem:[#allocation8 + $0x68] sm:$0xff] }
 0x21c   :  { %3770 = vmatpush.bf16.msrb.mxu2 %v5649_v8  ;;  %3804 = vmatpush.bf16.msra.mxu1 %v5881_v18  ;;  %v5710_v8 = vld [vmem:[#allocation7 + $0x188] sm:$0xf0] }
 0x21d   :  { %3780 = vmatpush.bf16.msrb.mxu3 %v5737_v42  ;;  %v5713_v1 = vor.u32 %v6522_v62, %v5710_v8  ;;  %v5934_v18 = vld [vmem:[#allocation7 + $0x348] sm:$0xf0] }
 0x21e   :  { %v7056_v21 = vpop.f32.mrf.mxu1  ;;  %v5937_v19 = vor.u32 %v6578_v17, %v5934_v18  ;;  %v5982_v62 = vld [vmem:[#allocation7 + $0x3a8] sm:$0xf0] }
 0x21f   :  { %v2814_v41 = vadd.f32 %v7056_v21, %v2801_v34  ;;  %v6606_v34 = vld [vmem:[#allocation8 + $0x20] sm:$0xff] }
 0x220   :  { %3805 = vmatpush.bf16.msra.mxu1 %v5873_v32  ;;  %v5926_v32 = vld [vmem:[#allocation7 + $0x338] sm:$0xf0] }
 0x221   :  { %3781 = vmatpush.bf16.msrb.mxu3 %v5729_v49  ;;  %v5929_v23 = vor.u32 %v6576_v20, %v5926_v32  ;;  %v2990_v20 = vperm.slane %v7065_v6, 1  ;;  %v6602_v6 = vld [vmem:[#allocation8] sm:$0xff] }
 0x222   :  { %v2774_v38 = vpop.f32.mrf.mxu2 }
 0x223   :  { %3758 = vmatmul.bf16.vlgmr.msrb.gmra.mxu1 %v7008_v33  ;;  %v2775_v56 = vadd.f32 %v2774_v38, %v2762_v51  ;;  %v5838_v33 = vld [vmem:[#allocation7 + $0x288] sm:$0xf0]  ;;  %v6572_v38 = vld [vmem:[#allocation7 + $0x314] sm:$0xf]  ;;  %v6598_v51 = vld [vmem:[#allocation7 + $0x3e4] sm:$0xf] }
 0x224   :  { %v3642_v43 = vpop.f32.mrf.mxu0  ;;  %3806 = vmatpush.bf16.msra.mxu1 %v5865_v35  ;;  %v5841_v3 = vor.u32 %v6554_v26, %v5838_v33  ;;  %v6017_v29 = vor.u32 %v6598_v51, %v6014_v52  ;;  %v5998_v26 = vld [vmem:[#allocation7 + $0x3c8] sm:$0xf0] }
 0x225   :  { %3782 = vmatpush.bf16.msrb.mxu3 %v5721_v63  ;;  %v3643_v5 = vadd.f32 %v3642_v43, %v2989_v12  ;;  %v5913_v43 = vor.u32 %v6572_v38, %v5910_v39  ;;  %v6592_v63 = vld [vmem:[#allocation7 + $0x3b4] sm:$0xf]  ;;  %v6603_v39 = vld [vmem:[#allocation8 + $0x8] sm:$0xff] }
 0x226   :  { %v2815_v46 = vpop.f32.mrf.mxu1  ;;  %v6604_v38 = vld [vmem:[#allocation8 + $0x10] sm:$0xff]  ;;  %v6611_v51 = vld [vmem:[#allocation8 + $0x48] sm:$0xff] }
 0x228   :  { %3807 = vmatpush.bf16.msra.mxu1 %v5857_v47  ;;  %v6600_v47 = vld [vmem:[#allocation7 + $0x3f4] sm:$0xf] }
 0x229   :  { %3783 = vmatpush.bf16.msrb.mxu3 %v5713_v1  ;;  %v6025_v48 = vor.u32 %v6600_v47, %v6022_v37  ;;  %v6614_v47 = vld [vmem:[#allocation8 + $0x60] sm:$0xff]  ;;  %v6613_v37 = vld [vmem:[#allocation8 + $0x58] sm:$0xff] }
 0x22a   :  { %v2776_v55 = vpop.f32.mrf.mxu2 }
 0x22c   :  { %v2787_v14 = vpop.f32.mrf.mxu3  ;;  %v3644_v60 = vpop.f32.mrf.mxu0  ;;  %3808 = vmatpush.bf16.msra.mxu1 %v5849_v58  ;;  %v6006_v58 = vld [vmem:[#allocation7 + $0x3d8] sm:$0xf0] }
 0x22d   :  { %v2788_v59 = vadd.f32 %v2787_v14, %v2775_v56  ;;  %v6596_v56 = vld [vmem:[#allocation7 + $0x3d4] sm:$0xf]  ;;  %v6594_v14 = vld [vmem:[#allocation7 + $0x3c4] sm:$0xf] }
 0x22e   :  { %v6009_v55 = vor.u32 %v6596_v56, %v6006_v58  ;;  %v6001_v33 = vor.u32 %v6594_v14, %v5998_v26  ;;  %v6610_v58 = vld [vmem:[#allocation8 + $0x40] sm:$0xff] }
 0x22f   :  { %v2849_v40 = vmax.f32 %v2788_v59, 0.0  ;;  %v5990_v59 = vld [vmem:[#allocation7 + $0x3b8] sm:$0xf0] }
 0x230   :  { %3809 = vmatpush.bf16.msra.mxu1 %v5841_v3  ;;  %v5993_v60 = vor.u32 %v6592_v63, %v5990_v59  ;;  %v6588_v3 = vld [vmem:[#allocation7 + $0x394] sm:$0xf] }
 0x231   :  { %v2986_v31 = vpack.c.bf16 %v2849_v40, %v2849_v40  ;;  %v5985_v40 = vor.u32 %v6590_v27, %v5982_v62 }
 0x233   :  { %3719 = vmatmul.bf16.vlgmr.msra.gmra.mxu2 %v2986_v31  ;;  %3810 = vmatmul.bf16.vlgmr.msra.gmra.mxu1 %v7052_v0  ;;  %v5918_v0 = vld [vmem:[#allocation7 + $0x328] sm:$0xf0] }
 0x234   :  { %v2789_v7 = vpop.f32.mrf.mxu3  ;;  %3815 = vmatpush.bf16.msra.mxu2 %v5961_v24  ;;  %v5921_v35 = vor.u32 %v6574_v28, %v5918_v0  ;;  %v5974_v24 = vld [vmem:[#allocation7 + $0x398] sm:$0xf0] }
 0x235   :  { %v5977_v1 = vor.u32 %v6588_v3, %v5974_v24  ;;  %v5966_v7 = vld [vmem:[#allocation7 + $0x388] sm:$0xf0] }
 0x236   :  { %v5969_v50 = vor.u32 %v6586_v4, %v5966_v7  ;;  %v6623_v4 = vld [vmem:[#allocation10 + $0x28] sm:$0xff]  ;;  %v6622_v7 = vld [vmem:[#allocation10 + $0x20] sm:$0xff] }
 0x238   :  { %3816 = vmatpush.bf16.msra.mxu2 %v5953_v9 }
 0x23c   :  { %3817 = vmatpush.bf16.msra.mxu2 %v5945_v15 }
 0x23e   :  { %v3655_v25 = vpop.f32.mrf.mxu1 }
 0x23f   :  { %v3656_v54 = vadd.f32 %v3655_v25, %v3643_v5 }
 0x240   :  { %3818 = vmatpush.bf16.msra.mxu2 %v5937_v19  ;;  %v6609_v19 = vld [vmem:[#allocation8 + $0x38] sm:$0xff] }
 0x241   :  { %3977 = vmatpush.bf16.msrb.mxu0 %v6609_v19 }
 0x242   :  { %v2826_v16 = vpop.f32.mrf.mxu2 }
 0x243   :  { %3771 = vmatmul.bf16.vlgmr.msrb.gmra.mxu2 %v7023_v13  ;;  %v2827_v42 = vadd.f32 %v2826_v16, %v2814_v41 }
 0x244   :  { %3819 = vmatpush.bf16.msra.mxu2 %v5929_v23  ;;  %v6607_v23 = vld [vmem:[#allocation8 + $0x28] sm:$0xff] }
 0x245   :  { %3978 = vmatpush.bf16.msrb.mxu0 %v6608_v22 }
 0x246   :  { %v3657_v30 = vpop.f32.mrf.mxu1 }
 0x247   :  { %v6605_v30 = vld [vmem:[#allocation8 + $0x18] sm:$0xff] }
 0x248   :  { %3820 = vmatpush.bf16.msra.mxu2 %v5921_v35 }
 0x249   :  { %3979 = vmatpush.bf16.msrb.mxu0 %v6607_v23 }
 0x24a   :  { %v2828_v2 = vpop.f32.mrf.mxu2 }
 0x24c   :  { %v2839_v36 = vpop.f32.mrf.mxu3  ;;  %3821 = vmatpush.bf16.msra.mxu2 %v5913_v43  ;;  %v6617_v43 = vld [vmem:[#allocation8 + $0x78] sm:$0xff] }
 0x24d   :  { %v2840_v46 = vadd.f32 %v2839_v36, %v2827_v42  ;;  %3980 = vmatpush.bf16.msrb.mxu0 %v6606_v34  ;;  %3990 = vmatpush.bf16.msrb.mxu1 %v6617_v43 }
 0x24f   :  { %v2850_v13 = vmax.f32 %v2840_v46, 0.0 }
 0x250   :  { %3822 = vmatpush.bf16.msra.mxu2 %v5905_v10 }
 0x251   :  { %v2987_v49 = vpack.c.bf16 %v2850_v13, %v2850_v13  ;;  %3981 = vmatpush.bf16.msrb.mxu0 %v6605_v30  ;;  %3991 = vmatpush.bf16.msrb.mxu1 %v6616_v61  ;;  %v6612_v13 = vld [vmem:[#allocation8 + $0x50] sm:$0xff] }
 0x253   :  { %3732 = vmatmul.bf16.vlgmr.msra.gmra.mxu3 %v2987_v49  ;;  %3823 = vmatmul.bf16.vlgmr.msra.gmra.mxu2 %v2986_v31 }
 0x254   :  { %v2841_v21 = vpop.f32.mrf.mxu3  ;;  %3828 = vmatpush.bf16.msra.mxu3 %v6025_v48 }
 0x255   :  { %3982 = vmatpush.bf16.msrb.mxu0 %v6604_v38  ;;  %3992 = vmatpush.bf16.msrb.mxu1 %v6615_v44 }
 0x258   :  { %3829 = vmatpush.bf16.msra.mxu3 %v6017_v29 }
 0x259   :  { %3983 = vmatpush.bf16.msrb.mxu0 %v6603_v39  ;;  %3993 = vmatpush.bf16.msrb.mxu1 %v6614_v47 }
 0x25c   :  { %3830 = vmatpush.bf16.msra.mxu3 %v6009_v55 }
 0x25d   :  { %3984 = vmatpush.bf16.msrb.mxu0 %v6602_v6  ;;  %3994 = vmatpush.bf16.msrb.mxu1 %v6613_v37 }
 0x260   :  { %3831 = vmatpush.bf16.msra.mxu3 %v6001_v33 }
 0x261   :  { %3995 = vmatpush.bf16.msrb.mxu1 %v6612_v13 }
 0x262   :  { %v3668_v57 = vpop.f32.mrf.mxu2 }
 0x263   :  { %v3669_v8 = vadd.f32 %v3668_v57, %v3656_v54  ;;  %3784 = vmatmul.bf16.vlgmr.msrb.gmra.mxu3 %v7026_v45 }
 0x264   :  { %3832 = vmatpush.bf16.msra.mxu3 %v5993_v60 }
 0x265   :  { %3996 = vmatpush.bf16.msrb.mxu1 %v6611_v51 }
 0x268   :  { %3833 = vmatpush.bf16.msra.mxu3 %v5985_v40 }
 0x269   :  { %3997 = vmatpush.bf16.msrb.mxu1 %v6610_v58 }
 0x26a   :  { %v3670_v31 = vpop.f32.mrf.mxu2 }
 0x26b   :  { %v6625_v31 = vld [vmem:[#allocation10 + $0x38] sm:$0xff] }
 0x26c   :  { %v3681_v53 = vpop.f32.mrf.mxu3  ;;  %3834 = vmatpush.bf16.msra.mxu3 %v5977_v1  ;;  %4073 = vmatpush.bf16.msrb.mxu2 %v6625_v31 }
 0x26d   :  { %v3682_v9 = vadd.f32 %v3681_v53, %v3669_v8  ;;  %v6624_v53 = vld [vmem:[#allocation10 + $0x30] sm:$0xff] }
 0x270   :  { %3835 = vmatpush.bf16.msra.mxu3 %v5969_v50  ;;  %v3694_v12 = vpop.f32.mrf.mxu0  ;;  %4074 = vmatpush.bf16.msrb.mxu2 %v6624_v53  ;;  %v6620_v50 = vld [vmem:[#allocation10 + $0x10] sm:$0xff] }
 0x271   :  { %v3695_v15 = vadd.f32 %v3694_v12, %v3682_v9  ;;  %v6621_v9 = vld [vmem:[#allocation10 + $0x18] sm:$0xff] }
 0x273   :  { %3836 = vmatmul.bf16.vlgmr.msra.gmra.mxu3 %v2987_v49 }
 0x274   :  { %v3683_v11 = vpop.f32.mrf.mxu3  ;;  %4075 = vmatpush.bf16.msrb.mxu2 %v6623_v4 }
 0x275   :  { %v6619_v11 = vld [vmem:[#allocation10 + $0x8] sm:$0xff] }
 0x278   :  { %v3696_v17 = vpop.f32.mrf.mxu0  ;;  %4076 = vmatpush.bf16.msrb.mxu2 %v6622_v7 }
 0x27c   :  { %4077 = vmatpush.bf16.msrb.mxu2 %v6621_v9 }
 0x280   :  { %v3746_v45 = vpop.f32.mrf.mxu0  ;;  %4078 = vmatpush.bf16.msrb.mxu2 %v6620_v50 }
 0x281   :  { %v3747_v16 = vadd.f32 %v3746_v45, %v2990_v20  ;;  %v6640_v45 = vld [vmem:[%s7092_s8] ss:$0 sm:$0xff] }
 0x284   :  { %4079 = vmatpush.bf16.msrb.mxu2 %v6619_v11 }
 0x288   :  { %v3748_v18 = vpop.f32.mrf.mxu0 }
 0x290   :  { %v3707_v5 = vpop.f32.mrf.mxu1  ;;  %v3798_v25 = vpop.f32.mrf.mxu0 }
 0x291   :  { %v3708_v48 = vadd.f32 %v3707_v5, %v3695_v15  ;;  %v6618_v15 = vld [vmem:[#allocation10] sm:$0xff] }
 0x292   :  { %4080 = vmatpush.bf16.msrb.mxu2 %v6618_v15 }
 0x298   :  { %v3709_v54 = vpop.f32.mrf.mxu1  ;;  %v3800_v32 = vpop.f32.mrf.mxu0 }
 0x299   :  { %v6641_v32 = vld [vmem:[%s7094_s10] ss:$0 sm:$0xff] }
 0x2a0   :  { %v3759_v28 = vpop.f32.mrf.mxu1 }
 0x2a1   :  { %v3760_v0 = vadd.f32 %v3759_v28, %v3747_v16 }
 0x2a8   :  { %v3761_v35 = vpop.f32.mrf.mxu1 }
 0x2b0   :  { %v3811_v41 = vpop.f32.mrf.mxu1 }
 0x2b6   :  { %v3720_v42 = vpop.f32.mrf.mxu2 }
 0x2b7   :  { %v3721_v49 = vadd.f32 %v3720_v42, %v3708_v48 }
 0x2b8   :  { %v3813_v2 = vpop.f32.mrf.mxu1 }
 0x2be   :  { %v3722_v36 = vpop.f32.mrf.mxu2 }
 0x2c6   :  { %v3772_v46 = vpop.f32.mrf.mxu2 }
 0x2c7   :  { %v3773_v63 = vadd.f32 %v3772_v46, %v3760_v0 }
 0x2ce   :  { %v3774_v10 = vpop.f32.mrf.mxu2 }
 0x2d6   :  { %v3733_v52 = vpop.f32.mrf.mxu3  ;;  %v3824_v56 = vpop.f32.mrf.mxu2 }
 0x2d7   :  { %v3734_v21 = vadd.f32 %v3733_v52, %v3721_v49 }
 0x2d9   :  { %v3841_v29 = vmax.f32 %v3734_v21, 0.0 }
 0x2db   :  { %v3876_v55 = vpack.c.bf16 %v3841_v29, %v3841_v29 }
 0x2dd   :  { %3985 = vmatmul.bf16.vlgmr.msrb.gmra.mxu0 %v3876_v55 }
 0x2de   :  { %v3735_v14 = vpop.f32.mrf.mxu3  ;;  %v3826_v26 = vpop.f32.mrf.mxu2 }
 0x2e6   :  { %v3785_v33 = vpop.f32.mrf.mxu3 }
 0x2e7   :  { %v3786_v59 = vadd.f32 %v3785_v33, %v3773_v63 }
 0x2e9   :  { %v3799_v60 = vadd.f32 %v3798_v25, %v3786_v59 }
 0x2eb   :  { %v3812_v27 = vadd.f32 %v3811_v41, %v3799_v60 }
 0x2ed   :  { %v3825_v62 = vadd.f32 %v3824_v56, %v3812_v27 }
 0x2ee   :  { %v3787_v57 = vpop.f32.mrf.mxu3 }
 0x2f6   :  { %v3837_v8 = vpop.f32.mrf.mxu3 }
 0x2f7   :  { %v3838_v40 = vadd.f32 %v3837_v8, %v3825_v62 }
 0x2f9   :  { %v3842_v3 = vmax.f32 %v3838_v40, 0.0 }
 0x2fb   :  { %v3877_v24 = vpack.c.bf16 %v3842_v3, %v3842_v3 }
 0x2fd   :  { %3998 = vmatmul.bf16.vlgmr.msrb.gmra.mxu1 %v3877_v24 }
 0x2fe   :  { %v3839_v1 = vpop.f32.mrf.mxu3 }
 0x35a   :  { %v3986_v12 = vpop.f32.mrf.mxu0 }
 0x35b   :  { %v3987_v18 = vadd.f32 %v6640_v45, %v3986_v12 }
 0x362   :  { %v3988_v17 = vpop.f32.mrf.mxu0 }
 0x37a   :  { %v3999_v5 = vpop.f32.mrf.mxu1 }
 0x37b   :  { %v4000_v25 = vadd.f32 %v3999_v5, %v3987_v18 }
 0x37d   :  { %v4003_v19 = vmax.f32 %v4000_v25, 0.0 }
 0x37f   :  { %v4021_v54 = vpack.c.bf16 %v4003_v19, %v4003_v19 }
 0x381   :  { %4081 = vmatmul.bf16.vlgmr.msrb.gmra.mxu2 %v4021_v54 }
 0x382   :  { %v4001_v20 = vpop.f32.mrf.mxu1 }
 0x404   :  { %v4082_v22 = vpop.f32.mrf.mxu2 }
 0x405   :  { %v4083_v23 = vadd.f32 %v6641_v32, %v4082_v22 }
 0x407   :  { %4086 = vst [vmem:[#allocation11] sm:$0xff] %v4083_v23 }
 0x408   :  { %4097 = dma.vmem_to_hbm [thread:$0]  %s4093_s20, 128, %s4095_s23, [#allocation4]  }
 0x40c   :  { %v4084_v16 = vpop.f32.mrf.mxu2 }
 0x40d   :  { %6793 = dma.done.wait [#allocation4], 128  }
 0x40e   :  { %6794 = vsyncadd [#allocation4], 4294967168 }
 0x40f   :  { %4102 = vsyncpa [#allocation3], 1 }
 0x410   :  { %4103 = vsyncpa [#allocation6], 1 }
 0x411   :  { %4104 = vsyncpa [#allocation9], 1 }
 0x412   :  { %4105 = vsyncpa [#allocation4], 1 }

// kernel: fcnn_forward.1
= control target key start
LH: loop header
LB: loop body
LE: loop exit
PB: predicated region body
PF: predicated region fallthrough
CT: control target
= control target key end

     0   :  { %16 = vsyncpa [#allocation3], 0  ;;  %s7084_s0 = inlined_call_operand.vmem [shape: f32[8,384], index: 0, kind: input, shape index: {}]   ;;  %s7085_s1 = inlined_call_operand.hbm [shape: bf16[384,512], index: 1, kind: input, shape index: {}]   ;;  %s7086_s2 = inlined_call_operand.vmem [shape: f32[1,512], index: 2, kind: input, shape index: {}]   ;;  %s7087_s3 = inlined_call_operand.hbm [shape: bf16[512,1024], index: 3, kind: input, shape index: {}]   ;;  %s7088_s4 = inlined_call_operand.vmem [shape: f32[1,1024], index: 4, kind: input, shape index: {}]   ;;  %s7089_s5 = inlined_call_operand.hbm [shape: bf16[1024,256], index: 5, kind: input, shape index: {}]   ;;  %s7090_s6 = inlined_call_operand.vmem [shape: f32[1,256], index: 6, kind: input, shape index: {}]   ;;  %s7091_s7 = inlined_call_operand.hbm [shape: bf16[256,128], index: 7, kind: input, shape index: {}]   ;;  %s7092_s8 = inlined_call_operand.vmem [shape: f32[1,128], index: 8, kind: input, shape index: {}]   ;;  %s7093_s9 = inlined_call_operand.hbm [shape: bf16[128,128], index: 9, kind: input, shape index: {}]   ;;  %s7094_s10 = inlined_call_operand.vmem [shape: f32[1,128], index: 10, kind: input, shape index: {}]   ;;  %s7095_s11 = inlined_call_operand.hbm [shape: f32[8,128], index: 11, kind: output, shape index: {}]  }
   0x1   :  { %17 = vsyncpa [#allocation6], 0 }
   0x2   :  { %18 = vsyncpa [#allocation9], 0  ;;  %s41_s19 = sshll.u32 %s7087_s3, 4  ;;  %s42_s19 = int_to_ptr.hbm [resolvable:$true] %s41_s19 }
   0x3   :  { %19 = vsyncpa [#allocation4], 0  ;;  %s6795_s20 = smov [#allocation5]   ;;  %s71_s24 = sshll.u32 %s7091_s7, 4  ;;  %s72_s24 = int_to_ptr.hbm [resolvable:$true] %s71_s24 }
   0x4   :  { %s43_s21 = sshll.u32 %s6795_s20, 4  ;;  %s6796_s25 = smov 512   ;;  %s44_s21 = int_to_ptr.vmem [resolvable:$true] %s43_s21 }
   0x5   :  { %s6797_s26 = smov 32   ;;  %s6798_s27 = smov [#allocation8]  }
   0x6   :  { %49 = dma.hbm_to_vmem [thread:$0]  %s42_s19, 32768, %s44_s21, [#allocation6], %s6796_s25, %s6796_s25, %s6797_s26  }
   0x7   :  { %s73_s28 = sshll.u32 %s6798_s27, 4  ;;  %s6799_s29 = smov 64   ;;  %s74_s28 = int_to_ptr.vmem [resolvable:$true] %s73_s28 }
   0x8   :  { %s6800_s30 = smov 4   ;;  %s26_s13 = sshll.u32 %s7085_s1, 4  ;;  %s27_s13 = int_to_ptr.hbm [resolvable:$true] %s26_s13 }
   0x9   :  { %79 = dma.hbm_to_vmem [thread:$0]  %s72_s24, 2048, %s74_s28, [#allocation9], %s6799_s29, %s6799_s29, %s6800_s30  }
   0xa   :  { %s6801_s14 = smov [#allocation2]   ;;  %s56_s17 = sshll.u32 %s7089_s5, 4  ;;  %s57_s17 = int_to_ptr.hbm [resolvable:$true] %s56_s17 }
   0xb   :  { %s28_s15 = sshll.u32 %s6801_s14, 4  ;;  %s6802_s18 = smov 256   ;;  %s29_s15 = int_to_ptr.vmem [resolvable:$true] %s28_s15 }
   0xc   :  { %s6803_s19 = smov 16   ;;  %s6804_s20 = smov [#allocation7]  }
   0xd   :  { %34 = dma.hbm_to_vmem [thread:$0]  %s27_s13, 12288, %s29_s15, [#allocation3], %s6802_s18, %s6802_s18, %s6803_s19  }
   0xe   :  { %s58_s21 = sshll.u32 %s6804_s20, 4  ;;  %s6805_s22 = smov 128   ;;  %s59_s21 = int_to_ptr.vmem [resolvable:$true] %s58_s21 }
   0xf   :  { %s6806_s23 = smov 8   ;;  %s86_s25 = sshll.u32 %s7093_s9, 4  ;;  %s87_s25 = int_to_ptr.hbm [resolvable:$true] %s86_s25 }
  0x10   :  { %64 = dma.hbm_to_vmem [thread:$0]  %s57_s17, 16384, %s59_s21, [#allocation6], %s6805_s22, %s6805_s22, %s6806_s23  }
  0x11   :  { %s6807_s26 = smov [#allocation10]  }
  0x12   :  { %s88_s27 = sshll.u32 %s6807_s26, 4  ;;  %s89_s27 = int_to_ptr.vmem [resolvable:$true] %s88_s27 }
  0x13   :  { %94 = dma.hbm_to_vmem [thread:$0]  %s87_s25, 1024, %s89_s27, [#allocation9], %s6799_s29, %s6799_s29, %s6800_s30  }
  0x14   :  { %6787 = dma.done.wait [#allocation3], 12288  }
  0x15   :  { %6788 = vsyncadd [#allocation3], 4294955008 }
  0x16   :  { %6789 = dma.done.wait [#allocation6], 49152  }
  0x17   :  { %6790 = vsyncadd [#allocation6], 4294918144 }
  0x18   :  { %6791 = dma.done.wait [#allocation9], 3072  }
  0x19   :  { %6792 = vsyncadd [#allocation9], 4294964224  ;;  %v4220_v0 = vld [vmem:[#allocation2 + $0xe0] sm:$0xf]  ;;  %v6152_v1 = vld [vmem:[#allocation2 + $0xec] sm:$0xf0] }
  0x1a   :  { %v4348_v2 = vld [vmem:[#allocation2 + $0x1e0] sm:$0xf]  ;;  %v4221_v3 = vor.u32 %v6152_v1, %v4220_v0  ;;  %v6184_v4 = vld [vmem:[#allocation2 + $0x1ec] sm:$0xf0]  ;;  %v6150_v9 = vld [vmem:[#allocation2 + $0xe4] sm:$0xf] }
  0x1b   :  { %v4476_v5 = vld [vmem:[#allocation2 + $0x2e0] sm:$0xf]  ;;  %v6216_v6 = vld [vmem:[#allocation2 + $0x2ec] sm:$0xf0]  ;;  %v4349_v7 = vor.u32 %v6184_v4, %v4348_v2  ;;  %v4222_v10 = vld [vmem:[#allocation2 + $0xf0] sm:$0xf0] }
  0x1c   :  { %v4477_v8 = vor.u32 %v6216_v6, %v4476_v5  ;;  %v4204_v11 = vld [vmem:[#allocation2 + $0xc0] sm:$0xf]  ;;  %709 = vmatpush.bf16.msra.mxu0 %v4221_v3  ;;  %v4225_v12 = vor.u32 %v6150_v9, %v4222_v10  ;;  %v6148_v13 = vld [vmem:[#allocation2 + $0xcc] sm:$0xf0]  ;;  %v6146_v20 = vld [vmem:[#allocation2 + $0xc4] sm:$0xf] }
  0x1d   :  { %v4332_v14 = vld [vmem:[#allocation2 + $0x1c0] sm:$0xf]  ;;  %v6180_v15 = vld [vmem:[#allocation2 + $0x1cc] sm:$0xf0]  ;;  %722 = vmatpush.bf16.msra.mxu1 %v4349_v7  ;;  %v4205_v16 = vor.u32 %v6148_v13, %v4204_v11  ;;  %v4206_v22 = vld [vmem:[#allocation2 + $0xd0] sm:$0xf0] }
  0x1e   :  { %735 = vmatpush.bf16.msra.mxu2 %v4477_v8  ;;  %v4333_v17 = vor.u32 %v6180_v15, %v4332_v14  ;;  %v4460_v18 = vld [vmem:[#allocation2 + $0x2c0] sm:$0xf]  ;;  %v6212_v19 = vld [vmem:[#allocation2 + $0x2cc] sm:$0xf0]  ;;  %748 = vmatpush.bf16.msra.mxu3 %v4225_v12  ;;  %v4209_v25 = vor.u32 %v6146_v20, %v4206_v22  ;;  %v6142_v31 = vld [vmem:[#allocation2 + $0xa4] sm:$0xf] }
  0x1f   :  { %v4461_v21 = vor.u32 %v6212_v19, %v4460_v18  ;;  %v4188_v23 = vld [vmem:[#allocation2 + $0xa0] sm:$0xf]  ;;  %v6144_v24 = vld [vmem:[#allocation2 + $0xac] sm:$0xf0]  ;;  %v4190_v32 = vld [vmem:[#allocation2 + $0xb0] sm:$0xf0] }
  0x20   :  { %v4316_v26 = vld [vmem:[#allocation2 + $0x1a0] sm:$0xf]  ;;  %v6176_v27 = vld [vmem:[#allocation2 + $0x1ac] sm:$0xf0]  ;;  %710 = vmatpush.bf16.msra.mxu0 %v4205_v16  ;;  %v4189_v29 = vor.u32 %v6144_v24, %v4188_v23  ;;  %v4193_v38 = vor.u32 %v6142_v31, %v4190_v32  ;;  %v6138_v42 = vld [vmem:[#allocation2 + $0x84] sm:$0xf] }
  0x21   :  { %v4444_v28 = vld [vmem:[#allocation2 + $0x2a0] sm:$0xf]  ;;  %v6208_v30 = vld [vmem:[#allocation2 + $0x2ac] sm:$0xf0]  ;;  %723 = vmatpush.bf16.msra.mxu1 %v4333_v17  ;;  %v4317_v33 = vor.u32 %v6176_v27, %v4316_v26  ;;  %v4174_v43 = vld [vmem:[#allocation2 + $0x90] sm:$0xf0] }
  0x22   :  { %736 = vmatpush.bf16.msra.mxu2 %v4461_v21  ;;  %v4445_v34 = vor.u32 %v6208_v30, %v4444_v28  ;;  %v4172_v35 = vld [vmem:[#allocation2 + $0x80] sm:$0xf]  ;;  %v6140_v36 = vld [vmem:[#allocation2 + $0x8c] sm:$0xf0]  ;;  %749 = vmatpush.bf16.msra.mxu3 %v4209_v25  ;;  %v4177_v50 = vor.u32 %v6138_v42, %v4174_v43  ;;  %v6134_v54 = vld [vmem:[#allocation2 + $0x64] sm:$0xf] }
  0x23   :  { %v4300_v37 = vld [vmem:[#allocation2 + $0x180] sm:$0xf]  ;;  %v6172_v39 = vld [vmem:[#allocation2 + $0x18c] sm:$0xf0]  ;;  %v4173_v44 = vor.u32 %v6140_v36, %v4172_v35  ;;  %v4158_v55 = vld [vmem:[#allocation2 + $0x70] sm:$0xf0] }
  0x24   :  { %v4428_v40 = vld [vmem:[#allocation2 + $0x280] sm:$0xf]  ;;  %v6204_v41 = vld [vmem:[#allocation2 + $0x28c] sm:$0xf0]  ;;  %711 = vmatpush.bf16.msra.mxu0 %v4189_v29  ;;  %v4301_v45 = vor.u32 %v6172_v39, %v4300_v37  ;;  %v4161_v62 = vor.u32 %v6134_v54, %v4158_v55  ;;  %v6130_v2 = vld [vmem:[#allocation2 + $0x44] sm:$0xf] }
  0x25   :  { %724 = vmatpush.bf16.msra.mxu1 %v4317_v33  ;;  %v4429_v46 = vor.u32 %v6204_v41, %v4428_v40  ;;  %v4156_v47 = vld [vmem:[#allocation2 + $0x60] sm:$0xf]  ;;  %v6136_v48 = vld [vmem:[#allocation2 + $0x6c] sm:$0xf0]  ;;  %v4142_v3 = vld [vmem:[#allocation2 + $0x50] sm:$0xf0] }
  0x26   :  { %737 = vmatpush.bf16.msra.mxu2 %v4445_v34  ;;  %v4284_v49 = vld [vmem:[#allocation2 + $0x160] sm:$0xf]  ;;  %750 = vmatpush.bf16.msra.mxu3 %v4193_v38  ;;  %v6168_v51 = vld [vmem:[#allocation2 + $0x16c] sm:$0xf0]  ;;  %v4157_v56 = vor.u32 %v6136_v48, %v4156_v47  ;;  %v4145_v10 = vor.u32 %v6130_v2, %v4142_v3  ;;  %v6126_v14 = vld [vmem:[#allocation2 + $0x24] sm:$0xf] }
  0x27   :  { %v4412_v52 = vld [vmem:[#allocation2 + $0x260] sm:$0xf]  ;;  %v6200_v53 = vld [vmem:[#allocation2 + $0x26c] sm:$0xf0]  ;;  %v4285_v57 = vor.u32 %v6168_v51, %v4284_v49  ;;  %v4126_v15 = vld [vmem:[#allocation2 + $0x30] sm:$0xf0] }
  0x28   :  { %712 = vmatpush.bf16.msra.mxu0 %v4173_v44  ;;  %v4413_v58 = vor.u32 %v6200_v53, %v4412_v52  ;;  %v4140_v59 = vld [vmem:[#allocation2 + $0x40] sm:$0xf]  ;;  %v6132_v60 = vld [vmem:[#allocation2 + $0x4c] sm:$0xf0]  ;;  %v4129_v24 = vor.u32 %v6126_v14, %v4126_v15  ;;  %v6122_v26 = vld [vmem:[#allocation2 + $0x4] sm:$0xf] }
  0x29   :  { %725 = vmatpush.bf16.msra.mxu1 %v4301_v45  ;;  %v4268_v61 = vld [vmem:[#allocation2 + $0x140] sm:$0xf]  ;;  %v6164_v63 = vld [vmem:[#allocation2 + $0x14c] sm:$0xf0]  ;;  %v4141_v4 = vor.u32 %v6132_v60, %v4140_v59  ;;  %v4110_v27 = vld [vmem:[#allocation2 + $0x10] sm:$0xf0] }
  0x2a   :  { %738 = vmatpush.bf16.msra.mxu2 %v4429_v46  ;;  %751 = vmatpush.bf16.msra.mxu3 %v4177_v50  ;;  %v4396_v0 = vld [vmem:[#allocation2 + $0x240] sm:$0xf]  ;;  %v6196_v1 = vld [vmem:[#allocation2 + $0x24c] sm:$0xf0]  ;;  %v4269_v5 = vor.u32 %v6164_v63, %v4268_v61  ;;  %v6182_v28 = vld [vmem:[#allocation2 + $0x1e4] sm:$0xf]  ;;  %v4113_v40 = vor.u32 %v6122_v26, %v4110_v27 }
  0x2b   :  { %v4397_v6 = vor.u32 %v6196_v1, %v4396_v0  ;;  %v4124_v7 = vld [vmem:[#allocation2 + $0x20] sm:$0xf]  ;;  %v6128_v8 = vld [vmem:[#allocation2 + $0x2c] sm:$0xf0]  ;;  %v4350_v29 = vld [vmem:[#allocation2 + $0x1f0] sm:$0xf0] }
  0x2c   :  { %713 = vmatpush.bf16.msra.mxu0 %v4157_v56  ;;  %v4252_v9 = vld [vmem:[#allocation2 + $0x120] sm:$0xf]  ;;  %v6160_v11 = vld [vmem:[#allocation2 + $0x12c] sm:$0xf0]  ;;  %v4125_v16 = vor.u32 %v6128_v8, %v4124_v7  ;;  %v6214_v30 = vld [vmem:[#allocation2 + $0x2e4] sm:$0xf]  ;;  %v4353_v41 = vor.u32 %v6182_v28, %v4350_v29 }
  0x2d   :  { %726 = vmatpush.bf16.msra.mxu1 %v4285_v57  ;;  %v4380_v12 = vld [vmem:[#allocation2 + $0x220] sm:$0xf]  ;;  %v6192_v13 = vld [vmem:[#allocation2 + $0x22c] sm:$0xf0]  ;;  %v4253_v19 = vor.u32 %v6160_v11, %v4252_v9  ;;  %v4478_v32 = vld [vmem:[#allocation2 + $0x2f0] sm:$0xf0] }
  0x2e   :  { %739 = vmatpush.bf16.msra.mxu2 %v4413_v58  ;;  %752 = vmatpush.bf16.msra.mxu3 %v4161_v62  ;;  %v4108_v17 = vld [vmem:[#allocation2] sm:$0xf]  ;;  %v6124_v18 = vld [vmem:[#allocation2 + $0xc] sm:$0xf0]  ;;  %v4381_v20 = vor.u32 %v6192_v13, %v4380_v12  ;;  %v4228_v33 = vld [vmem:[#allocation2 + $0xe8] sm:$0xf]  ;;  %v4481_v44 = vor.u32 %v6214_v30, %v4478_v32 }
  0x2f   :  { %v4236_v21 = vld [vmem:[#allocation2 + $0x100] sm:$0xf]  ;;  %v6156_v22 = vld [vmem:[#allocation2 + $0x10c] sm:$0xf0]  ;;  %v4109_v31 = vor.u32 %v6124_v18, %v4108_v17  ;;  %v6153_v34 = vld [vmem:[#allocation2 + $0xf4] sm:$0xf0] }
  0x30   :  { %714 = vmatpush.bf16.msra.mxu0 %v4141_v4  ;;  %v4364_v23 = vld [vmem:[#allocation2 + $0x200] sm:$0xf]  ;;  %v6188_v25 = vld [vmem:[#allocation2 + $0x20c] sm:$0xf0]  ;;  %v4237_v35 = vor.u32 %v6156_v22, %v4236_v21  ;;  %v4356_v37 = vld [vmem:[#allocation2 + $0x1e8] sm:$0xf]  ;;  %v4229_v45 = vor.u32 %v6153_v34, %v4228_v33 }
  0x31   :  { %727 = vmatpush.bf16.msra.mxu1 %v4269_v5  ;;  %v4365_v36 = vor.u32 %v6188_v25, %v4364_v23  ;;  %v6185_v38 = vld [vmem:[#allocation2 + $0x1f4] sm:$0xf0]  ;;  %v119_v39 = vld [vmem:[%s7084_s0 + $0x10] sm:$0xff]  ;;  %v117_v42 = vld [vmem:[%s7084_s0] sm:$0xff]  ;;  %s6808_s19 = smov [#allocation11]   ;;  %s4094_s23 = sshll.u32 %s7095_s11, 4  ;;  %s4095_s23 = int_to_ptr.hbm [resolvable:$true] %s4094_s23 }
  0x32   :  { %740 = vmatpush.bf16.msra.mxu2 %v4397_v6  ;;  %753 = vmatpush.bf16.msra.mxu3 %v4145_v10  ;;  %v118_v43 = vld [vmem:[%s7084_s0 + $0x8] sm:$0xff]  ;;  %v6178_v46 = vld [vmem:[#allocation2 + $0x1c4] sm:$0xf]  ;;  %v4334_v47 = vld [vmem:[#allocation2 + $0x1d0] sm:$0xf0]  ;;  %v4357_v49 = vor.u32 %v6185_v38, %v4356_v37  ;;  %v6893_v50 = vpack.c.bf16 %v119_v39, %v119_v39  ;;  %v6895_v54 = vpack.c.bf16 %v117_v42, %v117_v42  ;;  %s4092_s20 = sshll.u32 %s6808_s19, 4  ;;  %s4093_s20 = int_to_ptr.vmem [resolvable:$true] %s4092_s20 }
  0x33   :  { %v6210_v48 = vld [vmem:[#allocation2 + $0x2c4] sm:$0xf]  ;;  %v4462_v51 = vld [vmem:[#allocation2 + $0x2d0] sm:$0xf0]  ;;  %v4212_v52 = vld [vmem:[#allocation2 + $0xc8] sm:$0xf]  ;;  %v6897_v57 = vpack.c.bf16 %v118_v43, %v118_v43  ;;  %v4337_v58 = vor.u32 %v6178_v46, %v4334_v47 }
  0x34   :  { %715 = vmatpush.bf16.msra.mxu0 %v4125_v16  ;;  %v6149_v53 = vld [vmem:[#allocation2 + $0xd4] sm:$0xf0]  ;;  %v4340_v55 = vld [vmem:[#allocation2 + $0x1c8] sm:$0xf]  ;;  %v4465_v59 = vor.u32 %v6210_v48, %v4462_v51  ;;  %v6174_v61 = vld [vmem:[#allocation2 + $0x1a4] sm:$0xf] }
  0x35   :  { %728 = vmatpush.bf16.msra.mxu1 %v4253_v19  ;;  %v6181_v56 = vld [vmem:[#allocation2 + $0x1d4] sm:$0xf0]  ;;  %v4213_v60 = vor.u32 %v6149_v53, %v4212_v52  ;;  %v4318_v62 = vld [vmem:[#allocation2 + $0x1b0] sm:$0xf0]  ;;  %v6206_v63 = vld [vmem:[#allocation2 + $0x2a4] sm:$0xf] }
  0x36   :  { %741 = vmatpush.bf16.msra.mxu2 %v4381_v20  ;;  %754 = vmatpush.bf16.msra.mxu3 %v4129_v24  ;;  %v4341_v0 = vor.u32 %v6181_v56, %v4340_v55  ;;  %v4446_v1 = vld [vmem:[#allocation2 + $0x2b0] sm:$0xf0]  ;;  %v4196_v2 = vld [vmem:[#allocation2 + $0xa8] sm:$0xf]  ;;  %v6145_v3 = vld [vmem:[#allocation2 + $0xb4] sm:$0xf0]  ;;  %v4321_v6 = vor.u32 %v6174_v61, %v4318_v62 }
  0x37   :  { %v4324_v4 = vld [vmem:[#allocation2 + $0x1a8] sm:$0xf]  ;;  %v6177_v5 = vld [vmem:[#allocation2 + $0x1b4] sm:$0xf0]  ;;  %v4449_v7 = vor.u32 %v6206_v63, %v4446_v1  ;;  %v4197_v8 = vor.u32 %v6145_v3, %v4196_v2  ;;  %v6170_v9 = vld [vmem:[#allocation2 + $0x184] sm:$0xf] }
  0x38   :  { %716 = vmatpush.bf16.msra.mxu0 %v4109_v31  ;;  %v4302_v10 = vld [vmem:[#allocation2 + $0x190] sm:$0xf0]  ;;  %v6202_v11 = vld [vmem:[#allocation2 + $0x284] sm:$0xf]  ;;  %v4325_v12 = vor.u32 %v6177_v5, %v4324_v4  ;;  %v4180_v14 = vld [vmem:[#allocation2 + $0x88] sm:$0xf] }
  0x39   :  { %729 = vmatpush.bf16.msra.mxu1 %v4237_v35  ;;  %v4430_v13 = vld [vmem:[#allocation2 + $0x290] sm:$0xf0]  ;;  %v6141_v15 = vld [vmem:[#allocation2 + $0x94] sm:$0xf0]  ;;  %v4308_v16 = vld [vmem:[#allocation2 + $0x188] sm:$0xf]  ;;  %v4305_v18 = vor.u32 %v6170_v9, %v4302_v10 }
  0x3a   :  { %742 = vmatpush.bf16.msra.mxu2 %v4365_v36  ;;  %755 = vmatpush.bf16.msra.mxu3 %v4113_v40  ;;  %v6173_v17 = vld [vmem:[#allocation2 + $0x194] sm:$0xf0]  ;;  %v4433_v19 = vor.u32 %v6202_v11, %v4430_v13  ;;  %v4181_v20 = vor.u32 %v6141_v15, %v4180_v14  ;;  %v6166_v21 = vld [vmem:[#allocation2 + $0x164] sm:$0xf]  ;;  %v4286_v22 = vld [vmem:[#allocation2 + $0x170] sm:$0xf0] }
  0x3b   :  { %717 = vmatmul.bf16.vlgmr.msra.gmra.mxu0 %v6895_v54  ;;  %v6198_v23 = vld [vmem:[#allocation2 + $0x264] sm:$0xf]  ;;  %v4309_v24 = vor.u32 %v6173_v17, %v4308_v16  ;;  %v4414_v25 = vld [vmem:[#allocation2 + $0x270] sm:$0xf0]  ;;  %v4164_v26 = vld [vmem:[#allocation2 + $0x68] sm:$0xf]  ;;  %v4289_v30 = vor.u32 %v6166_v21, %v4286_v22 }
  0x3c   :  { %761 = vmatpush.bf16.msrb.mxu0 %v4353_v41  ;;  %730 = vmatmul.bf16.vlgmr.msra.gmra.mxu1 %v6897_v57  ;;  %v6137_v27 = vld [vmem:[#allocation2 + $0x74] sm:$0xf0]  ;;  %v4292_v28 = vld [vmem:[#allocation2 + $0x168] sm:$0xf]  ;;  %v4417_v31 = vor.u32 %v6198_v23, %v4414_v25  ;;  %v6162_v33 = vld [vmem:[#allocation2 + $0x144] sm:$0xf] }
  0x3d   :  { %774 = vmatpush.bf16.msrb.mxu1 %v4481_v44  ;;  %743 = vmatmul.bf16.vlgmr.msra.gmra.mxu2 %v6893_v50  ;;  %v6169_v29 = vld [vmem:[#allocation2 + $0x174] sm:$0xf0]  ;;  %v4165_v32 = vor.u32 %v6137_v27, %v4164_v26  ;;  %v4270_v34 = vld [vmem:[#allocation2 + $0x150] sm:$0xf0]  ;;  %v6194_v35 = vld [vmem:[#allocation2 + $0x244] sm:$0xf] }
  0x3e   :  { %787 = vmatpush.bf16.msrb.mxu2 %v4229_v45  ;;  %800 = vmatpush.bf16.msrb.mxu3 %v4357_v49  ;;  %v4293_v36 = vor.u32 %v6169_v29, %v4292_v28  ;;  %v4398_v37 = vld [vmem:[#allocation2 + $0x250] sm:$0xf0]  ;;  %v4148_v38 = vld [vmem:[#allocation2 + $0x48] sm:$0xf]  ;;  %v6133_v39 = vld [vmem:[#allocation2 + $0x54] sm:$0xf0]  ;;  %v4273_v42 = vor.u32 %v6162_v33, %v4270_v34 }
  0x3f   :  { %756 = vmatmul.bf16.vlgmr.msra.gmra.mxu3 %v6895_v54  ;;  %v4276_v40 = vld [vmem:[#allocation2 + $0x148] sm:$0xf]  ;;  %v6165_v41 = vld [vmem:[#allocation2 + $0x154] sm:$0xf0]  ;;  %v4401_v43 = vor.u32 %v6194_v35, %v4398_v37  ;;  %v4149_v44 = vor.u32 %v6133_v39, %v4148_v38  ;;  %v6158_v45 = vld [vmem:[#allocation2 + $0x124] sm:$0xf] }
  0x40   :  { %762 = vmatpush.bf16.msrb.mxu0 %v4337_v58  ;;  %v4254_v46 = vld [vmem:[#allocation2 + $0x130] sm:$0xf0]  ;;  %v6190_v47 = vld [vmem:[#allocation2 + $0x224] sm:$0xf]  ;;  %v4277_v48 = vor.u32 %v6165_v41, %v4276_v40  ;;  %v4132_v51 = vld [vmem:[#allocation2 + $0x28] sm:$0xf] }
  0x41   :  { %775 = vmatpush.bf16.msrb.mxu1 %v4465_v59  ;;  %v4382_v49 = vld [vmem:[#allocation2 + $0x230] sm:$0xf0]  ;;  %v6129_v52 = vld [vmem:[#allocation2 + $0x34] sm:$0xf0]  ;;  %v4260_v53 = vld [vmem:[#allocation2 + $0x128] sm:$0xf]  ;;  %v4257_v56 = vor.u32 %v6158_v45, %v4254_v46 }
  0x42   :  { %788 = vmatpush.bf16.msrb.mxu2 %v4213_v60  ;;  %801 = vmatpush.bf16.msrb.mxu3 %v4341_v0  ;;  %v6161_v55 = vld [vmem:[#allocation2 + $0x134] sm:$0xf0]  ;;  %v6154_v58 = vld [vmem:[#allocation2 + $0x104] sm:$0xf]  ;;  %v4238_v59 = vld [vmem:[#allocation2 + $0x110] sm:$0xf0]  ;;  %v4385_v60 = vor.u32 %v6190_v47, %v4382_v49  ;;  %v4133_v61 = vor.u32 %v6129_v52, %v4132_v51 }
  0x43   :  { %v6186_v62 = vld [vmem:[#allocation2 + $0x204] sm:$0xf]  ;;  %v4366_v63 = vld [vmem:[#allocation2 + $0x210] sm:$0xf0]  ;;  %v4116_v0 = vld [vmem:[#allocation2 + $0x8] sm:$0xf]  ;;  %v4261_v1 = vor.u32 %v6161_v55, %v4260_v53 }
  0x44   :  { %763 = vmatpush.bf16.msrb.mxu0 %v4321_v6  ;;  %v6125_v2 = vld [vmem:[#allocation2 + $0x14] sm:$0xf0]  ;;  %v4244_v3 = vld [vmem:[#allocation2 + $0x108] sm:$0xf]  ;;  %v4230_v9 = vld [vmem:[#allocation2 + $0xf8] sm:$0xf0] }
  0x45   :  { %776 = vmatpush.bf16.msrb.mxu1 %v4449_v7  ;;  %v6157_v4 = vld [vmem:[#allocation2 + $0x114] sm:$0xf0]  ;;  %v4484_v5 = vld [vmem:[#allocation2 + $0x2e8] sm:$0xf]  ;;  %v6151_v7 = vld [vmem:[#allocation2 + $0xec] sm:$0xf]  ;;  %v4117_v13 = vor.u32 %v6125_v2, %v4116_v0 }
  0x46   :  { %789 = vmatpush.bf16.msrb.mxu2 %v4197_v8  ;;  %802 = vmatpush.bf16.msrb.mxu3 %v4325_v12  ;;  %v6217_v6 = vld [vmem:[#allocation2 + $0x2f4] sm:$0xf0]  ;;  %v4241_v8 = vor.u32 %v6154_v58, %v4238_v59  ;;  %v6183_v10 = vld [vmem:[#allocation2 + $0x1ec] sm:$0xf]  ;;  %v4358_v11 = vld [vmem:[#allocation2 + $0x1f8] sm:$0xf0]  ;;  %v4369_v12 = vor.u32 %v6186_v62, %v4366_v63  ;;  %v4245_v16 = vor.u32 %v6157_v4, %v4244_v3 }
  0x47   :  { %v6215_v14 = vld [vmem:[#allocation2 + $0x2ec] sm:$0xf]  ;;  %v4486_v15 = vld [vmem:[#allocation2 + $0x2f8] sm:$0xf0]  ;;  %v4485_v17 = vor.u32 %v6217_v6, %v4484_v5  ;;  %v6213_v21 = vld [vmem:[#allocation2 + $0x2d4] sm:$0xf0] }
  0x48   :  { %764 = vmatpush.bf16.msrb.mxu0 %v4305_v18  ;;  %v4233_v18 = vor.u32 %v6151_v7, %v4230_v9  ;;  %v6147_v22 = vld [vmem:[#allocation2 + $0xcc] sm:$0xf]  ;;  %v4489_v23 = vor.u32 %v6215_v14, %v4486_v15  ;;  %v4342_v26 = vld [vmem:[#allocation2 + $0x1d8] sm:$0xf0]  ;;  %v6209_v33 = vld [vmem:[#allocation2 + $0x2b4] sm:$0xf0] }
  0x49   :  { %777 = vmatpush.bf16.msrb.mxu1 %v4433_v19  ;;  %v4361_v19 = vor.u32 %v6183_v10, %v4358_v11  ;;  %v6179_v25 = vld [vmem:[#allocation2 + $0x1cc] sm:$0xf]  ;;  %v4470_v28 = vld [vmem:[#allocation2 + $0x2d8] sm:$0xf0]  ;;  %v6205_v45 = vld [vmem:[#allocation2 + $0x294] sm:$0xf0] }
  0x4a   :  { %790 = vmatpush.bf16.msrb.mxu2 %v4181_v20  ;;  %803 = vmatpush.bf16.msrb.mxu3 %v4309_v24  ;;  %v4468_v20 = vld [vmem:[#allocation2 + $0x2c8] sm:$0xf]  ;;  %v4214_v24 = vld [vmem:[#allocation2 + $0xd8] sm:$0xf0]  ;;  %v6211_v27 = vld [vmem:[#allocation2 + $0x2cc] sm:$0xf] }
  0x4b   :  { %v4469_v29 = vor.u32 %v6213_v21, %v4468_v20  ;;  %v6143_v34 = vld [vmem:[#allocation2 + $0xac] sm:$0xf]  ;;  %v4473_v35 = vor.u32 %v6211_v27, %v4470_v28  ;;  %v4326_v38 = vld [vmem:[#allocation2 + $0x1b8] sm:$0xf0]  ;;  %v4420_v59 = vld [vmem:[#allocation2 + $0x268] sm:$0xf] }
  0x4c   :  { %765 = vmatpush.bf16.msrb.mxu0 %v4289_v30  ;;  %v4217_v30 = vor.u32 %v6147_v22, %v4214_v24  ;;  %v6175_v37 = vld [vmem:[#allocation2 + $0x1ac] sm:$0xf]  ;;  %v4454_v40 = vld [vmem:[#allocation2 + $0x2b8] sm:$0xf0]  ;;  %v4404_v7 = vld [vmem:[#allocation2 + $0x248] sm:$0xf] }
  0x4d   :  { %778 = vmatpush.bf16.msrb.mxu1 %v4417_v31  ;;  %v4345_v31 = vor.u32 %v6179_v25, %v4342_v26  ;;  %v6207_v39 = vld [vmem:[#allocation2 + $0x2ac] sm:$0xf]  ;;  %v4310_v51 = vld [vmem:[#allocation2 + $0x198] sm:$0xf0]  ;;  %v6193_v20 = vld [vmem:[#allocation2 + $0x234] sm:$0xf0] }
  0x4e   :  { %791 = vmatpush.bf16.msrb.mxu2 %v4165_v32  ;;  %804 = vmatpush.bf16.msrb.mxu3 %v4293_v36  ;;  %v4452_v32 = vld [vmem:[#allocation2 + $0x2a8] sm:$0xf]  ;;  %v4198_v36 = vld [vmem:[#allocation2 + $0xb8] sm:$0xf0]  ;;  %v6139_v46 = vld [vmem:[#allocation2 + $0x8c] sm:$0xf]  ;;  %v4457_v47 = vor.u32 %v6207_v39, %v4454_v40 }
  0x4f   :  { %v4453_v41 = vor.u32 %v6209_v33, %v4452_v32  ;;  %v6171_v49 = vld [vmem:[#allocation2 + $0x18c] sm:$0xf]  ;;  %v4438_v53 = vld [vmem:[#allocation2 + $0x298] sm:$0xf0]  ;;  %v6189_v32 = vld [vmem:[#allocation2 + $0x214] sm:$0xf0] }
  0x50   :  { %766 = vmatpush.bf16.msrb.mxu0 %v4273_v42  ;;  %v4201_v42 = vor.u32 %v6143_v34, %v4198_v36  ;;  %v6203_v52 = vld [vmem:[#allocation2 + $0x28c] sm:$0xf]  ;;  %v4313_v58 = vor.u32 %v6171_v49, %v4310_v51  ;;  %v4166_v63 = vld [vmem:[#allocation2 + $0x78] sm:$0xf0]  ;;  %v4716_v40 = vld [vmem:[#allocation5 + $0x1c0] sm:$0xf] }
  0x51   :  { %779 = vmatpush.bf16.msrb.mxu1 %v4401_v43  ;;  %v4329_v43 = vor.u32 %v6175_v37, %v4326_v38  ;;  %v4441_v62 = vor.u32 %v6203_v52, %v4438_v53  ;;  %v6167_v0 = vld [vmem:[#allocation2 + $0x16c] sm:$0xf]  ;;  %v4422_v3 = vld [vmem:[#allocation2 + $0x278] sm:$0xf0]  ;;  %v4684_v49 = vld [vmem:[#allocation5 + $0x180] sm:$0xf] }
  0x52   :  { %792 = vmatpush.bf16.msrb.mxu2 %v4149_v44  ;;  %805 = vmatpush.bf16.msrb.mxu3 %v4277_v48  ;;  %v4436_v44 = vld [vmem:[#allocation2 + $0x288] sm:$0xf]  ;;  %v4182_v48 = vld [vmem:[#allocation2 + $0x98] sm:$0xf0]  ;;  %v6199_v2 = vld [vmem:[#allocation2 + $0x26c] sm:$0xf] }
  0x53   :  { %v4437_v55 = vor.u32 %v6205_v45, %v4436_v44  ;;  %v6131_v9 = vld [vmem:[#allocation2 + $0x4c] sm:$0xf]  ;;  %v4425_v10 = vor.u32 %v6199_v2, %v4422_v3  ;;  %v4150_v11 = vld [vmem:[#allocation2 + $0x58] sm:$0xf0]  ;;  %v6342_v44 = vld [vmem:[#allocation5 + $0x3dc] sm:$0xf0] }
  0x54   :  { %767 = vmatpush.bf16.msrb.mxu0 %v4257_v56  ;;  %v4185_v56 = vor.u32 %v6139_v46, %v4182_v48  ;;  %v6195_v14 = vld [vmem:[#allocation2 + $0x24c] sm:$0xf]  ;;  %v4406_v15 = vld [vmem:[#allocation2 + $0x258] sm:$0xf0]  ;;  %v6270_v51 = vld [vmem:[#allocation5 + $0x19c] sm:$0xf0] }
  0x55   :  { %780 = vmatpush.bf16.msrb.mxu1 %v4385_v60  ;;  %v6201_v60 = vld [vmem:[#allocation2 + $0x274] sm:$0xf0]  ;;  %v6127_v21 = vld [vmem:[#allocation2 + $0x2c] sm:$0xf]  ;;  %v4409_v22 = vor.u32 %v6195_v14, %v4406_v15  ;;  %v4262_v25 = vld [vmem:[#allocation2 + $0x138] sm:$0xf0] }
  0x56   :  { %793 = vmatpush.bf16.msrb.mxu2 %v4133_v61  ;;  %806 = vmatpush.bf16.msrb.mxu3 %v4261_v1  ;;  %v6135_v61 = vld [vmem:[#allocation2 + $0x6c] sm:$0xf]  ;;  %v4294_v1 = vld [vmem:[#allocation2 + $0x178] sm:$0xf0]  ;;  %v4421_v4 = vor.u32 %v6201_v60, %v4420_v59  ;;  %v4940_v53 = vld [vmem:[#allocation5 + $0x380] sm:$0xf] }
  0x57   :  { %v4169_v5 = vor.u32 %v6135_v61, %v4166_v63  ;;  %v4297_v6 = vor.u32 %v6167_v0, %v4294_v1  ;;  %v6159_v24 = vld [vmem:[#allocation2 + $0x12c] sm:$0xf]  ;;  %v4390_v27 = vld [vmem:[#allocation2 + $0x238] sm:$0xf0]  ;;  %v6262_v59 = vld [vmem:[#allocation5 + $0x15c] sm:$0xf0] }
  0x58   :  { %768 = vmatpush.bf16.msrb.mxu0 %v4241_v8  ;;  %v6197_v8 = vld [vmem:[#allocation2 + $0x254] sm:$0xf0]  ;;  %v6191_v26 = vld [vmem:[#allocation2 + $0x22c] sm:$0xf]  ;;  %v4118_v34 = vld [vmem:[#allocation2 + $0x18] sm:$0xf0] }
  0x59   :  { %781 = vmatpush.bf16.msrb.mxu1 %v4369_v12  ;;  %v6163_v12 = vld [vmem:[#allocation2 + $0x14c] sm:$0xf]  ;;  %v4246_v37 = vld [vmem:[#allocation2 + $0x118] sm:$0xf0]  ;;  %v4908_v61 = vld [vmem:[#allocation5 + $0x340] sm:$0xf] }
  0x5a   :  { %794 = vmatpush.bf16.msrb.mxu2 %v4117_v13  ;;  %807 = vmatpush.bf16.msrb.mxu3 %v4245_v16  ;;  %v4278_v13 = vld [vmem:[#allocation2 + $0x158] sm:$0xf0]  ;;  %v4405_v16 = vor.u32 %v6197_v8, %v4404_v7  ;;  %v6123_v33 = vld [vmem:[#allocation2 + $0xc] sm:$0xf]  ;;  %v4620_v0 = vld [vmem:[#allocation5 + $0x100] sm:$0xf] }
  0x5b   :  { %769 = vmatmul.bf16.vlgmr.msrb.gmra.mxu0 %v6897_v57  ;;  %v6155_v36 = vld [vmem:[#allocation2 + $0x10c] sm:$0xf]  ;;  %v4374_v39 = vld [vmem:[#allocation2 + $0x218] sm:$0xf0]  ;;  %v4121_v45 = vor.u32 %v6123_v33, %v4118_v34  ;;  %v6254_v1 = vld [vmem:[#allocation5 + $0x11c] sm:$0xf0] }
  0x5c   :  { %813 = vmatpush.bf16.msra.mxu0 %v4485_v17  ;;  %782 = vmatmul.bf16.vlgmr.msrb.gmra.mxu1 %v6893_v50  ;;  %v4153_v17 = vor.u32 %v6131_v9, %v4150_v11  ;;  %v6187_v38 = vld [vmem:[#allocation2 + $0x20c] sm:$0xf]  ;;  %v4249_v46 = vor.u32 %v6155_v36, %v4246_v37  ;;  %v4876_v3 = vld [vmem:[#allocation5 + $0x300] sm:$0xf]  ;;  %v6242_v34 = vld [vmem:[#allocation5 + $0xc4] sm:$0xf] }
  0x5d   :  { %826 = vmatpush.bf16.msra.mxu1 %v4233_v18  ;;  %795 = vmatmul.bf16.vlgmr.msrb.gmra.mxu2 %v6895_v54  ;;  %v4281_v18 = vor.u32 %v6163_v12, %v4278_v13  ;;  %v6246_v7 = vld [vmem:[#allocation5 + $0xdc] sm:$0xf0] }
  0x5e   :  { %839 = vmatpush.bf16.msra.mxu2 %v4361_v19  ;;  %852 = vmatpush.bf16.msra.mxu3 %v4489_v23  ;;  %v4388_v19 = vld [vmem:[#allocation2 + $0x228] sm:$0xf]  ;;  %v4134_v23 = vld [vmem:[#allocation2 + $0x38] sm:$0xf0]  ;;  %v4844_v8 = vld [vmem:[#allocation5 + $0x2c0] sm:$0xf] }
  0x5f   :  { %808 = vmatmul.bf16.vlgmr.msrb.gmra.mxu3 %v6897_v57  ;;  %v4389_v28 = vor.u32 %v6193_v20, %v4388_v19  ;;  %v4812_v12 = vld [vmem:[#allocation5 + $0x280] sm:$0xf] }
  0x60   :  { %814 = vmatpush.bf16.msra.mxu0 %v4469_v29  ;;  %v4372_v29 = vld [vmem:[#allocation2 + $0x208] sm:$0xf]  ;;  %v6302_v13 = vld [vmem:[#allocation5 + $0x29c] sm:$0xf0] }
  0x61   :  { %827 = vmatpush.bf16.msra.mxu1 %v4217_v30  ;;  %v4137_v30 = vor.u32 %v6127_v21, %v4134_v23  ;;  %v4524_v15 = vld [vmem:[#allocation5 + $0x40] sm:$0xf]  ;;  %v6274_v21 = vld [vmem:[#allocation5 + $0x1c4] sm:$0xf] }
  0x62   :  { %840 = vmatpush.bf16.msra.mxu2 %v4345_v31  ;;  %853 = vmatpush.bf16.msra.mxu3 %v4473_v35  ;;  %v4265_v31 = vor.u32 %v6159_v24, %v4262_v25  ;;  %v4393_v35 = vor.u32 %v6191_v26, %v4390_v27  ;;  %v4492_v19 = vld [vmem:[#allocation5] sm:$0xf]  ;;  %v6266_v25 = vld [vmem:[#allocation5 + $0x184] sm:$0xf] }
  0x63   :  { %v6222_v20 = vld [vmem:[#allocation5 + $0x1c] sm:$0xf0]  ;;  %v4686_v26 = vld [vmem:[#allocation5 + $0x1a0] sm:$0xf0] }
  0x64   :  { %815 = vmatpush.bf16.msra.mxu0 %v4453_v41  ;;  %v6278_v41 = vld [vmem:[#allocation5 + $0x1dc] sm:$0xf0]  ;;  %v4493_v23 = vor.u32 %v6222_v20, %v4492_v19  ;;  %v4689_v27 = vor.u32 %v6266_v25, %v4686_v26 }
  0x65   :  { %828 = vmatpush.bf16.msra.mxu1 %v4201_v42  ;;  %v4373_v42 = vor.u32 %v6189_v32, %v4372_v29  ;;  %v4717_v48 = vor.u32 %v6278_v41, %v4716_v40  ;;  %v4654_v29 = vld [vmem:[#allocation5 + $0x160] sm:$0xf0]  ;;  %v4780_v36 = vld [vmem:[#allocation5 + $0x240] sm:$0xf] }
  0x66   :  { %841 = vmatpush.bf16.msra.mxu2 %v4329_v43  ;;  %854 = vmatpush.bf16.msra.mxu3 %v4457_v47  ;;  %v4972_v43 = vld [vmem:[#allocation5 + $0x3c0] sm:$0xf]  ;;  %v4377_v47 = vor.u32 %v6187_v38, %v4374_v39  ;;  %v4622_v32 = vld [vmem:[#allocation5 + $0x120] sm:$0xf0] }
  0x67   :  { %v4973_v52 = vor.u32 %v6342_v44, %v4972_v43  ;;  %v6294_v37 = vld [vmem:[#allocation5 + $0x25c] sm:$0xf0]  ;;  %v6234_v40 = vld [vmem:[#allocation5 + $0x84] sm:$0xf] }
  0x68   :  { %816 = vmatpush.bf16.msra.mxu0 %v4437_v55  ;;  %v6334_v55 = vld [vmem:[#allocation5 + $0x39c] sm:$0xf0]  ;;  %v4781_v38 = vor.u32 %v6294_v37, %v4780_v36  ;;  %v4558_v41 = vld [vmem:[#allocation5 + $0xa0] sm:$0xf0] }
  0x69   :  { %829 = vmatpush.bf16.msra.mxu1 %v4185_v56  ;;  %v4685_v56 = vor.u32 %v6270_v51, %v4684_v49  ;;  %v4941_v60 = vor.u32 %v6334_v55, %v4940_v53  ;;  %v6406_v43 = vld [vmem:[#allocation5 + $0x5dc] sm:$0xf0]  ;;  %v4974_v49 = vld [vmem:[#allocation5 + $0x3e0] sm:$0xf0]  ;;  %v4561_v51 = vor.u32 %v6234_v40, %v4558_v41 }
  0x6a   :  { %842 = vmatpush.bf16.msra.mxu2 %v4313_v58  ;;  %855 = vmatpush.bf16.msra.mxu3 %v4441_v62  ;;  %v4652_v58 = vld [vmem:[#allocation5 + $0x140] sm:$0xf]  ;;  %v4526_v55 = vld [vmem:[#allocation5 + $0x60] sm:$0xf0] }
  0x6b   :  { %v6326_v62 = vld [vmem:[#allocation5 + $0x35c] sm:$0xf0]  ;;  %v4653_v63 = vor.u32 %v6262_v59, %v4652_v58 }
  0x6c   :  { %817 = vmatpush.bf16.msra.mxu0 %v4421_v4  ;;  %v4909_v2 = vor.u32 %v6326_v62, %v4908_v61  ;;  %v6318_v4 = vld [vmem:[#allocation5 + $0x31c] sm:$0xf0]  ;;  %v6330_v61 = vld [vmem:[#allocation5 + $0x384] sm:$0xf] }
  0x6d   :  { %830 = vmatpush.bf16.msra.mxu1 %v4169_v5  ;;  %v4621_v5 = vor.u32 %v6254_v1, %v4620_v0  ;;  %v6398_v58 = vld [vmem:[#allocation5 + $0x59c] sm:$0xf0]  ;;  %v4942_v62 = vld [vmem:[#allocation5 + $0x3a0] sm:$0xf0] }
  0x6e   :  { %843 = vmatpush.bf16.msra.mxu2 %v4297_v6  ;;  %856 = vmatpush.bf16.msra.mxu3 %v4425_v10  ;;  %v4588_v6 = vld [vmem:[#allocation5 + $0xc0] sm:$0xf]  ;;  %v4494_v0 = vld [vmem:[#allocation5 + $0x20] sm:$0xf0]  ;;  %v4945_v1 = vor.u32 %v6330_v61, %v4942_v62 }
  0x6f   :  { %v4589_v9 = vor.u32 %v6246_v7, %v4588_v6  ;;  %v4556_v10 = vld [vmem:[#allocation5 + $0x80] sm:$0xf]  ;;  %v6322_v7 = vld [vmem:[#allocation5 + $0x344] sm:$0xf] }
  0x70   :  { %818 = vmatpush.bf16.msra.mxu0 %v4405_v16  ;;  %v6230_v16 = vld [vmem:[#allocation5 + $0x5c] sm:$0xf0] }
  0x71   :  { %831 = vmatpush.bf16.msra.mxu1 %v4153_v17  ;;  %v4813_v17 = vor.u32 %v6302_v13, %v4812_v12  ;;  %v6470_v6 = vld [vmem:[#allocation5 + $0x7dc] sm:$0xf0] }
  0x72   :  { %844 = vmatpush.bf16.msra.mxu2 %v4281_v18  ;;  %857 = vmatpush.bf16.msra.mxu3 %v4409_v22  ;;  %v4525_v18 = vor.u32 %v6230_v16, %v4524_v15  ;;  %v4718_v22 = vld [vmem:[#allocation5 + $0x1e0] sm:$0xf0]  ;;  %v6462_v13 = vld [vmem:[#allocation5 + $0x79c] sm:$0xf0] }
  0x73   :  { %v4721_v24 = vor.u32 %v6274_v21, %v4718_v22  ;;  %v4878_v15 = vld [vmem:[#allocation5 + $0x320] sm:$0xf0]  ;;  %v6374_v19 = vld [vmem:[#allocation5 + $0x4dc] sm:$0xf0] }
  0x74   :  { %819 = vmatpush.bf16.msra.mxu0 %v4389_v28  ;;  %v6258_v28 = vld [vmem:[#allocation5 + $0x144] sm:$0xf]  ;;  %v5420_v20 = vld [vmem:[#allocation5 + $0x740] sm:$0xf] }
  0x75   :  { %832 = vmatpush.bf16.msra.mxu1 %v4137_v30  ;;  %v4657_v30 = vor.u32 %v6258_v28, %v4654_v29  ;;  %v6454_v22 = vld [vmem:[#allocation5 + $0x75c] sm:$0xf0] }
  0x76   :  { %845 = vmatpush.bf16.msra.mxu2 %v4265_v31  ;;  %858 = vmatpush.bf16.msra.mxu3 %v4393_v35  ;;  %v6250_v31 = vld [vmem:[#allocation5 + $0x104] sm:$0xf]  ;;  %v5421_v25 = vor.u32 %v6454_v22, %v5420_v20  ;;  %v6366_v28 = vld [vmem:[#allocation5 + $0x49c] sm:$0xf0] }
  0x77   :  { %v4625_v33 = vor.u32 %v6250_v31, %v4622_v32  ;;  %v4590_v35 = vld [vmem:[#allocation5 + $0xe0] sm:$0xf0]  ;;  %v6914_v29 = vld [vmem:[%s7086_s2] sm:$0xf] }
  0x78   :  { %820 = vmatpush.bf16.msra.mxu0 %v4373_v42  ;;  %v4593_v39 = vor.u32 %v6242_v34, %v4590_v35  ;;  %v5228_v42 = vld [vmem:[#allocation5 + $0x5c0] sm:$0xf]  ;;  %v6298_v34 = vld [vmem:[#allocation5 + $0x284] sm:$0xf]  ;;  %v221_v36 = vperm.slane %v6914_v29, 0 }
  0x79   :  { %833 = vmatpush.bf16.msra.mxu1 %v4121_v45  ;;  %v5229_v44 = vor.u32 %v6406_v43, %v5228_v42  ;;  %v4748_v45 = vld [vmem:[#allocation5 + $0x200] sm:$0xf]  ;;  %v4814_v35 = vld [vmem:[#allocation5 + $0x2a0] sm:$0xf0] }
  0x7a   :  { %846 = vmatpush.bf16.msra.mxu2 %v4249_v46  ;;  %859 = vmatpush.bf16.msra.mxu3 %v4377_v47  ;;  %v6286_v46 = vld [vmem:[#allocation5 + $0x21c] sm:$0xf0]  ;;  %v4817_v37 = vor.u32 %v6298_v34, %v4814_v35  ;;  %v6386_v20 = vld [vmem:[#allocation5 + $0x544] sm:$0xf] }
  0x7b   :  { %821 = vmatmul.bf16.vlgmr.msra.gmra.mxu0 %v6893_v50  ;;  %v4749_v47 = vor.u32 %v6286_v46, %v4748_v45  ;;  %v5388_v31 = vld [vmem:[#allocation5 + $0x700] sm:$0xf]  ;;  %v6290_v46 = vld [vmem:[#allocation5 + $0x244] sm:$0xf] }
  0x7c   :  { %2427 = vmatpush.bf16.msrb.mxu0 %v4717_v48  ;;  %834 = vmatmul.bf16.vlgmr.msra.gmra.mxu1 %v6895_v54  ;;  %v4877_v54 = vor.u32 %v6318_v4, %v4876_v3  ;;  %v6338_v48 = vld [vmem:[#allocation5 + $0x3c4] sm:$0xf]  ;;  %v6390_v3 = vld [vmem:[#allocation5 + $0x55c] sm:$0xf0] }
  0x7d   :  { %2440 = vmatpush.bf16.msrb.mxu1 %v4973_v52  ;;  %847 = vmatmul.bf16.vlgmr.msra.gmra.mxu2 %v6897_v57  ;;  %v6310_v57 = vld [vmem:[#allocation5 + $0x2dc] sm:$0xf0]  ;;  %v6226_v52 = vld [vmem:[#allocation5 + $0x44] sm:$0xf]  ;;  %v4977_v53 = vor.u32 %v6338_v48, %v4974_v49 }
  0x7e   :  { %860 = vmatmul.bf16.vlgmr.msra.gmra.mxu3 %v6893_v50  ;;  %v6238_v50 = vld [vmem:[#allocation5 + $0x9c] sm:$0xf0]  ;;  %v4845_v11 = vor.u32 %v6310_v57, %v4844_v8  ;;  %2453 = vmatpush.bf16.msrb.mxu2 %v5229_v44  ;;  %v4910_v8 = vld [vmem:[#allocation5 + $0x360] sm:$0xf0] }
  0x7f   :  { %v4557_v14 = vor.u32 %v6238_v50, %v4556_v10  ;;  %v4913_v57 = vor.u32 %v6322_v7, %v4910_v8  ;;  %v5132_v10 = vld [vmem:[#allocation5 + $0x500] sm:$0xf]  ;;  %v6466_v22 = vld [vmem:[#allocation5 + $0x7c4] sm:$0xf] }
  0x80   :  { %2428 = vmatpush.bf16.msrb.mxu0 %v4685_v56  ;;  %v5196_v56 = vld [vmem:[#allocation5 + $0x580] sm:$0xf]  ;;  %v6458_v34 = vld [vmem:[#allocation5 + $0x784] sm:$0xf] }
  0x81   :  { %2441 = vmatpush.bf16.msrb.mxu1 %v4941_v60  ;;  %v5197_v59 = vor.u32 %v6398_v58, %v5196_v56  ;;  %v6218_v60 = vld [vmem:[#allocation5 + $0x4] sm:$0xf]  ;;  %v6382_v50 = vld [vmem:[#allocation5 + $0x51c] sm:$0xf0] }
  0x82   :  { %v5133_v12 = vor.u32 %v6382_v50, %v5132_v10  ;;  %v6446_v32 = vld [vmem:[#allocation5 + $0x71c] sm:$0xf0] }
  0x83   :  { %2454 = vmatpush.bf16.msrb.mxu2 %v5197_v59  ;;  %v5356_v40 = vld [vmem:[#allocation5 + $0x6c0] sm:$0xf]  ;;  %v6402_v59 = vld [vmem:[#allocation5 + $0x5c4] sm:$0xf] }
  0x84   :  { %2429 = vmatpush.bf16.msrb.mxu0 %v4653_v63  ;;  %v4529_v63 = vor.u32 %v6226_v52, %v4526_v55  ;;  %v6438_v42 = vld [vmem:[#allocation5 + $0x6dc] sm:$0xf0] }
  0x85   :  { %2442 = vmatpush.bf16.msrb.mxu1 %v4909_v2  ;;  %v5164_v2 = vld [vmem:[#allocation5 + $0x540] sm:$0xf]  ;;  %v5357_v45 = vor.u32 %v6438_v42, %v5356_v40  ;;  %v6255_v40 = vld [vmem:[#allocation5 + $0x124] sm:$0xf0]  ;;  %v5102_v42 = vld [vmem:[#allocation5 + $0x4e0] sm:$0xf0] }
  0x86   :  { %v5165_v4 = vor.u32 %v6390_v3, %v5164_v2  ;;  %v6350_v52 = vld [vmem:[#allocation5 + $0x41c] sm:$0xf0]  ;;  %v4724_v2 = vld [vmem:[#allocation5 + $0x1c8] sm:$0xf] }
  0x87   :  { %v6430_v58 = vld [vmem:[#allocation5 + $0x69c] sm:$0xf0] }
  0x88   :  { %2430 = vmatpush.bf16.msrb.mxu0 %v4621_v5  ;;  %v5484_v5 = vld [vmem:[#allocation5 + $0x7c0] sm:$0xf]  ;;  %2455 = vmatpush.bf16.msrb.mxu2 %v5165_v4 }
  0x89   :  { %2443 = vmatpush.bf16.msrb.mxu1 %v4877_v54  ;;  %v5485_v54 = vor.u32 %v6470_v6, %v5484_v5  ;;  %v6279_v5 = vld [vmem:[#allocation5 + $0x1e4] sm:$0xf0]  ;;  %v5292_v6 = vld [vmem:[#allocation5 + $0x640] sm:$0xf] }
  0x8a   :  { %v6422_v7 = vld [vmem:[#allocation5 + $0x65c] sm:$0xf0] }
  0x8b   :  { %2466 = vmatpush.bf16.msrb.mxu3 %v5485_v54  ;;  %v5293_v8 = vor.u32 %v6422_v7, %v5292_v6 }
  0x8c   :  { %2431 = vmatpush.bf16.msrb.mxu0 %v4589_v9  ;;  %v4497_v9 = vor.u32 %v6218_v60, %v4494_v0  ;;  %2456 = vmatpush.bf16.msrb.mxu2 %v5133_v12  ;;  %v5230_v60 = vld [vmem:[#allocation5 + $0x5e0] sm:$0xf0] }
  0x8d   :  { %2444 = vmatpush.bf16.msrb.mxu1 %v4845_v11  ;;  %v5452_v11 = vld [vmem:[#allocation5 + $0x780] sm:$0xf]  ;;  %v5233_v62 = vor.u32 %v6402_v59, %v5230_v60  ;;  %v4750_v0 = vld [vmem:[#allocation5 + $0x220] sm:$0xf0] }
  0x8e   :  { %v5453_v16 = vor.u32 %v6462_v13, %v5452_v11  ;;  %v4725_v13 = vor.u32 %v6279_v5, %v4724_v2  ;;  %v6434_v2 = vld [vmem:[#allocation5 + $0x6c4] sm:$0xf] }
  0x90   :  { %2432 = vmatpush.bf16.msrb.mxu0 %v4557_v14  ;;  %v6314_v14 = vld [vmem:[#allocation5 + $0x304] sm:$0xf]  ;;  %2467 = vmatpush.bf16.msrb.mxu3 %v5453_v16  ;;  %v6271_v16 = vld [vmem:[#allocation5 + $0x1a4] sm:$0xf0] }
  0x91   :  { %2445 = vmatpush.bf16.msrb.mxu1 %v4813_v17  ;;  %v4881_v17 = vor.u32 %v6314_v14, %v4878_v15  ;;  %v4692_v14 = vld [vmem:[#allocation5 + $0x188] sm:$0xf] }
  0x94   :  { %2433 = vmatpush.bf16.msrb.mxu0 %v4525_v18  ;;  %v5100_v18 = vld [vmem:[#allocation5 + $0x4c0] sm:$0xf]  ;;  %2468 = vmatpush.bf16.msrb.mxu3 %v5421_v25  ;;  %v4693_v25 = vor.u32 %v6271_v16, %v4692_v14  ;;  %v6426_v16 = vld [vmem:[#allocation5 + $0x684] sm:$0xf] }
  0x95   :  { %2446 = vmatpush.bf16.msrb.mxu1 %v4781_v38  ;;  %v5101_v21 = vor.u32 %v6374_v19, %v5100_v18  ;;  %v5036_v38 = vld [vmem:[#allocation5 + $0x440] sm:$0xf] }
  0x96   :  { %v6414_v18 = vld [vmem:[#allocation5 + $0x61c] sm:$0xf0] }
  0x97   :  { %2457 = vmatpush.bf16.msrb.mxu2 %v5101_v21  ;;  %v5166_v21 = vld [vmem:[#allocation5 + $0x560] sm:$0xf0] }
  0x98   :  { %2434 = vmatpush.bf16.msrb.mxu0 %v4493_v23  ;;  %v6306_v23 = vld [vmem:[#allocation5 + $0x2c4] sm:$0xf] }
  0x99   :  { %2447 = vmatpush.bf16.msrb.mxu1 %v4749_v47  ;;  %v4782_v47 = vld [vmem:[#allocation5 + $0x260] sm:$0xf0] }
  0x9a   :  { %v4785_v49 = vor.u32 %v6290_v46, %v4782_v47 }
  0x9c   :  { %2479 = vmatpush.bf16.msra.mxu0 %v4721_v24  ;;  %v4846_v24 = vld [vmem:[#allocation5 + $0x2e0] sm:$0xf0] }
  0x9d   :  { %2492 = vmatpush.bf16.msra.mxu1 %v4977_v53  ;;  %v4849_v26 = vor.u32 %v6306_v23, %v4846_v24  ;;  %v5324_v53 = vld [vmem:[#allocation5 + $0x680] sm:$0xf]  ;;  %v5169_v23 = vor.u32 %v6386_v20, %v5166_v21  ;;  %v5486_v24 = vld [vmem:[#allocation5 + $0x7e0] sm:$0xf0]  ;;  %v4500_v21 = vld [vmem:[#allocation5 + $0x8] sm:$0xf] }
  0x9e   :  { %v5325_v61 = vor.u32 %v6430_v58, %v5324_v53  ;;  %v5070_v53 = vld [vmem:[#allocation5 + $0x4a0] sm:$0xf0] }
  0x9f   :  { %v5390_v58 = vld [vmem:[#allocation5 + $0x720] sm:$0xf0] }
  0xa0   :  { %2480 = vmatpush.bf16.msra.mxu0 %v4689_v27  ;;  %v5068_v27 = vld [vmem:[#allocation5 + $0x480] sm:$0xf] }
  0xa1   :  { %2493 = vmatpush.bf16.msra.mxu1 %v4945_v1 }
  0xa4   :  { %2481 = vmatpush.bf16.msra.mxu0 %v4657_v30  ;;  %v5069_v30 = vor.u32 %v6366_v28, %v5068_v27  ;;  %v5489_v27 = vor.u32 %v6466_v22, %v5486_v24  ;;  %v4660_v28 = vld [vmem:[#allocation5 + $0x148] sm:$0xf]  ;;  %v6275_v24 = vld [vmem:[#allocation5 + $0x1cc] sm:$0xf] }
  0xa5   :  { %2494 = vmatpush.bf16.msra.mxu1 %v4913_v57  ;;  %v6394_v57 = vld [vmem:[#allocation5 + $0x584] sm:$0xf]  ;;  %v6223_v22 = vld [vmem:[#allocation5 + $0x24] sm:$0xf0] }
  0xa6   :  { %2458 = vmatpush.bf16.msrb.mxu2 %v5069_v30  ;;  %v6263_v30 = vld [vmem:[#allocation5 + $0x164] sm:$0xf0] }
  0xa8   :  { %2482 = vmatpush.bf16.msra.mxu0 %v4625_v33  ;;  %v5389_v33 = vor.u32 %v6446_v32, %v5388_v31  ;;  %v6378_v32 = vld [vmem:[#allocation5 + $0x504] sm:$0xf] }
  0xa9   :  { %2495 = vmatpush.bf16.msra.mxu1 %v4881_v17  ;;  %v5260_v17 = vld [vmem:[#allocation5 + $0x600] sm:$0xf] }
  0xaa   :  { %2469 = vmatpush.bf16.msrb.mxu3 %v5389_v33  ;;  %v5261_v19 = vor.u32 %v6414_v18, %v5260_v17  ;;  %v5134_v33 = vld [vmem:[#allocation5 + $0x520] sm:$0xf0] }
  0xab   :  { %v5137_v35 = vor.u32 %v6378_v32, %v5134_v33  ;;  %v5326_v17 = vld [vmem:[#allocation5 + $0x6a0] sm:$0xf0]  ;;  %v4501_v33 = vor.u32 %v6223_v22, %v4500_v21  ;;  %v6227_v21 = vld [vmem:[#allocation5 + $0x4c] sm:$0xf] }
  0xac   :  { %2483 = vmatpush.bf16.msra.mxu0 %v4593_v39  ;;  %v6358_v39 = vld [vmem:[#allocation5 + $0x45c] sm:$0xf0]  ;;  %v5294_v32 = vld [vmem:[#allocation5 + $0x660] sm:$0xf0]  ;;  %v4534_v22 = vld [vmem:[#allocation5 + $0x68] sm:$0xf0] }
  0xad   :  { %2496 = vmatpush.bf16.msra.mxu1 %v4849_v26  ;;  %v5037_v41 = vor.u32 %v6358_v39, %v5036_v38  ;;  %v4628_v39 = vld [vmem:[#allocation5 + $0x108] sm:$0xf] }
  0xae   :  { %2470 = vmatpush.bf16.msrb.mxu3 %v5357_v45  ;;  %v5422_v45 = vld [vmem:[#allocation5 + $0x760] sm:$0xf0]  ;;  %v4629_v46 = vor.u32 %v6255_v40, %v4628_v39  ;;  %v6267_v39 = vld [vmem:[#allocation5 + $0x18c] sm:$0xf] }
  0xaf   :  { %2459 = vmatpush.bf16.msrb.mxu2 %v5037_v41  ;;  %v6370_v41 = vld [vmem:[#allocation5 + $0x4c4] sm:$0xf] }
  0xb0   :  { %2484 = vmatpush.bf16.msra.mxu0 %v4561_v51  ;;  %v5004_v51 = vld [vmem:[#allocation5 + $0x400] sm:$0xf] }
  0xb1   :  { %2497 = vmatpush.bf16.msra.mxu1 %v4817_v37  ;;  %v5005_v56 = vor.u32 %v6350_v52, %v5004_v51  ;;  %v4661_v37 = vor.u32 %v6263_v30, %v4660_v28  ;;  %v6247_v51 = vld [vmem:[#allocation5 + $0xe4] sm:$0xf0]  ;;  %v6362_v52 = vld [vmem:[#allocation5 + $0x484] sm:$0xf] }
  0xb2   :  { %2471 = vmatpush.bf16.msrb.mxu3 %v5325_v61  ;;  %v4948_v30 = vld [vmem:[#allocation5 + $0x388] sm:$0xf] }
  0xb3   :  { %2460 = vmatpush.bf16.msrb.mxu2 %v5005_v56  ;;  %v5073_v56 = vor.u32 %v6362_v52, %v5070_v53  ;;  %v4884_v53 = vld [vmem:[#allocation5 + $0x308] sm:$0xf] }
  0xb4   :  { %2485 = vmatpush.bf16.msra.mxu0 %v4529_v63  ;;  %v6282_v63 = vld [vmem:[#allocation5 + $0x204] sm:$0xf] }
  0xb5   :  { %2498 = vmatpush.bf16.msra.mxu1 %v4785_v49  ;;  %v4753_v3 = vor.u32 %v6282_v63, %v4750_v0  ;;  %v4596_v49 = vld [vmem:[#allocation5 + $0xc8] sm:$0xf]  ;;  %v6354_v0 = vld [vmem:[#allocation5 + $0x444] sm:$0xf] }
  0xb6   :  { %2472 = vmatpush.bf16.msrb.mxu3 %v5293_v8  ;;  %v4597_v59 = vor.u32 %v6247_v51, %v4596_v49  ;;  %v6239_v63 = vld [vmem:[#allocation5 + $0xa4] sm:$0xf0]  ;;  %v6259_v49 = vld [vmem:[#allocation5 + $0x14c] sm:$0xf] }
  0xb7   :  { %2505 = vmatpush.bf16.msra.mxu2 %v5233_v62  ;;  %v4564_v62 = vld [vmem:[#allocation5 + $0x88] sm:$0xf]  ;;  %v4662_v51 = vld [vmem:[#allocation5 + $0x168] sm:$0xf0] }
  0xb8   :  { %2486 = vmatpush.bf16.msra.mxu0 %v4497_v9  ;;  %v718_v43 = vpop.f32.mrf.mxu0  ;;  %v5198_v9 = vld [vmem:[#allocation5 + $0x5a0] sm:$0xf0]  ;;  %v4565_v6 = vor.u32 %v6239_v63, %v4564_v62  ;;  %v4852_v62 = vld [vmem:[#allocation5 + $0x2c8] sm:$0xf] }
  0xb9   :  { %v731_v44 = vpop.f32.mrf.mxu1  ;;  %v719_v48 = vadd.f32 %v718_v43, %v221_v36  ;;  %2499 = vmatpush.bf16.msra.mxu1 %v4753_v3  ;;  %v5201_v12 = vor.u32 %v6394_v57, %v5198_v9  ;;  %v5454_v36 = vld [vmem:[#allocation5 + $0x7a0] sm:$0xf0]  ;;  %v4532_v9 = vld [vmem:[#allocation5 + $0x48] sm:$0xf] }
  0xba   :  { %2473 = vmatpush.bf16.msrb.mxu3 %v5261_v19  ;;  %v5457_v38 = vor.u32 %v6458_v34, %v5454_v36  ;;  %v6450_v43 = vld [vmem:[#allocation5 + $0x744] sm:$0xf]  ;;  %v5329_v19 = vor.u32 %v6426_v16, %v5326_v17  ;;  %v6311_v63 = vld [vmem:[#allocation5 + $0x2e4] sm:$0xf0] }
  0xbb   :  { %v732_v55 = vadd.f32 %v731_v44, %v719_v48  ;;  %2506 = vmatpush.bf16.msra.mxu2 %v5201_v12  ;;  %v5105_v44 = vor.u32 %v6370_v41, %v5102_v42  ;;  %v5425_v47 = vor.u32 %v6450_v43, %v5422_v45  ;;  %v222_v48 = vperm.slane %v6914_v29, 1  ;;  %v4694_v41 = vld [vmem:[#allocation5 + $0x1a8] sm:$0xf0]  ;;  %v6410_v42 = vld [vmem:[#allocation5 + $0x604] sm:$0xf] }
  0xbc   :  { %v5262_v43 = vld [vmem:[#allocation5 + $0x620] sm:$0xf0]  ;;  %v6327_v45 = vld [vmem:[#allocation5 + $0x364] sm:$0xf0] }
  0xbd   :  { %v5236_v16 = vld [vmem:[#allocation5 + $0x5c8] sm:$0xf] }
  0xbe   :  { %2518 = vmatpush.bf16.msra.mxu3 %v5489_v27 }
  0xbf   :  { %2507 = vmatpush.bf16.msra.mxu2 %v5169_v23 }
  0xc0   :  { %v744_v1 = vpop.f32.mrf.mxu2  ;;  %v720_v50 = vpop.f32.mrf.mxu0 }
  0xc1   :  { %v745_v4 = vadd.f32 %v744_v1, %v732_v55  ;;  %v733_v11 = vpop.f32.mrf.mxu1  ;;  %v6442_v55 = vld [vmem:[#allocation5 + $0x704] sm:$0xf] }
  0xc2   :  { %v6917_v54 = vpop.f32.mrf.mxu3  ;;  %2519 = vmatpush.bf16.msra.mxu3 %v5457_v38  ;;  %v5393_v60 = vor.u32 %v6442_v55, %v5390_v58  ;;  %v5038_v1 = vld [vmem:[#allocation5 + $0x460] sm:$0xf0]  ;;  %v6319_v55 = vld [vmem:[#allocation5 + $0x324] sm:$0xf0]  ;;  %v4665_v58 = vor.u32 %v6259_v49, %v4662_v51 }
  0xc3   :  { %v865_v10 = vmax.f32 %v745_v4, 0.0  ;;  %2508 = vmatpush.bf16.msra.mxu2 %v5137_v35  ;;  %v758_v61 = vadd.f32 %v6917_v54, %v222_v48  ;;  %v5041_v3 = vor.u32 %v6354_v0, %v5038_v1  ;;  %v5358_v4 = vld [vmem:[#allocation5 + $0x6e0] sm:$0xf0]  ;;  %v4980_v54 = vld [vmem:[#allocation5 + $0x3c8] sm:$0xf]  ;;  %v223_v0 = vperm.slane %v6914_v29, 2 }
  0xc4   :  { %v5361_v7 = vor.u32 %v6434_v2, %v5358_v4  ;;  %v6346_v50 = vld [vmem:[#allocation5 + $0x404] sm:$0xf]  ;;  %v4853_v2 = vor.u32 %v6311_v63, %v4852_v62  ;;  %v4598_v4 = vld [vmem:[#allocation5 + $0xe8] sm:$0xf0]  ;;  %v5172_v51 = vld [vmem:[#allocation5 + $0x548] sm:$0xf] }
  0xc5   :  { %v6919_v15 = vpack.c.bf16 %v865_v10, %v865_v10  ;;  %v6231_v10 = vld [vmem:[#allocation5 + $0x64] sm:$0xf0]  ;;  %v5006_v11 = vld [vmem:[#allocation5 + $0x420] sm:$0xf0]  ;;  %v4700_v62 = vld [vmem:[#allocation5 + $0x190] sm:$0xf] }
  0xc6   :  { %2520 = vmatpush.bf16.msra.mxu3 %v5425_v47  ;;  %v5009_v14 = vor.u32 %v6346_v50, %v5006_v11  ;;  %v4533_v18 = vor.u32 %v6231_v10, %v4532_v9  ;;  %v4697_v47 = vor.u32 %v6267_v39, %v4694_v41  ;;  %v6235_v9 = vld [vmem:[#allocation5 + $0x8c] sm:$0xf]  ;;  %v6295_v50 = vld [vmem:[#allocation5 + $0x264] sm:$0xf0]  ;;  %v6272_v63 = vld [vmem:[#allocation5 + $0x1ac] sm:$0xf0] }
  0xc7   :  { %2435 = vmatmul.bf16.vlgmr.msrb.gmra.mxu0 %v6919_v15  ;;  %2509 = vmatpush.bf16.msra.mxu2 %v5105_v44  ;;  %v4916_v44 = vld [vmem:[#allocation5 + $0x348] sm:$0xf]  ;;  %v4566_v10 = vld [vmem:[#allocation5 + $0xa8] sm:$0xf0] }
  0xc8   :  { %2531 = vmatpush.bf16.msrb.mxu0 %v4725_v13  ;;  %v746_v26 = vpop.f32.mrf.mxu2  ;;  %v6343_v13 = vld [vmem:[#allocation5 + $0x3e4] sm:$0xf0]  ;;  %v4917_v48 = vor.u32 %v6327_v45, %v4916_v44  ;;  %v6331_v39 = vld [vmem:[#allocation5 + $0x38c] sm:$0xf] }
  0xc9   :  { %v4981_v23 = vor.u32 %v6343_v13, %v4980_v54  ;;  %v6418_v26 = vld [vmem:[#allocation5 + $0x644] sm:$0xf]  ;;  %v4788_v54 = vld [vmem:[#allocation5 + $0x248] sm:$0xf]  ;;  %v224_v13 = vperm.slane %v6914_v29, 3 }
  0xca   :  { %v759_v31 = vpop.f32.mrf.mxu3  ;;  %2521 = vmatpush.bf16.msra.mxu3 %v5393_v60  ;;  %v5297_v36 = vor.u32 %v6418_v26, %v5294_v32  ;;  %v6251_v60 = vld [vmem:[#allocation5 + $0x10c] sm:$0xf]  ;;  %v4537_v32 = vor.u32 %v6227_v21, %v4534_v22  ;;  %v6455_v21 = vld [vmem:[#allocation5 + $0x764] sm:$0xf0] }
  0xcb   :  { %2510 = vmatpush.bf16.msra.mxu2 %v5073_v56  ;;  %v6335_v31 = vld [vmem:[#allocation5 + $0x3a4] sm:$0xf0]  ;;  %v6339_v26 = vld [vmem:[#allocation5 + $0x3cc] sm:$0xf] }
  0xcc   :  { %2532 = vmatpush.bf16.msrb.mxu0 %v4693_v25  ;;  %v4726_v25 = vld [vmem:[#allocation5 + $0x1e8] sm:$0xf0]  ;;  %v4949_v40 = vor.u32 %v6335_v31, %v4948_v30 }
  0xcd   :  { %v4950_v41 = vld [vmem:[#allocation5 + $0x3a8] sm:$0xf0] }
  0xce   :  { %2522 = vmatpush.bf16.msra.mxu3 %v5361_v7  ;;  %v6307_v22 = vld [vmem:[#allocation5 + $0x2cc] sm:$0xf] }
  0xcf   :  { %2511 = vmatpush.bf16.msra.mxu2 %v5041_v3  ;;  %v6243_v3 = vld [vmem:[#allocation5 + $0xcc] sm:$0xf] }
  0xd0   :  { %2533 = vmatpush.bf16.msrb.mxu0 %v4661_v37  ;;  %v4729_v37 = vor.u32 %v6275_v24, %v4726_v25  ;;  %v6287_v24 = vld [vmem:[#allocation5 + $0x224] sm:$0xf0] }
  0xd2   :  { %2523 = vmatpush.bf16.msra.mxu3 %v5329_v19  ;;  %v4789_v19 = vor.u32 %v6295_v50, %v4788_v54  ;;  %v4886_v54 = vld [vmem:[#allocation5 + $0x328] sm:$0xf0]  ;;  %v4668_v50 = vld [vmem:[#allocation5 + $0x150] sm:$0xf] }
  0xd3   :  { %2512 = vmatpush.bf16.msra.mxu2 %v5009_v14  ;;  %v4569_v14 = vor.u32 %v6235_v9, %v4566_v10  ;;  %v6315_v9 = vld [vmem:[#allocation5 + $0x30c] sm:$0xf] }
  0xd4   :  { %2534 = vmatpush.bf16.msrb.mxu0 %v4629_v46  ;;  %v5265_v46 = vor.u32 %v6410_v42, %v5262_v43  ;;  %v4732_v42 = vld [vmem:[#allocation5 + $0x1d0] sm:$0xf] }
  0xd5   :  { %v6280_v43 = vld [vmem:[#allocation5 + $0x1ec] sm:$0xf0] }
  0xd6   :  { %2524 = vmatpush.bf16.msra.mxu3 %v5297_v36 }
  0xd7   :  { %2487 = vmatmul.bf16.vlgmr.msra.gmra.mxu0 %v6919_v15 }
  0xd8   :  { %v770_v5 = vpop.f32.mrf.mxu0  ;;  %2535 = vmatpush.bf16.msrb.mxu0 %v4597_v59  ;;  %v4885_v59 = vor.u32 %v6319_v55, %v4884_v53  ;;  %v4953_v55 = vor.u32 %v6331_v39, %v4950_v41  ;;  %v6248_v39 = vld [vmem:[#allocation5 + $0xec] sm:$0xf0] }
  0xd9   :  { %v771_v8 = vadd.f32 %v770_v5, %v758_v61  ;;  %v783_v57 = vpop.f32.mrf.mxu1  ;;  %v4630_v61 = vld [vmem:[#allocation5 + $0x128] sm:$0xf0]  ;;  %v4820_v5 = vld [vmem:[#allocation5 + $0x288] sm:$0xf] }
  0xda   :  { %2525 = vmatpush.bf16.msra.mxu3 %v5265_v46  ;;  %v4633_v1 = vor.u32 %v6251_v60, %v4630_v61  ;;  %v6323_v60 = vld [vmem:[#allocation5 + $0x34c] sm:$0xf] }
  0xdb   :  { %v784_v12 = vadd.f32 %v783_v57, %v771_v8  ;;  %v4601_v8 = vor.u32 %v6243_v3, %v4598_v4  ;;  %v4918_v61 = vld [vmem:[#allocation5 + $0x368] sm:$0xf0]  ;;  %v5140_v3 = vld [vmem:[#allocation5 + $0x508] sm:$0xf] }
  0xdc   :  { %2536 = vmatpush.bf16.msrb.mxu0 %v4565_v6  ;;  %v6303_v6 = vld [vmem:[#allocation5 + $0x2a4] sm:$0xf0] }
  0xdd   :  { %v866_v20 = vmax.f32 %v784_v12, 0.0  ;;  %v4821_v57 = vor.u32 %v6303_v6, %v4820_v5  ;;  %v6383_v4 = vld [vmem:[#allocation5 + $0x524] sm:$0xf0]  ;;  %v4921_v6 = vor.u32 %v6323_v60, %v4918_v61 }
  0xde   :  { %v6431_v60 = vld [vmem:[#allocation5 + $0x6a4] sm:$0xf0] }
  0xdf   :  { %v6925_v27 = vpack.c.bf16 %v866_v20, %v866_v20  ;;  %v6407_v20 = vld [vmem:[#allocation5 + $0x5e4] sm:$0xf0] }
  0xe0   :  { %v796_v28 = vpop.f32.mrf.mxu2  ;;  %2537 = vmatpush.bf16.msrb.mxu0 %v4533_v18  ;;  %v772_v35 = vpop.f32.mrf.mxu0  ;;  %v5237_v31 = vor.u32 %v6407_v20, %v5236_v16  ;;  %v5108_v16 = vld [vmem:[#allocation5 + $0x4c8] sm:$0xf] }
  0xe1   :  { %2448 = vmatmul.bf16.vlgmr.msrb.gmra.mxu1 %v6925_v27  ;;  %v785_v38 = vpop.f32.mrf.mxu1  ;;  %v797_v7 = vadd.f32 %v796_v28, %v223_v0  ;;  %v4982_v28 = vld [vmem:[#allocation5 + $0x3e8] sm:$0xf0]  ;;  %v6399_v35 = vld [vmem:[#allocation5 + $0x5a4] sm:$0xf0] }
  0xe2   :  { %v809_v34 = vpop.f32.mrf.mxu3  ;;  %2544 = vmatpush.bf16.msrb.mxu1 %v4981_v23  ;;  %v4756_v23 = vld [vmem:[#allocation5 + $0x208] sm:$0xf]  ;;  %v4985_v36 = vor.u32 %v6339_v26, %v4982_v28  ;;  %v4502_v38 = vld [vmem:[#allocation5 + $0x28] sm:$0xf0] }
  0xe3   :  { %v810_v11 = vadd.f32 %v809_v34, %v797_v7  ;;  %v5204_v34 = vld [vmem:[#allocation5 + $0x588] sm:$0xf]  ;;  %v4701_v7 = vor.u32 %v6272_v63, %v4700_v62  ;;  %v6403_v63 = vld [vmem:[#allocation5 + $0x5cc] sm:$0xf] }
  0xe4   :  { %2538 = vmatpush.bf16.msrb.mxu0 %v4501_v33  ;;  %v4757_v33 = vor.u32 %v6287_v24, %v4756_v23  ;;  %v5428_v20 = vld [vmem:[#allocation5 + $0x748] sm:$0xf]  ;;  %v4854_v23 = vld [vmem:[#allocation5 + $0x2e8] sm:$0xf0]  ;;  %v4636_v24 = vld [vmem:[#allocation5 + $0x110] sm:$0xf] }
  0xe5   :  { %v5429_v28 = vor.u32 %v6455_v21, %v5428_v20  ;;  %v6276_v20 = vld [vmem:[#allocation5 + $0x1d4] sm:$0xf] }
  0xe6   :  { %2545 = vmatpush.bf16.msrb.mxu1 %v4949_v40  ;;  %v4734_v21 = vld [vmem:[#allocation5 + $0x1f0] sm:$0xf0] }
  0xe7   :  { %2539 = vmatmul.bf16.vlgmr.msrb.gmra.mxu0 %v6919_v15 }
  0xe8   :  { %2583 = vmatpush.bf16.msra.mxu0 %v4729_v37  ;;  %v798_v52 = vpop.f32.mrf.mxu2  ;;  %v6219_v37 = vld [vmem:[#allocation5 + $0xc] sm:$0xf] }
  0xe9   :  { %v4505_v49 = vor.u32 %v6219_v37, %v4502_v38  ;;  %v6391_v52 = vld [vmem:[#allocation5 + $0x564] sm:$0xf0]  ;;  %v4822_v37 = vld [vmem:[#allocation5 + $0x2a8] sm:$0xf0]  ;;  %v4604_v38 = vld [vmem:[#allocation5 + $0xd0] sm:$0xf] }
  0xea   :  { %v811_v56 = vpop.f32.mrf.mxu3  ;;  %2546 = vmatpush.bf16.msrb.mxu1 %v4917_v48 }
  0xeb   :  { %v4733_v56 = vor.u32 %v6280_v43, %v4732_v42  ;;  %v5044_v42 = vld [vmem:[#allocation5 + $0x448] sm:$0xf] }
  0xec   :  { %2584 = vmatpush.bf16.msra.mxu0 %v4697_v47  ;;  %v5205_v47 = vor.u32 %v6399_v35, %v5204_v34  ;;  %v5396_v34 = vld [vmem:[#allocation5 + $0x708] sm:$0xf] }
  0xed   :  { %v6447_v35 = vld [vmem:[#allocation5 + $0x724] sm:$0xf0] }
  0xee   :  { %2547 = vmatpush.bf16.msrb.mxu1 %v4885_v59  ;;  %v6471_v59 = vld [vmem:[#allocation5 + $0x7e4] sm:$0xf0]  ;;  %v5397_v41 = vor.u32 %v6447_v35, %v5396_v34  ;;  %v5494_v34 = vld [vmem:[#allocation5 + $0x7e8] sm:$0xf0]  ;;  %v4924_v35 = vld [vmem:[#allocation5 + $0x350] sm:$0xf] }
  0xef   :  { %v6359_v43 = vld [vmem:[#allocation5 + $0x464] sm:$0xf0] }
  0xf0   :  { %2585 = vmatpush.bf16.msra.mxu0 %v4665_v58  ;;  %v5492_v58 = vld [vmem:[#allocation5 + $0x7c8] sm:$0xf] }
  0xf1   :  { %2500 = vmatmul.bf16.vlgmr.msra.gmra.mxu1 %v6925_v27 }
  0xf2   :  { %2548 = vmatpush.bf16.msrb.mxu1 %v4853_v2  ;;  %v5493_v2 = vor.u32 %v6471_v59, %v5492_v58  ;;  %v6351_v58 = vld [vmem:[#allocation5 + $0x424] sm:$0xf0] }
  0xf3   :  { %v5332_v59 = vld [vmem:[#allocation5 + $0x688] sm:$0xf] }
  0xf4   :  { %2586 = vmatpush.bf16.msra.mxu0 %v4633_v1  ;;  %v5173_v1 = vor.u32 %v6391_v52, %v5172_v51  ;;  %v4572_v51 = vld [vmem:[#allocation5 + $0x90] sm:$0xf] }
  0xf5   :  { %v6240_v52 = vld [vmem:[#allocation5 + $0xac] sm:$0xf0] }
  0xf6   :  { %2549 = vmatpush.bf16.msrb.mxu1 %v4821_v57  ;;  %v6463_v57 = vld [vmem:[#allocation5 + $0x7a4] sm:$0xf0]  ;;  %v4573_v62 = vor.u32 %v6240_v52, %v4572_v51  ;;  %v6260_v51 = vld [vmem:[#allocation5 + $0x154] sm:$0xf] }
  0xf7   :  { %v4670_v52 = vld [vmem:[#allocation5 + $0x170] sm:$0xf0] }
  0xf8   :  { %v822_v12 = vpop.f32.mrf.mxu0  ;;  %2587 = vmatpush.bf16.msra.mxu0 %v4601_v8  ;;  %v5460_v8 = vld [vmem:[#allocation5 + $0x788] sm:$0xf] }
  0xf9   :  { %v823_v17 = vadd.f32 %v822_v12, %v810_v11  ;;  %v835_v18 = vpop.f32.mrf.mxu1  ;;  %v6264_v11 = vld [vmem:[#allocation5 + $0x16c] sm:$0xf0] }
  0xfa   :  { %v836_v30 = vadd.f32 %v835_v18, %v224_v13  ;;  %2550 = vmatpush.bf16.msrb.mxu1 %v4789_v19  ;;  %v5141_v13 = vor.u32 %v6383_v4, %v5140_v3  ;;  %v4889_v18 = vor.u32 %v6315_v9, %v4886_v54  ;;  %v4669_v19 = vor.u32 %v6264_v11, %v4668_v50  ;;  %v4540_v3 = vld [vmem:[#allocation5 + $0x50] sm:$0xf]  ;;  %v6423_v11 = vld [vmem:[#allocation5 + $0x664] sm:$0xf0] }
  0xfb   :  { %v867_v25 = vmax.f32 %v823_v17, 0.0  ;;  %v6375_v17 = vld [vmem:[#allocation5 + $0x4e4] sm:$0xf0]  ;;  %v6232_v4 = vld [vmem:[#allocation5 + $0x6c] sm:$0xf0] }
  0xfc   :  { %2588 = vmatpush.bf16.msra.mxu0 %v4569_v14  ;;  %v5461_v14 = vor.u32 %v6463_v57, %v5460_v8  ;;  %v5109_v26 = vor.u32 %v6375_v17, %v5108_v16  ;;  %v6344_v8 = vld [vmem:[#allocation5 + $0x3ec] sm:$0xf0]  ;;  %v5333_v57 = vor.u32 %v6431_v60, %v5332_v59  ;;  %v4541_v50 = vor.u32 %v6232_v4, %v4540_v3 }
  0xfd   :  { %v6932_v29 = vpack.c.bf16 %v867_v25, %v867_v25  ;;  %v6256_v25 = vld [vmem:[#allocation5 + $0x12c] sm:$0xf0]  ;;  %v4673_v60 = vor.u32 %v6260_v51, %v4670_v52 }
  0xfe   :  { %2551 = vmatpush.bf16.msrb.mxu1 %v4757_v33  ;;  %v4637_v33 = vor.u32 %v6256_v25, %v4636_v24  ;;  %v4508_v16 = vld [vmem:[#allocation5 + $0x10] sm:$0xf] }
  0xff   :  { %2461 = vmatmul.bf16.vlgmr.msrb.gmra.mxu2 %v6932_v29  ;;  %v6224_v17 = vld [vmem:[#allocation5 + $0x2c] sm:$0xf0] }
 0x100   :  { %v848_v40 = vpop.f32.mrf.mxu2  ;;  %2557 = vmatpush.bf16.msrb.mxu2 %v5237_v31  ;;  %v824_v46 = vpop.f32.mrf.mxu0  ;;  %2589 = vmatpush.bf16.msra.mxu0 %v4537_v32  ;;  %v6367_v31 = vld [vmem:[#allocation5 + $0x4a4] sm:$0xf0]  ;;  %v4857_v32 = vor.u32 %v6307_v22, %v4854_v23  ;;  %v4509_v25 = vor.u32 %v6224_v17, %v4508_v16  ;;  %v6355_v16 = vld [vmem:[#allocation5 + $0x44c] sm:$0xf] }
 0x101   :  { %v849_v44 = vadd.f32 %v848_v40, %v836_v30  ;;  %v861_v45 = vpop.f32.mrf.mxu3  ;;  %v837_v48 = vpop.f32.mrf.mxu1  ;;  %2552 = vmatmul.bf16.vlgmr.msrb.gmra.mxu1 %v6925_v27  ;;  %v5076_v30 = vld [vmem:[#allocation5 + $0x488] sm:$0xf]  ;;  %v5046_v17 = vld [vmem:[#allocation5 + $0x468] sm:$0xf0] }
 0x102   :  { %2596 = vmatpush.bf16.msra.mxu1 %v4985_v36  ;;  %v6299_v36 = vld [vmem:[#allocation5 + $0x28c] sm:$0xf]  ;;  %v5077_v40 = vor.u32 %v6367_v31, %v5076_v30  ;;  %v5364_v46 = vld [vmem:[#allocation5 + $0x6c8] sm:$0xf] }
 0x103   :  { %v862_v53 = vadd.f32 %v861_v45, %v849_v44  ;;  %v4825_v44 = vor.u32 %v6299_v36, %v4822_v37  ;;  %v4605_v45 = vor.u32 %v6248_v39, %v4604_v38  ;;  %v6291_v48 = vld [vmem:[#allocation5 + $0x24c] sm:$0xf]  ;;  %v5268_v23 = vld [vmem:[#allocation5 + $0x608] sm:$0xf]  ;;  %v6328_v36 = vld [vmem:[#allocation5 + $0x36c] sm:$0xf0] }
 0x104   :  { %2558 = vmatpush.bf16.msrb.mxu2 %v5205_v47  ;;  %2590 = vmatpush.bf16.msra.mxu0 %v4505_v49  ;;  %v6439_v47 = vld [vmem:[#allocation5 + $0x6e4] sm:$0xf0]  ;;  %v4790_v49 = vld [vmem:[#allocation5 + $0x268] sm:$0xf0]  ;;  %v6268_v37 = vld [vmem:[#allocation5 + $0x194] sm:$0xf] }
 0x105   :  { %v868_v0 = vmax.f32 %v862_v53, 0.0  ;;  %v5045_v53 = vor.u32 %v6359_v43, %v5044_v42  ;;  %v4793_v61 = vor.u32 %v6291_v48, %v4790_v49  ;;  %v5174_v30 = vld [vmem:[#allocation5 + $0x568] sm:$0xf0]  ;;  %v4702_v38 = vld [vmem:[#allocation5 + $0x1b0] sm:$0xf0] }
 0x106   :  { %2597 = vmatpush.bf16.msra.mxu1 %v4953_v55  ;;  %v5012_v55 = vld [vmem:[#allocation5 + $0x408] sm:$0xf]  ;;  %v6379_v42 = vld [vmem:[#allocation5 + $0x50c] sm:$0xf]  ;;  %v4892_v48 = vld [vmem:[#allocation5 + $0x310] sm:$0xf] }
 0x107   :  { %v6936_v5 = vpack.c.bf16 %v868_v0, %v868_v0  ;;  %2591 = vmatmul.bf16.vlgmr.msra.gmra.mxu0 %v6919_v15  ;;  %v5238_v0 = vld [vmem:[#allocation5 + $0x5e8] sm:$0xf0]  ;;  %v6320_v49 = vld [vmem:[#allocation5 + $0x32c] sm:$0xf0] }
 0x108   :  { %2635 = vmatpush.bf16.msrb.mxu0 %v4733_v56  ;;  %v850_v10 = vpop.f32.mrf.mxu2  ;;  %2559 = vmatpush.bf16.msrb.mxu2 %v5173_v1  ;;  %v5365_v56 = vor.u32 %v6439_v47, %v5364_v46  ;;  %v6283_v1 = vld [vmem:[#allocation5 + $0x20c] sm:$0xf]  ;;  %v5241_v9 = vor.u32 %v6403_v63, %v5238_v0  ;;  %v4893_v59 = vor.u32 %v6320_v49, %v4892_v48  ;;  %v4860_v63 = vld [vmem:[#allocation5 + $0x2d0] sm:$0xf] }
 0x109   :  { %v863_v12 = vpop.f32.mrf.mxu3  ;;  %2474 = vmatmul.bf16.vlgmr.msrb.gmra.mxu3 %v6936_v5  ;;  %v5300_v10 = vld [vmem:[#allocation5 + $0x648] sm:$0xf]  ;;  %v5142_v43 = vld [vmem:[#allocation5 + $0x528] sm:$0xf0]  ;;  %v6312_v0 = vld [vmem:[#allocation5 + $0x2ec] sm:$0xf0] }
 0x10a   :  { %2570 = vmatpush.bf16.msrb.mxu3 %v5493_v2  ;;  %2598 = vmatpush.bf16.msra.mxu1 %v4921_v6  ;;  %v4758_v2 = vld [vmem:[#allocation5 + $0x228] sm:$0xf0]  ;;  %v5013_v6 = vor.u32 %v6351_v58, %v5012_v55  ;;  %v5301_v22 = vor.u32 %v6423_v11, %v5300_v10  ;;  %v6244_v11 = vld [vmem:[#allocation5 + $0xd4] sm:$0xf] }
 0x10b   :  { %v4761_v54 = vor.u32 %v6283_v1, %v4758_v2  ;;  %v6395_v12 = vld [vmem:[#allocation5 + $0x58c] sm:$0xf]  ;;  %v6252_v1 = vld [vmem:[#allocation5 + $0x114] sm:$0xf] }
 0x10c   :  { %2636 = vmatpush.bf16.msrb.mxu0 %v4701_v7  ;;  %2560 = vmatpush.bf16.msrb.mxu2 %v5141_v13  ;;  %v4988_v7 = vld [vmem:[#allocation5 + $0x3d0] sm:$0xf]  ;;  %v5206_v13 = vld [vmem:[#allocation5 + $0x5a8] sm:$0xf0]  ;;  %v4638_v2 = vld [vmem:[#allocation5 + $0x130] sm:$0xf0] }
 0x10d   :  { %v5209_v24 = vor.u32 %v6395_v12, %v5206_v13  ;;  %v6459_v46 = vld [vmem:[#allocation5 + $0x78c] sm:$0xf]  ;;  %v4606_v12 = vld [vmem:[#allocation5 + $0xf0] sm:$0xf0] }
 0x10e   :  { %2571 = vmatpush.bf16.msrb.mxu3 %v5461_v14  ;;  %2599 = vmatpush.bf16.msra.mxu1 %v4889_v18  ;;  %v4989_v14 = vor.u32 %v6344_v8, %v4988_v7  ;;  %v4956_v18 = vld [vmem:[#allocation5 + $0x390] sm:$0xf]  ;;  %v5462_v47 = vld [vmem:[#allocation5 + $0x7a8] sm:$0xf0]  ;;  %v4861_v8 = vor.u32 %v6312_v0, %v4860_v63  ;;  %v6281_v63 = vld [vmem:[#allocation5 + $0x1f4] sm:$0xf0] }
 0x10f   :  { %2513 = vmatmul.bf16.vlgmr.msra.gmra.mxu2 %v6932_v29  ;;  %v5465_v55 = vor.u32 %v6459_v46, %v5462_v47  ;;  %v5110_v58 = vld [vmem:[#allocation5 + $0x4e8] sm:$0xf0] }
 0x110   :  { %2637 = vmatpush.bf16.msrb.mxu0 %v4669_v19  ;;  %2561 = vmatpush.bf16.msrb.mxu2 %v5109_v26  ;;  %v6336_v19 = vld [vmem:[#allocation5 + $0x3ac] sm:$0xf0]  ;;  %v6415_v26 = vld [vmem:[#allocation5 + $0x624] sm:$0xf0]  ;;  %v5078_v7 = vld [vmem:[#allocation5 + $0x4a8] sm:$0xf0] }
 0x111   :  { %v4957_v31 = vor.u32 %v6336_v19, %v4956_v18  ;;  %v5269_v39 = vor.u32 %v6415_v26, %v5268_v23  ;;  %v5398_v10 = vld [vmem:[#allocation5 + $0x728] sm:$0xf0]  ;;  %v4609_v19 = vor.u32 %v6244_v11, %v4606_v12  ;;  %v6296_v23 = vld [vmem:[#allocation5 + $0x26c] sm:$0xf0]  ;;  %v5049_v26 = vor.u32 %v6355_v16, %v5046_v17  ;;  %v4708_v11 = vld [vmem:[#allocation5 + $0x198] sm:$0xf] }
 0x112   :  { %2572 = vmatpush.bf16.msrb.mxu3 %v5429_v28  ;;  %2600 = vmatpush.bf16.msra.mxu1 %v4857_v32  ;;  %v6387_v28 = vld [vmem:[#allocation5 + $0x54c] sm:$0xf]  ;;  %v4737_v32 = vor.u32 %v6276_v20, %v4734_v21  ;;  %v6273_v12 = vld [vmem:[#allocation5 + $0x1b4] sm:$0xf0]  ;;  %v5148_v16 = vld [vmem:[#allocation5 + $0x510] sm:$0xf] }
 0x113   :  { %v6435_v20 = vld [vmem:[#allocation5 + $0x6cc] sm:$0xf] }
 0x114   :  { %2638 = vmatpush.bf16.msrb.mxu0 %v4637_v33  ;;  %2562 = vmatpush.bf16.msrb.mxu2 %v5077_v40  ;;  %v6467_v33 = vld [vmem:[#allocation5 + $0x7cc] sm:$0xf]  ;;  %v5177_v40 = vor.u32 %v6387_v28, %v5174_v30 }
 0x115   :  { %v5366_v21 = vld [vmem:[#allocation5 + $0x6e8] sm:$0xf0] }
 0x116   :  { %2573 = vmatpush.bf16.msrb.mxu3 %v5397_v41  ;;  %2601 = vmatpush.bf16.msra.mxu1 %v4825_v44  ;;  %v5497_v41 = vor.u32 %v6467_v33, %v5494_v34  ;;  %v4925_v44 = vor.u32 %v6328_v36, %v4924_v35  ;;  %v5369_v28 = vor.u32 %v6435_v20, %v5366_v21  ;;  %v6347_v30 = vld [vmem:[#allocation5 + $0x40c] sm:$0xf]  ;;  %v5244_v36 = vld [vmem:[#allocation5 + $0x5d0] sm:$0xf] }
 0x117   :  { %v5334_v35 = vld [vmem:[#allocation5 + $0x6a8] sm:$0xf0]  ;;  %v6464_v20 = vld [vmem:[#allocation5 + $0x7ac] sm:$0xf0]  ;;  %v4709_v21 = vor.u32 %v6273_v12, %v4708_v11  ;;  %v5246_v11 = vld [vmem:[#allocation5 + $0x5f0] sm:$0xf0] }
 0x118   :  { %2639 = vmatpush.bf16.msrb.mxu0 %v4605_v45  ;;  %2563 = vmatpush.bf16.msrb.mxu2 %v5045_v53  ;;  %v4705_v45 = vor.u32 %v6268_v37, %v4702_v38  ;;  %v5145_v53 = vor.u32 %v6379_v42, %v5142_v43  ;;  %v6408_v37 = vld [vmem:[#allocation5 + $0x5ec] sm:$0xf0]  ;;  %v6340_v42 = vld [vmem:[#allocation5 + $0x3d4] sm:$0xf]  ;;  %v6419_v48 = vld [vmem:[#allocation5 + $0x64c] sm:$0xf] }
 0x119   :  { %2526 = vmatmul.bf16.vlgmr.msra.gmra.mxu3 %v6936_v5  ;;  %v4764_v38 = vld [vmem:[#allocation5 + $0x210] sm:$0xf]  ;;  %v4990_v43 = vld [vmem:[#allocation5 + $0x3f0] sm:$0xf0]  ;;  %v5245_v46 = vor.u32 %v6408_v37, %v5244_v36  ;;  %v5302_v49 = vld [vmem:[#allocation5 + $0x668] sm:$0xf0] }
 0x11a   :  { %2574 = vmatpush.bf16.msrb.mxu3 %v5365_v56  ;;  %2602 = vmatpush.bf16.msra.mxu1 %v4793_v61  ;;  %v6371_v56 = vld [vmem:[#allocation5 + $0x4cc] sm:$0xf]  ;;  %v4993_v52 = vor.u32 %v6340_v42, %v4990_v43  ;;  %v6308_v36 = vld [vmem:[#allocation5 + $0x2d4] sm:$0xf]  ;;  %v5084_v43 = vld [vmem:[#allocation5 + $0x490] sm:$0xf] }
 0x11b   :  { %v6451_v61 = vld [vmem:[#allocation5 + $0x74c] sm:$0xf]  ;;  %v5113_v3 = vor.u32 %v6371_v56, %v5110_v58  ;;  %v6220_v56 = vld [vmem:[#allocation5 + $0x14] sm:$0xf] }
 0x11c   :  { %2640 = vmatpush.bf16.msrb.mxu0 %v4573_v62  ;;  %2564 = vmatpush.bf16.msrb.mxu2 %v5013_v6  ;;  %v5430_v62 = vld [vmem:[#allocation5 + $0x768] sm:$0xf0]  ;;  %v4510_v58 = vld [vmem:[#allocation5 + $0x30] sm:$0xf0] }
 0x11d   :  { %v5433_v4 = vor.u32 %v6451_v61, %v5430_v62  ;;  %v6363_v6 = vld [vmem:[#allocation5 + $0x48c] sm:$0xf]  ;;  %v5305_v61 = vor.u32 %v6419_v48, %v5302_v49  ;;  %v4740_v62 = vld [vmem:[#allocation5 + $0x1d8] sm:$0xf]  ;;  %v4862_v37 = vld [vmem:[#allocation5 + $0x2f0] sm:$0xf0] }
 0x11e   :  { %2575 = vmatpush.bf16.msrb.mxu3 %v5333_v57  ;;  %2603 = vmatpush.bf16.msra.mxu1 %v4761_v54  ;;  %v4641_v57 = vor.u32 %v6252_v1, %v4638_v2  ;;  %v4828_v54 = vld [vmem:[#allocation5 + $0x290] sm:$0xf]  ;;  %v5081_v13 = vor.u32 %v6363_v6, %v5078_v7  ;;  %v6411_v1 = vld [vmem:[#allocation5 + $0x60c] sm:$0xf]  ;;  %v6300_v49 = vld [vmem:[#allocation5 + $0x294] sm:$0xf] }
 0x11f   :  { %2565 = vmatmul.bf16.vlgmr.msrb.gmra.mxu2 %v6932_v29  ;;  %v5270_v2 = vld [vmem:[#allocation5 + $0x628] sm:$0xf0]  ;;  %v6392_v7 = vld [vmem:[#allocation5 + $0x56c] sm:$0xf0] }
 0x120   :  { %2609 = vmatpush.bf16.msra.mxu2 %v5241_v9  ;;  %2641 = vmatpush.bf16.msrb.mxu0 %v4541_v50  ;;  %v6443_v9 = vld [vmem:[#allocation5 + $0x70c] sm:$0xf]  ;;  %v6304_v50 = vld [vmem:[#allocation5 + $0x2ac] sm:$0xf0] }
 0x121   :  { %2604 = vmatmul.bf16.vlgmr.msra.gmra.mxu1 %v6925_v27  ;;  %v4829_v18 = vor.u32 %v6304_v50, %v4828_v54  ;;  %v4926_v54 = vld [vmem:[#allocation5 + $0x370] sm:$0xf0]  ;;  %v5273_v50 = vor.u32 %v6411_v1, %v5270_v2  ;;  %v4580_v2 = vld [vmem:[#allocation5 + $0x98] sm:$0xf] }
 0x122   :  { %2648 = vmatpush.bf16.msrb.mxu1 %v4989_v14  ;;  %2576 = vmatpush.bf16.msrb.mxu3 %v5301_v22  ;;  %v5401_v14 = vor.u32 %v6443_v9, %v5398_v10  ;;  %v4796_v22 = vld [vmem:[#allocation5 + $0x250] sm:$0xf]  ;;  %v4741_v9 = vor.u32 %v6281_v63, %v4740_v62  ;;  %v6324_v10 = vld [vmem:[#allocation5 + $0x354] sm:$0xf] }
 0x123   :  { %v4797_v33 = vor.u32 %v6296_v23, %v4796_v22  ;;  %v4929_v17 = vor.u32 %v6324_v10, %v4926_v54  ;;  %v6316_v22 = vld [vmem:[#allocation5 + $0x314] sm:$0xf]  ;;  %v6440_v62 = vld [vmem:[#allocation5 + $0x6ec] sm:$0xf0] }
 0x124   :  { %2610 = vmatpush.bf16.msra.mxu2 %v5209_v24  ;;  %2642 = vmatpush.bf16.msrb.mxu0 %v4509_v25  ;;  %v6236_v24 = vld [vmem:[#allocation5 + $0x94] sm:$0xf]  ;;  %v6432_v54 = vld [vmem:[#allocation5 + $0x6ac] sm:$0xf0] }
 0x125   :  { %v4574_v25 = vld [vmem:[#allocation5 + $0xb0] sm:$0xf0] }
 0x126   :  { %2649 = vmatpush.bf16.msrb.mxu1 %v4957_v31  ;;  %2577 = vmatpush.bf16.msrb.mxu3 %v5269_v39  ;;  %v5014_v31 = vld [vmem:[#allocation5 + $0x428] sm:$0xf0]  ;;  %v4577_v34 = vor.u32 %v6236_v24, %v4574_v25  ;;  %v6288_v39 = vld [vmem:[#allocation5 + $0x22c] sm:$0xf0]  ;;  %v4894_v23 = vld [vmem:[#allocation5 + $0x330] sm:$0xf0] }
 0x127   :  { %2643 = vmatmul.bf16.vlgmr.msrb.gmra.mxu0 %v6919_v15  ;;  %v4765_v47 = vor.u32 %v6288_v39, %v4764_v38  ;;  %v4676_v24 = vld [vmem:[#allocation5 + $0x158] sm:$0xf]  ;;  %v4798_v1 = vld [vmem:[#allocation5 + $0x270] sm:$0xf0] }
 0x128   :  { %2687 = vmatpush.bf16.msra.mxu0 %v4737_v32  ;;  %2611 = vmatpush.bf16.msra.mxu2 %v5177_v40  ;;  %v6427_v32 = vld [vmem:[#allocation5 + $0x68c] sm:$0xf]  ;;  %v6228_v40 = vld [vmem:[#allocation5 + $0x54] sm:$0xf]  ;;  %v6265_v25 = vld [vmem:[#allocation5 + $0x174] sm:$0xf0] }
 0x129   :  { %2578 = vmatmul.bf16.vlgmr.msrb.gmra.mxu3 %v6936_v5  ;;  %v4644_v38 = vld [vmem:[#allocation5 + $0x118] sm:$0xf] }
 0x12a   :  { %2622 = vmatpush.bf16.msra.mxu3 %v5497_v41  ;;  %2650 = vmatpush.bf16.msrb.mxu1 %v4925_v44  ;;  %v4542_v41 = vld [vmem:[#allocation5 + $0x70] sm:$0xf0]  ;;  %v5017_v44 = vor.u32 %v6347_v30, %v5014_v31  ;;  %v5116_v30 = vld [vmem:[#allocation5 + $0x4d0] sm:$0xf]  ;;  %v4897_v31 = vor.u32 %v6316_v22, %v4894_v23  ;;  %v6257_v39 = vld [vmem:[#allocation5 + $0x134] sm:$0xf0] }
 0x12b   :  { %v4545_v51 = vor.u32 %v6228_v40, %v4542_v41  ;;  %v4645_v48 = vor.u32 %v6257_v39, %v4644_v38  ;;  %v6277_v38 = vld [vmem:[#allocation5 + $0x1dc] sm:$0xf] }
 0x12c   :  { %2688 = vmatpush.bf16.msra.mxu0 %v4705_v45  ;;  %2612 = vmatpush.bf16.msra.mxu2 %v5145_v53  ;;  %v5337_v45 = vor.u32 %v6427_v32, %v5334_v35  ;;  %v5212_v53 = vld [vmem:[#allocation5 + $0x590] sm:$0xf]  ;;  %v4677_v35 = vor.u32 %v6265_v25, %v4676_v24  ;;  %v4742_v39 = vld [vmem:[#allocation5 + $0x1f8] sm:$0xf0] }
 0x12d   :  { %v6376_v32 = vld [vmem:[#allocation5 + $0x4ec] sm:$0xf0] }
 0x12e   :  { %2623 = vmatpush.bf16.msra.mxu3 %v5465_v55  ;;  %2651 = vmatpush.bf16.msrb.mxu1 %v4893_v59  ;;  %v6400_v55 = vld [vmem:[#allocation5 + $0x5ac] sm:$0xf0]  ;;  %v6332_v59 = vld [vmem:[#allocation5 + $0x394] sm:$0xf]  ;;  %v5117_v41 = vor.u32 %v6376_v32, %v5116_v30  ;;  %v4516_v32 = vld [vmem:[#allocation5 + $0x18] sm:$0xf] }
 0x12f   :  { %v5213_v0 = vor.u32 %v6400_v55, %v5212_v53  ;;  %v6249_v53 = vld [vmem:[#allocation5 + $0xf4] sm:$0xf0]  ;;  %v5308_v24 = vld [vmem:[#allocation5 + $0x650] sm:$0xf]  ;;  %v6396_v30 = vld [vmem:[#allocation5 + $0x594] sm:$0xf] }
 0x130   :  { %2689 = vmatpush.bf16.msra.mxu0 %v4673_v60  ;;  %2613 = vmatpush.bf16.msra.mxu2 %v5113_v3  ;;  %v4958_v60 = vld [vmem:[#allocation5 + $0x3b0] sm:$0xf0]  ;;  %v5180_v3 = vld [vmem:[#allocation5 + $0x550] sm:$0xf] }
 0x131   :  { %v4961_v6 = vor.u32 %v6332_v59, %v4958_v60  ;;  %v6360_v60 = vld [vmem:[#allocation5 + $0x46c] sm:$0xf0] }
 0x132   :  { %2624 = vmatpush.bf16.msra.mxu3 %v5433_v4  ;;  %2652 = vmatpush.bf16.msrb.mxu1 %v4861_v8  ;;  %v4513_v4 = vor.u32 %v6220_v56, %v4510_v58  ;;  %v5500_v8 = vld [vmem:[#allocation5 + $0x7d0] sm:$0xf] }
 0x133   :  { %v5052_v58 = vld [vmem:[#allocation5 + $0x450] sm:$0xf] }
 0x134   :  { %2690 = vmatpush.bf16.msra.mxu0 %v4641_v57  ;;  %2614 = vmatpush.bf16.msra.mxu2 %v5081_v13  ;;  %v6472_v57 = vld [vmem:[#allocation5 + $0x7ec] sm:$0xf0]  ;;  %v5181_v13 = vor.u32 %v6392_v7, %v5180_v3  ;;  %v6241_v3 = vld [vmem:[#allocation5 + $0xb4] sm:$0xf0] }
 0x135   :  { %v4581_v12 = vor.u32 %v6241_v3, %v4580_v2  ;;  %v6424_v25 = vld [vmem:[#allocation5 + $0x66c] sm:$0xf0]  ;;  %v4900_v3 = vld [vmem:[#allocation5 + $0x318] sm:$0xf] }
 0x136   :  { %2625 = vmatpush.bf16.msra.mxu3 %v5401_v14  ;;  %2653 = vmatpush.bf16.msrb.mxu1 %v4829_v18  ;;  %v5501_v14 = vor.u32 %v6472_v57, %v5500_v8  ;;  %v6384_v18 = vld [vmem:[#allocation5 + $0x52c] sm:$0xf0] }
 0x137   :  { %v5020_v8 = vld [vmem:[#allocation5 + $0x410] sm:$0xf] }
 0x138   :  { %2691 = vmatpush.bf16.msra.mxu0 %v4609_v19  ;;  %2615 = vmatpush.bf16.msra.mxu2 %v5049_v26  ;;  %v5468_v19 = vld [vmem:[#allocation5 + $0x790] sm:$0xf]  ;;  %v5149_v26 = vor.u32 %v6384_v18, %v5148_v16  ;;  %v4548_v16 = vld [vmem:[#allocation5 + $0x58] sm:$0xf] }
 0x139   :  { %v6352_v57 = vld [vmem:[#allocation5 + $0x42c] sm:$0xf0]  ;;  %v4996_v18 = vld [vmem:[#allocation5 + $0x3d8] sm:$0xf] }
 0x13a   :  { %2626 = vmatpush.bf16.msra.mxu3 %v5369_v28  ;;  %2654 = vmatpush.bf16.msrb.mxu1 %v4797_v33  ;;  %v5469_v28 = vor.u32 %v6464_v20, %v5468_v19  ;;  %v5436_v33 = vld [vmem:[#allocation5 + $0x750] sm:$0xf]  ;;  %v6345_v19 = vld [vmem:[#allocation5 + $0x3f4] sm:$0xf0]  ;;  %v5021_v20 = vor.u32 %v6352_v57, %v5020_v8  ;;  %v4678_v8 = vld [vmem:[#allocation5 + $0x178] sm:$0xf0] }
 0x13c   :  { %2692 = vmatpush.bf16.msra.mxu0 %v4577_v34  ;;  %2616 = vmatpush.bf16.msra.mxu2 %v5017_v44  ;;  %v6456_v34 = vld [vmem:[#allocation5 + $0x76c] sm:$0xf0]  ;;  %v4865_v44 = vor.u32 %v6308_v36, %v4862_v37  ;;  %v5309_v37 = vor.u32 %v6424_v25, %v5308_v24  ;;  %v5086_v24 = vld [vmem:[#allocation5 + $0x4b0] sm:$0xf0] }
 0x13d   :  { %v5437_v42 = vor.u32 %v6456_v34, %v5436_v33  ;;  %v6225_v33 = vld [vmem:[#allocation5 + $0x34] sm:$0xf0]  ;;  %v6444_v25 = vld [vmem:[#allocation5 + $0x714] sm:$0xf] }
 0x13e   :  { %2627 = vmatpush.bf16.msra.mxu3 %v5337_v45  ;;  %2655 = vmatpush.bf16.msrb.mxu1 %v4765_v47  ;;  %v6368_v45 = vld [vmem:[#allocation5 + $0x4ac] sm:$0xf0]  ;;  %v4964_v34 = vld [vmem:[#allocation5 + $0x398] sm:$0xf] }
 0x13f   :  { %2617 = vmatmul.bf16.vlgmr.msra.gmra.mxu2 %v6932_v29  ;;  %v6448_v47 = vld [vmem:[#allocation5 + $0x72c] sm:$0xf0]  ;;  %v5085_v55 = vor.u32 %v6368_v45, %v5084_v43  ;;  %v4517_v45 = vor.u32 %v6225_v33, %v4516_v32  ;;  %v6245_v33 = vld [vmem:[#allocation5 + $0xdc] sm:$0xf] }
 0x140   :  { %2661 = vmatpush.bf16.msrb.mxu2 %v5245_v46  ;;  %2693 = vmatpush.bf16.msra.mxu0 %v4545_v51  ;;  %v5404_v46 = vld [vmem:[#allocation5 + $0x710] sm:$0xf]  ;;  %v4830_v51 = vld [vmem:[#allocation5 + $0x2b0] sm:$0xf0] }
 0x141   :  { %2656 = vmatmul.bf16.vlgmr.msrb.gmra.mxu1 %v6925_v27  ;;  %v5405_v56 = vor.u32 %v6448_v47, %v5404_v46  ;;  %v4833_v59 = vor.u32 %v6300_v49, %v4830_v51  ;;  %v6416_v43 = vld [vmem:[#allocation5 + $0x62c] sm:$0xf0]  ;;  %v5182_v47 = vld [vmem:[#allocation5 + $0x570] sm:$0xf0]  ;;  %v4745_v51 = vor.u32 %v6277_v38, %v4742_v39 }
 0x142   :  { %2700 = vmatpush.bf16.msra.mxu1 %v4993_v52  ;;  %2628 = vmatpush.bf16.msra.mxu3 %v5305_v61  ;;  %v4612_v52 = vld [vmem:[#allocation5 + $0xd8] sm:$0xf]  ;;  %v5372_v61 = vld [vmem:[#allocation5 + $0x6d0] sm:$0xf]  ;;  %v5502_v49 = vld [vmem:[#allocation5 + $0x7f0] sm:$0xf0] }
 0x143   :  { %v4613_v63 = vor.u32 %v6249_v53, %v4612_v52  ;;  %v5373_v7 = vor.u32 %v6440_v62, %v5372_v61  ;;  %v4932_v52 = vld [vmem:[#allocation5 + $0x358] sm:$0xf]  ;;  %v6380_v61 = vld [vmem:[#allocation5 + $0x514] sm:$0xf] }
 0x144   :  { %2662 = vmatpush.bf16.msrb.mxu2 %v5213_v0  ;;  %2694 = vmatpush.bf16.msra.mxu0 %v4513_v4  ;;  %v6950_v40 = vpop.f32.mrf.mxu0  ;;  %v6292_v0 = vld [vmem:[#allocation5 + $0x254] sm:$0xf]  ;;  %v6329_v53 = vld [vmem:[#allocation5 + $0x374] sm:$0xf0] }
 0x145   :  { %v4801_v10 = vor.u32 %v6292_v0, %v4798_v1  ;;  %v4933_v62 = vor.u32 %v6329_v53, %v4932_v52  ;;  %v6460_v0 = vld [vmem:[#allocation5 + $0x794] sm:$0xf] }
 0x146   :  { %2701 = vmatpush.bf16.msra.mxu1 %v4961_v6  ;;  %2629 = vmatpush.bf16.msra.mxu3 %v5273_v50  ;;  %v5053_v6 = vor.u32 %v6360_v60, %v5052_v58  ;;  %v6404_v50 = vld [vmem:[#allocation5 + $0x5d4] sm:$0xf]  ;;  %v4710_v58 = vld [vmem:[#allocation5 + $0x1b8] sm:$0xf0] }
 0x147   :  { %2695 = vmatmul.bf16.vlgmr.msra.gmra.mxu0 %v6919_v15  ;;  %v5249_v22 = vor.u32 %v6404_v50, %v5246_v11  ;;  %v5470_v1 = vld [vmem:[#allocation5 + $0x7b0] sm:$0xf0] }
 0x148   :  { %2739 = vmatpush.bf16.msrb.mxu0 %v4741_v9  ;;  %2663 = vmatpush.bf16.msrb.mxu2 %v5181_v13  ;;  %v5340_v9 = vld [vmem:[#allocation5 + $0x690] sm:$0xf]  ;;  %v6284_v13 = vld [vmem:[#allocation5 + $0x214] sm:$0xf] }
 0x149   :  { %2630 = vmatmul.bf16.vlgmr.msra.gmra.mxu3 %v6936_v5  ;;  %v5118_v11 = vld [vmem:[#allocation5 + $0x4f0] sm:$0xf0] }
 0x14a   :  { %2674 = vmatpush.bf16.msrb.mxu3 %v5501_v14  ;;  %2702 = vmatpush.bf16.msra.mxu1 %v4929_v17  ;;  %v4766_v14 = vld [vmem:[#allocation5 + $0x230] sm:$0xf0]  ;;  %v6233_v17 = vld [vmem:[#allocation5 + $0x74] sm:$0xf0] }
 0x14b   :  { %v4769_v23 = vor.u32 %v6284_v13, %v4766_v14  ;;  %v5438_v13 = vld [vmem:[#allocation5 + $0x770] sm:$0xf0] }
 0x14c   :  { %2740 = vmatpush.bf16.msrb.mxu0 %v4709_v21  ;;  %2664 = vmatpush.bf16.msrb.mxu2 %v5149_v26  ;;  %v2438_v4 = vpop.f32.mrf.mxu0  ;;  %v5341_v21 = vor.u32 %v6432_v54, %v5340_v9  ;;  %v4549_v26 = vor.u32 %v6233_v17, %v4548_v16  ;;  %v5473_v9 = vor.u32 %v6460_v0, %v5470_v1  ;;  %v4868_v16 = vld [vmem:[#allocation5 + $0x2d8] sm:$0xf]  ;;  %v6356_v38 = vld [vmem:[#allocation5 + $0x454] sm:$0xf]  ;;  %v6229_v1 = vld [vmem:[#allocation5 + $0x5c] sm:$0xf] }
 0x14d   :  { %v6321_v4 = vld [vmem:[#allocation5 + $0x334] sm:$0xf0]  ;;  %v6348_v53 = vld [vmem:[#allocation5 + $0x414] sm:$0xf] }
 0x14e   :  { %2675 = vmatpush.bf16.msrb.mxu3 %v5469_v28  ;;  %2703 = vmatpush.bf16.msra.mxu1 %v4897_v31  ;;  %v4997_v28 = vor.u32 %v6345_v19, %v4996_v18  ;;  %v5214_v31 = vld [vmem:[#allocation5 + $0x5b0] sm:$0xf0]  ;;  %v4901_v50 = vor.u32 %v6321_v4, %v4900_v3  ;;  %v6313_v17 = vld [vmem:[#allocation5 + $0x2f4] sm:$0xf0]  ;;  %v6253_v18 = vld [vmem:[#allocation5 + $0x11c] sm:$0xf] }
 0x14f   :  { %v4646_v19 = vld [vmem:[#allocation5 + $0x138] sm:$0xf0]  ;;  %v6289_v0 = vld [vmem:[#allocation5 + $0x234] sm:$0xf0] }
 0x150   :  { %2741 = vmatpush.bf16.msrb.mxu0 %v4677_v35  ;;  %2665 = vmatpush.bf16.msrb.mxu2 %v5117_v41  ;;  %v6337_v35 = vld [vmem:[#allocation5 + $0x3b4] sm:$0xf0]  ;;  %v5217_v41 = vor.u32 %v6396_v30, %v5214_v31  ;;  %v4550_v3 = vld [vmem:[#allocation5 + $0x78] sm:$0xf0] }
 0x151   :  { %v4965_v46 = vor.u32 %v6337_v35, %v4964_v34  ;;  %v4836_v30 = vld [vmem:[#allocation5 + $0x298] sm:$0xf]  ;;  %v4614_v34 = vld [vmem:[#allocation5 + $0xf8] sm:$0xf0] }
 0x152   :  { %2676 = vmatpush.bf16.msrb.mxu3 %v5437_v42  ;;  %2704 = vmatpush.bf16.msra.mxu1 %v4865_v44  ;;  %v5276_v42 = vld [vmem:[#allocation5 + $0x610] sm:$0xf]  ;;  %v6388_v44 = vld [vmem:[#allocation5 + $0x554] sm:$0xf]  ;;  %v6305_v31 = vld [vmem:[#allocation5 + $0x2b4] sm:$0xf0] }
 0x153   :  { %v6341_v4 = vld [vmem:[#allocation5 + $0x3dc] sm:$0xf] }
 0x154   :  { %2742 = vmatpush.bf16.msrb.mxu0 %v4645_v48  ;;  %2666 = vmatpush.bf16.msrb.mxu2 %v5085_v55  ;;  %v6952_v36 = vpop.f32.mrf.mxu0  ;;  %v6468_v48 = vld [vmem:[#allocation5 + $0x7d4] sm:$0xf]  ;;  %v5277_v55 = vor.u32 %v6416_v43, %v5276_v42 }
 0x155   :  { %v5505_v60 = vor.u32 %v6468_v48, %v5502_v49  ;;  %v5054_v42 = vld [vmem:[#allocation5 + $0x470] sm:$0xf0]  ;;  %v6237_v48 = vld [vmem:[#allocation5 + $0x9c] sm:$0xf] }
 0x156   :  { %2677 = vmatpush.bf16.msrb.mxu3 %v5405_v56  ;;  %2705 = vmatpush.bf16.msra.mxu1 %v4833_v59  ;;  %v6269_v56 = vld [vmem:[#allocation5 + $0x19c] sm:$0xf]  ;;  %v5185_v59 = vor.u32 %v6388_v44, %v5182_v47  ;;  %v6436_v43 = vld [vmem:[#allocation5 + $0x6d4] sm:$0xf]  ;;  %v6297_v47 = vld [vmem:[#allocation5 + $0x274] sm:$0xf0] }
 0x157   :  { %v4713_v2 = vor.u32 %v6269_v56, %v4710_v58  ;;  %v5374_v44 = vld [vmem:[#allocation5 + $0x6f0] sm:$0xf0]  ;;  %v4582_v49 = vld [vmem:[#allocation5 + $0xb8] sm:$0xf0] }
 0x158   :  { %2743 = vmatpush.bf16.msrb.mxu0 %v4613_v63  ;;  %2667 = vmatpush.bf16.msrb.mxu2 %v5053_v6  ;;  %v5150_v63 = vld [vmem:[#allocation5 + $0x530] sm:$0xf0]  ;;  %v5377_v52 = vor.u32 %v6436_v43, %v5374_v44  ;;  %v6487_v43 = vld [vmem:[#allocation7 + $0x64] sm:$0xf0] }
 0x159   :  { %v5153_v57 = vor.u32 %v6380_v61, %v5150_v63  ;;  %v6428_v56 = vld [vmem:[#allocation5 + $0x694] sm:$0xf]  ;;  %v6409_v61 = vld [vmem:[#allocation5 + $0x5f4] sm:$0xf0] }
 0x15a   :  { %2678 = vmatpush.bf16.msrb.mxu3 %v5373_v7  ;;  %2706 = vmatpush.bf16.msra.mxu1 %v4801_v10  ;;  %v6261_v7 = vld [vmem:[#allocation5 + $0x15c] sm:$0xf]  ;;  %v6372_v10 = vld [vmem:[#allocation5 + $0x4d4] sm:$0xf]  ;;  %v4772_v63 = vld [vmem:[#allocation5 + $0x218] sm:$0xf] }
 0x15b   :  { %v4681_v14 = vor.u32 %v6261_v7, %v4678_v8 }
 0x15c   :  { %2744 = vmatpush.bf16.msrb.mxu0 %v4581_v12  ;;  %2668 = vmatpush.bf16.msrb.mxu2 %v5021_v20  ;;  %v2490_v6 = vpop.f32.mrf.mxu0  ;;  %v6452_v12 = vld [vmem:[#allocation5 + $0x754] sm:$0xf]  ;;  %v5121_v20 = vor.u32 %v6372_v10, %v5118_v11  ;;  %v4773_v10 = vor.u32 %v6289_v0, %v4772_v63  ;;  %v5124_v0 = vld [vmem:[#allocation5 + $0x4d8] sm:$0xf] }
 0x15d   :  { %v4998_v6 = vld [vmem:[#allocation5 + $0x3f8] sm:$0xf0]  ;;  %v5310_v11 = vld [vmem:[#allocation5 + $0x670] sm:$0xf0] }
 0x15e   :  { %2679 = vmatpush.bf16.msrb.mxu3 %v5341_v21  ;;  %2707 = vmatpush.bf16.msra.mxu1 %v4769_v23  ;;  %v6957_v54 = vpop.f32.mrf.mxu1  ;;  %v5441_v21 = vor.u32 %v6452_v12, %v5438_v13  ;;  %v4869_v23 = vor.u32 %v6313_v17, %v4868_v16  ;;  %v4553_v12 = vor.u32 %v6229_v1, %v4550_v3  ;;  %v6401_v16 = vld [vmem:[#allocation5 + $0x5b4] sm:$0xf0]  ;;  %v6221_v17 = vld [vmem:[#allocation5 + $0x1c] sm:$0xf] }
 0x15f   :  { %2669 = vmatmul.bf16.vlgmr.msrb.gmra.mxu2 %v6932_v29  ;;  %v5001_v13 = vor.u32 %v6341_v4, %v4998_v6  ;;  %v5444_v3 = vld [vmem:[#allocation5 + $0x758] sm:$0xf] }
 0x160   :  { %2713 = vmatpush.bf16.msra.mxu2 %v5249_v22  ;;  %2745 = vmatpush.bf16.msrb.mxu0 %v4549_v26  ;;  %v6364_v22 = vld [vmem:[#allocation5 + $0x494] sm:$0xf]  ;;  %v6457_v4 = vld [vmem:[#allocation5 + $0x774] sm:$0xf0] }
 0x161   :  { %2708 = vmatmul.bf16.vlgmr.msra.gmra.mxu1 %v6925_v27  ;;  %v5406_v26 = vld [vmem:[#allocation5 + $0x730] sm:$0xf0]  ;;  %v5089_v35 = vor.u32 %v6364_v22, %v5086_v24  ;;  %v5572_v22 = vld [vmem:[#allocation7 + $0x70] sm:$0xf] }
 0x162   :  { %2752 = vmatpush.bf16.msrb.mxu1 %v4997_v28  ;;  %2680 = vmatpush.bf16.msrb.mxu3 %v5309_v37  ;;  %v4649_v28 = vor.u32 %v6253_v18, %v4646_v19  ;;  %v5409_v37 = vor.u32 %v6444_v25, %v5406_v26  ;;  %v4518_v18 = vld [vmem:[#allocation5 + $0x38] sm:$0xf0]  ;;  %v6412_v25 = vld [vmem:[#allocation5 + $0x614] sm:$0xf] }
 0x163   :  { %v6333_v19 = vld [vmem:[#allocation5 + $0x39c] sm:$0xf]  ;;  %v5278_v26 = vld [vmem:[#allocation5 + $0x630] sm:$0xf0] }
 0x164   :  { %2714 = vmatpush.bf16.msra.mxu2 %v5217_v41  ;;  %2746 = vmatpush.bf16.msrb.mxu0 %v4517_v45  ;;  %v6960_v32 = vpop.f32.mrf.mxu0  ;;  %v4837_v41 = vor.u32 %v6305_v31, %v4836_v30  ;;  %v4617_v45 = vor.u32 %v6245_v33, %v4614_v34  ;;  %v4521_v30 = vor.u32 %v6221_v17, %v4518_v18  ;;  %v6393_v33 = vld [vmem:[#allocation5 + $0x574] sm:$0xf0] }
 0x165   :  { %v5508_v34 = vld [vmem:[#allocation5 + $0x7d8] sm:$0xf] }
 0x166   :  { %2753 = vmatpush.bf16.msrb.mxu1 %v4965_v46  ;;  %2681 = vmatpush.bf16.msrb.mxu3 %v5277_v55  ;;  %v2451_v39 = vpop.f32.mrf.mxu1  ;;  %v4804_v46 = vld [vmem:[#allocation5 + $0x258] sm:$0xf]  ;;  %v5022_v55 = vld [vmem:[#allocation5 + $0x430] sm:$0xf0] }
 0x167   :  { %2747 = vmatmul.bf16.vlgmr.msrb.gmra.mxu0 %v6919_v15  ;;  %v4805_v58 = vor.u32 %v6297_v47, %v4804_v46  ;;  %v5025_v7 = vor.u32 %v6348_v53, %v5022_v55  ;;  %v4934_v39 = vld [vmem:[#allocation5 + $0x378] sm:$0xf0]  ;;  %v5156_v47 = vld [vmem:[#allocation5 + $0x518] sm:$0xf]  ;;  %v6969_v53 = vld [vmem:[%s7088_s4] sm:$0xff] }
 0x168   :  { %2791 = vmatpush.bf16.msra.mxu0 %v4745_v51  ;;  %2715 = vmatpush.bf16.msra.mxu2 %v5185_v59  ;;  %v5057_v51 = vor.u32 %v6356_v38, %v5054_v42  ;;  %v5342_v59 = vld [vmem:[#allocation5 + $0x6b0] sm:$0xf0]  ;;  %v6325_v38 = vld [vmem:[#allocation5 + $0x35c] sm:$0xf]  ;;  %v5564_v42 = vld [vmem:[#allocation7 + $0x60] sm:$0xf] }
 0x169   :  { %2682 = vmatmul.bf16.vlgmr.msrb.gmra.mxu3 %v6936_v5  ;;  %v5345_v8 = vor.u32 %v6428_v56, %v5342_v59  ;;  %v5565_v55 = vor.u32 %v6487_v43, %v5564_v42  ;;  %v6317_v56 = vld [vmem:[#allocation5 + $0x31c] sm:$0xf]  ;;  %v1133_v59 = vperm.slane %v6969_v53, 2  ;;  %v6369_v18 = vld [vmem:[#allocation5 + $0x4b4] sm:$0xf0] }
 0x16a   :  { %2726 = vmatpush.bf16.msra.mxu3 %v5505_v60  ;;  %2754 = vmatpush.bf16.msrb.mxu1 %v4933_v62  ;;  %v5252_v60 = vld [vmem:[#allocation5 + $0x5d8] sm:$0xf]  ;;  %v4585_v62 = vor.u32 %v6237_v48, %v4582_v49  ;;  %v4937_v48 = vor.u32 %v6325_v38, %v4934_v39  ;;  %v6293_v39 = vld [vmem:[#allocation5 + $0x25c] sm:$0xf]  ;;  %v5532_v42 = vld [vmem:[#allocation7 + $0x20] sm:$0xf] }
 0x16b   :  { %v6385_v49 = vld [vmem:[#allocation5 + $0x534] sm:$0xf0]  ;;  %v6479_v43 = vld [vmem:[#allocation7 + $0x24] sm:$0xf0] }
 0x16c   :  { %2792 = vmatpush.bf16.msra.mxu0 %v4713_v2  ;;  %2716 = vmatpush.bf16.msra.mxu2 %v5153_v57  ;;  %v2542_v2 = vpop.f32.mrf.mxu0 }
 0x16d   :  { %v6377_v2 = vld [vmem:[#allocation5 + $0x4f4] sm:$0xf0] }
 0x16e   :  { %2727 = vmatpush.bf16.msra.mxu3 %v5473_v9  ;;  %2755 = vmatpush.bf16.msrb.mxu1 %v4901_v50  ;;  %v6962_v57 = vpop.f32.mrf.mxu1  ;;  %v5253_v9 = vor.u32 %v6409_v61, %v5252_v60  ;;  %v6420_v50 = vld [vmem:[#allocation5 + $0x654] sm:$0xf]  ;;  %v5556_v60 = vld [vmem:[#allocation7 + $0x50] sm:$0xf]  ;;  %v6485_v61 = vld [vmem:[#allocation7 + $0x54] sm:$0xf0] }
 0x16f   :  { %v5557_v6 = vor.u32 %v6485_v61, %v5556_v60  ;;  %v5533_v61 = vor.u32 %v6479_v43, %v5532_v42 }
 0x170   :  { %2793 = vmatpush.bf16.msra.mxu0 %v4681_v14  ;;  %2717 = vmatpush.bf16.msra.mxu2 %v5121_v20  ;;  %v5220_v14 = vld [vmem:[#allocation5 + $0x598] sm:$0xf]  ;;  %v4966_v20 = vld [vmem:[#allocation5 + $0x3b8] sm:$0xf0] }
 0x171   :  { %v5221_v24 = vor.u32 %v6401_v16, %v5220_v14  ;;  %v4969_v31 = vor.u32 %v6333_v19, %v4966_v20  ;;  %v5412_v19 = vld [vmem:[#allocation5 + $0x718] sm:$0xf] }
 0x172   :  { %2728 = vmatpush.bf16.msra.mxu3 %v5441_v21  ;;  %2756 = vmatpush.bf16.msrb.mxu1 %v4869_v23  ;;  %v5313_v21 = vor.u32 %v6420_v50, %v5310_v11  ;;  %v6489_v23 = vld [vmem:[#allocation7 + $0x74] sm:$0xf0]  ;;  %v6483_v50 = vld [vmem:[#allocation7 + $0x44] sm:$0xf0] }
 0x173   :  { %v6449_v20 = vld [vmem:[#allocation5 + $0x734] sm:$0xf0] }
 0x174   :  { %2794 = vmatpush.bf16.msra.mxu0 %v4649_v28  ;;  %2718 = vmatpush.bf16.msra.mxu2 %v5089_v35  ;;  %v5188_v28 = vld [vmem:[#allocation5 + $0x558] sm:$0xf] }
 0x175   :  { %v6473_v35 = vld [vmem:[#allocation5 + $0x7f4] sm:$0xf0] }
 0x176   :  { %2729 = vmatpush.bf16.msra.mxu3 %v5409_v37  ;;  %2757 = vmatpush.bf16.msrb.mxu1 %v4837_v41  ;;  %v5573_v37 = vor.u32 %v6489_v23, %v5572_v22  ;;  %v5281_v41 = vor.u32 %v6412_v25, %v5278_v26  ;;  %v2503_v44 = vpop.f32.mrf.mxu1  ;;  %v5509_v46 = vor.u32 %v6473_v35, %v5508_v34  ;;  %v4838_v22 = vld [vmem:[#allocation5 + $0x2b8] sm:$0xf0]  ;;  %v5540_v23 = vld [vmem:[#allocation7 + $0x30] sm:$0xf]  ;;  %v1131_v25 = vperm.slane %v6969_v53, 0 }
 0x177   :  { %v6361_v34 = vld [vmem:[#allocation5 + $0x474] sm:$0xf0] }
 0x178   :  { %2795 = vmatpush.bf16.msra.mxu0 %v4617_v45  ;;  %2719 = vmatpush.bf16.msra.mxu2 %v5057_v51  ;;  %v5189_v45 = vor.u32 %v6393_v33, %v5188_v28  ;;  %v5476_v51 = vld [vmem:[#allocation5 + $0x798] sm:$0xf]  ;;  %v5413_v28 = vor.u32 %v6449_v20, %v5412_v19  ;;  %v2437_v44 = vadd.f32 %v6950_v40, %v1131_v25  ;;  %v5524_v40 = vld [vmem:[#allocation7 + $0x10] sm:$0xf]  ;;  %v6475_v19 = vld [vmem:[#allocation7 + $0x4] sm:$0xf0] }
 0x179   :  { %v5380_v35 = vld [vmem:[#allocation5 + $0x6d8] sm:$0xf]  ;;  %v6503_v20 = vld [vmem:[#allocation7 + $0xe4] sm:$0xf0] }
 0x17a   :  { %2730 = vmatpush.bf16.msra.mxu3 %v5377_v52  ;;  %2758 = vmatpush.bf16.msrb.mxu1 %v4805_v58  ;;  %v6465_v52 = vld [vmem:[#allocation5 + $0x7b4] sm:$0xf0]  ;;  %v4902_v58 = vld [vmem:[#allocation5 + $0x338] sm:$0xf0] }
 0x17b   :  { %v5477_v63 = vor.u32 %v6465_v52, %v5476_v51  ;;  %v4905_v1 = vor.u32 %v6317_v56, %v4902_v58  ;;  %v5348_v51 = vld [vmem:[#allocation5 + $0x698] sm:$0xf]  ;;  %v6405_v58 = vld [vmem:[#allocation5 + $0x5dc] sm:$0xf] }
 0x17c   :  { %2796 = vmatpush.bf16.msra.mxu0 %v4585_v62  ;;  %2720 = vmatpush.bf16.msra.mxu2 %v5025_v7  ;;  %v5157_v62 = vor.u32 %v6385_v49, %v5156_v47  ;;  %v6309_v7 = vld [vmem:[#allocation5 + $0x2dc] sm:$0xf]  ;;  %v6353_v49 = vld [vmem:[#allocation5 + $0x434] sm:$0xf0] }
 0x17d   :  { %v6433_v56 = vld [vmem:[#allocation5 + $0x6b4] sm:$0xf0] }
 0x17e   :  { %2731 = vmatpush.bf16.msra.mxu3 %v5345_v8  ;;  %2759 = vmatpush.bf16.msrb.mxu1 %v4773_v10  ;;  %v4870_v8 = vld [vmem:[#allocation5 + $0x2f8] sm:$0xf0]  ;;  %v5548_v10 = vld [vmem:[#allocation7 + $0x40] sm:$0xf]  ;;  %v2553_v11 = vpop.f32.mrf.mxu1  ;;  %v6417_v25 = vld [vmem:[#allocation5 + $0x634] sm:$0xf0] }
 0x17f   :  { %2721 = vmatmul.bf16.vlgmr.msra.gmra.mxu2 %v6932_v29  ;;  %v4873_v17 = vor.u32 %v6309_v7, %v4870_v8 }
 0x180   :  { %2765 = vmatpush.bf16.msrb.mxu2 %v5253_v9  ;;  %2797 = vmatpush.bf16.msra.mxu0 %v4553_v12  ;;  %v2541_v9 = vadd.f32 %v6960_v32, %v1133_v59  ;;  %v5125_v12 = vor.u32 %v6377_v2, %v5124_v0  ;;  %v6301_v32 = vld [vmem:[#allocation5 + $0x29c] sm:$0xf]  ;;  %v6477_v0 = vld [vmem:[#allocation7 + $0x14] sm:$0xf0] }
 0x181   :  { %2760 = vmatmul.bf16.vlgmr.msrb.gmra.mxu1 %v6925_v27  ;;  %v4841_v33 = vor.u32 %v6301_v32, %v4838_v22  ;;  %v5254_v59 = vld [vmem:[#allocation5 + $0x5f8] sm:$0xf0]  ;;  %v6505_v2 = vld [vmem:[#allocation7 + $0xf4] sm:$0xf0] }
 0x182   :  { %2804 = vmatpush.bf16.msra.mxu1 %v5001_v13  ;;  %2732 = vmatpush.bf16.msra.mxu3 %v5313_v21  ;;  %v5092_v13 = vld [vmem:[#allocation5 + $0x498] sm:$0xf]  ;;  %v6975_v14 = vadd.f32 %v2553_v11, %v2541_v9  ;;  %v6977_v16 = vpop.f32.mrf.mxu2  ;;  %v5549_v21 = vor.u32 %v6483_v50, %v5548_v10  ;;  %v5257_v8 = vor.u32 %v6405_v58, %v5254_v59  ;;  %v5612_v58 = vld [vmem:[#allocation7 + $0xc0] sm:$0xf]  ;;  %v6499_v59 = vld [vmem:[#allocation7 + $0xc4] sm:$0xf0] }
 0x183   :  { %v5093_v26 = vor.u32 %v6369_v18, %v5092_v13  ;;  %v5316_v10 = vld [vmem:[#allocation5 + $0x658] sm:$0xf]  ;;  %v6397_v13 = vld [vmem:[#allocation5 + $0x59c] sm:$0xf]  ;;  %v5516_v18 = vld [vmem:[#allocation7] sm:$0xf] }
 0x184   :  { %2766 = vmatpush.bf16.msrb.mxu2 %v5221_v24  ;;  %2798 = vmatpush.bf16.msra.mxu0 %v4521_v30  ;;  %v6481_v24 = vld [vmem:[#allocation7 + $0x34] sm:$0xf0] }
 0x185   :  { %v5060_v30 = vld [vmem:[#allocation5 + $0x458] sm:$0xf]  ;;  %v5541_v38 = vor.u32 %v6481_v24, %v5540_v23  ;;  %v5828_v23 = vld [vmem:[#allocation7 + $0x270] sm:$0xf] }
 0x186   :  { %2805 = vmatpush.bf16.msra.mxu1 %v4969_v31  ;;  %2733 = vmatpush.bf16.msra.mxu3 %v5281_v41  ;;  %v6980_v31 = vpop.f32.mrf.mxu0  ;;  %v4806_v41 = vld [vmem:[#allocation5 + $0x278] sm:$0xf0]  ;;  %v6425_v50 = vld [vmem:[#allocation5 + $0x674] sm:$0xf0] }
 0x187   :  { %2799 = vmatmul.bf16.vlgmr.msra.gmra.mxu0 %v6919_v15  ;;  %v5445_v15 = vor.u32 %v6457_v4, %v5444_v3  ;;  %v2450_v3 = vadd.f32 %v6957_v54, %v2437_v44  ;;  %v5628_v54 = vld [vmem:[#allocation7 + $0xe0] sm:$0xf]  ;;  %v5317_v32 = vor.u32 %v6425_v50, %v5316_v10  ;;  %v5284_v22 = vld [vmem:[#allocation5 + $0x618] sm:$0xf] }
 0x188   :  { %3633 = vmatpush.bf16.msrb.mxu0 %v5573_v37  ;;  %2767 = vmatpush.bf16.msrb.mxu2 %v5189_v45  ;;  %v6441_v37 = vld [vmem:[#allocation5 + $0x6f4] sm:$0xf0]  ;;  %v2555_v45 = vpop.f32.mrf.mxu1  ;;  %v5285_v44 = vor.u32 %v6417_v25, %v5284_v22  ;;  %v5804_v50 = vld [vmem:[#allocation7 + $0x240] sm:$0xf]  ;;  %v6495_v22 = vld [vmem:[#allocation7 + $0xa4] sm:$0xf0] }
 0x189   :  { %2734 = vmatmul.bf16.vlgmr.msra.gmra.mxu3 %v6936_v5  ;;  %v5381_v47 = vor.u32 %v6441_v37, %v5380_v35  ;;  %v2463_v11 = vadd.f32 %v6977_v16, %v2450_v3  ;;  %v5190_v35 = vld [vmem:[#allocation5 + $0x578] sm:$0xf0]  ;;  %v5613_v3 = vor.u32 %v6499_v59, %v5612_v58 }
 0x18a   :  { %2778 = vmatpush.bf16.msrb.mxu3 %v5509_v46  ;;  %2806 = vmatpush.bf16.msra.mxu1 %v4937_v48  ;;  %v5061_v46 = vor.u32 %v6361_v34, %v5060_v30  ;;  %v5028_v48 = vld [vmem:[#allocation5 + $0x418] sm:$0xf]  ;;  %v2464_v52 = vpop.f32.mrf.mxu2  ;;  %v5629_v34 = vor.u32 %v6503_v20, %v5628_v54  ;;  %v6469_v37 = vld [vmem:[#allocation5 + $0x7dc] sm:$0xf] }
 0x18b   :  { %v5029_v4 = vor.u32 %v6353_v49, %v5028_v48  ;;  %v5820_v48 = vld [vmem:[#allocation7 + $0x260] sm:$0xf]  ;;  %v6551_v49 = vld [vmem:[#allocation7 + $0x264] sm:$0xf0]  ;;  %v5158_v52 = vld [vmem:[#allocation5 + $0x538] sm:$0xf0] }
 0x18c   :  { %3634 = vmatpush.bf16.msrb.mxu0 %v5565_v55  ;;  %2768 = vmatpush.bf16.msrb.mxu2 %v5157_v62  ;;  %v4809_v55 = vor.u32 %v6293_v39, %v4806_v41  ;;  %v2475_v60 = vpop.f32.mrf.mxu3  ;;  %v6285_v62 = vld [vmem:[#allocation5 + $0x21c] sm:$0xf]  ;;  %v5620_v39 = vld [vmem:[#allocation7 + $0xd0] sm:$0xf]  ;;  %v6501_v41 = vld [vmem:[#allocation7 + $0xd4] sm:$0xf0] }
 0x18d   :  { %v5094_v54 = vld [vmem:[#allocation5 + $0x4b8] sm:$0xf0] }
 0x18e   :  { %2779 = vmatpush.bf16.msrb.mxu3 %v5477_v63  ;;  %2807 = vmatpush.bf16.msra.mxu1 %v4905_v1  ;;  %v4774_v63 = vld [vmem:[#allocation5 + $0x238] sm:$0xf0]  ;;  %v5636_v1 = vld [vmem:[#allocation7 + $0xf0] sm:$0xf]  ;;  %v2594_v7 = vpop.f32.mrf.mxu0 }
 0x18f   :  { %v4777_v9 = vor.u32 %v6285_v62, %v4774_v63  ;;  %v5446_v7 = vld [vmem:[#allocation5 + $0x778] sm:$0xf0] }
 0x190   :  { %3635 = vmatpush.bf16.msrb.mxu0 %v5557_v6  ;;  %2769 = vmatpush.bf16.msrb.mxu2 %v5125_v12  ;;  %v5349_v6 = vor.u32 %v6433_v56, %v5348_v51  ;;  %v5525_v12 = vor.u32 %v6477_v0, %v5524_v40  ;;  %v5621_v51 = vor.u32 %v6501_v41, %v5620_v39  ;;  %v5478_v56 = vld [vmem:[#allocation5 + $0x7b8] sm:$0xf0]  ;;  %v5812_v0 = vld [vmem:[#allocation7 + $0x250] sm:$0xf] }
 0x191   :  { %v6373_v40 = vld [vmem:[#allocation5 + $0x4dc] sm:$0xf] }
 0x192   :  { %2780 = vmatpush.bf16.msrb.mxu3 %v5445_v15  ;;  %2808 = vmatpush.bf16.msra.mxu1 %v4873_v17  ;;  %v5637_v15 = vor.u32 %v6505_v2, %v5636_v1  ;;  %v5222_v17 = vld [vmem:[#allocation5 + $0x5b8] sm:$0xf0]  ;;  %v6985_v24 = vpop.f32.mrf.mxu2  ;;  %v6549_v1 = vld [vmem:[#allocation7 + $0x254] sm:$0xf0] }
 0x193   :  { %v5225_v16 = vor.u32 %v6397_v13, %v5222_v17  ;;  %v5813_v10 = vor.u32 %v6549_v1, %v5812_v0  ;;  %v6365_v17 = vld [vmem:[#allocation5 + $0x49c] sm:$0xf] }
 0x194   :  { %3636 = vmatpush.bf16.msrb.mxu0 %v5549_v21  ;;  %2770 = vmatpush.bf16.msrb.mxu2 %v5093_v26  ;;  %v2476_v21 = vadd.f32 %v2475_v60, %v2463_v11  ;;  %v6389_v26 = vld [vmem:[#allocation5 + $0x55c] sm:$0xf]  ;;  %v2477_v30 = vpop.f32.mrf.mxu3  ;;  %v5821_v60 = vor.u32 %v6551_v49, %v5820_v48  ;;  %v1132_v11 = vperm.slane %v6969_v53, 1 }
 0x195   :  { %v5193_v45 = vor.u32 %v6389_v26, %v5190_v35  ;;  %v6445_v20 = vld [vmem:[#allocation5 + $0x71c] sm:$0xf]  ;;  %v6545_v35 = vld [vmem:[#allocation7 + $0x234] sm:$0xf0] }
 0x196   :  { %2781 = vmatpush.bf16.msrb.mxu3 %v5413_v28  ;;  %2809 = vmatpush.bf16.msra.mxu1 %v4841_v33  ;;  %v6553_v28 = vld [vmem:[#allocation7 + $0x274] sm:$0xf0]  ;;  %v5517_v33 = vor.u32 %v6475_v19, %v5516_v18  ;;  %v2843_v43 = vmax.f32 %v2476_v21, 0.0  ;;  %v6547_v18 = vld [vmem:[#allocation7 + $0x244] sm:$0xf0] }
 0x197   :  { %v5829_v42 = vor.u32 %v6553_v28, %v5828_v23  ;;  %v5414_v21 = vld [vmem:[#allocation5 + $0x738] sm:$0xf0]  ;;  %v5805_v23 = vor.u32 %v6547_v18, %v5804_v50  ;;  %v5097_v28 = vor.u32 %v6365_v17, %v5094_v54  ;;  %v5772_v54 = vld [vmem:[#allocation7 + $0x200] sm:$0xf] }
 0x198   :  { %3637 = vmatpush.bf16.msrb.mxu0 %v5541_v38  ;;  %2771 = vmatpush.bf16.msrb.mxu2 %v5061_v46  ;;  %v5510_v38 = vld [vmem:[#allocation5 + $0x7f8] sm:$0xf0]  ;;  %v5417_v30 = vor.u32 %v6445_v20, %v5414_v21  ;;  %v5684_v21 = vld [vmem:[#allocation7 + $0x150] sm:$0xf] }
 0x199   :  { %v5513_v46 = vor.u32 %v6469_v37, %v5510_v38  ;;  %v5062_v39 = vld [vmem:[#allocation5 + $0x478] sm:$0xf0] }
 0x19a   :  { %2782 = vmatpush.bf16.msrb.mxu3 %v5381_v47  ;;  %2810 = vmatpush.bf16.msra.mxu1 %v4809_v55  ;;  %v6381_v47 = vld [vmem:[#allocation5 + $0x51c] sm:$0xf] }
 0x19b   :  { %v6461_v55 = vld [vmem:[#allocation5 + $0x79c] sm:$0xf]  ;;  %v5161_v62 = vor.u32 %v6381_v47, %v5158_v52 }
 0x19c   :  { %3638 = vmatpush.bf16.msrb.mxu0 %v5533_v61  ;;  %2772 = vmatpush.bf16.msrb.mxu2 %v5029_v4  ;;  %v6989_v61 = vpack.c.bf16 %v2843_v43, %v2843_v43  ;;  %v5481_v63 = vor.u32 %v6461_v55, %v5478_v56  ;;  %v6992_v2 = vpop.f32.mrf.mxu3  ;;  %v5126_v4 = vld [vmem:[#allocation5 + $0x4f8] sm:$0xf0]  ;;  %v6543_v56 = vld [vmem:[#allocation7 + $0x224] sm:$0xf0] }
 0x19d   :  { %v6437_v41 = vld [vmem:[#allocation5 + $0x6dc] sm:$0xf] }
 0x19e   :  { %2783 = vmatpush.bf16.msrb.mxu3 %v5349_v6  ;;  %2811 = vmatpush.bf16.msra.mxu1 %v4777_v9  ;;  %v6453_v6 = vld [vmem:[#allocation5 + $0x75c] sm:$0xf]  ;;  %v6497_v9 = vld [vmem:[#allocation7 + $0xb4] sm:$0xf0] }
 0x19f   :  { %2773 = vmatmul.bf16.vlgmr.msrb.gmra.mxu2 %v6932_v29  ;;  %v5449_v13 = vor.u32 %v6453_v6, %v5446_v7  ;;  %v6349_v52 = vld [vmem:[#allocation5 + $0x41c] sm:$0xf]  ;;  %v5780_v6 = vld [vmem:[#allocation7 + $0x210] sm:$0xf]  ;;  %v6541_v7 = vld [vmem:[#allocation7 + $0x214] sm:$0xf0] }
 0x1a0   :  { %2817 = vmatpush.bf16.msra.mxu2 %v5257_v8  ;;  %3639 = vmatpush.bf16.msrb.mxu0 %v5525_v12  ;;  %v5604_v8 = vld [vmem:[#allocation7 + $0xb0] sm:$0xf]  ;;  %v6996_v12 = vpop.f32.mrf.mxu1  ;;  %v5030_v55 = vld [vmem:[#allocation5 + $0x438] sm:$0xf0]  ;;  %v5781_v17 = vor.u32 %v6541_v7, %v5780_v6  ;;  %v6563_v6 = vld [vmem:[#allocation7 + $0x2c4] sm:$0xf0] }
 0x1a1   :  { %2812 = vmatmul.bf16.vlgmr.msra.gmra.mxu1 %v6925_v27  ;;  %v2516_v27 = vpop.f32.mrf.mxu2  ;;  %v5605_v19 = vor.u32 %v6497_v9, %v5604_v8  ;;  %v6429_v59 = vld [vmem:[#allocation5 + $0x69c] sm:$0xf]  ;;  %v6482_v7 = vld [vmem:[#allocation7 + $0x44] sm:$0xf] }
 0x1a2   :  { %3646 = vmatpush.bf16.msrb.mxu1 %v5637_v15  ;;  %2784 = vmatpush.bf16.msrb.mxu3 %v5317_v32  ;;  %v5129_v15 = vor.u32 %v6373_v40, %v5126_v4  ;;  %v5596_v32 = vld [vmem:[#allocation7 + $0xa0] sm:$0xf]  ;;  %v6491_v40 = vld [vmem:[#allocation7 + $0x84] sm:$0xf0]  ;;  %v6421_v50 = vld [vmem:[#allocation5 + $0x65c] sm:$0xf] }
 0x1a3   :  { %v5597_v38 = vor.u32 %v6495_v22, %v5596_v32  ;;  %v6413_v18 = vld [vmem:[#allocation5 + $0x61c] sm:$0xf]  ;;  %v6539_v32 = vld [vmem:[#allocation7 + $0x204] sm:$0xf0]  ;;  %v5892_v22 = vld [vmem:[#allocation7 + $0x2f0] sm:$0xf] }
 0x1a4   :  { %2818 = vmatpush.bf16.msra.mxu2 %v5225_v16  ;;  %3640 = vmatpush.bf16.msrb.mxu0 %v5517_v33  ;;  %v2489_v16 = vadd.f32 %v6952_v36, %v1132_v11  ;;  %v6999_v25 = vpop.f32.mrf.mxu0  ;;  %v6357_v33 = vld [vmem:[#allocation5 + $0x45c] sm:$0xf]  ;;  %v2529_v37 = vpop.f32.mrf.mxu3  ;;  %v5588_v36 = vld [vmem:[#allocation7 + $0x90] sm:$0xf] }
 0x1a5   :  { %v5065_v49 = vor.u32 %v6357_v33, %v5062_v39  ;;  %v6537_v37 = vld [vmem:[#allocation7 + $0x1f4] sm:$0xf0] }
 0x1a6   :  { %3647 = vmatpush.bf16.msrb.mxu1 %v5629_v34  ;;  %2785 = vmatpush.bf16.msrb.mxu3 %v5285_v44  ;;  %v5796_v34 = vld [vmem:[#allocation7 + $0x230] sm:$0xf]  ;;  %v2502_v43 = vadd.f32 %v6962_v57, %v2489_v16  ;;  %v6493_v44 = vld [vmem:[#allocation7 + $0x94] sm:$0xf0] }
 0x1a7   :  { %3641 = vmatmul.bf16.vlgmr.msrb.gmra.mxu0 %v6989_v61  ;;  %v5589_v58 = vor.u32 %v6493_v44, %v5588_v36  ;;  %v5700_v57 = vld [vmem:[#allocation7 + $0x170] sm:$0xf]  ;;  %v6569_v16 = vld [vmem:[#allocation7 + $0x2f4] sm:$0xf0]  ;;  %v6567_v36 = vld [vmem:[#allocation7 + $0x2e4] sm:$0xf0] }
 0x1a8   :  { %3685 = vmatpush.bf16.msra.mxu0 %v5829_v42  ;;  %2819 = vmatpush.bf16.msra.mxu2 %v5193_v45  ;;  %v5382_v42 = vld [vmem:[#allocation5 + $0x6f8] sm:$0xf0]  ;;  %v5797_v45 = vor.u32 %v6545_v35, %v5796_v34  ;;  %v2515_v47 = vadd.f32 %v6985_v24, %v2502_v43  ;;  %v2607_v48 = vpop.f32.mrf.mxu1  ;;  %v6517_v34 = vld [vmem:[#allocation7 + $0x154] sm:$0xf0]  ;;  %v5764_v35 = vld [vmem:[#allocation7 + $0x1f0] sm:$0xf]  ;;  %v5893_v39 = vor.u32 %v6569_v16, %v5892_v22 }
 0x1a9   :  { %2786 = vmatmul.bf16.vlgmr.msrb.gmra.mxu3 %v6936_v5  ;;  %v7001_v26 = vpop.f32.mrf.mxu2  ;;  %v5884_v43 = vld [vmem:[#allocation7 + $0x2e0] sm:$0xf]  ;;  %v6486_v44 = vld [vmem:[#allocation7 + $0x64] sm:$0xf]  ;;  %v5652_v22 = vld [vmem:[#allocation7 + $0x110] sm:$0xf] }
 0x1aa   :  { %2830 = vmatpush.bf16.msra.mxu3 %v5513_v46  ;;  %3648 = vmatpush.bf16.msrb.mxu1 %v5621_v51  ;;  %v5788_v46 = vld [vmem:[#allocation7 + $0x220] sm:$0xf]  ;;  %v5385_v51 = vor.u32 %v6437_v41, %v5382_v42  ;;  %v2528_v27 = vadd.f32 %v6992_v2, %v2515_v47  ;;  %v5318_v2 = vld [vmem:[#allocation5 + $0x678] sm:$0xf0]  ;;  %v5765_v47 = vor.u32 %v6537_v37, %v5764_v35 }
 0x1ab   :  { %v5789_v24 = vor.u32 %v6543_v56, %v5788_v46  ;;  %v5321_v20 = vor.u32 %v6421_v50, %v5318_v2  ;;  %v5685_v46 = vor.u32 %v6517_v34, %v5684_v21  ;;  %v5676_v48 = vld [vmem:[#allocation7 + $0x140] sm:$0xf]  ;;  %v6529_v34 = vld [vmem:[#allocation7 + $0x1b4] sm:$0xf0] }
 0x1ac   :  { %3686 = vmatpush.bf16.msra.mxu0 %v5821_v60  ;;  %2820 = vmatpush.bf16.msra.mxu2 %v5161_v62  ;;  %v5350_v60 = vld [vmem:[#allocation5 + $0x6b8] sm:$0xf0]  ;;  %v6521_v62 = vld [vmem:[#allocation7 + $0x174] sm:$0xf0]  ;;  %v2646_v0 = vpop.f32.mrf.mxu0  ;;  %v7006_v8 = vpop.f32.mrf.mxu3  ;;  %v2844_v11 = vmax.f32 %v2528_v27, 0.0 }
 0x1ad   :  { %v5353_v4 = vor.u32 %v6429_v59, %v5350_v60  ;;  %v5701_v9 = vor.u32 %v6521_v62, %v5700_v57  ;;  %v6565_v59 = vld [vmem:[#allocation7 + $0x2d4] sm:$0xf0]  ;;  %v6484_v60 = vld [vmem:[#allocation7 + $0x54] sm:$0xf]  ;;  %v5668_v62 = vld [vmem:[#allocation7 + $0x130] sm:$0xf] }
 0x1ae   :  { %2831 = vmatpush.bf16.msra.mxu3 %v5481_v63  ;;  %3649 = vmatpush.bf16.msrb.mxu1 %v5613_v3  ;;  %v5580_v63 = vld [vmem:[#allocation7 + $0x80] sm:$0xf]  ;;  %v5033_v3 = vor.u32 %v6349_v52, %v5030_v55  ;;  %v7008_v33 = vpack.c.bf16 %v2844_v11, %v2844_v11  ;;  %v6535_v55 = vld [vmem:[#allocation7 + $0x1e4] sm:$0xf0]  ;;  %v6533_v0 = vld [vmem:[#allocation7 + $0x1d4] sm:$0xf0] }
 0x1af   :  { %v5756_v52 = vld [vmem:[#allocation7 + $0x1e0] sm:$0xf] }
 0x1b0   :  { %3687 = vmatpush.bf16.msra.mxu0 %v5813_v10  ;;  %2821 = vmatpush.bf16.msra.mxu2 %v5129_v15  ;;  %v5581_v10 = vor.u32 %v6491_v40, %v5580_v63  ;;  %v5692_v15 = vld [vmem:[#allocation7 + $0x160] sm:$0xf]  ;;  %v5757_v27 = vor.u32 %v6535_v55, %v5756_v52  ;;  %v5558_v63 = vld [vmem:[#allocation7 + $0x58] sm:$0xf0]  ;;  %v6513_v40 = vld [vmem:[#allocation7 + $0x134] sm:$0xf0] }
 0x1b1   :  { %v2568_v1 = vpop.f32.mrf.mxu2  ;;  %v5669_v50 = vor.u32 %v6513_v40, %v5668_v62  ;;  %v5660_v11 = vld [vmem:[#allocation7 + $0x120] sm:$0xf]  ;;  %v6527_v55 = vld [vmem:[#allocation7 + $0x1a4] sm:$0xf0] }
 0x1b2   :  { %2832 = vmatpush.bf16.msra.mxu3 %v5449_v13  ;;  %3650 = vmatpush.bf16.msrb.mxu1 %v5605_v19  ;;  %v6519_v13 = vld [vmem:[#allocation7 + $0x164] sm:$0xf0]  ;;  %v5286_v19 = vld [vmem:[#allocation5 + $0x638] sm:$0xf0]  ;;  %v5724_v52 = vld [vmem:[#allocation7 + $0x1a0] sm:$0xf] }
 0x1b3   :  { %v5289_v42 = vor.u32 %v6413_v18, %v5286_v19  ;;  %v5860_v19 = vld [vmem:[#allocation7 + $0x2b0] sm:$0xf] }
 0x1b4   :  { %3688 = vmatpush.bf16.msra.mxu0 %v5805_v23  ;;  %2822 = vmatpush.bf16.msra.mxu2 %v5097_v28  ;;  %v5693_v23 = vor.u32 %v6519_v13, %v5692_v15  ;;  %v6488_v28 = vld [vmem:[#allocation7 + $0x74] sm:$0xf]  ;;  %v6511_v15 = vld [vmem:[#allocation7 + $0x124] sm:$0xf0]  ;;  %v5740_v13 = vld [vmem:[#allocation7 + $0x1c0] sm:$0xf] }
 0x1b5   :  { %v5661_v21 = vor.u32 %v6511_v15, %v5660_v11  ;;  %v6523_v11 = vld [vmem:[#allocation7 + $0x184] sm:$0xf0]  ;;  %v5956_v15 = vld [vmem:[#allocation7 + $0x370] sm:$0xf] }
 0x1b6   :  { %2833 = vmatpush.bf16.msra.mxu3 %v5417_v30  ;;  %3651 = vmatpush.bf16.msrb.mxu1 %v5597_v38  ;;  %v5574_v30 = vld [vmem:[#allocation7 + $0x78] sm:$0xf0]  ;;  %v5773_v38 = vor.u32 %v6539_v32, %v5772_v54  ;;  %v6561_v54 = vld [vmem:[#allocation7 + $0x2b4] sm:$0xf0] }
 0x1b7   :  { %v5577_v41 = vor.u32 %v6488_v28, %v5574_v30  ;;  %v6509_v28 = vld [vmem:[#allocation7 + $0x114] sm:$0xf0]  ;;  %v5732_v30 = vld [vmem:[#allocation7 + $0x1b0] sm:$0xf]  ;;  %v5861_v35 = vor.u32 %v6561_v54, %v5860_v19  ;;  %v6504_v19 = vld [vmem:[#allocation7 + $0xf4] sm:$0xf] }
 0x1b8   :  { %3689 = vmatpush.bf16.msra.mxu0 %v5797_v45  ;;  %2823 = vmatpush.bf16.msra.mxu2 %v5065_v49  ;;  %v2581_v45 = vpop.f32.mrf.mxu3  ;;  %v5566_v49 = vld [vmem:[#allocation7 + $0x68] sm:$0xf0]  ;;  %v5638_v54 = vld [vmem:[#allocation7 + $0xf8] sm:$0xf0] }
 0x1b9   :  { %v5569_v56 = vor.u32 %v6486_v44, %v5566_v49  ;;  %v5534_v44 = vld [vmem:[#allocation7 + $0x28] sm:$0xf0] }
 0x1ba   :  { %2834 = vmatpush.bf16.msra.mxu3 %v5385_v51  ;;  %3652 = vmatpush.bf16.msrb.mxu1 %v5589_v58  ;;  %v6515_v51 = vld [vmem:[#allocation7 + $0x144] sm:$0xf0]  ;;  %v5876_v58 = vld [vmem:[#allocation7 + $0x2d0] sm:$0xf] }
 0x1bb   :  { %v5677_v57 = vor.u32 %v6515_v51, %v5676_v48  ;;  %v5877_v1 = vor.u32 %v6565_v59, %v5876_v58  ;;  %v5644_v48 = vld [vmem:[#allocation7 + $0x100] sm:$0xf]  ;;  %v6507_v51 = vld [vmem:[#allocation7 + $0x104] sm:$0xf0]  ;;  %v6476_v59 = vld [vmem:[#allocation7 + $0x14] sm:$0xf] }
 0x1bc   :  { %3690 = vmatpush.bf16.msra.mxu0 %v5789_v24  ;;  %2824 = vmatpush.bf16.msra.mxu2 %v5033_v3  ;;  %v5748_v24 = vld [vmem:[#allocation7 + $0x1d0] sm:$0xf]  ;;  %v5561_v3 = vor.u32 %v6484_v60, %v5558_v63  ;;  %v5645_v60 = vor.u32 %v6507_v51, %v5644_v48  ;;  %v6579_v48 = vld [vmem:[#allocation7 + $0x344] sm:$0xf0] }
 0x1bd   :  { %v5749_v2 = vor.u32 %v6533_v0, %v5748_v24  ;;  %v5716_v24 = vld [vmem:[#allocation7 + $0x190] sm:$0xf]  ;;  %v6525_v0 = vld [vmem:[#allocation7 + $0x194] sm:$0xf0] }
 0x1be   :  { %2835 = vmatpush.bf16.msra.mxu3 %v5353_v4  ;;  %3653 = vmatpush.bf16.msrb.mxu1 %v5581_v10  ;;  %v5868_v4 = vld [vmem:[#allocation7 + $0x2c0] sm:$0xf]  ;;  %v7013_v10 = vpop.f32.mrf.mxu1 }
 0x1bf   :  { %2825 = vmatmul.bf16.vlgmr.msra.gmra.mxu2 %v6932_v29  ;;  %v5885_v29 = vor.u32 %v6567_v36, %v5884_v43  ;;  %v5869_v18 = vor.u32 %v6563_v6, %v5868_v4  ;;  %v2567_v43 = vadd.f32 %v7001_v26, %v6975_v14  ;;  %v6478_v36 = vld [vmem:[#allocation7 + $0x24] sm:$0xf]  ;;  %v5844_v14 = vld [vmem:[#allocation7 + $0x290] sm:$0xf]  ;;  %v6557_v26 = vld [vmem:[#allocation7 + $0x294] sm:$0xf0] }
 0x1c0   :  { %3659 = vmatpush.bf16.msrb.mxu2 %v5701_v9  ;;  %3691 = vmatpush.bf16.msra.mxu0 %v5781_v17  ;;  %v5550_v9 = vld [vmem:[#allocation7 + $0x48] sm:$0xf0]  ;;  %v6531_v17 = vld [vmem:[#allocation7 + $0x1c4] sm:$0xf0]  ;;  %v5708_v6 = vld [vmem:[#allocation7 + $0x180] sm:$0xf] }
 0x1c1   :  { %3654 = vmatmul.bf16.vlgmr.msrb.gmra.mxu1 %v7008_v33  ;;  %v5741_v32 = vor.u32 %v6531_v17, %v5740_v13  ;;  %v2580_v49 = vadd.f32 %v7006_v8, %v2567_v43  ;;  %v6500_v43 = vld [vmem:[#allocation7 + $0xd4] sm:$0xf] }
 0x1c2   :  { %2836 = vmatpush.bf16.msra.mxu3 %v5321_v20  ;;  %3698 = vmatpush.bf16.msra.mxu1 %v5893_v39  ;;  %v6480_v20 = vld [vmem:[#allocation7 + $0x34] sm:$0xf]  ;;  %v2618_v16 = vpop.f32.mrf.mxu2  ;;  %v5852_v39 = vld [vmem:[#allocation7 + $0x2a0] sm:$0xf] }
 0x1c3   :  { %v2845_v8 = vmax.f32 %v2580_v49, 0.0  ;;  %v6498_v49 = vld [vmem:[#allocation7 + $0xc4] sm:$0xf] }
 0x1c4   :  { %3660 = vmatpush.bf16.msrb.mxu2 %v5693_v23  ;;  %3692 = vmatpush.bf16.msra.mxu0 %v5773_v38  ;;  %v5542_v23 = vld [vmem:[#allocation7 + $0x38] sm:$0xf0]  ;;  %v7015_v37 = vpop.f32.mrf.mxu0 }
 0x1c5   :  { %v5545_v38 = vor.u32 %v6480_v20, %v5542_v23  ;;  %v7023_v13 = vpack.c.bf16 %v2845_v8, %v2845_v8  ;;  %v6583_v23 = vld [vmem:[#allocation7 + $0x364] sm:$0xf0] }
 0x1c6   :  { %2837 = vmatpush.bf16.msra.mxu3 %v5289_v42  ;;  %3699 = vmatpush.bf16.msra.mxu1 %v5885_v29  ;;  %v1134_v42 = vperm.slane %v6969_v53, 3  ;;  %v2659_v45 = vpop.f32.mrf.mxu1  ;;  %v6575_v8 = vld [vmem:[#allocation7 + $0x324] sm:$0xf0] }
 0x1c8   :  { %3737 = vmatpush.bf16.msrb.mxu0 %v5577_v41  ;;  %3661 = vmatpush.bf16.msrb.mxu2 %v5685_v46  ;;  %v6559_v41 = vld [vmem:[#allocation7 + $0x2a4] sm:$0xf0]  ;;  %v5653_v46 = vor.u32 %v6509_v28, %v5652_v22  ;;  %v2593_v58 = vadd.f32 %v6980_v31, %v1134_v42  ;;  %v5948_v22 = vld [vmem:[#allocation7 + $0x360] sm:$0xf]  ;;  %v5630_v28 = vld [vmem:[#allocation7 + $0xe8] sm:$0xf0] }
 0x1c9   :  { %2838 = vmatmul.bf16.vlgmr.msra.gmra.mxu3 %v6936_v5  ;;  %v5553_v5 = vor.u32 %v6482_v7, %v5550_v9  ;;  %v5853_v29 = vor.u32 %v6559_v41, %v5852_v39  ;;  %v5836_v7 = vld [vmem:[#allocation7 + $0x280] sm:$0xf]  ;;  %v6555_v9 = vld [vmem:[#allocation7 + $0x284] sm:$0xf0]  ;;  %v5940_v41 = vld [vmem:[#allocation7 + $0x350] sm:$0xf] }
 0x1ca   :  { %3672 = vmatpush.bf16.msrb.mxu3 %v5765_v47  ;;  %3700 = vmatpush.bf16.msra.mxu1 %v5877_v1  ;;  %v5733_v47 = vor.u32 %v6529_v34, %v5732_v30  ;;  %v2606_v62 = vadd.f32 %v6996_v12, %v2593_v58  ;;  %v2620_v63 = vpop.f32.mrf.mxu2  ;;  %v5845_v1 = vor.u32 %v6557_v26, %v5844_v14  ;;  %v5518_v12 = vld [vmem:[#allocation7 + $0x8] sm:$0xf0]  ;;  %v6581_v42 = vld [vmem:[#allocation7 + $0x354] sm:$0xf0]  ;;  %v6496_v14 = vld [vmem:[#allocation7 + $0xb4] sm:$0xf] }
 0x1cb   :  { %v5709_v30 = vor.u32 %v6523_v11, %v5708_v6  ;;  %v5949_v34 = vor.u32 %v6583_v23, %v5948_v22  ;;  %v6577_v58 = vld [vmem:[#allocation7 + $0x334] sm:$0xf0]  ;;  %v1135_v26 = vperm.slane %v6969_v53, 4  ;;  %v6550_v23 = vld [vmem:[#allocation7 + $0x264] sm:$0xf] }
 0x1cc   :  { %3738 = vmatpush.bf16.msrb.mxu0 %v5569_v56  ;;  %3662 = vmatpush.bf16.msrb.mxu2 %v5677_v57  ;;  %v5537_v56 = vor.u32 %v6478_v36, %v5534_v44  ;;  %v5725_v57 = vor.u32 %v6527_v55, %v5724_v52  ;;  %v2631_v40 = vpop.f32.mrf.mxu3  ;;  %v2619_v4 = vadd.f32 %v2618_v16, %v2606_v62  ;;  %v6502_v16 = vld [vmem:[#allocation7 + $0xe4] sm:$0xf]  ;;  %v5622_v36 = vld [vmem:[#allocation7 + $0xd8] sm:$0xf0]  ;;  %v5614_v52 = vld [vmem:[#allocation7 + $0xc8] sm:$0xf0] }
 0x1cd   :  { %v5633_v39 = vor.u32 %v6502_v16, %v5630_v28  ;;  %v5941_v44 = vor.u32 %v6581_v42, %v5940_v41  ;;  %v5916_v62 = vld [vmem:[#allocation7 + $0x320] sm:$0xf]  ;;  %v6573_v6 = vld [vmem:[#allocation7 + $0x314] sm:$0xf0]  ;;  %v6020_v28 = vld [vmem:[#allocation7 + $0x3f0] sm:$0xf] }
 0x1ce   :  { %3673 = vmatpush.bf16.msrb.mxu3 %v5757_v27  ;;  %3701 = vmatpush.bf16.msra.mxu1 %v5869_v18  ;;  %v5526_v27 = vld [vmem:[#allocation7 + $0x18] sm:$0xf0]  ;;  %v2632_v17 = vadd.f32 %v2631_v40, %v2619_v4  ;;  %v5837_v18 = vor.u32 %v6555_v9, %v5836_v7  ;;  %v6494_v40 = vld [vmem:[#allocation7 + $0xa4] sm:$0xf]  ;;  %v5908_v4 = vld [vmem:[#allocation7 + $0x310] sm:$0xf] }
 0x1cf   :  { %v5529_v31 = vor.u32 %v6476_v59, %v5526_v27  ;;  %v6492_v7 = vld [vmem:[#allocation7 + $0x94] sm:$0xf]  ;;  %v5702_v41 = vld [vmem:[#allocation7 + $0x178] sm:$0xf0] }
 0x1d0   :  { %3739 = vmatpush.bf16.msrb.mxu0 %v5561_v3  ;;  %3663 = vmatpush.bf16.msrb.mxu2 %v5669_v50  ;;  %v2698_v3 = vpop.f32.mrf.mxu0  ;;  %v6474_v50 = vld [vmem:[#allocation7 + $0x4] sm:$0xf] }
 0x1d1   :  { %v5521_v20 = vor.u32 %v6474_v50, %v5518_v12  ;;  %v5909_v50 = vor.u32 %v6573_v6, %v5908_v4  ;;  %v5798_v4 = vld [vmem:[#allocation7 + $0x238] sm:$0xf0] }
 0x1d2   :  { %3674 = vmatpush.bf16.msrb.mxu3 %v5749_v2  ;;  %3702 = vmatpush.bf16.msra.mxu1 %v5861_v35  ;;  %v5717_v2 = vor.u32 %v6525_v0, %v5716_v24  ;;  %v2846_v35 = vmax.f32 %v2632_v17, 0.0  ;;  %v5598_v24 = vld [vmem:[#allocation7 + $0xa8] sm:$0xf0]  ;;  %v5917_v0 = vor.u32 %v6575_v8, %v5916_v62  ;;  %v5996_v8 = vld [vmem:[#allocation7 + $0x3c0] sm:$0xf] }
 0x1d4   :  { %3740 = vmatpush.bf16.msrb.mxu0 %v5553_v5  ;;  %3664 = vmatpush.bf16.msrb.mxu2 %v5661_v21  ;;  %v6585_v5 = vld [vmem:[#allocation7 + $0x374] sm:$0xf0]  ;;  %v7026_v45 = vpack.c.bf16 %v2846_v35, %v2846_v35  ;;  %v5822_v35 = vld [vmem:[#allocation7 + $0x268] sm:$0xf0] }
 0x1d5   :  { %v5957_v21 = vor.u32 %v6585_v5, %v5956_v15  ;;  %v6552_v5 = vld [vmem:[#allocation7 + $0x274] sm:$0xf] }
 0x1d6   :  { %3675 = vmatpush.bf16.msrb.mxu3 %v5741_v32  ;;  %3703 = vmatpush.bf16.msra.mxu1 %v5853_v29  ;;  %v5641_v32 = vor.u32 %v6504_v19, %v5638_v54  ;;  %v5617_v29 = vor.u32 %v6498_v49, %v5614_v52  ;;  %v5900_v19 = vld [vmem:[#allocation7 + $0x300] sm:$0xf]  ;;  %v6571_v54 = vld [vmem:[#allocation7 + $0x304] sm:$0xf0]  ;;  %v5814_v52 = vld [vmem:[#allocation7 + $0x258] sm:$0xf0] }
 0x1d8   :  { %3741 = vmatpush.bf16.msrb.mxu0 %v5545_v38  ;;  %3665 = vmatpush.bf16.msrb.mxu2 %v5653_v46  ;;  %v2633_v38 = vpop.f32.mrf.mxu3  ;;  %v5625_v46 = vor.u32 %v6500_v43, %v5622_v36  ;;  %v6012_v43 = vld [vmem:[#allocation7 + $0x3e0] sm:$0xf]  ;;  %v6599_v36 = vld [vmem:[#allocation7 + $0x3e4] sm:$0xf0] }
 0x1d9   :  { %v6013_v49 = vor.u32 %v6599_v36, %v6012_v43  ;;  %v6508_v43 = vld [vmem:[#allocation7 + $0x114] sm:$0xf] }
 0x1da   :  { %3676 = vmatpush.bf16.msrb.mxu3 %v5733_v47  ;;  %3704 = vmatpush.bf16.msra.mxu1 %v5845_v1  ;;  %v5932_v47 = vld [vmem:[#allocation7 + $0x340] sm:$0xf]  ;;  %v2645_v1 = vadd.f32 %v6999_v25, %v1135_v26  ;;  %v5830_v25 = vld [vmem:[#allocation7 + $0x278] sm:$0xf0] }
 0x1db   :  { %v5933_v51 = vor.u32 %v6579_v48, %v5932_v47  ;;  %v5833_v22 = vor.u32 %v6552_v5, %v5830_v25  ;;  %v5825_v47 = vor.u32 %v6550_v23, %v5822_v35  ;;  %v6548_v48 = vld [vmem:[#allocation7 + $0x254] sm:$0xf]  ;;  %v5686_v26 = vld [vmem:[#allocation7 + $0x158] sm:$0xf0]  ;;  %v5790_v25 = vld [vmem:[#allocation7 + $0x228] sm:$0xf0] }
 0x1dc   :  { %3742 = vmatpush.bf16.msrb.mxu0 %v5537_v56  ;;  %3666 = vmatpush.bf16.msrb.mxu2 %v5645_v60  ;;  %v5924_v56 = vld [vmem:[#allocation7 + $0x330] sm:$0xf]  ;;  %v5606_v60 = vld [vmem:[#allocation7 + $0xb8] sm:$0xf0]  ;;  %v2658_v53 = vadd.f32 %v7013_v10, %v2645_v1  ;;  %v5678_v1 = vld [vmem:[#allocation7 + $0x148] sm:$0xf0] }
 0x1dd   :  { %v5925_v59 = vor.u32 %v6577_v58, %v5924_v56  ;;  %v5609_v27 = vor.u32 %v6496_v14, %v5606_v60  ;;  %v6004_v56 = vld [vmem:[#allocation7 + $0x3d0] sm:$0xf]  ;;  %v6597_v58 = vld [vmem:[#allocation7 + $0x3d4] sm:$0xf0]  ;;  %v6516_v14 = vld [vmem:[#allocation7 + $0x154] sm:$0xf]  ;;  %v5817_v60 = vor.u32 %v6548_v48, %v5814_v52 }
 0x1de   :  { %3677 = vmatpush.bf16.msrb.mxu3 %v5725_v57  ;;  %3705 = vmatpush.bf16.msra.mxu1 %v5837_v18  ;;  %v7029_v55 = vpop.f32.mrf.mxu1  ;;  %v5689_v62 = vor.u32 %v6516_v14, %v5686_v26  ;;  %v5782_v35 = vld [vmem:[#allocation7 + $0x218] sm:$0xf0]  ;;  %v6538_v48 = vld [vmem:[#allocation7 + $0x204] sm:$0xf]  ;;  %v6587_v14 = vld [vmem:[#allocation7 + $0x384] sm:$0xf0] }
 0x1df   :  { %3667 = vmatmul.bf16.vlgmr.msrb.gmra.mxu2 %v7023_v13  ;;  %v6506_v26 = vld [vmem:[#allocation7 + $0x104] sm:$0xf] }
 0x1e0   :  { %3743 = vmatpush.bf16.msrb.mxu0 %v5529_v31  ;;  %3711 = vmatpush.bf16.msra.mxu2 %v5957_v21  ;;  %v5601_v31 = vor.u32 %v6494_v40, %v5598_v24  ;;  %v5901_v21 = vor.u32 %v6571_v54, %v5900_v19  ;;  %v6595_v40 = vld [vmem:[#allocation7 + $0x3c4] sm:$0xf0]  ;;  %v6514_v24 = vld [vmem:[#allocation7 + $0x144] sm:$0xf]  ;;  %v5980_v54 = vld [vmem:[#allocation7 + $0x3a0] sm:$0xf] }
 0x1e1   :  { %v5681_v6 = vor.u32 %v6514_v24, %v5678_v1  ;;  %v5766_v24 = vld [vmem:[#allocation7 + $0x1f8] sm:$0xf0]  ;;  %v6566_v1 = vld [vmem:[#allocation7 + $0x2e4] sm:$0xf] }
 0x1e2   :  { %3678 = vmatpush.bf16.msrb.mxu3 %v5717_v2  ;;  %3750 = vmatpush.bf16.msrb.mxu1 %v5641_v32  ;;  %v2670_v57 = vpop.f32.mrf.mxu2  ;;  %v5590_v2 = vld [vmem:[#allocation7 + $0x98] sm:$0xf0]  ;;  %v5582_v32 = vld [vmem:[#allocation7 + $0x88] sm:$0xf0] }
 0x1e3   :  { %v2671_v9 = vadd.f32 %v2670_v57, %v2658_v53  ;;  %v5593_v15 = vor.u32 %v6492_v7, %v5590_v2  ;;  %v6546_v57 = vld [vmem:[#allocation7 + $0x244] sm:$0xf]  ;;  %v6544_v53 = vld [vmem:[#allocation7 + $0x234] sm:$0xf]  ;;  %v5988_v7 = vld [vmem:[#allocation7 + $0x3b0] sm:$0xf] }
 0x1e4   :  { %3744 = vmatpush.bf16.msrb.mxu0 %v5521_v20  ;;  %3712 = vmatpush.bf16.msra.mxu2 %v5949_v34  ;;  %v7032_v63 = vpop.f32.mrf.mxu0  ;;  %v6490_v20 = vld [vmem:[#allocation7 + $0x84] sm:$0xf] }
 0x1e5   :  { %v5585_v16 = vor.u32 %v6490_v20, %v5582_v32  ;;  %v7044_v2 = vld [vmem:[%s7088_s4] sm:$0xff]  ;;  %v6591_v20 = vld [vmem:[#allocation7 + $0x3a4] sm:$0xf0]  ;;  %v5662_v32 = vld [vmem:[#allocation7 + $0x128] sm:$0xf0] }
 0x1e6   :  { %3679 = vmatpush.bf16.msrb.mxu3 %v5709_v30  ;;  %3751 = vmatpush.bf16.msrb.mxu1 %v5633_v39  ;;  %v2711_v3 = vpop.f32.mrf.mxu1  ;;  %v6601_v30 = vld [vmem:[#allocation7 + $0x3f4] sm:$0xf0]  ;;  %v6520_v39 = vld [vmem:[#allocation7 + $0x174] sm:$0xf] }
 0x1e7   :  { %v6021_v38 = vor.u32 %v6601_v30, %v6020_v28  ;;  %v5705_v42 = vor.u32 %v6520_v39, %v5702_v41  ;;  %v6540_v30 = vld [vmem:[#allocation7 + $0x214] sm:$0xf]  ;;  %v5972_v41 = vld [vmem:[#allocation7 + $0x390] sm:$0xf] }
 0x1e8   :  { %3713 = vmatpush.bf16.msra.mxu2 %v5941_v44  ;;  %v6518_v44 = vld [vmem:[#allocation7 + $0x164] sm:$0xf] }
 0x1e9   :  { %3680 = vmatmul.bf16.vlgmr.msrb.gmra.mxu3 %v7026_v45 }
 0x1ea   :  { %3752 = vmatpush.bf16.msrb.mxu1 %v5625_v46  ;;  %v2672_v11 = vpop.f32.mrf.mxu2  ;;  %3724 = vmatpush.bf16.msra.mxu3 %v6021_v38 }
 0x1eb   :  { %v1136_v11 = vperm.slane %v7044_v2, 5 }
 0x1ec   :  { %3714 = vmatpush.bf16.msra.mxu2 %v5933_v51  ;;  %v2683_v12 = vpop.f32.mrf.mxu3  ;;  %v2750_v18 = vpop.f32.mrf.mxu0  ;;  %v5694_v51 = vld [vmem:[#allocation7 + $0x168] sm:$0xf0] }
 0x1ed   :  { %v2684_v17 = vadd.f32 %v2683_v12, %v2671_v9  ;;  %v6593_v9 = vld [vmem:[#allocation7 + $0x3b4] sm:$0xf0]  ;;  %v5801_v12 = vor.u32 %v6544_v53, %v5798_v4  ;;  %v5670_v18 = vld [vmem:[#allocation7 + $0x138] sm:$0xf0]  ;;  %v2697_v23 = vadd.f32 %v7015_v37, %v1136_v11  ;;  %v6534_v4 = vld [vmem:[#allocation7 + $0x1e4] sm:$0xf] }
 0x1ee   :  { %3753 = vmatpush.bf16.msrb.mxu1 %v5617_v29  ;;  %v5697_v29 = vor.u32 %v6518_v44, %v5694_v51  ;;  %3725 = vmatpush.bf16.msra.mxu3 %v6013_v49  ;;  %v5774_v49 = vld [vmem:[#allocation7 + $0x208] sm:$0xf0]  ;;  %v5878_v11 = vld [vmem:[#allocation7 + $0x2d8] sm:$0xf0] }
 0x1ef   :  { %v2847_v10 = vmax.f32 %v2684_v17, 0.0  ;;  %v5989_v17 = vor.u32 %v6593_v9, %v5988_v7  ;;  %v2710_v39 = vadd.f32 %v7029_v55, %v2697_v23  ;;  %v5964_v55 = vld [vmem:[#allocation7 + $0x380] sm:$0xf]  ;;  %v5862_v23 = vld [vmem:[#allocation7 + $0x2b8] sm:$0xf0] }
 0x1f0   :  { %3715 = vmatpush.bf16.msra.mxu2 %v5925_v59  ;;  %v6005_v59 = vor.u32 %v6597_v58, %v6004_v56  ;;  %v6568_v56 = vld [vmem:[#allocation7 + $0x2f4] sm:$0xf]  ;;  %v5894_v58 = vld [vmem:[#allocation7 + $0x2f8] sm:$0xf0] }
 0x1f1   :  { %v7036_v34 = vpack.c.bf16 %v2847_v10, %v2847_v10 }
 0x1f2   :  { %3754 = vmatpush.bf16.msrb.mxu1 %v5609_v27  ;;  %v5806_v27 = vld [vmem:[#allocation7 + $0x248] sm:$0xf0]  ;;  %3726 = vmatpush.bf16.msra.mxu3 %v6005_v59 }
 0x1f3   :  { %3693 = vmatmul.bf16.vlgmr.msra.gmra.mxu0 %v7036_v34 }
 0x1f4   :  { %3716 = vmatpush.bf16.msra.mxu2 %v5917_v0  ;;  %v2685_v46 = vpop.f32.mrf.mxu3  ;;  %3789 = vmatpush.bf16.msra.mxu0 %v5833_v22  ;;  %v5997_v0 = vor.u32 %v6595_v40, %v5996_v8  ;;  %v5981_v22 = vor.u32 %v6591_v20, %v5980_v54  ;;  %v6536_v40 = vld [vmem:[#allocation7 + $0x1f4] sm:$0xf]  ;;  %v6530_v54 = vld [vmem:[#allocation7 + $0x1c4] sm:$0xf]  ;;  %v5742_v20 = vld [vmem:[#allocation7 + $0x1c8] sm:$0xf0] }
 0x1f5   :  { %v5654_v46 = vld [vmem:[#allocation7 + $0x118] sm:$0xf0]  ;;  %v5769_v53 = vor.u32 %v6536_v40, %v5766_v24 }
 0x1f6   :  { %3755 = vmatpush.bf16.msrb.mxu1 %v5601_v31  ;;  %v5809_v31 = vor.u32 %v6546_v57, %v5806_v27  ;;  %3727 = vmatpush.bf16.msra.mxu3 %v5997_v0  ;;  %v5657_v51 = vor.u32 %v6508_v43, %v5654_v46  ;;  %v5965_v57 = vor.u32 %v6587_v14, %v5964_v55  ;;  %v5646_v27 = vld [vmem:[#allocation7 + $0x108] sm:$0xf0] }
 0x1f7   :  { %v5649_v8 = vor.u32 %v6506_v26, %v5646_v27  ;;  %v6554_v26 = vld [vmem:[#allocation7 + $0x284] sm:$0xf]  ;;  %v5958_v27 = vld [vmem:[#allocation7 + $0x378] sm:$0xf0] }
 0x1f8   :  { %3717 = vmatpush.bf16.msra.mxu2 %v5909_v50  ;;  %3790 = vmatpush.bf16.msra.mxu0 %v5825_v47  ;;  %v6512_v50 = vld [vmem:[#allocation7 + $0x134] sm:$0xf] }
 0x1f9   :  { %v5673_v19 = vor.u32 %v6512_v50, %v5670_v18  ;;  %v6564_v50 = vld [vmem:[#allocation7 + $0x2d4] sm:$0xf] }
 0x1fa   :  { %3756 = vmatpush.bf16.msrb.mxu1 %v5593_v15  ;;  %v6542_v15 = vld [vmem:[#allocation7 + $0x224] sm:$0xf]  ;;  %3728 = vmatpush.bf16.msra.mxu3 %v5989_v17  ;;  %v5750_v17 = vld [vmem:[#allocation7 + $0x1d8] sm:$0xf0]  ;;  %v5881_v18 = vor.u32 %v6564_v50, %v5878_v11  ;;  %v6580_v50 = vld [vmem:[#allocation7 + $0x354] sm:$0xf] }
 0x1fb   :  { %v5793_v28 = vor.u32 %v6542_v15, %v5790_v25  ;;  %v6532_v15 = vld [vmem:[#allocation7 + $0x1d4] sm:$0xf]  ;;  %v5870_v25 = vld [vmem:[#allocation7 + $0x2c8] sm:$0xf0]  ;;  %v5942_v11 = vld [vmem:[#allocation7 + $0x358] sm:$0xf0] }
 0x1fc   :  { %3718 = vmatpush.bf16.msra.mxu2 %v5901_v21  ;;  %3791 = vmatpush.bf16.msra.mxu0 %v5817_v60  ;;  %v6510_v21 = vld [vmem:[#allocation7 + $0x124] sm:$0xf]  ;;  %v5777_v60 = vor.u32 %v6538_v48, %v5774_v49  ;;  %v5846_v48 = vld [vmem:[#allocation7 + $0x298] sm:$0xf0] }
 0x1fd   :  { %v5665_v38 = vor.u32 %v6510_v21, %v5662_v32 }
 0x1fe   :  { %3757 = vmatpush.bf16.msrb.mxu1 %v5585_v16  ;;  %v7039_v3 = vpop.f32.mrf.mxu1  ;;  %3729 = vmatpush.bf16.msra.mxu3 %v5981_v22  ;;  %v6560_v22 = vld [vmem:[#allocation7 + $0x2b4] sm:$0xf] }
 0x200   :  { %3763 = vmatpush.bf16.msrb.mxu2 %v5705_v42  ;;  %3792 = vmatpush.bf16.msra.mxu0 %v5809_v31  ;;  %v6589_v42 = vld [vmem:[#allocation7 + $0x394] sm:$0xf0]  ;;  %v5886_v31 = vld [vmem:[#allocation7 + $0x2e8] sm:$0xf0] }
 0x201   :  { %v5973_v44 = vor.u32 %v6589_v42, %v5972_v41  ;;  %v5889_v9 = vor.u32 %v6566_v1, %v5886_v31  ;;  %v5854_v41 = vld [vmem:[#allocation7 + $0x2a8] sm:$0xf0] }
 0x202   :  { %v2722_v5 = vpop.f32.mrf.mxu2 }
 0x203   :  { %3745 = vmatmul.bf16.vlgmr.msrb.gmra.mxu0 %v6989_v61  ;;  %v2723_v36 = vadd.f32 %v2722_v5, %v2710_v39  ;;  %v5785_v61 = vor.u32 %v6540_v30, %v5782_v35  ;;  %3730 = vmatpush.bf16.msra.mxu3 %v5973_v44  ;;  %v6562_v5 = vld [vmem:[#allocation7 + $0x2c4] sm:$0xf]  ;;  %v1137_v30 = vperm.slane %v7044_v2, 6  ;;  %v5865_v35 = vor.u32 %v6560_v22, %v5862_v23 }
 0x204   :  { %3764 = vmatpush.bf16.msrb.mxu2 %v5697_v29  ;;  %v7047_v10 = vpop.f32.mrf.mxu0  ;;  %3793 = vmatpush.bf16.msra.mxu0 %v5801_v12  ;;  %v5873_v32 = vor.u32 %v6562_v5, %v5870_v25  ;;  %v6558_v39 = vld [vmem:[#allocation7 + $0x2a4] sm:$0xf]  ;;  %v1138_v22 = vperm.slane %v7044_v2, 7 }
 0x205   :  { %v2749_v44 = vadd.f32 %v7032_v63, %v1137_v30 }
 0x206   :  { %v2763_v16 = vpop.f32.mrf.mxu1 }
 0x207   :  { %3731 = vmatpush.bf16.msra.mxu3 %v5965_v57  ;;  %v5745_v16 = vor.u32 %v6530_v54, %v5742_v20  ;;  %v6584_v57 = vld [vmem:[#allocation7 + $0x374] sm:$0xf] }
 0x208   :  { %3765 = vmatpush.bf16.msrb.mxu2 %v5689_v62  ;;  %3794 = vmatpush.bf16.msra.mxu0 %v5793_v28  ;;  %v5897_v62 = vor.u32 %v6568_v56, %v5894_v58  ;;  %v6528_v28 = vld [vmem:[#allocation7 + $0x1b4] sm:$0xf]  ;;  %v5961_v24 = vor.u32 %v6584_v57, %v5958_v27  ;;  %v6590_v27 = vld [vmem:[#allocation7 + $0x3a4] sm:$0xf] }
 0x209   :  { %v6576_v20 = vld [vmem:[#allocation7 + $0x334] sm:$0xf] }
 0x20a   :  { %v2724_v47 = vpop.f32.mrf.mxu2 }
 0x20b   :  { %3776 = vmatpush.bf16.msrb.mxu3 %v5769_v53  ;;  %v5857_v47 = vor.u32 %v6558_v39, %v5854_v41  ;;  %v6582_v53 = vld [vmem:[#allocation7 + $0x364] sm:$0xf]  ;;  %v5910_v39 = vld [vmem:[#allocation7 + $0x318] sm:$0xf0] }
 0x20c   :  { %3766 = vmatpush.bf16.msrb.mxu2 %v5681_v6  ;;  %v2735_v37 = vpop.f32.mrf.mxu3  ;;  %v2802_v29 = vpop.f32.mrf.mxu0  ;;  %3795 = vmatpush.bf16.msra.mxu0 %v5785_v61  ;;  %v5758_v6 = vld [vmem:[#allocation7 + $0x1e8] sm:$0xf0] }
 0x20d   :  { %v2736_v52 = vadd.f32 %v2735_v37, %v2723_v36  ;;  %v5761_v12 = vor.u32 %v6534_v4, %v5758_v6  ;;  %v6526_v36 = vld [vmem:[#allocation7 + $0x1a4] sm:$0xf]  ;;  %v5726_v61 = vld [vmem:[#allocation7 + $0x1a8] sm:$0xf0]  ;;  %v6556_v37 = vld [vmem:[#allocation7 + $0x294] sm:$0xf] }
 0x20e   :  { %v5729_v49 = vor.u32 %v6526_v36, %v5726_v61  ;;  %v5718_v29 = vld [vmem:[#allocation7 + $0x198] sm:$0xf0]  ;;  %v5849_v58 = vor.u32 %v6556_v37, %v5846_v48  ;;  %v5950_v4 = vld [vmem:[#allocation7 + $0x368] sm:$0xf0]  ;;  %v7065_v6 = vld [vmem:[%s7090_s6] sm:$0x3] }
 0x20f   :  { %v2848_v59 = vmax.f32 %v2736_v52, 0.0  ;;  %3777 = vmatpush.bf16.msrb.mxu3 %v5761_v12  ;;  %v6524_v52 = vld [vmem:[#allocation7 + $0x194] sm:$0xf]  ;;  %v2989_v12 = vperm.slane %v7065_v6, 0  ;;  %v6570_v61 = vld [vmem:[#allocation7 + $0x304] sm:$0xf] }
 0x210   :  { %3767 = vmatpush.bf16.msrb.mxu2 %v5673_v19  ;;  %3796 = vmatpush.bf16.msra.mxu0 %v5777_v60  ;;  %v5753_v19 = vor.u32 %v6532_v15, %v5750_v17  ;;  %v5721_v63 = vor.u32 %v6524_v52, %v5718_v29  ;;  %v5945_v15 = vor.u32 %v6580_v50, %v5942_v11  ;;  %v6578_v17 = vld [vmem:[#allocation7 + $0x344] sm:$0xf]  ;;  %v6022_v37 = vld [vmem:[#allocation7 + $0x3f8] sm:$0xf0]  ;;  %v6014_v52 = vld [vmem:[#allocation7 + $0x3e8] sm:$0xf0] }
 0x211   :  { %v7052_v0 = vpack.c.bf16 %v2848_v59, %v2848_v59 }
 0x213   :  { %3706 = vmatmul.bf16.vlgmr.msra.gmra.mxu1 %v7052_v0  ;;  %3797 = vmatmul.bf16.vlgmr.msra.gmra.mxu0 %v7036_v34  ;;  %v5734_v34 = vld [vmem:[#allocation7 + $0x1b8] sm:$0xf0] }
 0x214   :  { %3768 = vmatpush.bf16.msrb.mxu2 %v5665_v38  ;;  %v2737_v7 = vpop.f32.mrf.mxu3  ;;  %3802 = vmatpush.bf16.msra.mxu1 %v5897_v62  ;;  %v5737_v42 = vor.u32 %v6528_v28, %v5734_v34  ;;  %v6522_v62 = vld [vmem:[#allocation7 + $0x184] sm:$0xf]  ;;  %v2801_v34 = vadd.f32 %v7047_v10, %v1138_v22  ;;  %v6608_v22 = vld [vmem:[#allocation8 + $0x30] sm:$0xff] }
 0x215   :  { %3778 = vmatpush.bf16.msrb.mxu3 %v5753_v19  ;;  %v6574_v28 = vld [vmem:[#allocation7 + $0x324] sm:$0xf] }
 0x218   :  { %3769 = vmatpush.bf16.msrb.mxu2 %v5657_v51  ;;  %3803 = vmatpush.bf16.msra.mxu1 %v5889_v9  ;;  %v2762_v51 = vadd.f32 %v7039_v3, %v2749_v44  ;;  %v5953_v9 = vor.u32 %v6582_v53, %v5950_v4  ;;  %v5902_v44 = vld [vmem:[#allocation7 + $0x308] sm:$0xf0]  ;;  %v6586_v4 = vld [vmem:[#allocation7 + $0x384] sm:$0xf] }
 0x219   :  { %3779 = vmatpush.bf16.msrb.mxu3 %v5745_v16  ;;  %v5905_v10 = vor.u32 %v6570_v61, %v5902_v44  ;;  %v6616_v61 = vld [vmem:[#allocation8 + $0x70] sm:$0xff]  ;;  %v6615_v44 = vld [vmem:[#allocation8 + $0x68] sm:$0xff] }
 0x21c   :  { %3770 = vmatpush.bf16.msrb.mxu2 %v5649_v8  ;;  %3804 = vmatpush.bf16.msra.mxu1 %v5881_v18  ;;  %v5710_v8 = vld [vmem:[#allocation7 + $0x188] sm:$0xf0] }
 0x21d   :  { %3780 = vmatpush.bf16.msrb.mxu3 %v5737_v42  ;;  %v5713_v1 = vor.u32 %v6522_v62, %v5710_v8  ;;  %v5934_v18 = vld [vmem:[#allocation7 + $0x348] sm:$0xf0] }
 0x21e   :  { %v7056_v21 = vpop.f32.mrf.mxu1  ;;  %v5937_v19 = vor.u32 %v6578_v17, %v5934_v18  ;;  %v5982_v62 = vld [vmem:[#allocation7 + $0x3a8] sm:$0xf0] }
 0x21f   :  { %v2814_v41 = vadd.f32 %v7056_v21, %v2801_v34  ;;  %v6606_v34 = vld [vmem:[#allocation8 + $0x20] sm:$0xff] }
 0x220   :  { %3805 = vmatpush.bf16.msra.mxu1 %v5873_v32  ;;  %v5926_v32 = vld [vmem:[#allocation7 + $0x338] sm:$0xf0] }
 0x221   :  { %3781 = vmatpush.bf16.msrb.mxu3 %v5729_v49  ;;  %v5929_v23 = vor.u32 %v6576_v20, %v5926_v32  ;;  %v2990_v20 = vperm.slane %v7065_v6, 1  ;;  %v6602_v6 = vld [vmem:[#allocation8] sm:$0xff] }
 0x222   :  { %v2774_v38 = vpop.f32.mrf.mxu2 }
 0x223   :  { %3758 = vmatmul.bf16.vlgmr.msrb.gmra.mxu1 %v7008_v33  ;;  %v2775_v56 = vadd.f32 %v2774_v38, %v2762_v51  ;;  %v5838_v33 = vld [vmem:[#allocation7 + $0x288] sm:$0xf0]  ;;  %v6572_v38 = vld [vmem:[#allocation7 + $0x314] sm:$0xf]  ;;  %v6598_v51 = vld [vmem:[#allocation7 + $0x3e4] sm:$0xf] }
 0x224   :  { %v3642_v43 = vpop.f32.mrf.mxu0  ;;  %3806 = vmatpush.bf16.msra.mxu1 %v5865_v35  ;;  %v5841_v3 = vor.u32 %v6554_v26, %v5838_v33  ;;  %v6017_v29 = vor.u32 %v6598_v51, %v6014_v52  ;;  %v5998_v26 = vld [vmem:[#allocation7 + $0x3c8] sm:$0xf0] }
 0x225   :  { %3782 = vmatpush.bf16.msrb.mxu3 %v5721_v63  ;;  %v3643_v5 = vadd.f32 %v3642_v43, %v2989_v12  ;;  %v5913_v43 = vor.u32 %v6572_v38, %v5910_v39  ;;  %v6592_v63 = vld [vmem:[#allocation7 + $0x3b4] sm:$0xf]  ;;  %v6603_v39 = vld [vmem:[#allocation8 + $0x8] sm:$0xff] }
 0x226   :  { %v2815_v46 = vpop.f32.mrf.mxu1  ;;  %v6604_v38 = vld [vmem:[#allocation8 + $0x10] sm:$0xff]  ;;  %v6611_v51 = vld [vmem:[#allocation8 + $0x48] sm:$0xff] }
 0x228   :  { %3807 = vmatpush.bf16.msra.mxu1 %v5857_v47  ;;  %v6600_v47 = vld [vmem:[#allocation7 + $0x3f4] sm:$0xf] }
 0x229   :  { %3783 = vmatpush.bf16.msrb.mxu3 %v5713_v1  ;;  %v6025_v48 = vor.u32 %v6600_v47, %v6022_v37  ;;  %v6614_v47 = vld [vmem:[#allocation8 + $0x60] sm:$0xff]  ;;  %v6613_v37 = vld [vmem:[#allocation8 + $0x58] sm:$0xff] }
 0x22a   :  { %v2776_v55 = vpop.f32.mrf.mxu2 }
 0x22c   :  { %v2787_v14 = vpop.f32.mrf.mxu3  ;;  %v3644_v60 = vpop.f32.mrf.mxu0  ;;  %3808 = vmatpush.bf16.msra.mxu1 %v5849_v58  ;;  %v6006_v58 = vld [vmem:[#allocation7 + $0x3d8] sm:$0xf0] }
 0x22d   :  { %v2788_v59 = vadd.f32 %v2787_v14, %v2775_v56  ;;  %v6596_v56 = vld [vmem:[#allocation7 + $0x3d4] sm:$0xf]  ;;  %v6594_v14 = vld [vmem:[#allocation7 + $0x3c4] sm:$0xf] }
 0x22e   :  { %v6009_v55 = vor.u32 %v6596_v56, %v6006_v58  ;;  %v6001_v33 = vor.u32 %v6594_v14, %v5998_v26  ;;  %v6610_v58 = vld [vmem:[#allocation8 + $0x40] sm:$0xff] }
 0x22f   :  { %v2849_v40 = vmax.f32 %v2788_v59, 0.0  ;;  %v5990_v59 = vld [vmem:[#allocation7 + $0x3b8] sm:$0xf0] }
 0x230   :  { %3809 = vmatpush.bf16.msra.mxu1 %v5841_v3  ;;  %v5993_v60 = vor.u32 %v6592_v63, %v5990_v59  ;;  %v6588_v3 = vld [vmem:[#allocation7 + $0x394] sm:$0xf] }
 0x231   :  { %v2986_v31 = vpack.c.bf16 %v2849_v40, %v2849_v40  ;;  %v5985_v40 = vor.u32 %v6590_v27, %v5982_v62 }
 0x233   :  { %3719 = vmatmul.bf16.vlgmr.msra.gmra.mxu2 %v2986_v31  ;;  %3810 = vmatmul.bf16.vlgmr.msra.gmra.mxu1 %v7052_v0  ;;  %v5918_v0 = vld [vmem:[#allocation7 + $0x328] sm:$0xf0] }
 0x234   :  { %v2789_v7 = vpop.f32.mrf.mxu3  ;;  %3815 = vmatpush.bf16.msra.mxu2 %v5961_v24  ;;  %v5921_v35 = vor.u32 %v6574_v28, %v5918_v0  ;;  %v5974_v24 = vld [vmem:[#allocation7 + $0x398] sm:$0xf0] }
 0x235   :  { %v5977_v1 = vor.u32 %v6588_v3, %v5974_v24  ;;  %v5966_v7 = vld [vmem:[#allocation7 + $0x388] sm:$0xf0] }
 0x236   :  { %v5969_v50 = vor.u32 %v6586_v4, %v5966_v7  ;;  %v6623_v4 = vld [vmem:[#allocation10 + $0x28] sm:$0xff]  ;;  %v6622_v7 = vld [vmem:[#allocation10 + $0x20] sm:$0xff] }
 0x238   :  { %3816 = vmatpush.bf16.msra.mxu2 %v5953_v9 }
 0x23c   :  { %3817 = vmatpush.bf16.msra.mxu2 %v5945_v15 }
 0x23e   :  { %v3655_v25 = vpop.f32.mrf.mxu1 }
 0x23f   :  { %v3656_v54 = vadd.f32 %v3655_v25, %v3643_v5 }
 0x240   :  { %3818 = vmatpush.bf16.msra.mxu2 %v5937_v19  ;;  %v6609_v19 = vld [vmem:[#allocation8 + $0x38] sm:$0xff] }
 0x241   :  { %3977 = vmatpush.bf16.msrb.mxu0 %v6609_v19 }
 0x242   :  { %v2826_v16 = vpop.f32.mrf.mxu2 }
 0x243   :  { %3771 = vmatmul.bf16.vlgmr.msrb.gmra.mxu2 %v7023_v13  ;;  %v2827_v42 = vadd.f32 %v2826_v16, %v2814_v41 }
 0x244   :  { %3819 = vmatpush.bf16.msra.mxu2 %v5929_v23  ;;  %v6607_v23 = vld [vmem:[#allocation8 + $0x28] sm:$0xff] }
 0x245   :  { %3978 = vmatpush.bf16.msrb.mxu0 %v6608_v22 }
 0x246   :  { %v3657_v30 = vpop.f32.mrf.mxu1 }
 0x247   :  { %v6605_v30 = vld [vmem:[#allocation8 + $0x18] sm:$0xff] }
 0x248   :  { %3820 = vmatpush.bf16.msra.mxu2 %v5921_v35 }
 0x249   :  { %3979 = vmatpush.bf16.msrb.mxu0 %v6607_v23 }
 0x24a   :  { %v2828_v2 = vpop.f32.mrf.mxu2 }
 0x24c   :  { %v2839_v36 = vpop.f32.mrf.mxu3  ;;  %3821 = vmatpush.bf16.msra.mxu2 %v5913_v43  ;;  %v6617_v43 = vld [vmem:[#allocation8 + $0x78] sm:$0xff] }
 0x24d   :  { %v2840_v46 = vadd.f32 %v2839_v36, %v2827_v42  ;;  %3980 = vmatpush.bf16.msrb.mxu0 %v6606_v34  ;;  %3990 = vmatpush.bf16.msrb.mxu1 %v6617_v43 }
 0x24f   :  { %v2850_v13 = vmax.f32 %v2840_v46, 0.0 }
 0x250   :  { %3822 = vmatpush.bf16.msra.mxu2 %v5905_v10 }
 0x251   :  { %v2987_v49 = vpack.c.bf16 %v2850_v13, %v2850_v13  ;;  %3981 = vmatpush.bf16.msrb.mxu0 %v6605_v30  ;;  %3991 = vmatpush.bf16.msrb.mxu1 %v6616_v61  ;;  %v6612_v13 = vld [vmem:[#allocation8 + $0x50] sm:$0xff] }
 0x253   :  { %3732 = vmatmul.bf16.vlgmr.msra.gmra.mxu3 %v2987_v49  ;;  %3823 = vmatmul.bf16.vlgmr.msra.gmra.mxu2 %v2986_v31 }
 0x254   :  { %v2841_v21 = vpop.f32.mrf.mxu3  ;;  %3828 = vmatpush.bf16.msra.mxu3 %v6025_v48 }
 0x255   :  { %3982 = vmatpush.bf16.msrb.mxu0 %v6604_v38  ;;  %3992 = vmatpush.bf16.msrb.mxu1 %v6615_v44 }
 0x258   :  { %3829 = vmatpush.bf16.msra.mxu3 %v6017_v29 }
 0x259   :  { %3983 = vmatpush.bf16.msrb.mxu0 %v6603_v39  ;;  %3993 = vmatpush.bf16.msrb.mxu1 %v6614_v47 }
 0x25c   :  { %3830 = vmatpush.bf16.msra.mxu3 %v6009_v55 }
 0x25d   :  { %3984 = vmatpush.bf16.msrb.mxu0 %v6602_v6  ;;  %3994 = vmatpush.bf16.msrb.mxu1 %v6613_v37 }
 0x260   :  { %3831 = vmatpush.bf16.msra.mxu3 %v6001_v33 }
 0x261   :  { %3995 = vmatpush.bf16.msrb.mxu1 %v6612_v13 }
 0x262   :  { %v3668_v57 = vpop.f32.mrf.mxu2 }
 0x263   :  { %v3669_v8 = vadd.f32 %v3668_v57, %v3656_v54  ;;  %3784 = vmatmul.bf16.vlgmr.msrb.gmra.mxu3 %v7026_v45 }
 0x264   :  { %3832 = vmatpush.bf16.msra.mxu3 %v5993_v60 }
 0x265   :  { %3996 = vmatpush.bf16.msrb.mxu1 %v6611_v51 }
 0x268   :  { %3833 = vmatpush.bf16.msra.mxu3 %v5985_v40 }
 0x269   :  { %3997 = vmatpush.bf16.msrb.mxu1 %v6610_v58 }
 0x26a   :  { %v3670_v31 = vpop.f32.mrf.mxu2 }
 0x26b   :  { %v6625_v31 = vld [vmem:[#allocation10 + $0x38] sm:$0xff] }
 0x26c   :  { %v3681_v53 = vpop.f32.mrf.mxu3  ;;  %3834 = vmatpush.bf16.msra.mxu3 %v5977_v1  ;;  %4073 = vmatpush.bf16.msrb.mxu2 %v6625_v31 }
 0x26d   :  { %v3682_v9 = vadd.f32 %v3681_v53, %v3669_v8  ;;  %v6624_v53 = vld [vmem:[#allocation10 + $0x30] sm:$0xff] }
 0x270   :  { %3835 = vmatpush.bf16.msra.mxu3 %v5969_v50  ;;  %v3694_v12 = vpop.f32.mrf.mxu0  ;;  %4074 = vmatpush.bf16.msrb.mxu2 %v6624_v53  ;;  %v6620_v50 = vld [vmem:[#allocation10 + $0x10] sm:$0xff] }
 0x271   :  { %v3695_v15 = vadd.f32 %v3694_v12, %v3682_v9  ;;  %v6621_v9 = vld [vmem:[#allocation10 + $0x18] sm:$0xff] }
 0x273   :  { %3836 = vmatmul.bf16.vlgmr.msra.gmra.mxu3 %v2987_v49 }
 0x274   :  { %v3683_v11 = vpop.f32.mrf.mxu3  ;;  %4075 = vmatpush.bf16.msrb.mxu2 %v6623_v4 }
 0x275   :  { %v6619_v11 = vld [vmem:[#allocation10 + $0x8] sm:$0xff] }
 0x278   :  { %v3696_v17 = vpop.f32.mrf.mxu0  ;;  %4076 = vmatpush.bf16.msrb.mxu2 %v6622_v7 }
 0x27c   :  { %4077 = vmatpush.bf16.msrb.mxu2 %v6621_v9 }
 0x280   :  { %v3746_v45 = vpop.f32.mrf.mxu0  ;;  %4078 = vmatpush.bf16.msrb.mxu2 %v6620_v50 }
 0x281   :  { %v3747_v16 = vadd.f32 %v3746_v45, %v2990_v20  ;;  %v6640_v45 = vld [vmem:[%s7092_s8] ss:$0 sm:$0xff] }
 0x284   :  { %4079 = vmatpush.bf16.msrb.mxu2 %v6619_v11 }
 0x288   :  { %v3748_v18 = vpop.f32.mrf.mxu0 }
 0x290   :  { %v3707_v5 = vpop.f32.mrf.mxu1  ;;  %v3798_v25 = vpop.f32.mrf.mxu0 }
 0x291   :  { %v3708_v48 = vadd.f32 %v3707_v5, %v3695_v15  ;;  %v6618_v15 = vld [vmem:[#allocation10] sm:$0xff] }
 0x292   :  { %4080 = vmatpush.bf16.msrb.mxu2 %v6618_v15 }
 0x298   :  { %v3709_v54 = vpop.f32.mrf.mxu1  ;;  %v3800_v32 = vpop.f32.mrf.mxu0 }
 0x299   :  { %v6641_v32 = vld [vmem:[%s7094_s10] ss:$0 sm:$0xff] }
 0x2a0   :  { %v3759_v28 = vpop.f32.mrf.mxu1 }
 0x2a1   :  { %v3760_v0 = vadd.f32 %v3759_v28, %v3747_v16 }
 0x2a8   :  { %v3761_v35 = vpop.f32.mrf.mxu1 }
 0x2b0   :  { %v3811_v41 = vpop.f32.mrf.mxu1 }
 0x2b6   :  { %v3720_v42 = vpop.f32.mrf.mxu2 }
 0x2b7   :  { %v3721_v49 = vadd.f32 %v3720_v42, %v3708_v48 }
 0x2b8   :  { %v3813_v2 = vpop.f32.mrf.mxu1 }
 0x2be   :  { %v3722_v36 = vpop.f32.mrf.mxu2 }
 0x2c6   :  { %v3772_v46 = vpop.f32.mrf.mxu2 }
 0x2c7   :  { %v3773_v63 = vadd.f32 %v3772_v46, %v3760_v0 }
 0x2ce   :  { %v3774_v10 = vpop.f32.mrf.mxu2 }
 0x2d6   :  { %v3733_v52 = vpop.f32.mrf.mxu3  ;;  %v3824_v56 = vpop.f32.mrf.mxu2 }
 0x2d7   :  { %v3734_v21 = vadd.f32 %v3733_v52, %v3721_v49 }
 0x2d9   :  { %v3841_v29 = vmax.f32 %v3734_v21, 0.0 }
 0x2db   :  { %v3876_v55 = vpack.c.bf16 %v3841_v29, %v3841_v29 }
 0x2dd   :  { %3985 = vmatmul.bf16.vlgmr.msrb.gmra.mxu0 %v3876_v55 }
 0x2de   :  { %v3735_v14 = vpop.f32.mrf.mxu3  ;;  %v3826_v26 = vpop.f32.mrf.mxu2 }
 0x2e6   :  { %v3785_v33 = vpop.f32.mrf.mxu3 }
 0x2e7   :  { %v3786_v59 = vadd.f32 %v3785_v33, %v3773_v63 }
 0x2e9   :  { %v3799_v60 = vadd.f32 %v3798_v25, %v3786_v59 }
 0x2eb   :  { %v3812_v27 = vadd.f32 %v3811_v41, %v3799_v60 }
 0x2ed   :  { %v3825_v62 = vadd.f32 %v3824_v56, %v3812_v27 }
 0x2ee   :  { %v3787_v57 = vpop.f32.mrf.mxu3 }
 0x2f6   :  { %v3837_v8 = vpop.f32.mrf.mxu3 }
 0x2f7   :  { %v3838_v40 = vadd.f32 %v3837_v8, %v3825_v62 }
 0x2f9   :  { %v3842_v3 = vmax.f32 %v3838_v40, 0.0 }
 0x2fb   :  { %v3877_v24 = vpack.c.bf16 %v3842_v3, %v3842_v3 }
 0x2fd   :  { %3998 = vmatmul.bf16.vlgmr.msrb.gmra.mxu1 %v3877_v24 }
 0x2fe   :  { %v3839_v1 = vpop.f32.mrf.mxu3 }
 0x35a   :  { %v3986_v12 = vpop.f32.mrf.mxu0 }
 0x35b   :  { %v3987_v18 = vadd.f32 %v6640_v45, %v3986_v12 }
 0x362   :  { %v3988_v17 = vpop.f32.mrf.mxu0 }
 0x37a   :  { %v3999_v5 = vpop.f32.mrf.mxu1 }
 0x37b   :  { %v4000_v25 = vadd.f32 %v3999_v5, %v3987_v18 }
 0x37d   :  { %v4003_v19 = vmax.f32 %v4000_v25, 0.0 }
 0x37f   :  { %v4021_v54 = vpack.c.bf16 %v4003_v19, %v4003_v19 }
 0x381   :  { %4081 = vmatmul.bf16.vlgmr.msrb.gmra.mxu2 %v4021_v54 }
 0x382   :  { %v4001_v20 = vpop.f32.mrf.mxu1 }
 0x404   :  { %v4082_v22 = vpop.f32.mrf.mxu2 }
 0x405   :  { %v4083_v23 = vadd.f32 %v6641_v32, %v4082_v22 }
 0x407   :  { %4086 = vst [vmem:[#allocation11] sm:$0xff] %v4083_v23 }
 0x408   :  { %4097 = dma.vmem_to_hbm [thread:$0]  %s4093_s20, 128, %s4095_s23, [#allocation4]  }
 0x40c   :  { %v4084_v16 = vpop.f32.mrf.mxu2 }
 0x40d   :  { %6793 = dma.done.wait [#allocation4], 128  }
 0x40e   :  { %6794 = vsyncadd [#allocation4], 4294967168 }
 0x40f   :  { %4102 = vsyncpa [#allocation3], 1 }
 0x410   :  { %4103 = vsyncpa [#allocation6], 1 }
 0x411   :  { %4104 = vsyncpa [#allocation9], 1 }
 0x412   :  { %4105 = vsyncpa [#allocation4], 1 }

</bundles_post_ra>
